<compile_context>
chip_gen: v7x
topology: tpu7x:2x2x1
jax: 0.10.0
libtpu: 0.0.40
codegen_flags: <defaults>
</compile_context>

<pallas_src>
import jax
import jax.numpy as jnp
from jax import lax
from jax.experimental import pallas as pl
from jax.experimental.pallas import tpu as pltpu


# ---------------------------------------------------------------------------
# Fused kernel: MaxPool2d(2) + CARB(64) for NB batch images (NHWC-ish layout)
# ---------------------------------------------------------------------------
def _down_kernel(x_ref, w1_ref, b1_ref, w2_ref, b2_ref, alpha_ref,
                 o_ref, pad_ref, slab_ref, res_ref):
    NB, H, Wp, C2 = x_ref.shape          # x block is (NB, H, W/2, 2*C)
    C = C2 // 2
    Hp = H // 2
    HWp = Hp * Wp
    M = NB * HWp

    # Zero-padded conv-input buffer (bf16).  Full fill is ~tens of vst; the
    # interior is overwritten below, the border must be zero for pad=1 convs.
    pad_ref[...] = jnp.zeros_like(pad_ref)

    # ---------------- MaxPool2d(2): pure value computation ----------------
    for b in range(NB):
        xb = x_ref[b]                                   # (H, Wp, 2C) f32
        xw = jnp.maximum(xb[:, :, :C], xb[:, :, C:])    # W-pool -> (H, Wp, C)
        x4 = xw.reshape(Hp, 2, Wp, C)                   # free leading-dim relabel
        p = jnp.maximum(x4[:, 0], x4[:, 1])             # H-pool -> (Hp, Wp, C)
        res_ref[b] = p                                  # residual kept in f32
        pad_ref[b, 1:Hp + 1, 1:Wp + 1, :] = p.astype(pad_ref.dtype)

    def conv3x3(w_ref, b_ref):
        # Pack the 9 shifted taps into one (M, 9C) bf16 slab -> a single MXU
        # matmul with K = 9*C (f32 accumulation); bias added in f32.
        for b in range(NB):
            for dy in range(3):
                for dx in range(3):
                    t = dy * 3 + dx
                    slab_ref[b, :, :, t * C:(t + 1) * C] = (
                        pad_ref[b, dy:dy + Hp, dx:dx + Wp, :])
        lhs = slab_ref[...].reshape(M, 9 * C)
        return jnp.dot(lhs, w_ref[...],
                       preferred_element_type=jnp.float32) + b_ref[...]

    alpha = alpha_ref[0]                                # shared PReLU parameter

    # conv1 -> bias -> PReLU (f32 epilogue)
    h = conv3x3(w1_ref, b1_ref)
    h = jnp.where(h > 0, h, alpha * h)

    # conv2 input: overwrite the interior of the padded buffer (border stays 0)
    pad_ref[:, 1:Hp + 1, 1:Wp + 1, :] = (
        h.reshape(NB, Hp, Wp, C).astype(pad_ref.dtype))

    # conv2 -> bias -> residual add
    y = conv3x3(w2_ref, b2_ref) + res_ref[...].reshape(M, C)
    o_ref[...] = y.astype(o_ref.dtype)


# ---------------------------------------------------------------------------
# Wrapper
# ---------------------------------------------------------------------------
def _pick_nb(n):
    for nb in (4, 2, 1):                 # M = nb*Hp*Wp: 256 / 128 / 64 at 16x16
        if n % nb == 0:
            return nb
    return 1


def down_forward_fn(x_nchw, prep):
    N, C, H, W = x_nchw.shape
    assert H % 2 == 0 and W % 2 == 0, "MaxPool2d(2) path assumes even H, W"
    Hp, Wp = H // 2, W // 2
    HWp = Hp * Wp
    NB = _pick_nb(N)

    # NCHW -> NHWC, then a free row-major relabel (N,H,W,C) -> (N,H,W/2,2C) so
    # the in-kernel W-pool is a lane-slice max and the input load is lane-dense.
    x = jnp.transpose(x_nchw, (0, 2, 3, 1)).reshape(N, H, Wp, 2 * C)

    flops = 2 * (2 * 9 * N * HWp * C * C)           # two convs, 2 flops / MAC
    bytes_accessed = (N * H * W * C * 4 + N * HWp * C * 4
                      + 2 * 9 * C * C * 2 + 2 * C * 4)

    out = pl.pallas_call(
        _down_kernel,
        grid=(N // NB,),
        in_specs=[
            pl.BlockSpec((NB, H, Wp, 2 * C), lambda n: (n, 0, 0, 0)),  # x block
            pl.BlockSpec((9 * C, C), lambda n: (0, 0)),                # w1 (resident)
            pl.BlockSpec((1, C), lambda n: (0, 0)),                    # b1
            pl.BlockSpec((9 * C, C), lambda n: (0, 0)),                # w2 (resident)
            pl.BlockSpec((1, C), lambda n: (0, 0)),                    # b2
            pl.BlockSpec(memory_space=pltpu.MemorySpace.SMEM),         # PReLU alpha
        ],
        out_specs=pl.BlockSpec((NB * HWp, C), lambda n: (n, 0)),
        out_shape=jax.ShapeDtypeStruct((N * HWp, C), jnp.float32),
        scratch_shapes=[
            pltpu.VMEM((NB, Hp + 2, Wp + 2, C), jnp.bfloat16),   # zero-padded conv input
            pltpu.VMEM((NB, Hp, Wp, 9 * C), jnp.bfloat16),       # packed-K tap slab
            pltpu.VMEM((NB, Hp, Wp, C), jnp.float32),            # pooled image (residual)
        ],
        compiler_params=pltpu.CompilerParams(
            dimension_semantics=("parallel",),          # batch-block axis across TCs (v7x)
            vmem_limit_bytes=32 * 1024 * 1024),
        cost_estimate=pl.CostEstimate(flops=flops, transcendentals=0,
                                      bytes_accessed=bytes_accessed),
    )(x, prep["w1"], prep["b1"], prep["w2"], prep["b2"], prep["alpha"])

    out = out.reshape(N, Hp, Wp, C)
    return jnp.transpose(out, (0, 3, 1, 2))             # NHWC -> NCHW (interface only)


down_forward = jax.jit(down_forward_fn)


# ---------------------------------------------------------------------------
# Parameters (PyTorch-style) + one-time (hoisted) kernel-layout preparation
# ---------------------------------------------------------------------------
def init_params(key, channels=64):
    ks = jax.random.split(key, 4)
    fan_in = channels * 9
    bound = fan_in ** -0.5

    def conv_w(k):
        return jax.random.uniform(k, (channels, channels, 3, 3), jnp.float32,
                                  -bound, bound)

    def conv_b(k):
        return jax.random.uniform(k, (channels,), jnp.float32, -bound, bound)

    return {
        "conv1_w": conv_w(ks[0]), "conv1_b": conv_b(ks[1]),
        "conv2_w": conv_w(ks[2]), "conv2_b": conv_b(ks[3]),
        "prelu_alpha": jnp.array([0.25], jnp.float32),   # nn.PReLU() default
    }


def prepare_params(params):
    """Once, outside the forward: (Cout,Cin,3,3) -> packed-K (9*Cin, Cout) bf16."""
    def wmat(w):
        co, ci = w.shape[0], w.shape[1]
        return (jnp.transpose(w, (2, 3, 1, 0))           # (kh, kw, cin, cout)
                .reshape(9 * ci, co).astype(jnp.bfloat16))
    return {
        "w1": wmat(params["conv1_w"]),
        "b1": params["conv1_b"].reshape(1, -1).astype(jnp.float32),
        "w2": wmat(params["conv2_w"]),
        "b2": params["conv2_b"].reshape(1, -1).astype(jnp.float32),
        "alpha": params["prelu_alpha"].astype(jnp.float32),
    }


# ---------------------------------------------------------------------------
# Pure-JAX reference (same bf16 weights AND same one-time bf16 rounding of the
# conv inputs) so only MXU accumulation order differs -> tight tolerance.
# ---------------------------------------------------------------------------
def ref_forward(x_nchw, prep):
    C = x_nchw.shape[1]
    p = lax.reduce_window(x_nchw, -jnp.inf, lax.max,
                          (1, 1, 2, 2), (1, 1, 2, 2), "VALID")

    def conv(z, w_packed, b):
        w = w_packed.astype(jnp.float32).reshape(3, 3, C, C)   # (kh, kw, ci, co)
        w = jnp.transpose(w, (3, 2, 0, 1))                     # OIHW
        zr = z.astype(jnp.bfloat16).astype(jnp.float32)        # same rounding as kernel
        y = lax.conv_general_dilated(zr, w, (1, 1), ((1, 1), (1, 1)),
                                     dimension_numbers=("NCHW", "OIHW", "NCHW"),
                                     precision=lax.Precision.HIGHEST)
        return y + b.reshape(1, -1, 1, 1)

    h = conv(p, prep["w1"], prep["b1"])
    a = prep["alpha"][0]
    h = jnp.where(h > 0, h, a * h)
    return conv(h, prep["w2"], prep["b2"]) + p


if __name__ == "__main__":
    key = jax.random.PRNGKey(0)
    pkey, xkey = jax.random.split(key)

    C = 64                      # Down wraps CARB(64): input must be 64-channel
    params = init_params(pkey, C)
    prep = prepare_params(params)                       # hoisted weight prep (once)

    x = jax.random.normal(xkey, (2, C, 16, 16), jnp.float32)   # NCHW

    out = down_forward(x, prep)
    jax.block_until_ready(out)
    assert out.shape == (2, C, 8, 8), out.shape
    assert bool(jnp.all(jnp.isfinite(out)))

    # Correctness: reference mirrors the kernel's bf16 weight/activation
    # rounding, so only f32 accumulation order differs (tolerance tightened
    # from the previous 5e-2 relative).
    ref = jax.jit(ref_forward)(x, prep)
    err = float(jnp.max(jnp.abs(out - ref)))
    scale = float(jnp.max(jnp.abs(ref))) + 1e-6
    assert err <= 5e-3 * scale + 1e-3, ("mismatch vs reference", err, scale)

    print("KERNEL_OK")
</pallas_src>

<mosaic_0001>
module attributes {stable_mosaic.version = 11 : i64} {
  func.func @_down_kernel(%arg0: i32, %arg1: memref<2x16x8x128xf32, #tpu.memory_space<vmem>>, %arg2: memref<576x64xbf16, #tpu.memory_space<vmem>>, %arg3: memref<1x64xf32, #tpu.memory_space<vmem>>, %arg4: memref<576x64xbf16, #tpu.memory_space<vmem>>, %arg5: memref<1x64xf32, #tpu.memory_space<vmem>>, %arg6: memref<1xf32, #tpu.memory_space<smem>>, %arg7: memref<128x64xf32, #tpu.memory_space<vmem>>, %arg8: memref<2x10x10x64xbf16, #tpu.memory_space<vmem>>, %arg9: memref<2x8x8x576xbf16, #tpu.memory_space<vmem>>, %arg10: memref<2x8x8x64xf32, #tpu.memory_space<vmem>>) attributes {dimension_semantics = [#tpu.dimension_semantics<parallel>], iteration_bounds = array<i64: 1>, scalar_prefetch = 0 : i64, scratch_operands = 3 : i64, tpu.core_type = #tpu.core_type<tc>, window_params = [{transform_indices = @transform_0, window_bounds = array<i64: 2, 16, 8, 128>}, {pipeline_mode = #tpu.pipeline_mode<synchronous>, transform_indices = @transform_1, window_bounds = array<i64: 576, 64>}, {pipeline_mode = #tpu.pipeline_mode<synchronous>, transform_indices = @transform_2, window_bounds = array<i64: 1, 64>}, {pipeline_mode = #tpu.pipeline_mode<synchronous>, transform_indices = @transform_3, window_bounds = array<i64: 576, 64>}, {pipeline_mode = #tpu.pipeline_mode<synchronous>, transform_indices = @transform_4, window_bounds = array<i64: 1, 64>}, {transform_indices = @transform_5, window_bounds = array<i64: 1>}, {transform_indices = @transform_6, window_bounds = array<i64: 128, 64>}]} {
    %cst = arith.constant 0.000000e+00 : bf16
    %0 = vector.broadcast %cst : bf16 to vector<2x10x10x64xbf16>
    %c0 = arith.constant 0 : index
    %c0_0 = arith.constant 0 : index
    %c0_1 = arith.constant 0 : index
    %c0_2 = arith.constant 0 : index
    %1 = vector.load %arg8[%c0, %c0_0, %c0_1, %c0_2] : memref<2x10x10x64xbf16, #tpu.memory_space<vmem>>, vector<2x10x10x64xbf16>
    tpu.vector_store %arg8[%c0, %c0_0, %c0_1, %c0_2], %0 {strides = array<i32>} : memref<2x10x10x64xbf16, #tpu.memory_space<vmem>>, vector<2x10x10x64xbf16>,
    %c0_3 = arith.constant 0 : index
    %c0_4 = arith.constant 0 : index
    %c0_5 = arith.constant 0 : index
    %c0_6 = arith.constant 0 : index
    %2 = vector.load %arg1[%c0_3, %c0_4, %c0_5, %c0_6] : memref<2x16x8x128xf32, #tpu.memory_space<vmem>>, vector<1x16x8x128xf32>
    %3 = vector.shape_cast %2 : vector<1x16x8x128xf32> to vector<16x8x128xf32>
    %4 = vector.extract_strided_slice %3 {offsets = [0, 0, 0], sizes = [16, 8, 64], strides = [1, 1, 1]} : vector<16x8x128xf32> to vector<16x8x64xf32>
    %5 = vector.extract_strided_slice %3 {offsets = [0, 0, 64], sizes = [16, 8, 64], strides = [1, 1, 1]} : vector<16x8x128xf32> to vector<16x8x64xf32>
    %6 = arith.maximumf %4, %5 : vector<16x8x64xf32>
    %7 = vector.shape_cast %6 : vector<16x8x64xf32> to vector<8x2x8x64xf32>
    %8 = vector.extract_strided_slice %7 {offsets = [0, 0, 0, 0], sizes = [8, 1, 8, 64], strides = [1, 1, 1, 1]} : vector<8x2x8x64xf32> to vector<8x1x8x64xf32>
    %9 = vector.shape_cast %8 : vector<8x1x8x64xf32> to vector<8x8x64xf32>
    %10 = vector.extract_strided_slice %7 {offsets = [0, 1, 0, 0], sizes = [8, 1, 8, 64], strides = [1, 1, 1, 1]} : vector<8x2x8x64xf32> to vector<8x1x8x64xf32>
    %11 = vector.shape_cast %10 : vector<8x1x8x64xf32> to vector<8x8x64xf32>
    %12 = arith.maximumf %9, %11 : vector<8x8x64xf32>
    %c0_7 = arith.constant 0 : index
    %c0_8 = arith.constant 0 : index
    %c0_9 = arith.constant 0 : index
    %c0_10 = arith.constant 0 : index
    %13 = vector.load %arg10[%c0_7, %c0_8, %c0_9, %c0_10] : memref<2x8x8x64xf32, #tpu.memory_space<vmem>>, vector<1x8x8x64xf32>
    %14 = vector.shape_cast %13 : vector<1x8x8x64xf32> to vector<8x8x64xf32>
    %15 = vector.shape_cast %12 : vector<8x8x64xf32> to vector<1x8x8x64xf32>
    tpu.vector_store %arg10[%c0_7, %c0_8, %c0_9, %c0_10], %15 {strides = array<i32>} : memref<2x8x8x64xf32, #tpu.memory_space<vmem>>, vector<1x8x8x64xf32>,
    %16 = arith.truncf %12 : vector<8x8x64xf32> to vector<8x8x64xbf16>
    %c0_11 = arith.constant 0 : index
    %c1 = arith.constant 1 : index
    %c1_12 = arith.constant 1 : index
    %c0_13 = arith.constant 0 : index
    %17 = vector.load %arg8[%c0_11, %c1, %c1_12, %c0_13] : memref<2x10x10x64xbf16, #tpu.memory_space<vmem>>, vector<1x8x8x64xbf16>
    %18 = vector.shape_cast %17 : vector<1x8x8x64xbf16> to vector<8x8x64xbf16>
    %19 = vector.shape_cast %16 : vector<8x8x64xbf16> to vector<1x8x8x64xbf16>
    tpu.vector_store %arg8[%c0_11, %c1, %c1_12, %c0_13], %19 {strides = array<i32>} : memref<2x10x10x64xbf16, #tpu.memory_space<vmem>>, vector<1x8x8x64xbf16>,
    %c1_14 = arith.constant 1 : index
    %c0_15 = arith.constant 0 : index
    %c0_16 = arith.constant 0 : index
    %c0_17 = arith.constant 0 : index
    %20 = vector.load %arg1[%c1_14, %c0_15, %c0_16, %c0_17] : memref<2x16x8x128xf32, #tpu.memory_space<vmem>>, vector<1x16x8x128xf32>
    %21 = vector.shape_cast %20 : vector<1x16x8x128xf32> to vector<16x8x128xf32>
    %22 = vector.extract_strided_slice %21 {offsets = [0, 0, 0], sizes = [16, 8, 64], strides = [1, 1, 1]} : vector<16x8x128xf32> to vector<16x8x64xf32>
    %23 = vector.extract_strided_slice %21 {offsets = [0, 0, 64], sizes = [16, 8, 64], strides = [1, 1, 1]} : vector<16x8x128xf32> to vector<16x8x64xf32>
    %24 = arith.maximumf %22, %23 : vector<16x8x64xf32>
    %25 = vector.shape_cast %24 : vector<16x8x64xf32> to vector<8x2x8x64xf32>
    %26 = vector.extract_strided_slice %25 {offsets = [0, 0, 0, 0], sizes = [8, 1, 8, 64], strides = [1, 1, 1, 1]} : vector<8x2x8x64xf32> to vector<8x1x8x64xf32>
    %27 = vector.shape_cast %26 : vector<8x1x8x64xf32> to vector<8x8x64xf32>
    %28 = vector.extract_strided_slice %25 {offsets = [0, 1, 0, 0], sizes = [8, 1, 8, 64], strides = [1, 1, 1, 1]} : vector<8x2x8x64xf32> to vector<8x1x8x64xf32>
    %29 = vector.shape_cast %28 : vector<8x1x8x64xf32> to vector<8x8x64xf32>
    %30 = arith.maximumf %27, %29 : vector<8x8x64xf32>
    %c1_18 = arith.constant 1 : index
    %c0_19 = arith.constant 0 : index
    %c0_20 = arith.constant 0 : index
    %c0_21 = arith.constant 0 : index
    %31 = vector.load %arg10[%c1_18, %c0_19, %c0_20, %c0_21] : memref<2x8x8x64xf32, #tpu.memory_space<vmem>>, vector<1x8x8x64xf32>
    %32 = vector.shape_cast %31 : vector<1x8x8x64xf32> to vector<8x8x64xf32>
    %33 = vector.shape_cast %30 : vector<8x8x64xf32> to vector<1x8x8x64xf32>
    tpu.vector_store %arg10[%c1_18, %c0_19, %c0_20, %c0_21], %33 {strides = array<i32>} : memref<2x8x8x64xf32, #tpu.memory_space<vmem>>, vector<1x8x8x64xf32>,
    %34 = arith.truncf %30 : vector<8x8x64xf32> to vector<8x8x64xbf16>
    %c1_22 = arith.constant 1 : index
    %c1_23 = arith.constant 1 : index
    %c1_24 = arith.constant 1 : index
    %c0_25 = arith.constant 0 : index
    %35 = vector.load %arg8[%c1_22, %c1_23, %c1_24, %c0_25] : memref<2x10x10x64xbf16, #tpu.memory_space<vmem>>, vector<1x8x8x64xbf16>
    %36 = vector.shape_cast %35 : vector<1x8x8x64xbf16> to vector<8x8x64xbf16>
    %37 = vector.shape_cast %34 : vector<8x8x64xbf16> to vector<1x8x8x64xbf16>
    tpu.vector_store %arg8[%c1_22, %c1_23, %c1_24, %c0_25], %37 {strides = array<i32>} : memref<2x10x10x64xbf16, #tpu.memory_space<vmem>>, vector<1x8x8x64xbf16>,
    %c0_26 = arith.constant 0 : index
    %38 = memref.load %arg6[%c0_26] : memref<1xf32, #tpu.memory_space<smem>>
    %c0_27 = arith.constant 0 : index
    %c0_28 = arith.constant 0 : index
    %c0_29 = arith.constant 0 : index
    %c0_30 = arith.constant 0 : index
    %39 = vector.load %arg8[%c0_27, %c0_28, %c0_29, %c0_30] : memref<2x10x10x64xbf16, #tpu.memory_space<vmem>>, vector<1x8x8x64xbf16>
    %40 = vector.shape_cast %39 : vector<1x8x8x64xbf16> to vector<8x8x64xbf16>
    %c0_31 = arith.constant 0 : index
    %c0_32 = arith.constant 0 : index
    %c0_33 = arith.constant 0 : index
    %c0_34 = arith.constant 0 : index
    %41 = vector.load %arg9[%c0_31, %c0_32, %c0_33, %c0_34] : memref<2x8x8x576xbf16, #tpu.memory_space<vmem>>, vector<1x8x8x64xbf16>
    %42 = vector.shape_cast %41 : vector<1x8x8x64xbf16> to vector<8x8x64xbf16>
    %43 = vector.shape_cast %40 : vector<8x8x64xbf16> to vector<1x8x8x64xbf16>
    tpu.vector_store %arg9[%c0_31, %c0_32, %c0_33, %c0_34], %43 {strides = array<i32>} : memref<2x8x8x576xbf16, #tpu.memory_space<vmem>>, vector<1x8x8x64xbf16>,
    %c0_35 = arith.constant 0 : index
    %c0_36 = arith.constant 0 : index
    %c1_37 = arith.constant 1 : index
    %c0_38 = arith.constant 0 : index
    %44 = vector.load %arg8[%c0_35, %c0_36, %c1_37, %c0_38] : memref<2x10x10x64xbf16, #tpu.memory_space<vmem>>, vector<1x8x8x64xbf16>
    %45 = vector.shape_cast %44 : vector<1x8x8x64xbf16> to vector<8x8x64xbf16>
    %c0_39 = arith.constant 0 : index
    %c0_40 = arith.constant 0 : index
    %c0_41 = arith.constant 0 : index
    %c64 = arith.constant 64 : index
    %46 = vector.load %arg9[%c0_39, %c0_40, %c0_41, %c64] : memref<2x8x8x576xbf16, #tpu.memory_space<vmem>>, vector<1x8x8x64xbf16>
    %47 = vector.shape_cast %46 : vector<1x8x8x64xbf16> to vector<8x8x64xbf16>
    %48 = vector.shape_cast %45 : vector<8x8x64xbf16> to vector<1x8x8x64xbf16>
    tpu.vector_store %arg9[%c0_39, %c0_40, %c0_41, %c64], %48 {strides = array<i32>} : memref<2x8x8x576xbf16, #tpu.memory_space<vmem>>, vector<1x8x8x64xbf16>,
    %c0_42 = arith.constant 0 : index
    %c0_43 = arith.constant 0 : index
    %c2 = arith.constant 2 : index
    %c0_44 = arith.constant 0 : index
    %49 = vector.load %arg8[%c0_42, %c0_43, %c2, %c0_44] : memref<2x10x10x64xbf16, #tpu.memory_space<vmem>>, vector<1x8x8x64xbf16>
    %50 = vector.shape_cast %49 : vector<1x8x8x64xbf16> to vector<8x8x64xbf16>
    %c0_45 = arith.constant 0 : index
    %c0_46 = arith.constant 0 : index
    %c0_47 = arith.constant 0 : index
    %c128 = arith.constant 128 : index
    %51 = vector.load %arg9[%c0_45, %c0_46, %c0_47, %c128] : memref<2x8x8x576xbf16, #tpu.memory_space<vmem>>, vector<1x8x8x64xbf16>
    %52 = vector.shape_cast %51 : vector<1x8x8x64xbf16> to vector<8x8x64xbf16>
    %53 = vector.shape_cast %50 : vector<8x8x64xbf16> to vector<1x8x8x64xbf16>
    tpu.vector_store %arg9[%c0_45, %c0_46, %c0_47, %c128], %53 {strides = array<i32>} : memref<2x8x8x576xbf16, #tpu.memory_space<vmem>>, vector<1x8x8x64xbf16>,
    %c0_48 = arith.constant 0 : index
    %c1_49 = arith.constant 1 : index
    %c0_50 = arith.constant 0 : index
    %c0_51 = arith.constant 0 : index
    %54 = vector.load %arg8[%c0_48, %c1_49, %c0_50, %c0_51] : memref<2x10x10x64xbf16, #tpu.memory_space<vmem>>, vector<1x8x8x64xbf16>
    %55 = vector.shape_cast %54 : vector<1x8x8x64xbf16> to vector<8x8x64xbf16>
    %c0_52 = arith.constant 0 : index
    %c0_53 = arith.constant 0 : index
    %c0_54 = arith.constant 0 : index
    %c192 = arith.constant 192 : index
    %56 = vector.load %arg9[%c0_52, %c0_53, %c0_54, %c192] : memref<2x8x8x576xbf16, #tpu.memory_space<vmem>>, vector<1x8x8x64xbf16>
    %57 = vector.shape_cast %56 : vector<1x8x8x64xbf16> to vector<8x8x64xbf16>
    %58 = vector.shape_cast %55 : vector<8x8x64xbf16> to vector<1x8x8x64xbf16>
    tpu.vector_store %arg9[%c0_52, %c0_53, %c0_54, %c192], %58 {strides = array<i32>} : memref<2x8x8x576xbf16, #tpu.memory_space<vmem>>, vector<1x8x8x64xbf16>,
    %c0_55 = arith.constant 0 : index
    %c1_56 = arith.constant 1 : index
    %c1_57 = arith.constant 1 : index
    %c0_58 = arith.constant 0 : index
    %59 = vector.load %arg8[%c0_55, %c1_56, %c1_57, %c0_58] : memref<2x10x10x64xbf16, #tpu.memory_space<vmem>>, vector<1x8x8x64xbf16>
    %60 = vector.shape_cast %59 : vector<1x8x8x64xbf16> to vector<8x8x64xbf16>
    %c0_59 = arith.constant 0 : index
    %c0_60 = arith.constant 0 : index
    %c0_61 = arith.constant 0 : index
    %c256 = arith.constant 256 : index
    %61 = vector.load %arg9[%c0_59, %c0_60, %c0_61, %c256] : memref<2x8x8x576xbf16, #tpu.memory_space<vmem>>, vector<1x8x8x64xbf16>
    %62 = vector.shape_cast %61 : vector<1x8x8x64xbf16> to vector<8x8x64xbf16>
    %63 = vector.shape_cast %60 : vector<8x8x64xbf16> to vector<1x8x8x64xbf16>
    tpu.vector_store %arg9[%c0_59, %c0_60, %c0_61, %c256], %63 {strides = array<i32>} : memref<2x8x8x576xbf16, #tpu.memory_space<vmem>>, vector<1x8x8x64xbf16>,
    %c0_62 = arith.constant 0 : index
    %c1_63 = arith.constant 1 : index
    %c2_64 = arith.constant 2 : index
    %c0_65 = arith.constant 0 : index
    %64 = vector.load %arg8[%c0_62, %c1_63, %c2_64, %c0_65] : memref<2x10x10x64xbf16, #tpu.memory_space<vmem>>, vector<1x8x8x64xbf16>
    %65 = vector.shape_cast %64 : vector<1x8x8x64xbf16> to vector<8x8x64xbf16>
    %c0_66 = arith.constant 0 : index
    %c0_67 = arith.constant 0 : index
    %c0_68 = arith.constant 0 : index
    %c320 = arith.constant 320 : index
    %66 = vector.load %arg9[%c0_66, %c0_67, %c0_68, %c320] : memref<2x8x8x576xbf16, #tpu.memory_space<vmem>>, vector<1x8x8x64xbf16>
    %67 = vector.shape_cast %66 : vector<1x8x8x64xbf16> to vector<8x8x64xbf16>
    %68 = vector.shape_cast %65 : vector<8x8x64xbf16> to vector<1x8x8x64xbf16>
    tpu.vector_store %arg9[%c0_66, %c0_67, %c0_68, %c320], %68 {strides = array<i32>} : memref<2x8x8x576xbf16, #tpu.memory_space<vmem>>, vector<1x8x8x64xbf16>,
    %c0_69 = arith.constant 0 : index
    %c2_70 = arith.constant 2 : index
    %c0_71 = arith.constant 0 : index
    %c0_72 = arith.constant 0 : index
    %69 = vector.load %arg8[%c0_69, %c2_70, %c0_71, %c0_72] : memref<2x10x10x64xbf16, #tpu.memory_space<vmem>>, vector<1x8x8x64xbf16>
    %70 = vector.shape_cast %69 : vector<1x8x8x64xbf16> to vector<8x8x64xbf16>
    %c0_73 = arith.constant 0 : index
    %c0_74 = arith.constant 0 : index
    %c0_75 = arith.constant 0 : index
    %c384 = arith.constant 384 : index
    %71 = vector.load %arg9[%c0_73, %c0_74, %c0_75, %c384] : memref<2x8x8x576xbf16, #tpu.memory_space<vmem>>, vector<1x8x8x64xbf16>
    %72 = vector.shape_cast %71 : vector<1x8x8x64xbf16> to vector<8x8x64xbf16>
    %73 = vector.shape_cast %70 : vector<8x8x64xbf16> to vector<1x8x8x64xbf16>
    tpu.vector_store %arg9[%c0_73, %c0_74, %c0_75, %c384], %73 {strides = array<i32>} : memref<2x8x8x576xbf16, #tpu.memory_space<vmem>>, vector<1x8x8x64xbf16>,
    %c0_76 = arith.constant 0 : index
    %c2_77 = arith.constant 2 : index
    %c1_78 = arith.constant 1 : index
    %c0_79 = arith.constant 0 : index
    %74 = vector.load %arg8[%c0_76, %c2_77, %c1_78, %c0_79] : memref<2x10x10x64xbf16, #tpu.memory_space<vmem>>, vector<1x8x8x64xbf16>
    %75 = vector.shape_cast %74 : vector<1x8x8x64xbf16> to vector<8x8x64xbf16>
    %c0_80 = arith.constant 0 : index
    %c0_81 = arith.constant 0 : index
    %c0_82 = arith.constant 0 : index
    %c448 = arith.constant 448 : index
    %76 = vector.load %arg9[%c0_80, %c0_81, %c0_82, %c448] : memref<2x8x8x576xbf16, #tpu.memory_space<vmem>>, vector<1x8x8x64xbf16>
    %77 = vector.shape_cast %76 : vector<1x8x8x64xbf16> to vector<8x8x64xbf16>
    %78 = vector.shape_cast %75 : vector<8x8x64xbf16> to vector<1x8x8x64xbf16>
    tpu.vector_store %arg9[%c0_80, %c0_81, %c0_82, %c448], %78 {strides = array<i32>} : memref<2x8x8x576xbf16, #tpu.memory_space<vmem>>, vector<1x8x8x64xbf16>,
    %c0_83 = arith.constant 0 : index
    %c2_84 = arith.constant 2 : index
    %c2_85 = arith.constant 2 : index
    %c0_86 = arith.constant 0 : index
    %79 = vector.load %arg8[%c0_83, %c2_84, %c2_85, %c0_86] : memref<2x10x10x64xbf16, #tpu.memory_space<vmem>>, vector<1x8x8x64xbf16>
    %80 = vector.shape_cast %79 : vector<1x8x8x64xbf16> to vector<8x8x64xbf16>
    %c0_87 = arith.constant 0 : index
    %c0_88 = arith.constant 0 : index
    %c0_89 = arith.constant 0 : index
    %c512 = arith.constant 512 : index
    %81 = vector.load %arg9[%c0_87, %c0_88, %c0_89, %c512] : memref<2x8x8x576xbf16, #tpu.memory_space<vmem>>, vector<1x8x8x64xbf16>
    %82 = vector.shape_cast %81 : vector<1x8x8x64xbf16> to vector<8x8x64xbf16>
    %83 = vector.shape_cast %80 : vector<8x8x64xbf16> to vector<1x8x8x64xbf16>
    tpu.vector_store %arg9[%c0_87, %c0_88, %c0_89, %c512], %83 {strides = array<i32>} : memref<2x8x8x576xbf16, #tpu.memory_space<vmem>>, vector<1x8x8x64xbf16>,
    %c1_90 = arith.constant 1 : index
    %c0_91 = arith.constant 0 : index
    %c0_92 = arith.constant 0 : index
    %c0_93 = arith.constant 0 : index
    %84 = vector.load %arg8[%c1_90, %c0_91, %c0_92, %c0_93] : memref<2x10x10x64xbf16, #tpu.memory_space<vmem>>, vector<1x8x8x64xbf16>
    %85 = vector.shape_cast %84 : vector<1x8x8x64xbf16> to vector<8x8x64xbf16>
    %c1_94 = arith.constant 1 : index
    %c0_95 = arith.constant 0 : index
    %c0_96 = arith.constant 0 : index
    %c0_97 = arith.constant 0 : index
    %86 = vector.load %arg9[%c1_94, %c0_95, %c0_96, %c0_97] : memref<2x8x8x576xbf16, #tpu.memory_space<vmem>>, vector<1x8x8x64xbf16>
    %87 = vector.shape_cast %86 : vector<1x8x8x64xbf16> to vector<8x8x64xbf16>
    %88 = vector.shape_cast %85 : vector<8x8x64xbf16> to vector<1x8x8x64xbf16>
    tpu.vector_store %arg9[%c1_94, %c0_95, %c0_96, %c0_97], %88 {strides = array<i32>} : memref<2x8x8x576xbf16, #tpu.memory_space<vmem>>, vector<1x8x8x64xbf16>,
    %c1_98 = arith.constant 1 : index
    %c0_99 = arith.constant 0 : index
    %c1_100 = arith.constant 1 : index
    %c0_101 = arith.constant 0 : index
    %89 = vector.load %arg8[%c1_98, %c0_99, %c1_100, %c0_101] : memref<2x10x10x64xbf16, #tpu.memory_space<vmem>>, vector<1x8x8x64xbf16>
    %90 = vector.shape_cast %89 : vector<1x8x8x64xbf16> to vector<8x8x64xbf16>
    %c1_102 = arith.constant 1 : index
    %c0_103 = arith.constant 0 : index
    %c0_104 = arith.constant 0 : index
    %c64_105 = arith.constant 64 : index
    %91 = vector.load %arg9[%c1_102, %c0_103, %c0_104, %c64_105] : memref<2x8x8x576xbf16, #tpu.memory_space<vmem>>, vector<1x8x8x64xbf16>
    %92 = vector.shape_cast %91 : vector<1x8x8x64xbf16> to vector<8x8x64xbf16>
    %93 = vector.shape_cast %90 : vector<8x8x64xbf16> to vector<1x8x8x64xbf16>
    tpu.vector_store %arg9[%c1_102, %c0_103, %c0_104, %c64_105], %93 {strides = array<i32>} : memref<2x8x8x576xbf16, #tpu.memory_space<vmem>>, vector<1x8x8x64xbf16>,
    %c1_106 = arith.constant 1 : index
    %c0_107 = arith.constant 0 : index
    %c2_108 = arith.constant 2 : index
    %c0_109 = arith.constant 0 : index
    %94 = vector.load %arg8[%c1_106, %c0_107, %c2_108, %c0_109] : memref<2x10x10x64xbf16, #tpu.memory_space<vmem>>, vector<1x8x8x64xbf16>
    %95 = vector.shape_cast %94 : vector<1x8x8x64xbf16> to vector<8x8x64xbf16>
    %c1_110 = arith.constant 1 : index
    %c0_111 = arith.constant 0 : index
    %c0_112 = arith.constant 0 : index
    %c128_113 = arith.constant 128 : index
    %96 = vector.load %arg9[%c1_110, %c0_111, %c0_112, %c128_113] : memref<2x8x8x576xbf16, #tpu.memory_space<vmem>>, vector<1x8x8x64xbf16>
    %97 = vector.shape_cast %96 : vector<1x8x8x64xbf16> to vector<8x8x64xbf16>
    %98 = vector.shape_cast %95 : vector<8x8x64xbf16> to vector<1x8x8x64xbf16>
    tpu.vector_store %arg9[%c1_110, %c0_111, %c0_112, %c128_113], %98 {strides = array<i32>} : memref<2x8x8x576xbf16, #tpu.memory_space<vmem>>, vector<1x8x8x64xbf16>,
    %c1_114 = arith.constant 1 : index
    %c1_115 = arith.constant 1 : index
    %c0_116 = arith.constant 0 : index
    %c0_117 = arith.constant 0 : index
    %99 = vector.load %arg8[%c1_114, %c1_115, %c0_116, %c0_117] : memref<2x10x10x64xbf16, #tpu.memory_space<vmem>>, vector<1x8x8x64xbf16>
    %100 = vector.shape_cast %99 : vector<1x8x8x64xbf16> to vector<8x8x64xbf16>
    %c1_118 = arith.constant 1 : index
    %c0_119 = arith.constant 0 : index
    %c0_120 = arith.constant 0 : index
    %c192_121 = arith.constant 192 : index
    %101 = vector.load %arg9[%c1_118, %c0_119, %c0_120, %c192_121] : memref<2x8x8x576xbf16, #tpu.memory_space<vmem>>, vector<1x8x8x64xbf16>
    %102 = vector.shape_cast %101 : vector<1x8x8x64xbf16> to vector<8x8x64xbf16>
    %103 = vector.shape_cast %100 : vector<8x8x64xbf16> to vector<1x8x8x64xbf16>
    tpu.vector_store %arg9[%c1_118, %c0_119, %c0_120, %c192_121], %103 {strides = array<i32>} : memref<2x8x8x576xbf16, #tpu.memory_space<vmem>>, vector<1x8x8x64xbf16>,
    %c1_122 = arith.constant 1 : index
    %c1_123 = arith.constant 1 : index
    %c1_124 = arith.constant 1 : index
    %c0_125 = arith.constant 0 : index
    %104 = vector.load %arg8[%c1_122, %c1_123, %c1_124, %c0_125] : memref<2x10x10x64xbf16, #tpu.memory_space<vmem>>, vector<1x8x8x64xbf16>
    %105 = vector.shape_cast %104 : vector<1x8x8x64xbf16> to vector<8x8x64xbf16>
    %c1_126 = arith.constant 1 : index
    %c0_127 = arith.constant 0 : index
    %c0_128 = arith.constant 0 : index
    %c256_129 = arith.constant 256 : index
    %106 = vector.load %arg9[%c1_126, %c0_127, %c0_128, %c256_129] : memref<2x8x8x576xbf16, #tpu.memory_space<vmem>>, vector<1x8x8x64xbf16>
    %107 = vector.shape_cast %106 : vector<1x8x8x64xbf16> to vector<8x8x64xbf16>
    %108 = vector.shape_cast %105 : vector<8x8x64xbf16> to vector<1x8x8x64xbf16>
    tpu.vector_store %arg9[%c1_126, %c0_127, %c0_128, %c256_129], %108 {strides = array<i32>} : memref<2x8x8x576xbf16, #tpu.memory_space<vmem>>, vector<1x8x8x64xbf16>,
    %c1_130 = arith.constant 1 : index
    %c1_131 = arith.constant 1 : index
    %c2_132 = arith.constant 2 : index
    %c0_133 = arith.constant 0 : index
    %109 = vector.load %arg8[%c1_130, %c1_131, %c2_132, %c0_133] : memref<2x10x10x64xbf16, #tpu.memory_space<vmem>>, vector<1x8x8x64xbf16>
    %110 = vector.shape_cast %109 : vector<1x8x8x64xbf16> to vector<8x8x64xbf16>
    %c1_134 = arith.constant 1 : index
    %c0_135 = arith.constant 0 : index
    %c0_136 = arith.constant 0 : index
    %c320_137 = arith.constant 320 : index
    %111 = vector.load %arg9[%c1_134, %c0_135, %c0_136, %c320_137] : memref<2x8x8x576xbf16, #tpu.memory_space<vmem>>, vector<1x8x8x64xbf16>
    %112 = vector.shape_cast %111 : vector<1x8x8x64xbf16> to vector<8x8x64xbf16>
    %113 = vector.shape_cast %110 : vector<8x8x64xbf16> to vector<1x8x8x64xbf16>
    tpu.vector_store %arg9[%c1_134, %c0_135, %c0_136, %c320_137], %113 {strides = array<i32>} : memref<2x8x8x576xbf16, #tpu.memory_space<vmem>>, vector<1x8x8x64xbf16>,
    %c1_138 = arith.constant 1 : index
    %c2_139 = arith.constant 2 : index
    %c0_140 = arith.constant 0 : index
    %c0_141 = arith.constant 0 : index
    %114 = vector.load %arg8[%c1_138, %c2_139, %c0_140, %c0_141] : memref<2x10x10x64xbf16, #tpu.memory_space<vmem>>, vector<1x8x8x64xbf16>
    %115 = vector.shape_cast %114 : vector<1x8x8x64xbf16> to vector<8x8x64xbf16>
    %c1_142 = arith.constant 1 : index
    %c0_143 = arith.constant 0 : index
    %c0_144 = arith.constant 0 : index
    %c384_145 = arith.constant 384 : index
    %116 = vector.load %arg9[%c1_142, %c0_143, %c0_144, %c384_145] : memref<2x8x8x576xbf16, #tpu.memory_space<vmem>>, vector<1x8x8x64xbf16>
    %117 = vector.shape_cast %116 : vector<1x8x8x64xbf16> to vector<8x8x64xbf16>
    %118 = vector.shape_cast %115 : vector<8x8x64xbf16> to vector<1x8x8x64xbf16>
    tpu.vector_store %arg9[%c1_142, %c0_143, %c0_144, %c384_145], %118 {strides = array<i32>} : memref<2x8x8x576xbf16, #tpu.memory_space<vmem>>, vector<1x8x8x64xbf16>,
    %c1_146 = arith.constant 1 : index
    %c2_147 = arith.constant 2 : index
    %c1_148 = arith.constant 1 : index
    %c0_149 = arith.constant 0 : index
    %119 = vector.load %arg8[%c1_146, %c2_147, %c1_148, %c0_149] : memref<2x10x10x64xbf16, #tpu.memory_space<vmem>>, vector<1x8x8x64xbf16>
    %120 = vector.shape_cast %119 : vector<1x8x8x64xbf16> to vector<8x8x64xbf16>
    %c1_150 = arith.constant 1 : index
    %c0_151 = arith.constant 0 : index
    %c0_152 = arith.constant 0 : index
    %c448_153 = arith.constant 448 : index
    %121 = vector.load %arg9[%c1_150, %c0_151, %c0_152, %c448_153] : memref<2x8x8x576xbf16, #tpu.memory_space<vmem>>, vector<1x8x8x64xbf16>
    %122 = vector.shape_cast %121 : vector<1x8x8x64xbf16> to vector<8x8x64xbf16>
    %123 = vector.shape_cast %120 : vector<8x8x64xbf16> to vector<1x8x8x64xbf16>
    tpu.vector_store %arg9[%c1_150, %c0_151, %c0_152, %c448_153], %123 {strides = array<i32>} : memref<2x8x8x576xbf16, #tpu.memory_space<vmem>>, vector<1x8x8x64xbf16>,
    %c1_154 = arith.constant 1 : index
    %c2_155 = arith.constant 2 : index
    %c2_156 = arith.constant 2 : index
    %c0_157 = arith.constant 0 : index
    %124 = vector.load %arg8[%c1_154, %c2_155, %c2_156, %c0_157] : memref<2x10x10x64xbf16, #tpu.memory_space<vmem>>, vector<1x8x8x64xbf16>
    %125 = vector.shape_cast %124 : vector<1x8x8x64xbf16> to vector<8x8x64xbf16>
    %c1_158 = arith.constant 1 : index
    %c0_159 = arith.constant 0 : index
    %c0_160 = arith.constant 0 : index
    %c512_161 = arith.constant 512 : index
    %126 = vector.load %arg9[%c1_158, %c0_159, %c0_160, %c512_161] : memref<2x8x8x576xbf16, #tpu.memory_space<vmem>>, vector<1x8x8x64xbf16>
    %127 = vector.shape_cast %126 : vector<1x8x8x64xbf16> to vector<8x8x64xbf16>
    %128 = vector.shape_cast %125 : vector<8x8x64xbf16> to vector<1x8x8x64xbf16>
    tpu.vector_store %arg9[%c1_158, %c0_159, %c0_160, %c512_161], %128 {strides = array<i32>} : memref<2x8x8x576xbf16, #tpu.memory_space<vmem>>, vector<1x8x8x64xbf16>,
    %c0_162 = arith.constant 0 : index
    %c0_163 = arith.constant 0 : index
    %c0_164 = arith.constant 0 : index
    %c0_165 = arith.constant 0 : index
    %129 = vector.load %arg9[%c0_162, %c0_163, %c0_164, %c0_165] : memref<2x8x8x576xbf16, #tpu.memory_space<vmem>>, vector<2x8x8x576xbf16>
    %130 = vector.shape_cast %129 : vector<2x8x8x576xbf16> to vector<128x576xbf16>
    %c0_166 = arith.constant 0 : index
    %c0_167 = arith.constant 0 : index
    %131 = vector.load %arg2[%c0_166, %c0_167] : memref<576x64xbf16, #tpu.memory_space<vmem>>, vector<576x64xbf16>
    %cst_168 = arith.constant dense<0.000000e+00> : vector<128x64xf32>
    %132 = tpu.matmul %130, %131, %cst_168 {dimension_numbers = #tpu.dot_dimension_numbers<[1], [0], [0], [1], [0, 0, 1, 1], [], []>} : vector<128x576xbf16>, vector<576x64xbf16>, vector<128x64xf32> -> vector<128x64xf32>
    %c0_169 = arith.constant 0 : index
    %c0_170 = arith.constant 0 : index
    %133 = vector.load %arg3[%c0_169, %c0_170] : memref<1x64xf32, #tpu.memory_space<vmem>>, vector<1x64xf32>
    %134 = vector.broadcast %133 : vector<1x64xf32> to vector<128x64xf32>
    %135 = arith.addf %132, %134 : vector<128x64xf32>
    %cst_171 = arith.constant 0.000000e+00 : f32
    %136 = vector.broadcast %cst_171 : f32 to vector<128x64xf32>
    %137 = arith.cmpf ogt, %135, %136 : vector<128x64xf32>
    %138 = vector.broadcast %38 : f32 to vector<128x64xf32>
    %139 = arith.mulf %138, %135 : vector<128x64xf32>
    %140 = arith.select %137, %135, %139 : vector<128x64xi1>, vector<128x64xf32>
    %141 = vector.shape_cast %140 : vector<128x64xf32> to vector<2x8x8x64xf32>
    %142 = arith.truncf %141 : vector<2x8x8x64xf32> to vector<2x8x8x64xbf16>
    %c0_172 = arith.constant 0 : index
    %c1_173 = arith.constant 1 : index
    %c1_174 = arith.constant 1 : index
    %c0_175 = arith.constant 0 : index
    %143 = vector.load %arg8[%c0_172, %c1_173, %c1_174, %c0_175] : memref<2x10x10x64xbf16, #tpu.memory_space<vmem>>, vector<2x8x8x64xbf16>
    tpu.vector_store %arg8[%c0_172, %c1_173, %c1_174, %c0_175], %142 {strides = array<i32>} : memref<2x10x10x64xbf16, #tpu.memory_space<vmem>>, vector<2x8x8x64xbf16>,
    %c0_176 = arith.constant 0 : index
    %c0_177 = arith.constant 0 : index
    %c0_178 = arith.constant 0 : index
    %c0_179 = arith.constant 0 : index
    %144 = vector.load %arg8[%c0_176, %c0_177, %c0_178, %c0_179] : memref<2x10x10x64xbf16, #tpu.memory_space<vmem>>, vector<1x8x8x64xbf16>
    %145 = vector.shape_cast %144 : vector<1x8x8x64xbf16> to vector<8x8x64xbf16>
    %c0_180 = arith.constant 0 : index
    %c0_181 = arith.constant 0 : index
    %c0_182 = arith.constant 0 : index
    %c0_183 = arith.constant 0 : index
    %146 = vector.load %arg9[%c0_180, %c0_181, %c0_182, %c0_183] : memref<2x8x8x576xbf16, #tpu.memory_space<vmem>>, vector<1x8x8x64xbf16>
    %147 = vector.shape_cast %146 : vector<1x8x8x64xbf16> to vector<8x8x64xbf16>
    %148 = vector.shape_cast %145 : vector<8x8x64xbf16> to vector<1x8x8x64xbf16>
    tpu.vector_store %arg9[%c0_180, %c0_181, %c0_182, %c0_183], %148 {strides = array<i32>} : memref<2x8x8x576xbf16, #tpu.memory_space<vmem>>, vector<1x8x8x64xbf16>,
    %c0_184 = arith.constant 0 : index
    %c0_185 = arith.constant 0 : index
    %c1_186 = arith.constant 1 : index
    %c0_187 = arith.constant 0 : index
    %149 = vector.load %arg8[%c0_184, %c0_185, %c1_186, %c0_187] : memref<2x10x10x64xbf16, #tpu.memory_space<vmem>>, vector<1x8x8x64xbf16>
    %150 = vector.shape_cast %149 : vector<1x8x8x64xbf16> to vector<8x8x64xbf16>
    %c0_188 = arith.constant 0 : index
    %c0_189 = arith.constant 0 : index
    %c0_190 = arith.constant 0 : index
    %c64_191 = arith.constant 64 : index
    %151 = vector.load %arg9[%c0_188, %c0_189, %c0_190, %c64_191] : memref<2x8x8x576xbf16, #tpu.memory_space<vmem>>, vector<1x8x8x64xbf16>
    %152 = vector.shape_cast %151 : vector<1x8x8x64xbf16> to vector<8x8x64xbf16>
    %153 = vector.shape_cast %150 : vector<8x8x64xbf16> to vector<1x8x8x64xbf16>
    tpu.vector_store %arg9[%c0_188, %c0_189, %c0_190, %c64_191], %153 {strides = array<i32>} : memref<2x8x8x576xbf16, #tpu.memory_space<vmem>>, vector<1x8x8x64xbf16>,
    %c0_192 = arith.constant 0 : index
    %c0_193 = arith.constant 0 : index
    %c2_194 = arith.constant 2 : index
    %c0_195 = arith.constant 0 : index
    %154 = vector.load %arg8[%c0_192, %c0_193, %c2_194, %c0_195] : memref<2x10x10x64xbf16, #tpu.memory_space<vmem>>, vector<1x8x8x64xbf16>
    %155 = vector.shape_cast %154 : vector<1x8x8x64xbf16> to vector<8x8x64xbf16>
    %c0_196 = arith.constant 0 : index
    %c0_197 = arith.constant 0 : index
    %c0_198 = arith.constant 0 : index
    %c128_199 = arith.constant 128 : index
    %156 = vector.load %arg9[%c0_196, %c0_197, %c0_198, %c128_199] : memref<2x8x8x576xbf16, #tpu.memory_space<vmem>>, vector<1x8x8x64xbf16>
    %157 = vector.shape_cast %156 : vector<1x8x8x64xbf16> to vector<8x8x64xbf16>
    %158 = vector.shape_cast %155 : vector<8x8x64xbf16> to vector<1x8x8x64xbf16>
    tpu.vector_store %arg9[%c0_196, %c0_197, %c0_198, %c128_199], %158 {strides = array<i32>} : memref<2x8x8x576xbf16, #tpu.memory_space<vmem>>, vector<1x8x8x64xbf16>,
    %c0_200 = arith.constant 0 : index
    %c1_201 = arith.constant 1 : index
    %c0_202 = arith.constant 0 : index
    %c0_203 = arith.constant 0 : index
    %159 = vector.load %arg8[%c0_200, %c1_201, %c0_202, %c0_203] : memref<2x10x10x64xbf16, #tpu.memory_space<vmem>>, vector<1x8x8x64xbf16>
    %160 = vector.shape_cast %159 : vector<1x8x8x64xbf16> to vector<8x8x64xbf16>
    %c0_204 = arith.constant 0 : index
    %c0_205 = arith.constant 0 : index
    %c0_206 = arith.constant 0 : index
    %c192_207 = arith.constant 192 : index
    %161 = vector.load %arg9[%c0_204, %c0_205, %c0_206, %c192_207] : memref<2x8x8x576xbf16, #tpu.memory_space<vmem>>, vector<1x8x8x64xbf16>
    %162 = vector.shape_cast %161 : vector<1x8x8x64xbf16> to vector<8x8x64xbf16>
    %163 = vector.shape_cast %160 : vector<8x8x64xbf16> to vector<1x8x8x64xbf16>
    tpu.vector_store %arg9[%c0_204, %c0_205, %c0_206, %c192_207], %163 {strides = array<i32>} : memref<2x8x8x576xbf16, #tpu.memory_space<vmem>>, vector<1x8x8x64xbf16>,
    %c0_208 = arith.constant 0 : index
    %c1_209 = arith.constant 1 : index
    %c1_210 = arith.constant 1 : index
    %c0_211 = arith.constant 0 : index
    %164 = vector.load %arg8[%c0_208, %c1_209, %c1_210, %c0_211] : memref<2x10x10x64xbf16, #tpu.memory_space<vmem>>, vector<1x8x8x64xbf16>
    %165 = vector.shape_cast %164 : vector<1x8x8x64xbf16> to vector<8x8x64xbf16>
    %c0_212 = arith.constant 0 : index
    %c0_213 = arith.constant 0 : index
    %c0_214 = arith.constant 0 : index
    %c256_215 = arith.constant 256 : index
    %166 = vector.load %arg9[%c0_212, %c0_213, %c0_214, %c256_215] : memref<2x8x8x576xbf16, #tpu.memory_space<vmem>>, vector<1x8x8x64xbf16>
    %167 = vector.shape_cast %166 : vector<1x8x8x64xbf16> to vector<8x8x64xbf16>
    %168 = vector.shape_cast %165 : vector<8x8x64xbf16> to vector<1x8x8x64xbf16>
    tpu.vector_store %arg9[%c0_212, %c0_213, %c0_214, %c256_215], %168 {strides = array<i32>} : memref<2x8x8x576xbf16, #tpu.memory_space<vmem>>, vector<1x8x8x64xbf16>,
    %c0_216 = arith.constant 0 : index
    %c1_217 = arith.constant 1 : index
    %c2_218 = arith.constant 2 : index
    %c0_219 = arith.constant 0 : index
    %169 = vector.load %arg8[%c0_216, %c1_217, %c2_218, %c0_219] : memref<2x10x10x64xbf16, #tpu.memory_space<vmem>>, vector<1x8x8x64xbf16>
    %170 = vector.shape_cast %169 : vector<1x8x8x64xbf16> to vector<8x8x64xbf16>
    %c0_220 = arith.constant 0 : index
    %c0_221 = arith.constant 0 : index
    %c0_222 = arith.constant 0 : index
    %c320_223 = arith.constant 320 : index
    %171 = vector.load %arg9[%c0_220, %c0_221, %c0_222, %c320_223] : memref<2x8x8x576xbf16, #tpu.memory_space<vmem>>, vector<1x8x8x64xbf16>
    %172 = vector.shape_cast %171 : vector<1x8x8x64xbf16> to vector<8x8x64xbf16>
    %173 = vector.shape_cast %170 : vector<8x8x64xbf16> to vector<1x8x8x64xbf16>
    tpu.vector_store %arg9[%c0_220, %c0_221, %c0_222, %c320_223], %173 {strides = array<i32>} : memref<2x8x8x576xbf16, #tpu.memory_space<vmem>>, vector<1x8x8x64xbf16>,
    %c0_224 = arith.constant 0 : index
    %c2_225 = arith.constant 2 : index
    %c0_226 = arith.constant 0 : index
    %c0_227 = arith.constant 0 : index
    %174 = vector.load %arg8[%c0_224, %c2_225, %c0_226, %c0_227] : memref<2x10x10x64xbf16, #tpu.memory_space<vmem>>, vector<1x8x8x64xbf16>
    %175 = vector.shape_cast %174 : vector<1x8x8x64xbf16> to vector<8x8x64xbf16>
    %c0_228 = arith.constant 0 : index
    %c0_229 = arith.constant 0 : index
    %c0_230 = arith.constant 0 : index
    %c384_231 = arith.constant 384 : index
    %176 = vector.load %arg9[%c0_228, %c0_229, %c0_230, %c384_231] : memref<2x8x8x576xbf16, #tpu.memory_space<vmem>>, vector<1x8x8x64xbf16>
    %177 = vector.shape_cast %176 : vector<1x8x8x64xbf16> to vector<8x8x64xbf16>
    %178 = vector.shape_cast %175 : vector<8x8x64xbf16> to vector<1x8x8x64xbf16>
    tpu.vector_store %arg9[%c0_228, %c0_229, %c0_230, %c384_231], %178 {strides = array<i32>} : memref<2x8x8x576xbf16, #tpu.memory_space<vmem>>, vector<1x8x8x64xbf16>,
    %c0_232 = arith.constant 0 : index
    %c2_233 = arith.constant 2 : index
    %c1_234 = arith.constant 1 : index
    %c0_235 = arith.constant 0 : index
    %179 = vector.load %arg8[%c0_232, %c2_233, %c1_234, %c0_235] : memref<2x10x10x64xbf16, #tpu.memory_space<vmem>>, vector<1x8x8x64xbf16>
    %180 = vector.shape_cast %179 : vector<1x8x8x64xbf16> to vector<8x8x64xbf16>
    %c0_236 = arith.constant 0 : index
    %c0_237 = arith.constant 0 : index
    %c0_238 = arith.constant 0 : index
    %c448_239 = arith.constant 448 : index
    %181 = vector.load %arg9[%c0_236, %c0_237, %c0_238, %c448_239] : memref<2x8x8x576xbf16, #tpu.memory_space<vmem>>, vector<1x8x8x64xbf16>
    %182 = vector.shape_cast %181 : vector<1x8x8x64xbf16> to vector<8x8x64xbf16>
    %183 = vector.shape_cast %180 : vector<8x8x64xbf16> to vector<1x8x8x64xbf16>
    tpu.vector_store %arg9[%c0_236, %c0_237, %c0_238, %c448_239], %183 {strides = array<i32>} : memref<2x8x8x576xbf16, #tpu.memory_space<vmem>>, vector<1x8x8x64xbf16>,
    %c0_240 = arith.constant 0 : index
    %c2_241 = arith.constant 2 : index
    %c2_242 = arith.constant 2 : index
    %c0_243 = arith.constant 0 : index
    %184 = vector.load %arg8[%c0_240, %c2_241, %c2_242, %c0_243] : memref<2x10x10x64xbf16, #tpu.memory_space<vmem>>, vector<1x8x8x64xbf16>
    %185 = vector.shape_cast %184 : vector<1x8x8x64xbf16> to vector<8x8x64xbf16>
    %c0_244 = arith.constant 0 : index
    %c0_245 = arith.constant 0 : index
    %c0_246 = arith.constant 0 : index
    %c512_247 = arith.constant 512 : index
    %186 = vector.load %arg9[%c0_244, %c0_245, %c0_246, %c512_247] : memref<2x8x8x576xbf16, #tpu.memory_space<vmem>>, vector<1x8x8x64xbf16>
    %187 = vector.shape_cast %186 : vector<1x8x8x64xbf16> to vector<8x8x64xbf16>
    %188 = vector.shape_cast %185 : vector<8x8x64xbf16> to vector<1x8x8x64xbf16>
    tpu.vector_store %arg9[%c0_244, %c0_245, %c0_246, %c512_247], %188 {strides = array<i32>} : memref<2x8x8x576xbf16, #tpu.memory_space<vmem>>, vector<1x8x8x64xbf16>,
    %c1_248 = arith.constant 1 : index
    %c0_249 = arith.constant 0 : index
    %c0_250 = arith.constant 0 : index
    %c0_251 = arith.constant 0 : index
    %189 = vector.load %arg8[%c1_248, %c0_249, %c0_250, %c0_251] : memref<2x10x10x64xbf16, #tpu.memory_space<vmem>>, vector<1x8x8x64xbf16>
    %190 = vector.shape_cast %189 : vector<1x8x8x64xbf16> to vector<8x8x64xbf16>
    %c1_252 = arith.constant 1 : index
    %c0_253 = arith.constant 0 : index
    %c0_254 = arith.constant 0 : index
    %c0_255 = arith.constant 0 : index
    %191 = vector.load %arg9[%c1_252, %c0_253, %c0_254, %c0_255] : memref<2x8x8x576xbf16, #tpu.memory_space<vmem>>, vector<1x8x8x64xbf16>
    %192 = vector.shape_cast %191 : vector<1x8x8x64xbf16> to vector<8x8x64xbf16>
    %193 = vector.shape_cast %190 : vector<8x8x64xbf16> to vector<1x8x8x64xbf16>
    tpu.vector_store %arg9[%c1_252, %c0_253, %c0_254, %c0_255], %193 {strides = array<i32>} : memref<2x8x8x576xbf16, #tpu.memory_space<vmem>>, vector<1x8x8x64xbf16>,
    %c1_256 = arith.constant 1 : index
    %c0_257 = arith.constant 0 : index
    %c1_258 = arith.constant 1 : index
    %c0_259 = arith.constant 0 : index
    %194 = vector.load %arg8[%c1_256, %c0_257, %c1_258, %c0_259] : memref<2x10x10x64xbf16, #tpu.memory_space<vmem>>, vector<1x8x8x64xbf16>
    %195 = vector.shape_cast %194 : vector<1x8x8x64xbf16> to vector<8x8x64xbf16>
    %c1_260 = arith.constant 1 : index
    %c0_261 = arith.constant 0 : index
    %c0_262 = arith.constant 0 : index
    %c64_263 = arith.constant 64 : index
    %196 = vector.load %arg9[%c1_260, %c0_261, %c0_262, %c64_263] : memref<2x8x8x576xbf16, #tpu.memory_space<vmem>>, vector<1x8x8x64xbf16>
    %197 = vector.shape_cast %196 : vector<1x8x8x64xbf16> to vector<8x8x64xbf16>
    %198 = vector.shape_cast %195 : vector<8x8x64xbf16> to vector<1x8x8x64xbf16>
    tpu.vector_store %arg9[%c1_260, %c0_261, %c0_262, %c64_263], %198 {strides = array<i32>} : memref<2x8x8x576xbf16, #tpu.memory_space<vmem>>, vector<1x8x8x64xbf16>,
    %c1_264 = arith.constant 1 : index
    %c0_265 = arith.constant 0 : index
    %c2_266 = arith.constant 2 : index
    %c0_267 = arith.constant 0 : index
    %199 = vector.load %arg8[%c1_264, %c0_265, %c2_266, %c0_267] : memref<2x10x10x64xbf16, #tpu.memory_space<vmem>>, vector<1x8x8x64xbf16>
    %200 = vector.shape_cast %199 : vector<1x8x8x64xbf16> to vector<8x8x64xbf16>
    %c1_268 = arith.constant 1 : index
    %c0_269 = arith.constant 0 : index
    %c0_270 = arith.constant 0 : index
    %c128_271 = arith.constant 128 : index
    %201 = vector.load %arg9[%c1_268, %c0_269, %c0_270, %c128_271] : memref<2x8x8x576xbf16, #tpu.memory_space<vmem>>, vector<1x8x8x64xbf16>
    %202 = vector.shape_cast %201 : vector<1x8x8x64xbf16> to vector<8x8x64xbf16>
    %203 = vector.shape_cast %200 : vector<8x8x64xbf16> to vector<1x8x8x64xbf16>
    tpu.vector_store %arg9[%c1_268, %c0_269, %c0_270, %c128_271], %203 {strides = array<i32>} : memref<2x8x8x576xbf16, #tpu.memory_space<vmem>>, vector<1x8x8x64xbf16>,
    %c1_272 = arith.constant 1 : index
    %c1_273 = arith.constant 1 : index
    %c0_274 = arith.constant 0 : index
    %c0_275 = arith.constant 0 : index
    %204 = vector.load %arg8[%c1_272, %c1_273, %c0_274, %c0_275] : memref<2x10x10x64xbf16, #tpu.memory_space<vmem>>, vector<1x8x8x64xbf16>
    %205 = vector.shape_cast %204 : vector<1x8x8x64xbf16> to vector<8x8x64xbf16>
    %c1_276 = arith.constant 1 : index
    %c0_277 = arith.constant 0 : index
    %c0_278 = arith.constant 0 : index
    %c192_279 = arith.constant 192 : index
    %206 = vector.load %arg9[%c1_276, %c0_277, %c0_278, %c192_279] : memref<2x8x8x576xbf16, #tpu.memory_space<vmem>>, vector<1x8x8x64xbf16>
    %207 = vector.shape_cast %206 : vector<1x8x8x64xbf16> to vector<8x8x64xbf16>
    %208 = vector.shape_cast %205 : vector<8x8x64xbf16> to vector<1x8x8x64xbf16>
    tpu.vector_store %arg9[%c1_276, %c0_277, %c0_278, %c192_279], %208 {strides = array<i32>} : memref<2x8x8x576xbf16, #tpu.memory_space<vmem>>, vector<1x8x8x64xbf16>,
    %c1_280 = arith.constant 1 : index
    %c1_281 = arith.constant 1 : index
    %c1_282 = arith.constant 1 : index
    %c0_283 = arith.constant 0 : index
    %209 = vector.load %arg8[%c1_280, %c1_281, %c1_282, %c0_283] : memref<2x10x10x64xbf16, #tpu.memory_space<vmem>>, vector<1x8x8x64xbf16>
    %210 = vector.shape_cast %209 : vector<1x8x8x64xbf16> to vector<8x8x64xbf16>
    %c1_284 = arith.constant 1 : index
    %c0_285 = arith.constant 0 : index
    %c0_286 = arith.constant 0 : index
    %c256_287 = arith.constant 256 : index
    %211 = vector.load %arg9[%c1_284, %c0_285, %c0_286, %c256_287] : memref<2x8x8x576xbf16, #tpu.memory_space<vmem>>, vector<1x8x8x64xbf16>
    %212 = vector.shape_cast %211 : vector<1x8x8x64xbf16> to vector<8x8x64xbf16>
    %213 = vector.shape_cast %210 : vector<8x8x64xbf16> to vector<1x8x8x64xbf16>
    tpu.vector_store %arg9[%c1_284, %c0_285, %c0_286, %c256_287], %213 {strides = array<i32>} : memref<2x8x8x576xbf16, #tpu.memory_space<vmem>>, vector<1x8x8x64xbf16>,
    %c1_288 = arith.constant 1 : index
    %c1_289 = arith.constant 1 : index
    %c2_290 = arith.constant 2 : index
    %c0_291 = arith.constant 0 : index
    %214 = vector.load %arg8[%c1_288, %c1_289, %c2_290, %c0_291] : memref<2x10x10x64xbf16, #tpu.memory_space<vmem>>, vector<1x8x8x64xbf16>
    %215 = vector.shape_cast %214 : vector<1x8x8x64xbf16> to vector<8x8x64xbf16>
    %c1_292 = arith.constant 1 : index
    %c0_293 = arith.constant 0 : index
    %c0_294 = arith.constant 0 : index
    %c320_295 = arith.constant 320 : index
    %216 = vector.load %arg9[%c1_292, %c0_293, %c0_294, %c320_295] : memref<2x8x8x576xbf16, #tpu.memory_space<vmem>>, vector<1x8x8x64xbf16>
    %217 = vector.shape_cast %216 : vector<1x8x8x64xbf16> to vector<8x8x64xbf16>
    %218 = vector.shape_cast %215 : vector<8x8x64xbf16> to vector<1x8x8x64xbf16>
    tpu.vector_store %arg9[%c1_292, %c0_293, %c0_294, %c320_295], %218 {strides = array<i32>} : memref<2x8x8x576xbf16, #tpu.memory_space<vmem>>, vector<1x8x8x64xbf16>,
    %c1_296 = arith.constant 1 : index
    %c2_297 = arith.constant 2 : index
    %c0_298 = arith.constant 0 : index
    %c0_299 = arith.constant 0 : index
    %219 = vector.load %arg8[%c1_296, %c2_297, %c0_298, %c0_299] : memref<2x10x10x64xbf16, #tpu.memory_space<vmem>>, vector<1x8x8x64xbf16>
    %220 = vector.shape_cast %219 : vector<1x8x8x64xbf16> to vector<8x8x64xbf16>
    %c1_300 = arith.constant 1 : index
    %c0_301 = arith.constant 0 : index
    %c0_302 = arith.constant 0 : index
    %c384_303 = arith.constant 384 : index
    %221 = vector.load %arg9[%c1_300, %c0_301, %c0_302, %c384_303] : memref<2x8x8x576xbf16, #tpu.memory_space<vmem>>, vector<1x8x8x64xbf16>
    %222 = vector.shape_cast %221 : vector<1x8x8x64xbf16> to vector<8x8x64xbf16>
    %223 = vector.shape_cast %220 : vector<8x8x64xbf16> to vector<1x8x8x64xbf16>
    tpu.vector_store %arg9[%c1_300, %c0_301, %c0_302, %c384_303], %223 {strides = array<i32>} : memref<2x8x8x576xbf16, #tpu.memory_space<vmem>>, vector<1x8x8x64xbf16>,
    %c1_304 = arith.constant 1 : index
    %c2_305 = arith.constant 2 : index
    %c1_306 = arith.constant 1 : index
    %c0_307 = arith.constant 0 : index
    %224 = vector.load %arg8[%c1_304, %c2_305, %c1_306, %c0_307] : memref<2x10x10x64xbf16, #tpu.memory_space<vmem>>, vector<1x8x8x64xbf16>
    %225 = vector.shape_cast %224 : vector<1x8x8x64xbf16> to vector<8x8x64xbf16>
    %c1_308 = arith.constant 1 : index
    %c0_309 = arith.constant 0 : index
    %c0_310 = arith.constant 0 : index
    %c448_311 = arith.constant 448 : index
    %226 = vector.load %arg9[%c1_308, %c0_309, %c0_310, %c448_311] : memref<2x8x8x576xbf16, #tpu.memory_space<vmem>>, vector<1x8x8x64xbf16>
    %227 = vector.shape_cast %226 : vector<1x8x8x64xbf16> to vector<8x8x64xbf16>
    %228 = vector.shape_cast %225 : vector<8x8x64xbf16> to vector<1x8x8x64xbf16>
    tpu.vector_store %arg9[%c1_308, %c0_309, %c0_310, %c448_311], %228 {strides = array<i32>} : memref<2x8x8x576xbf16, #tpu.memory_space<vmem>>, vector<1x8x8x64xbf16>,
    %c1_312 = arith.constant 1 : index
    %c2_313 = arith.constant 2 : index
    %c2_314 = arith.constant 2 : index
    %c0_315 = arith.constant 0 : index
    %229 = vector.load %arg8[%c1_312, %c2_313, %c2_314, %c0_315] : memref<2x10x10x64xbf16, #tpu.memory_space<vmem>>, vector<1x8x8x64xbf16>
    %230 = vector.shape_cast %229 : vector<1x8x8x64xbf16> to vector<8x8x64xbf16>
    %c1_316 = arith.constant 1 : index
    %c0_317 = arith.constant 0 : index
    %c0_318 = arith.constant 0 : index
    %c512_319 = arith.constant 512 : index
    %231 = vector.load %arg9[%c1_316, %c0_317, %c0_318, %c512_319] : memref<2x8x8x576xbf16, #tpu.memory_space<vmem>>, vector<1x8x8x64xbf16>
    %232 = vector.shape_cast %231 : vector<1x8x8x64xbf16> to vector<8x8x64xbf16>
    %233 = vector.shape_cast %230 : vector<8x8x64xbf16> to vector<1x8x8x64xbf16>
    tpu.vector_store %arg9[%c1_316, %c0_317, %c0_318, %c512_319], %233 {strides = array<i32>} : memref<2x8x8x576xbf16, #tpu.memory_space<vmem>>, vector<1x8x8x64xbf16>,
    %c0_320 = arith.constant 0 : index
    %c0_321 = arith.constant 0 : index
    %c0_322 = arith.constant 0 : index
    %c0_323 = arith.constant 0 : index
    %234 = vector.load %arg9[%c0_320, %c0_321, %c0_322, %c0_323] : memref<2x8x8x576xbf16, #tpu.memory_space<vmem>>, vector<2x8x8x576xbf16>
    %235 = vector.shape_cast %234 : vector<2x8x8x576xbf16> to vector<128x576xbf16>
    %c0_324 = arith.constant 0 : index
    %c0_325 = arith.constant 0 : index
    %236 = vector.load %arg4[%c0_324, %c0_325] : memref<576x64xbf16, #tpu.memory_space<vmem>>, vector<576x64xbf16>
    %cst_326 = arith.constant dense<0.000000e+00> : vector<128x64xf32>
    %237 = tpu.matmul %235, %236, %cst_326 {dimension_numbers = #tpu.dot_dimension_numbers<[1], [0], [0], [1], [0, 0, 1, 1], [], []>} : vector<128x576xbf16>, vector<576x64xbf16>, vector<128x64xf32> -> vector<128x64xf32>
    %c0_327 = arith.constant 0 : index
    %c0_328 = arith.constant 0 : index
    %238 = vector.load %arg5[%c0_327, %c0_328] : memref<1x64xf32, #tpu.memory_space<vmem>>, vector<1x64xf32>
    %239 = vector.broadcast %238 : vector<1x64xf32> to vector<128x64xf32>
    %240 = arith.addf %237, %239 : vector<128x64xf32>
    %c0_329 = arith.constant 0 : index
    %c0_330 = arith.constant 0 : index
    %c0_331 = arith.constant 0 : index
    %c0_332 = arith.constant 0 : index
    %241 = vector.load %arg10[%c0_329, %c0_330, %c0_331, %c0_332] : memref<2x8x8x64xf32, #tpu.memory_space<vmem>>, vector<2x8x8x64xf32>
    %242 = vector.shape_cast %241 : vector<2x8x8x64xf32> to vector<128x64xf32>
    %243 = arith.addf %240, %242 : vector<128x64xf32>
    %c0_333 = arith.constant 0 : index
    %c0_334 = arith.constant 0 : index
    %244 = vector.load %arg7[%c0_333, %c0_334] : memref<128x64xf32, #tpu.memory_space<vmem>>, vector<128x64xf32>
    tpu.vector_store %arg7[%c0_333, %c0_334], %243 {strides = array<i32>} : memref<128x64xf32, #tpu.memory_space<vmem>>, vector<128x64xf32>,
    return
  }
  func.func @transform_0(%arg0: i32) -> (i32, i32, i32, i32) {
    %c0_i32 = arith.constant 0 : i32
    %c0_i32_0 = arith.constant 0 : i32
    %c0_i32_1 = arith.constant 0 : i32
    %c0_i32_2 = arith.constant 0 : i32
    return %arg0, %c0_i32, %c0_i32_0, %c0_i32_1 : i32, i32, i32, i32
  }
  func.func @transform_1(%arg0: i32) -> (i32, i32) {
    %c0_i32 = arith.constant 0 : i32
    %c0_i32_0 = arith.constant 0 : i32
    %c0_i32_1 = arith.constant 0 : i32
    return %c0_i32, %c0_i32_0 : i32, i32
  }
  func.func @transform_2(%arg0: i32) -> (i32, i32) {
    %c0_i32 = arith.constant 0 : i32
    %c0_i32_0 = arith.constant 0 : i32
    %c0_i32_1 = arith.constant 0 : i32
    return %c0_i32, %c0_i32_0 : i32, i32
  }
  func.func @transform_3(%arg0: i32) -> (i32, i32) {
    %c0_i32 = arith.constant 0 : i32
    %c0_i32_0 = arith.constant 0 : i32
    %c0_i32_1 = arith.constant 0 : i32
    return %c0_i32, %c0_i32_0 : i32, i32
  }
  func.func @transform_4(%arg0: i32) -> (i32, i32) {
    %c0_i32 = arith.constant 0 : i32
    %c0_i32_0 = arith.constant 0 : i32
    %c0_i32_1 = arith.constant 0 : i32
    return %c0_i32, %c0_i32_0 : i32, i32
  }
  func.func @transform_5(%arg0: i32) -> i32 {
    %c0_i32 = arith.constant 0 : i32
    %c0_i32_0 = arith.constant 0 : i32
    return %c0_i32 : i32
  }
  func.func @transform_6(%arg0: i32) -> (i32, i32) {
    %c0_i32 = arith.constant 0 : i32
    %c0_i32_0 = arith.constant 0 : i32
    return %arg0, %c0_i32 : i32, i32
  }
}

</mosaic_0001>

<bundles_post_ra>
// kernel: down_forward_fn.1
= control target key start
LH: loop header
LB: loop body
LE: loop exit
PB: predicated region body
PF: predicated region fallthrough
CT: control target
= control target key end

     0   :  { %vm26_vm0 = vcmask 519168   ;;  %s6842_s25 = smov 64   ;;  %vm28_vm1 = vcmask 516096   ;;  %v6843_v4 = vmov 0   ;;  %vm656_vm2 = vsmask.f32 3328  ;;  %s9367_s0 = inlined_call_operand.vmem [shape: f32[2,16,8,128], index: 0, kind: input, shape index: {}]   ;;  %s9368_s1 = inlined_call_operand.vmem [shape: bf16[576,64], index: 1, kind: input, shape index: {}]   ;;  %s9369_s2 = inlined_call_operand.vmem [shape: f32[1,64], index: 2, kind: input, shape index: {}]   ;;  %s9370_s3 = inlined_call_operand.vmem [shape: bf16[576,64], index: 3, kind: input, shape index: {}]   ;;  %s9371_s4 = inlined_call_operand.vmem [shape: f32[1,64], index: 4, kind: input, shape index: {}]   ;;  %s9372_s5 = inlined_call_operand.<no memory space> [shape: f32[1], index: 5, kind: input, shape index: {}]   ;;  %s9373_s6 = inlined_call_operand.hbm [shape: f32[128,64], index: 6, kind: output, shape index: {}]  }
   0x1   :  { %v6885_v0 = vld [vmem:[%s9367_s0 + $0x10] sm:$0xff]  ;;  %v6890_v1 = vld [vmem:[%s9367_s0] sm:$0xff]  ;;  %v6899_v2 = vld [vmem:[%s9367_s0 + $0x18] sm:$0xff]  ;;  %32 = vst.msk [vmem:[#allocation2 + $0x10] sm:$0xf] %vm26_vm0, %v6843_v4 }
   0x2   :  { %104 = vrot.lane.b32.xlu1 %v6885_v0, %s6842_s25  ;;  %100 = vrot.lane.b32.xlu0 %v6890_v1, %s6842_s25  ;;  %v6904_v3 = vld [vmem:[%s9367_s0 + $0x8] sm:$0xff]  ;;  %33 = vst.msk [vmem:[#allocation2 + $0x14] sm:$0x1] %vm28_vm1, %v6843_v4  ;;  %29 = vst.msk [vmem:[#allocation2 + $0x4] sm:$0x1] %vm28_vm1, %v6843_v4  ;;  %v6958_v6 = vld [vmem:[%s9367_s0 + $0x20] sm:$0xff] }
   0x3   :  { %27 = vst.msk [vmem:[#allocation2] sm:$0xf] %vm26_vm0, %v6843_v4  ;;  %30 = vst.msk [vmem:[#allocation2 + $0x8] sm:$0xf] %vm26_vm0, %v6843_v4  ;;  %v6953_v5 = vld [vmem:[%s9367_s0 + $0x28] sm:$0xff]  ;;  %v6967_v7 = vld [vmem:[%s9367_s0 + $0x38] sm:$0xff] }
   0x4   :  { %31 = vst.msk [vmem:[#allocation2 + $0xc] sm:$0x1] %vm28_vm1, %v6843_v4  ;;  %35 = vst.msk [vmem:[#allocation2 + $0x1c] sm:$0x1] %vm28_vm1, %v6843_v4  ;;  %v6972_v8 = vld [vmem:[%s9367_s0 + $0x30] sm:$0xff]  ;;  %v6981_v9 = vld [vmem:[%s9367_s0 + $0x48] sm:$0xff] }
   0x5   :  { %34 = vst.msk [vmem:[#allocation2 + $0x18] sm:$0xf] %vm26_vm0, %v6843_v4  ;;  %36 = vst.msk [vmem:[#allocation2 + $0x20] sm:$0xf] %vm26_vm0, %v6843_v4  ;;  %v6986_v10 = vld [vmem:[%s9367_s0 + $0x40] sm:$0xff]  ;;  %v6995_v11 = vld [vmem:[%s9367_s0 + $0x58] sm:$0xff] }
   0x6   :  { %37 = vst.msk [vmem:[#allocation2 + $0x24] sm:$0x1] %vm28_vm1, %v6843_v4  ;;  %39 = vst.msk [vmem:[#allocation2 + $0x2c] sm:$0x1] %vm28_vm1, %v6843_v4  ;;  %106 = vrot.lane.b32.xlu1 %v6899_v2, %s6842_s25  ;;  %102 = vrot.lane.b32.xlu0 %v6904_v3, %s6842_s25  ;;  %v7000_v12 = vld [vmem:[%s9367_s0 + $0x50] sm:$0xff]  ;;  %v7009_v13 = vld [vmem:[%s9367_s0 + $0x68] sm:$0xff] }
   0x7   :  { %38 = vst.msk [vmem:[#allocation2 + $0x28] sm:$0xf] %vm26_vm0, %v6843_v4  ;;  %40 = vst.msk [vmem:[#allocation2 + $0x30] sm:$0xf] %vm26_vm0, %v6843_v4  ;;  %v7014_v14 = vld [vmem:[%s9367_s0 + $0x60] sm:$0xff]  ;;  %v7019_v15 = vld [vmem:[%s9367_s0 + $0x88] sm:$0xff] }
   0x8   :  { %41 = vst.msk [vmem:[#allocation2 + $0x34] sm:$0x1] %vm28_vm1, %v6843_v4  ;;  %43 = vst.msk [vmem:[#allocation2 + $0x3c] sm:$0x1] %vm28_vm1, %v6843_v4  ;;  %v7028_v16 = vld [vmem:[%s9367_s0 + $0x80] sm:$0xff]  ;;  %v7033_v17 = vld [vmem:[%s9367_s0 + $0x78] sm:$0xff] }
   0x9   :  { %42 = vst.msk [vmem:[#allocation2 + $0x38] sm:$0xf] %vm26_vm0, %v6843_v4  ;;  %44 = vst.msk [vmem:[#allocation2 + $0x40] sm:$0xf] %vm26_vm0, %v6843_v4  ;;  %v7042_v18 = vld [vmem:[%s9367_s0 + $0x70] sm:$0xff]  ;;  %v7047_v19 = vld [vmem:[%s9367_s0 + $0x98] sm:$0xff] }
   0xa   :  { %45 = vst.msk [vmem:[#allocation2 + $0x44] sm:$0x1] %vm28_vm1, %v6843_v4  ;;  %47 = vst.msk [vmem:[#allocation2 + $0x4c] sm:$0x1] %vm28_vm1, %v6843_v4  ;;  %110 = vrot.lane.b32.xlu1 %v6953_v5, %s6842_s25  ;;  %108 = vrot.lane.b32.xlu0 %v6958_v6, %s6842_s25  ;;  %v7056_v20 = vld [vmem:[%s9367_s0 + $0x90] sm:$0xff]  ;;  %v7065_v21 = vld [vmem:[%s9367_s0 + $0xa8] sm:$0xff] }
   0xb   :  { %46 = vst.msk [vmem:[#allocation2 + $0x48] sm:$0xf] %vm26_vm0, %v6843_v4  ;;  %48 = vst.msk [vmem:[#allocation2 + $0x50] sm:$0xf] %vm26_vm0, %v6843_v4  ;;  %v7070_v22 = vld [vmem:[%s9367_s0 + $0xa0] sm:$0xff]  ;;  %v7075_v23 = vld [vmem:[%s9367_s0 + $0xb8] sm:$0xff] }
   0xc   :  { %49 = vst.msk [vmem:[#allocation2 + $0x54] sm:$0x1] %vm28_vm1, %v6843_v4  ;;  %51 = vst.msk [vmem:[#allocation2 + $0x5c] sm:$0x1] %vm28_vm1, %v6843_v4  ;;  %v7080_v24 = vld [vmem:[%s9367_s0 + $0xb0] sm:$0xff]  ;;  %v7089_v26 = vld [vmem:[%s9367_s0 + $0xc8] sm:$0xff] }
   0xd   :  { %50 = vst.msk [vmem:[#allocation2 + $0x58] sm:$0xf] %vm26_vm0, %v6843_v4  ;;  %52 = vst.msk [vmem:[#allocation2 + $0x60] sm:$0xf] %vm26_vm0, %v6843_v4  ;;  %v640_v25 = vld [vmem:[#allocation2] sm:$0xf] }
   0xe   :  { %53 = vst.msk [vmem:[#allocation2 + $0x64] sm:$0x1] %vm28_vm1, %v6843_v4  ;;  %55 = vst.msk [vmem:[#allocation2 + $0x6c] sm:$0x1] %vm28_vm1, %v6843_v4  ;;  %114 = vrot.lane.b32.xlu1 %v6967_v7, %s6842_s25  ;;  %112 = vrot.lane.b32.xlu0 %v6972_v8, %s6842_s25  ;;  %v660_v27 = vshrl.u32 %v640_v25, 16  ;;  %v663_v28 = vshll.u32 %v640_v25, 16 }
   0xf   :  { %54 = vst.msk [vmem:[#allocation2 + $0x68] sm:$0xf] %vm26_vm0, %v6843_v4  ;;  %56 = vst.msk [vmem:[#allocation2 + $0x70] sm:$0xf] %vm26_vm0, %v6843_v4  ;;  %v7098_v29 = vld [vmem:[%s9367_s0 + $0xc0] sm:$0xff]  ;;  %v7103_v30 = vld [vmem:[%s9367_s0 + $0xd8] sm:$0xff] }
  0x10   :  { %57 = vst.msk [vmem:[#allocation2 + $0x74] sm:$0x1] %vm28_vm1, %v6843_v4  ;;  %59 = vst.msk [vmem:[#allocation2 + $0x7c] sm:$0x1] %vm28_vm1, %v6843_v4  ;;  %v7108_v31 = vld [vmem:[%s9367_s0 + $0xd0] sm:$0xff]  ;;  %v662_v32 = vrot.slane %v660_v27, 4 }
  0x11   :  { %58 = vst.msk [vmem:[#allocation2 + $0x78] sm:$0xf] %vm26_vm0, %v6843_v4  ;;  %60 = vst.msk [vmem:[#allocation2 + $0x80] sm:$0xf] %vm26_vm0, %v6843_v4  ;;  %v665_v33 = vrot.slane %v663_v28, 5  ;;  %v7117_v35 = vld [vmem:[%s9367_s0 + $0xe8] sm:$0xff] }
  0x12   :  { %61 = vst.msk [vmem:[#allocation2 + $0x84] sm:$0x1] %vm28_vm1, %v6843_v4  ;;  %63 = vst.msk [vmem:[#allocation2 + $0x8c] sm:$0x1] %vm28_vm1, %v6843_v4  ;;  %118 = vrot.lane.b32.xlu1 %v6981_v9, %s6842_s25  ;;  %116 = vrot.lane.b32.xlu0 %v6986_v10, %s6842_s25  ;;  %v641_v34 = vld [vmem:[#allocation2 + $0x4] sm:$0x1] }
  0x13   :  { %62 = vst.msk [vmem:[#allocation2 + $0x88] sm:$0xf] %vm26_vm0, %v6843_v4  ;;  %64 = vst.msk [vmem:[#allocation2 + $0x90] sm:$0xf] %vm26_vm0, %v6843_v4  ;;  %v7126_v36 = vld [vmem:[%s9367_s0 + $0xe0] sm:$0xff]  ;;  %v666_v37 = vor.u32 %v665_v33, %v662_v32  ;;  %v669_v38 = vshll.u32 %v641_v34, 16 }
  0x14   :  { %65 = vst.msk [vmem:[#allocation2 + $0x94] sm:$0x1] %vm28_vm1, %v6843_v4  ;;  %67 = vst.msk [vmem:[#allocation2 + $0x9c] sm:$0x1] %vm28_vm1, %v6843_v4  ;;  %vm657_vm3 = vsmask.f32 7440 }
  0x15   :  { %66 = vst.msk [vmem:[#allocation2 + $0x98] sm:$0xf] %vm26_vm0, %v6843_v4  ;;  %v7131_v39 = vld [vmem:[%s9367_s0 + $0xf8] sm:$0xff]  ;;  %v7140_v40 = vld [vmem:[%s9367_s0 + $0xf0] sm:$0xff]  ;;  %vm7142_vm4 = vmor %vm656_vm2, %vm657_vm3  ;;  %v667_v42 = vrot.slane %v666_v37, 4  ;;  %v671_v43 = vrot.slane %v669_v38, 5 }
  0x16   :  { %122 = vrot.lane.b32.xlu1 %v6995_v11, %s6842_s25  ;;  %120 = vrot.lane.b32.xlu0 %v7000_v12, %s6842_s25 }
  0x17   :  { %v672_v44 = vsel %vm7142_vm4, %v667_v42, %v671_v43 }
  0x1a   :  { %126 = vrot.lane.b32.xlu1 %v7009_v13, %s6842_s25  ;;  %124 = vrot.lane.b32.xlu0 %v7014_v14, %s6842_s25 }
  0x1e   :  { %383 = vrot.lane.b32.xlu1 %v7019_v15, %s6842_s25  ;;  %381 = vrot.lane.b32.xlu0 %v7028_v16, %s6842_s25 }
  0x22   :  { %130 = vrot.lane.b32.xlu1 %v7033_v17, %s6842_s25  ;;  %128 = vrot.lane.b32.xlu0 %v7042_v18, %s6842_s25 }
  0x26   :  { %387 = vrot.lane.b32.xlu1 %v7047_v19, %s6842_s25  ;;  %385 = vrot.lane.b32.xlu0 %v7056_v20, %s6842_s25 }
  0x2a   :  { %391 = vrot.lane.b32.xlu1 %v7065_v21, %s6842_s25  ;;  %389 = vrot.lane.b32.xlu0 %v7070_v22, %s6842_s25 }
  0x2e   :  { %395 = vrot.lane.b32.xlu1 %v7075_v23, %s6842_s25  ;;  %393 = vrot.lane.b32.xlu0 %v7080_v24, %s6842_s25 }
  0x32   :  { %399 = vrot.lane.b32.xlu1 %v7089_v26, %s6842_s25  ;;  %397 = vrot.lane.b32.xlu0 %v7098_v29, %s6842_s25 }
  0x36   :  { %403 = vrot.lane.b32.xlu1 %v7103_v30, %s6842_s25  ;;  %401 = vrot.lane.b32.xlu0 %v7108_v31, %s6842_s25 }
  0x3a   :  { %407 = vrot.lane.b32.xlu1 %v7117_v35, %s6842_s25  ;;  %405 = vrot.lane.b32.xlu0 %v7126_v36, %s6842_s25 }
  0x3e   :  { %411 = vrot.lane.b32.xlu1 %v7131_v39, %s6842_s25  ;;  %409 = vrot.lane.b32.xlu0 %v7140_v40, %s6842_s25 }
  0x42   :  { %771 = vrot.lane.b32.xlu0 %v672_v44, %s6842_s25 }
  0x43   :  { %12 = vsyncpa [#allocation7], 0  ;;  %vm172_vm5 = vcmask 523264   ;;  %v1450_v55 = vld [vmem:[#allocation2 + $0x50] sm:$0xf]  ;;  %vm795_vm10 = vcmask 1043968  }
  0x44   :  { %vm295_vm6 = vsmask.f32 7938  ;;  %v1467_v62 = vshrl.u32 %v1450_v55, 16  ;;  %v1470_v63 = vshll.u32 %v1450_v55, 16  ;;  %vm301_vm7 = vsmask.f32 256 }
  0x45   :  { %vm7162_vm8 = vmand %vm26_vm0, %vm295_vm6  ;;  %v309_v33 = vld [vmem:[#allocation2 + $0x14] sm:$0x1]  ;;  %v297_v42 = vld [vmem:[#allocation2 + $0x8] sm:$0xf]  ;;  %vm836_vm11 = vcmask 1042432   ;;  %vm837_vm12 = vcmask 1046532  }
  0x46   :  { %vm7170_vm9 = vmand %vm28_vm1, %vm301_vm7  ;;  %v303_v43 = vld [vmem:[#allocation2 + $0xc] sm:$0x1] }
  0x47   :  { %vm7440_vm13 = vmor %vm836_vm11, %vm837_vm12 }
  0x74   :  { %v105_v45 = vpop.permute.xlu1 %104  ;;  %v101_v46 = vpop.permute.xlu0 %100 }
  0x75   :  { %v150_v49 = vmax.f32 %v6885_v0, %v105_v45  ;;  %v148_v50 = vmax.f32 %v6890_v1, %v101_v46  ;;  %v1469_v45 = vrot.slane %v1467_v62, 4  ;;  %v1472_v46 = vrot.slane %v1470_v63, 5  ;;  %v1451_v63 = vld [vmem:[#allocation2 + $0x54] sm:$0x1] }
  0x78   :  { %v107_v47 = vpop.permute.xlu1 %106  ;;  %v103_v48 = vpop.permute.xlu0 %102 }
  0x79   :  { %v151_v51 = vmax.f32 %v6899_v2, %v107_v47  ;;  %v149_v52 = vmax.f32 %v6904_v3, %v103_v48 }
  0x7b   :  { %v165_v53 = vmax.f32 %v150_v49, %v151_v51  ;;  %v164_v54 = vmax.f32 %v148_v50, %v149_v52 }
  0x7c   :  { %v111_v56 = vpop.permute.xlu1 %110  ;;  %v109_v57 = vpop.permute.xlu0 %108 }
  0x7d   :  { %174 = vst.msk [vmem:[#allocation4 + $0x8] sm:$0xff] %vm172_vm5, %v165_v53  ;;  %v6299_v58 = vpack.c.bf16 %v165_v53, %v165_v53  ;;  %173 = vst.msk [vmem:[#allocation4] sm:$0xff] %vm172_vm5, %v164_v54  ;;  %v6298_v59 = vpack.c.bf16 %v164_v54, %v164_v54  ;;  %v153_v60 = vmax.f32 %v6953_v5, %v111_v56  ;;  %v306_v5 = vld [vmem:[#allocation2 + $0x10] sm:$0xf]  ;;  %v1206_v54 = vld [vmem:[#allocation2 + $0x48] sm:$0xf] }
  0x7e   :  { %v152_v61 = vmax.f32 %v6958_v6, %v109_v57 }
  0x7f   :  { %v222_v0 = vshrl.u32 %v6299_v58, 16  ;;  %v214_v1 = vshrl.u32 %v6298_v59, 16  ;;  %v225_v2 = vshll.u32 %v6299_v58, 16  ;;  %v217_v3 = vshll.u32 %v6298_v59, 16 }
  0x80   :  { %v166_v4 = vmax.f32 %v152_v61, %v153_v60  ;;  %v115_v25 = vpop.permute.xlu1 %114  ;;  %v113_v27 = vpop.permute.xlu0 %112 }
  0x81   :  { %v224_v28 = vrot.slane %v222_v0, 7  ;;  %v216_v6 = vrot.slane %v214_v1, 7  ;;  %v155_v34 = vmax.f32 %v6967_v7, %v115_v25  ;;  %v154_v37 = vmax.f32 %v6972_v8, %v113_v27  ;;  %v6663_v0 = vld [vmem:[%s9368_s1 + $0x40] sm:$0xff]  }
  0x82   :  { %175 = vst.msk [vmem:[#allocation4 + $0x10] sm:$0xff] %vm172_vm5, %v166_v4  ;;  %v6300_v44 = vpack.c.bf16 %v166_v4, %v166_v4  ;;  %v6664_v1 = vld [vmem:[%s9368_s1] sm:$0xff]   ;;  %v1473_v4 = vor.u32 %v1472_v46, %v1469_v45  ;;  %v1307_v25 = vshrl.u32 %v1206_v54, 16  ;;  %6330 = vmatprep.subr.bf16.mxu0 %v6663_v0 }
  0x83   :  { %v227_v47 = vor.u32 %v225_v2, %v224_v28  ;;  %v228_v48 = vrot.slane %v224_v28, 4  ;;  %v219_v49 = vor.u32 %v217_v3, %v216_v6  ;;  %v220_v50 = vrot.slane %v216_v6, 4  ;;  %v312_v2 = vld [vmem:[#allocation2 + $0x18] sm:$0xf]  ;;  %v315_v3 = vld [vmem:[#allocation2 + $0x1c] sm:$0x1]  ;;  %6331 = vmatpush3.bf16.msra.mxu0 %v6664_v1 }
  0x84   :  { %v230_v7 = vshrl.u32 %v6300_v44, 16  ;;  %v233_v51 = vshll.u32 %v6300_v44, 16  ;;  %v167_v8 = vmax.f32 %v154_v37, %v155_v34  ;;  %v119_v52 = vpop.permute.xlu1 %118  ;;  %v117_v53 = vpop.permute.xlu0 %116  ;;  %v1310_v6 = vshll.u32 %v1206_v54, 16 }
  0x85   :  { %v307_v55 = vsel %vm7162_vm8, %v227_v47, %v306_v5  ;;  %v310_v56 = vsel %vm7170_vm9, %v228_v48, %v309_v33  ;;  %v298_v57 = vsel %vm7162_vm8, %v219_v49, %v297_v42  ;;  %v304_v58 = vsel %vm7170_vm9, %v220_v50, %v303_v43  ;;  %v6665_v48 = vld [vmem:[%s9368_s1 + $0x48] sm:$0xff]   ;;  %v624_v49 = vld [vmem:[#allocation2] sm:$0xf] }
  0x86   :  { %308 = vst [vmem:[#allocation2 + $0x10] sm:$0xf] %v307_v55  ;;  %311 = vst [vmem:[#allocation2 + $0x14] sm:$0x1] %v310_v56  ;;  %v232_v59 = vrot.slane %v230_v7, 7  ;;  %v6301_v60 = vpack.c.bf16 %v167_v8, %v167_v8  ;;  %v157_v61 = vmax.f32 %v6981_v9, %v119_v52  ;;  %v156_v62 = vmax.f32 %v6986_v10, %v117_v53 }
  0x87   :  { %299 = vst [vmem:[#allocation2 + $0x8] sm:$0xf] %v298_v57  ;;  %305 = vst [vmem:[#allocation2 + $0xc] sm:$0x1] %v304_v58  ;;  %v318_v10 = vld [vmem:[#allocation2 + $0x20] sm:$0xf]  ;;  %6332 = vmatprep.subr.bf16.mxu0 %v6665_v48 }
  0x88   :  { %176 = vst.msk [vmem:[#allocation4 + $0x18] sm:$0xff] %vm172_vm5, %v167_v8  ;;  %v235_v27 = vor.u32 %v233_v51, %v232_v59  ;;  %v236_v28 = vrot.slane %v232_v59, 4  ;;  %v238_v5 = vshrl.u32 %v6301_v60, 16  ;;  %v123_v33 = vpop.permute.xlu1 %122  ;;  %v121_v9 = vpop.permute.xlu0 %120  ;;  %v168_v34 = vmax.f32 %v156_v62, %v157_v61  ;;  %v7207_v8 = vld [vmem:[#allocation2 + $0x4c] sm:$0x1] }
  0x89   :  { %v159_v37 = vmax.f32 %v6995_v11, %v123_v33  ;;  %v158_v42 = vmax.f32 %v7000_v12, %v121_v9  ;;  %v1476_v43 = vshll.u32 %v1451_v63, 16  ;;  %v241_v47 = vshll.u32 %v6301_v60, 16  ;;  %v6666_v11 = vld [vmem:[%s9368_s1 + $0x8] sm:$0xff]   ;;  %v321_v12 = vld [vmem:[#allocation2 + $0x24] sm:$0x1] }
  0x8a   :  { %v313_v44 = vsel %vm7162_vm8, %v235_v27, %v312_v2  ;;  %v316_v45 = vsel %vm7170_vm9, %v236_v28, %v315_v3  ;;  %v240_v46 = vrot.slane %v238_v5, 7  ;;  %177 = vst.msk [vmem:[#allocation4 + $0x20] sm:$0xff] %vm172_vm5, %v168_v34  ;;  %v6302_v50 = vpack.c.bf16 %v168_v34, %v168_v34  ;;  %6333 = vmatpush3.bf16.msra.mxu0 %v6666_v11  ;;  %v324_v27 = vld [vmem:[#allocation2 + $0x28] sm:$0xf]  ;;  %v327_v33 = vld [vmem:[#allocation2 + $0x2c] sm:$0x1] }
  0x8b   :  { %314 = vst [vmem:[#allocation2 + $0x18] sm:$0xf] %v313_v44  ;;  %317 = vst [vmem:[#allocation2 + $0x1c] sm:$0x1] %v316_v45  ;;  %v169_v7 = vmax.f32 %v158_v42, %v159_v37  ;;  %v7205_v51 = vrot.slane %v1473_v4, 4  ;;  %v7210_v56 = vrot.slane %v1307_v25, 4 }
  0x8c   :  { %632 = vst.msk [vmem:[#allocation3] sm:$0xf] %vm26_vm0, %v624_v49  ;;  %v243_v52 = vor.u32 %v241_v47, %v240_v46  ;;  %v244_v53 = vrot.slane %v240_v46, 4  ;;  %v127_v54 = vpop.permute.xlu1 %126  ;;  %v125_v55 = vpop.permute.xlu0 %124  ;;  %v7212_v57 = vrot.slane %v1310_v6, 5  ;;  %v246_v58 = vshrl.u32 %v6302_v50, 16  ;;  %v6667_v42 = vld [vmem:[%s9368_s1 + $0x50] sm:$0xff]  }
  0x8d   :  { %178 = vst.msk [vmem:[#allocation4 + $0x28] sm:$0xff] %vm172_vm5, %v169_v7  ;;  %v6303_v59 = vpack.c.bf16 %v169_v7, %v169_v7  ;;  %v161_v60 = vmax.f32 %v7009_v13, %v127_v54  ;;  %v888_v61 = vld [vmem:[#allocation2 + $0x10] sm:$0xf]  ;;  %v7216_v63 = vrot.slane %v1476_v43, 5  ;;  %v160_v2 = vmax.f32 %v7014_v14, %v125_v55  ;;  %v333_v49 = vld [vmem:[#allocation2 + $0x34] sm:$0x1]  ;;  %6334 = vmatprep.subr.bf16.mxu0 %v6667_v42 }
  0x8e   :  { %v887_v62 = vld [vmem:[#allocation2 + $0x8] sm:$0xf]  ;;  %v319_v0 = vsel %vm7162_vm8, %v243_v52, %v318_v10  ;;  %v322_v1 = vsel %vm7170_vm9, %v244_v53, %v321_v12  ;;  %905 = vrot.lane.b32.xlu1 %v888_v61, %s6842_s25  ;;  %v1316_v13 = vshll.u32 %v7207_v8, 16  ;;  %v248_v4 = vrot.slane %v246_v58, 7  ;;  %v330_v46 = vld [vmem:[#allocation2 + $0x30] sm:$0xf] }
  0x8f   :  { %903 = vrot.lane.b32.xlu0 %v887_v62, %s6842_s25  ;;  %v642_v3 = vld [vmem:[#allocation2 + $0x8] sm:$0xf]  ;;  %320 = vst [vmem:[#allocation2 + $0x20] sm:$0xf] %v319_v0  ;;  %323 = vst [vmem:[#allocation2 + $0x24] sm:$0x1] %v322_v1  ;;  %v170_v6 = vmax.f32 %v160_v2, %v161_v60  ;;  %v1313_v37 = vor.u32 %v7212_v57, %v7210_v56 }
  0x90   :  { %v249_v25 = vshll.u32 %v6302_v50, 16  ;;  %v254_v28 = vshrl.u32 %v6303_v59, 16  ;;  %v674_v5 = vshrl.u32 %v642_v3, 16  ;;  %v257_v9 = vshll.u32 %v6303_v59, 16  ;;  %v384_v10 = vpop.permute.xlu1 %383  ;;  %v382_v34 = vpop.permute.xlu0 %381  ;;  %v643_v48 = vld [vmem:[#allocation2 + $0xc] sm:$0x1] }
  0x91   :  { %v677_v14 = vshll.u32 %v642_v3, 16  ;;  %v252_v44 = vrot.slane %v248_v4, 4  ;;  %v430_v47 = vmax.f32 %v7019_v15, %v384_v10  ;;  %179 = vst.msk [vmem:[#allocation4 + $0x30] sm:$0xff] %vm172_vm5, %v170_v6  ;;  %v6304_v11 = vpack.c.bf16 %v170_v6, %v170_v6  ;;  %v6668_v15 = vld [vmem:[%s9368_s1 + $0x10] sm:$0xff]   ;;  %v6669_v10 = vld [vmem:[%s9368_s1 + $0x58] sm:$0xff]  }
  0x92   :  { %v251_v43 = vor.u32 %v249_v25, %v248_v4  ;;  %v256_v45 = vrot.slane %v254_v28, 7  ;;  %v429_v12 = vmax.f32 %v7028_v16, %v382_v34  ;;  %v889_v50 = vld [vmem:[#allocation2 + $0x18] sm:$0xf]  ;;  %v676_v7 = vrot.slane %v674_v5, 4  ;;  %v7248_v2 = vld [vmem:[#allocation2 + $0x10] sm:$0xf]  ;;  %6335 = vmatpush3.bf16.msra.mxu0 %v6668_v15 }
  0x93   :  { %v679_v8 = vrot.slane %v677_v14, 5  ;;  %v328_v53 = vsel %vm7170_vm9, %v252_v44, %v327_v33  ;;  %907 = vrot.lane.b32.xlu0 %v889_v50, %s6842_s25  ;;  %v262_v16 = vshrl.u32 %v6304_v11, 16  ;;  %v683_v60 = vshll.u32 %v643_v48, 16  ;;  %v336_v25 = vld [vmem:[#allocation2 + $0x38] sm:$0xf]  ;;  %6336 = vmatprep.subr.bf16.mxu0 %v6669_v10 }
  0x94   :  { %v325_v52 = vsel %vm7162_vm8, %v251_v43, %v324_v27  ;;  %v259_v54 = vor.u32 %v257_v9, %v256_v45  ;;  %v260_v55 = vrot.slane %v256_v45, 4  ;;  %329 = vst [vmem:[#allocation2 + $0x2c] sm:$0x1] %v328_v53  ;;  %v445_v56 = vmax.f32 %v429_v12, %v430_v47  ;;  %v131_v57 = vpop.permute.xlu1 %130  ;;  %v129_v58 = vpop.permute.xlu0 %128  ;;  %v339_v27 = vld [vmem:[#allocation2 + $0x3c] sm:$0x1] }
  0x95   :  { %326 = vst [vmem:[#allocation2 + $0x28] sm:$0xf] %v325_v52  ;;  %v680_v59 = vor.u32 %v679_v8, %v676_v7  ;;  %v163_v0 = vmax.f32 %v7033_v17, %v131_v57  ;;  %v162_v1 = vmax.f32 %v7042_v18, %v129_v58  ;;  %v264_v3 = vrot.slane %v262_v16, 7  ;;  %v575_v7 = vld [vmem:[#allocation2 + $0x58] sm:$0xf] }
  0x96   :  { %v331_v61 = vsel %vm7162_vm8, %v259_v54, %v330_v46  ;;  %v334_v62 = vsel %vm7170_vm9, %v260_v55, %v333_v49  ;;  %v265_v4 = vshll.u32 %v6304_v11, 16  ;;  %454 = vst.msk [vmem:[#allocation4 + $0x40] sm:$0xff] %vm172_vm5, %v445_v56  ;;  %v6306_v28 = vpack.c.bf16 %v445_v56, %v445_v56  ;;  %v890_v33 = vld [vmem:[#allocation2 + $0x20] sm:$0xf]  ;;  %v578_v8 = vld [vmem:[#allocation2 + $0x5c] sm:$0x1] }
  0x97   :  { %332 = vst [vmem:[#allocation2 + $0x30] sm:$0xf] %v331_v61  ;;  %335 = vst [vmem:[#allocation2 + $0x34] sm:$0x1] %v334_v62  ;;  %v1479_v5 = vsel %vm7142_vm4, %v7205_v51, %v7216_v63  ;;  %v171_v17 = vmax.f32 %v162_v1, %v163_v0  ;;  %v681_v18 = vrot.slane %v680_v59, 4  ;;  %v7255_v9 = vrot.slane %v1313_v37, 4  ;;  %909 = vrot.lane.b32.xlu1 %v890_v33, %s6842_s25 }
  0x98   :  { %v7257_v6 = vrot.slane %v1316_v13, 5  ;;  %v267_v34 = vor.u32 %v265_v4, %v264_v3  ;;  %v268_v14 = vrot.slane %v264_v3, 4  ;;  %v495_v42 = vshrl.u32 %v6306_v28, 16  ;;  %v388_v43 = vpop.permute.xlu1 %387  ;;  %v386_v44 = vpop.permute.xlu0 %385  ;;  %v6670_v37 = vld [vmem:[%s9368_s1 + $0x18] sm:$0xff]   ;;  %v345_v33 = vld [vmem:[#allocation2 + $0x44] sm:$0x1] }
  0x99   :  { %v688_v45 = vshrl.u32 %v7248_v2, 16  ;;  %180 = vst.msk [vmem:[#allocation4 + $0x38] sm:$0xff] %vm172_vm5, %v171_v17  ;;  %v6305_v13 = vpack.c.bf16 %v171_v17, %v171_v17  ;;  %v432_v46 = vmax.f32 %v7047_v19, %v388_v43  ;;  %v431_v47 = vmax.f32 %v7056_v20, %v386_v44  ;;  %6337 = vmatpush3.bf16.msra.mxu0 %v6670_v37  ;;  %v645_v20 = vld [vmem:[#allocation2 + $0x14] sm:$0x1]  ;;  %v646_v4 = vld [vmem:[#allocation2 + $0x18] sm:$0xf] }
  0x9a   :  { %v685_v48 = vrot.slane %v683_v60, 5  ;;  %v337_v49 = vsel %vm7162_vm8, %v267_v34, %v336_v25  ;;  %v340_v11 = vsel %vm7170_vm9, %v268_v14, %v339_v27  ;;  %v497_v12 = vrot.slane %v495_v42, 7  ;;  %v6671_v60 = vld [vmem:[%s9368_s1 + $0x60] sm:$0xff]   ;;  %v6673_v42 = vld [vmem:[%s9368_s1 + $0x68] sm:$0xff]  }
  0x9b   :  { %v498_v50 = vshll.u32 %v6306_v28, 16  ;;  %338 = vst [vmem:[#allocation2 + $0x38] sm:$0xf] %v337_v49  ;;  %341 = vst [vmem:[#allocation2 + $0x3c] sm:$0x1] %v340_v11  ;;  %v270_v52 = vshrl.u32 %v6305_v13, 16  ;;  %v446_v53 = vmax.f32 %v431_v47, %v432_v46  ;;  %v1319_v54 = vsel %vm7142_vm4, %v7255_v9, %v7257_v6  ;;  %6338 = vmatprep.subr.bf16.mxu0 %v6671_v60 }
  0x9c   :  { %v686_v19 = vsel %vm7142_vm4, %v681_v18, %v685_v48  ;;  %v501_v15 = vrot.slane %v497_v12, 4  ;;  %v273_v16 = vshll.u32 %v6305_v13, 16  ;;  %v891_v56 = vld [vmem:[#allocation2 + $0x28] sm:$0xf]  ;;  %v392_v57 = vpop.permute.xlu1 %391  ;;  %v390_v58 = vpop.permute.xlu0 %389  ;;  %v690_v59 = vrot.slane %v688_v45, 4  ;;  %v6672_v25 = vld [vmem:[%s9368_s1 + $0x20] sm:$0xff]  }
  0x9d   :  { %v500_v55 = vor.u32 %v498_v50, %v497_v12  ;;  %773 = vrot.lane.b32.xlu1 %v686_v19, %s6842_s25  ;;  %v272_v61 = vrot.slane %v270_v52, 7  ;;  %455 = vst.msk [vmem:[#allocation4 + $0x48] sm:$0xff] %vm172_vm5, %v446_v53  ;;  %v6307_v62 = vpack.c.bf16 %v446_v53, %v446_v53  ;;  %911 = vrot.lane.b32.xlu0 %v891_v56, %s6842_s25  ;;  %v342_v17 = vld [vmem:[#allocation2 + $0x40] sm:$0xf]  ;;  %v691_v18 = vshll.u32 %v7248_v2, 16  ;;  %v6674_v47 = vld [vmem:[%s9368_s1 + $0x28] sm:$0xff]  }
  0x9e   :  { %v434_v0 = vmax.f32 %v7065_v21, %v392_v57  ;;  %v433_v1 = vmax.f32 %v7070_v22, %v390_v58  ;;  %v892_v3 = vld [vmem:[#allocation2 + $0x30] sm:$0xf]  ;;  %v579_v28 = vsel %vm7170_vm9, %v501_v15, %v578_v8  ;;  %v697_v10 = vshll.u32 %v645_v20, 16  ;;  %6339 = vmatpush3.bf16.msra.mxu0 %v6672_v25  ;;  %v647_v13 = vld [vmem:[#allocation2 + $0x1c] sm:$0x1] }
  0x9f   :  { %v576_v27 = vsel %vm7162_vm8, %v500_v55, %v575_v7  ;;  %580 = vst [vmem:[#allocation2 + $0x5c] sm:$0x1] %v579_v28  ;;  %v275_v21 = vor.u32 %v273_v16, %v272_v61  ;;  %v276_v22 = vrot.slane %v272_v61, 4  ;;  %v503_v34 = vshrl.u32 %v6307_v62, 16  ;;  %6340 = vmatprep.subr.bf16.mxu0 %v6673_v42  ;;  %v6675_v50 = vld [vmem:[%s9368_s1 + $0x70] sm:$0xff]  }
  0xa0   :  { %577 = vst [vmem:[#allocation2 + $0x58] sm:$0xf] %v576_v27  ;;  %v506_v14 = vshll.u32 %v6307_v62, 16  ;;  %v447_v43 = vmax.f32 %v433_v1, %v434_v0  ;;  %v693_v44 = vrot.slane %v691_v18, 5  ;;  %v699_v45 = vrot.slane %v697_v10, 5  ;;  %v396_v37 = vpop.permute.xlu1 %395  ;;  %v394_v2 = vpop.permute.xlu0 %393  ;;  %v6676_v56 = vld [vmem:[%s9368_s1 + $0x30] sm:$0xff]  }
  0xa1   :  { %913 = vrot.lane.b32.xlu1 %v892_v3, %s6842_s25  ;;  %v702_v46 = vshrl.u32 %v646_v4, 16  ;;  %v343_v48 = vsel %vm7162_vm8, %v275_v21, %v342_v17  ;;  %v346_v49 = vsel %vm7170_vm9, %v276_v22, %v345_v33  ;;  %v505_v11 = vrot.slane %v503_v34, 7  ;;  %v581_v7 = vld [vmem:[#allocation2 + $0x60] sm:$0xf]  ;;  %v584_v8 = vld [vmem:[#allocation2 + $0x64] sm:$0x1] }
  0xa2   :  { %v436_v12 = vmax.f32 %v7075_v23, %v396_v37  ;;  %344 = vst [vmem:[#allocation2 + $0x40] sm:$0xf] %v343_v48  ;;  %347 = vst [vmem:[#allocation2 + $0x44] sm:$0x1] %v346_v49  ;;  %v6308_v52 = vpack.c.bf16 %v447_v43, %v447_v43  ;;  %v694_v53 = vor.u32 %v693_v44, %v690_v59  ;;  %v705_v16 = vshll.u32 %v646_v4, 16 }
  0xa3   :  { %456 = vst.msk [vmem:[#allocation4 + $0x50] sm:$0xff] %vm172_vm5, %v447_v43  ;;  %v435_v19 = vmax.f32 %v7080_v24, %v394_v2  ;;  %v704_v20 = vrot.slane %v702_v46, 4  ;;  %v508_v55 = vor.u32 %v506_v14, %v505_v11  ;;  %v509_v15 = vrot.slane %v505_v11, 4  ;;  %6341 = vmatpush3.bf16.msra.mxu0 %v6674_v47  ;;  %v648_v1 = vld [vmem:[#allocation2 + $0x20] sm:$0xf]  ;;  %v6677_v24 = vld [vmem:[%s9368_s1 + $0x78] sm:$0xff]  }
  0xa4   :  { %v711_v23 = vshll.u32 %v647_v13, 16  ;;  %v511_v57 = vshrl.u32 %v6308_v52, 16  ;;  %v514_v58 = vshll.u32 %v6308_v52, 16  ;;  %v695_v60 = vrot.slane %v694_v53, 4  ;;  %v400_v62 = vpop.permute.xlu1 %399  ;;  %v398_v0 = vpop.permute.xlu0 %397  ;;  %6342 = vmatprep.subr.bf16.mxu0 %v6675_v50  ;;  %v587_v28 = vld [vmem:[#allocation2 + $0x68] sm:$0xf] }
  0xa5   :  { %v448_v61 = vmax.f32 %v435_v19, %v436_v12  ;;  %v582_v59 = vsel %vm7162_vm8, %v508_v55, %v581_v7  ;;  %v585_v3 = vsel %vm7170_vm9, %v509_v15, %v584_v8  ;;  %v707_v4 = vrot.slane %v705_v16, 5  ;;  %v590_v10 = vld [vmem:[#allocation2 + $0x6c] sm:$0x1]  ;;  %v649_v34 = vld [vmem:[#allocation2 + $0x24] sm:$0x1] }
  0xa6   :  { %v713_v25 = vrot.slane %v711_v23, 5  ;;  %583 = vst [vmem:[#allocation2 + $0x60] sm:$0xf] %v582_v59  ;;  %586 = vst [vmem:[#allocation2 + $0x64] sm:$0x1] %v585_v3  ;;  %v513_v27 = vrot.slane %v511_v57, 7  ;;  %v700_v17 = vsel %vm7142_vm4, %v695_v60, %v699_v45  ;;  %v438_v18 = vmax.f32 %v7089_v26, %v400_v62 }
  0xa7   :  { %457 = vst.msk [vmem:[#allocation4 + $0x58] sm:$0xff] %vm172_vm5, %v448_v61  ;;  %v6309_v33 = vpack.c.bf16 %v448_v61, %v448_v61  ;;  %775 = vrot.lane.b32.xlu0 %v700_v17, %s6842_s25  ;;  %v708_v21 = vor.u32 %v707_v4, %v704_v20  ;;  %v437_v22 = vmax.f32 %v7098_v29, %v398_v0  ;;  %v716_v14 = vshrl.u32 %v648_v1, 16  ;;  %v893_v45 = vld [vmem:[#allocation2 + $0x38] sm:$0xf]  ;;  %v593_v8 = vld [vmem:[#allocation2 + $0x70] sm:$0xf] }
  0xa8   :  { %v719_v42 = vshll.u32 %v648_v1, 16  ;;  %6343 = vmatpush3.bf16.msra.mxu0 %v6676_v56  ;;  %v516_v43 = vor.u32 %v514_v58, %v513_v27  ;;  %v517_v44 = vrot.slane %v513_v27, 4  ;;  %v404_v13 = vpop.permute.xlu1 %403  ;;  %v402_v46 = vpop.permute.xlu0 %401  ;;  %v6678_v26 = vld [vmem:[%s9368_s1 + $0x38] sm:$0xff]   ;;  %v725_v7 = vshll.u32 %v649_v34, 16  ;;  %v596_v52 = vld [vmem:[#allocation2 + $0x74] sm:$0x1] }
  0xa9   :  { %v519_v37 = vshrl.u32 %v6309_v33, 16  ;;  %v522_v2 = vshll.u32 %v6309_v33, 16  ;;  %6344 = vmatprep.subr.bf16.mxu0 %v6677_v24  ;;  %v709_v47 = vrot.slane %v708_v21, 4  ;;  %v449_v48 = vmax.f32 %v437_v22, %v438_v18  ;;  %v650_v15 = vld [vmem:[#allocation2 + $0x28] sm:$0xf] }
  0xaa   :  { %v718_v49 = vrot.slane %v716_v14, 4  ;;  %v721_v29 = vrot.slane %v719_v42, 5  ;;  %v588_v11 = vsel %vm7162_vm8, %v516_v43, %v587_v28  ;;  %v591_v12 = vsel %vm7170_vm9, %v517_v44, %v590_v10  ;;  %v651_v61 = vld [vmem:[#allocation2 + $0x2c] sm:$0x1]  ;;  %v7343_v62 = vld [vmem:[#allocation2 + $0x30] sm:$0xf] }
  0xab   :  { %v521_v50 = vrot.slane %v519_v37, 7  ;;  %589 = vst [vmem:[#allocation2 + $0x68] sm:$0xf] %v588_v11  ;;  %592 = vst [vmem:[#allocation2 + $0x6c] sm:$0x1] %v591_v12  ;;  %v714_v53 = vsel %vm7142_vm4, %v709_v47, %v713_v25  ;;  %915 = vrot.lane.b32.xlu0 %v893_v45, %s6842_s25  ;;  %v6310_v19 = vpack.c.bf16 %v449_v48, %v449_v48  ;;  %v727_v56 = vrot.slane %v725_v7, 5 }
  0xac   :  { %458 = vst.msk [vmem:[#allocation4 + $0x60] sm:$0xff] %vm172_vm5, %v449_v48  ;;  %v722_v20 = vor.u32 %v721_v29, %v718_v49  ;;  %v440_v55 = vmax.f32 %v7103_v30, %v404_v13  ;;  %777 = vrot.lane.b32.xlu1 %v714_v53, %s6842_s25  ;;  %v439_v57 = vmax.f32 %v7108_v31, %v402_v46  ;;  %v408_v58 = vpop.permute.xlu1 %407  ;;  %v406_v60 = vpop.permute.xlu0 %405  ;;  %v894_v59 = vld [vmem:[#allocation2 + $0x40] sm:$0xf]  ;;  %v730_v17 = vshrl.u32 %v650_v15, 16  ;;  %v599_v18 = vld [vmem:[#allocation2 + $0x78] sm:$0xf] }
  0xad   :  { %v524_v16 = vor.u32 %v522_v2, %v521_v50  ;;  %v525_v23 = vrot.slane %v521_v50, 4  ;;  %6345 = vmatpush3.bf16.msra.mxu0 %v6678_v26  ;;  %v527_v0 = vshrl.u32 %v6310_v19, 16  ;;  %v530_v1 = vshll.u32 %v6310_v19, 16  ;;  %v602_v10 = vld [vmem:[#allocation2 + $0x7c] sm:$0x1]  ;;  %v6681_v37 = vld [vmem:[%s9368_s1 + $0x100] sm:$0xff]  }
  0xae   :  { %v723_v24 = vrot.slane %v722_v20, 4  ;;  %v442_v30 = vmax.f32 %v7117_v35, %v408_v58  ;;  %v450_v25 = vmax.f32 %v439_v57, %v440_v55  ;;  %v441_v31 = vmax.f32 %v7126_v36, %v406_v60  ;;  %v653_v26 = vld [vmem:[#allocation2 + $0x34] sm:$0x1]  ;;  %v605_v29 = vld [vmem:[#allocation2 + $0x80] sm:$0xf]  ;;  %6610 = vmatprep.subr.bf16.mxu0 %v6681_v37 }
  0xaf   :  { %v594_v3 = vsel %vm7162_vm8, %v524_v16, %v593_v8  ;;  %v597_v4 = vsel %vm7170_vm9, %v525_v23, %v596_v52  ;;  %v529_v27 = vrot.slane %v527_v0, 7  ;;  %v733_v33 = vshll.u32 %v650_v15, 16  ;;  %v654_v53 = vld [vmem:[#allocation2 + $0x38] sm:$0xf]  ;;  %v608_v20 = vld [vmem:[#allocation2 + $0x84] sm:$0x1] }
  0xb0   :  { %595 = vst [vmem:[#allocation2 + $0x70] sm:$0xf] %v594_v3  ;;  %598 = vst [vmem:[#allocation2 + $0x74] sm:$0x1] %v597_v4  ;;  %v728_v28 = vsel %vm7142_vm4, %v723_v24, %v727_v56  ;;  %v6311_v35 = vpack.c.bf16 %v450_v25, %v450_v25  ;;  %917 = vrot.lane.b32.xlu1 %v894_v59, %s6842_s25  ;;  %v451_v21 = vmax.f32 %v441_v31, %v442_v30  ;;  %v410_v34 = vpop.permute.xlu0 %409  ;;  %v412_v47 = vpop.permute.xlu1 %411  ;;  %v611_v55 = vld [vmem:[#allocation2 + $0x88] sm:$0xf] }
  0xb1   :  { %779 = vrot.lane.b32.xlu0 %v728_v28, %s6842_s25  ;;  %459 = vst.msk [vmem:[#allocation4 + $0x68] sm:$0xff] %vm172_vm5, %v450_v25  ;;  %v739_v22 = vshll.u32 %v651_v61, 16  ;;  %v744_v36 = vshrl.u32 %v7343_v62, 16  ;;  %v532_v14 = vor.u32 %v530_v1, %v529_v27  ;;  %v533_v42 = vrot.slane %v529_v27, 4  ;;  %v614_v63 = vld [vmem:[#allocation2 + $0x8c] sm:$0x1] }
  0xb2   :  { %v732_v43 = vrot.slane %v730_v17, 4  ;;  %v735_v44 = vrot.slane %v733_v33, 5  ;;  %v535_v2 = vshrl.u32 %v6311_v35, 16  ;;  %v538_v45 = vshll.u32 %v6311_v35, 16  ;;  %460 = vst.msk [vmem:[#allocation4 + $0x70] sm:$0xff] %vm172_vm5, %v451_v21 }
  0xb3   :  { %v6312_v13 = vpack.c.bf16 %v451_v21, %v451_v21  ;;  %v741_v46 = vrot.slane %v739_v22, 5  ;;  %v600_v48 = vsel %vm7162_vm8, %v532_v14, %v599_v18  ;;  %v603_v49 = vsel %vm7170_vm9, %v533_v42, %v602_v10  ;;  %v655_v0 = vld [vmem:[#allocation2 + $0x3c] sm:$0x1]  ;;  %v1452_v24 = vld [vmem:[#allocation2 + $0x58] sm:$0xf] }
  0xb4   :  { %v736_v11 = vor.u32 %v735_v44, %v732_v43  ;;  %v746_v12 = vrot.slane %v744_v36, 4  ;;  %601 = vst [vmem:[#allocation2 + $0x78] sm:$0xf] %v600_v48  ;;  %604 = vst [vmem:[#allocation2 + $0x7c] sm:$0x1] %v603_v49  ;;  %v537_v50 = vrot.slane %v535_v2, 7  ;;  %v772_v19 = vpop.permute.xlu0 %771  ;;  %v444_v23 = vmax.f32 %v7131_v39, %v412_v47 }
  0xb5   :  { %1578 = vrot.lane.b32.xlu0 %v1479_v5, %s6842_s25  ;;  %v543_v7 = vshrl.u32 %v6312_v13, 16  ;;  %v546_v8 = vshll.u32 %v6312_v13, 16  ;;  %v747_v52 = vshll.u32 %v7343_v62, 16  ;;  %v753_v16 = vshll.u32 %v653_v26, 16  ;;  %796 = vst.msk [vmem:[#allocation3] sm:$0xf] %vm795_vm10, %v772_v19 }
  0xb6   :  { %v737_v15 = vrot.slane %v736_v11, 4  ;;  %v443_v56 = vmax.f32 %v7140_v40, %v410_v34  ;;  %v540_v57 = vor.u32 %v538_v45, %v537_v50  ;;  %v541_v58 = vrot.slane %v537_v50, 4  ;;  %v7382_v3 = vld [vmem:[#allocation2 + $0x20] sm:$0xe]  ;;  %v7384_v4 = vld [vmem:[#allocation2 + $0x24] sm:$0x1] }
  0xb7   :  { %v545_v51 = vrot.slane %v543_v7, 7  ;;  %v749_v5 = vrot.slane %v747_v52, 5  ;;  %v755_v61 = vrot.slane %v753_v16, 5  ;;  %v758_v1 = vshrl.u32 %v654_v53, 16  ;;  %v7391_v10 = vld [vmem:[#allocation2 + $0x5c] sm:$0x1] }
  0xb8   :  { %v742_v60 = vsel %vm7142_vm4, %v737_v15, %v741_v46  ;;  %v452_v62 = vmax.f32 %v443_v56, %v444_v23  ;;  %v606_v39 = vsel %vm7162_vm8, %v540_v57, %v605_v29  ;;  %v609_v40 = vsel %vm7170_vm9, %v541_v58, %v608_v20  ;;  %v1454_v21 = vld [vmem:[#allocation2 + $0x60] sm:$0xf]  ;;  %v617_v37 = vld [vmem:[#allocation2 + $0x90] sm:$0xf]  ;;  %v620_v2 = vld [vmem:[#allocation2 + $0x94] sm:$0x1] }
  0xb9   :  { %v548_v59 = vor.u32 %v546_v8, %v545_v51  ;;  %v549_v30 = vrot.slane %v545_v51, 4  ;;  %781 = vrot.lane.b32.xlu1 %v742_v60, %s6842_s25  ;;  %607 = vst [vmem:[#allocation2 + $0x80] sm:$0xf] %v606_v39  ;;  %610 = vst [vmem:[#allocation2 + $0x84] sm:$0x1] %v609_v40  ;;  %v750_v25 = vor.u32 %v749_v5, %v746_v12  ;;  %v760_v27 = vrot.slane %v758_v1, 4 }
  0xba   :  { %461 = vst.msk [vmem:[#allocation4 + $0x78] sm:$0xff] %vm172_vm5, %v452_v62  ;;  %v6313_v31 = vpack.c.bf16 %v452_v62, %v452_v62  ;;  %v761_v28 = vshll.u32 %v654_v53, 16  ;;  %v767_v18 = vshll.u32 %v655_v0, 16  ;;  %v1481_v35 = vshrl.u32 %v1452_v24, 16  ;;  %v1691_v14 = vld [vmem:[#allocation2 + $0x60] sm:$0xf] }
  0xbb   :  { %v612_v17 = vsel %vm7162_vm8, %v548_v59, %v611_v55  ;;  %v615_v33 = vsel %vm7170_vm9, %v549_v30, %v614_v63  ;;  %v751_v22 = vrot.slane %v750_v25, 4  ;;  %v1484_v13 = vshll.u32 %v1452_v24, 16  ;;  %v1455_v48 = vld [vmem:[#allocation2 + $0x64] sm:$0x1]  ;;  %v1456_v29 = vld [vmem:[#allocation2 + $0x68] sm:$0xf] }
  0xbc   :  { %613 = vst [vmem:[#allocation2 + $0x88] sm:$0xf] %v612_v17  ;;  %616 = vst [vmem:[#allocation2 + $0x8c] sm:$0x1] %v615_v33  ;;  %v551_v36 = vshrl.u32 %v6313_v31, 16  ;;  %v554_v34 = vshll.u32 %v6313_v31, 16 }
  0xbd   :  { %v763_v42 = vrot.slane %v761_v28, 5  ;;  %1708 = vrot.lane.b32.xlu1 %v1691_v14, %s6842_s25  ;;  %v1483_v45 = vrot.slane %v1481_v35, 4  ;;  %v756_v46 = vsel %vm7142_vm4, %v751_v22, %v755_v61  ;;  %v1495_v49 = vshrl.u32 %v1454_v21, 16  ;;  %v7398_v11 = vld [vmem:[#allocation2 + $0x28] sm:$0xe] }
  0xbe   :  { %v553_v26 = vrot.slane %v551_v36, 7  ;;  %783 = vrot.lane.b32.xlu0 %v756_v46, %s6842_s25  ;;  %v769_v12 = vrot.slane %v767_v18, 5  ;;  %v1486_v50 = vrot.slane %v1484_v13, 5  ;;  %v1490_v7 = vshll.u32 %v7391_v10, 16  ;;  %v7402_v52 = vld [vmem:[#allocation2 + $0x2c] sm:$0x1] }
  0xbf   :  { %v764_v47 = vor.u32 %v763_v42, %v760_v27  ;;  %v1498_v8 = vshll.u32 %v1454_v21, 16  ;;  %v1497_v55 = vrot.slane %v1495_v49, 4  ;;  %v1457_v15 = vld [vmem:[#allocation2 + $0x6c] sm:$0x1]  ;;  %v1504_v56 = vshll.u32 %v1455_v48, 16  ;;  %v6687_v49 = vld [vmem:[%s9368_s1 + $0xc0] sm:$0xff]  }
  0xc0   :  { %v556_v53 = vor.u32 %v554_v34, %v553_v26  ;;  %v557_v19 = vrot.slane %v553_v26, 4  ;;  %v1487_v16 = vor.u32 %v1486_v50, %v1483_v45  ;;  %v1509_v57 = vshrl.u32 %v1456_v29, 16  ;;  %v1458_v58 = vld [vmem:[#allocation2 + $0x70] sm:$0xf]  ;;  %v1690_v5 = vld [vmem:[#allocation2 + $0x58] sm:$0xf]  ;;  %6394 = vmatprep.subr.bf16.mxu1 %v6687_v49 }
  0xc1   :  { %v765_v20 = vrot.slane %v764_v47, 4  ;;  %v1500_v23 = vrot.slane %v1498_v8, 5  ;;  %v1512_v61 = vshll.u32 %v1456_v29, 16  ;;  %v1459_v62 = vld [vmem:[#allocation2 + $0x74] sm:$0x1]  ;;  %v1518_v39 = vshll.u32 %v1457_v15, 16 }
  0xc2   :  { %v618_v51 = vsel %vm7162_vm8, %v556_v53, %v617_v37  ;;  %v621_v63 = vsel %vm7170_vm9, %v557_v19, %v620_v2  ;;  %1706 = vrot.lane.b32.xlu0 %v1690_v5, %s6842_s25  ;;  %v1488_v0 = vrot.slane %v1487_v16, 4  ;;  %v1511_v24 = vrot.slane %v1509_v57, 4  ;;  %v7412_v40 = vld [vmem:[#allocation2 + $0x8] sm:$0xe]  ;;  %v7414_v59 = vld [vmem:[#allocation2 + $0xc] sm:$0x1] }
  0xc3   :  { %v770_v60 = vsel %vm7142_vm4, %v765_v20, %v769_v12  ;;  %619 = vst [vmem:[#allocation2 + $0x90] sm:$0xf] %v618_v51  ;;  %622 = vst [vmem:[#allocation2 + $0x94] sm:$0x1] %v621_v63  ;;  %v1501_v1 = vor.u32 %v1500_v23, %v1497_v55  ;;  %v1692_v25 = vld [vmem:[#allocation2 + $0x68] sm:$0xf] }
  0xc4   :  { %785 = vrot.lane.b32.xlu1 %v770_v60, %s6842_s25  ;;  %v1693_v31 = vld [vmem:[#allocation2 + $0x70] sm:$0xf]  ;;  %v1514_v27 = vrot.slane %v1512_v61, 5  ;;  %v1523_v28 = vshrl.u32 %v1458_v58, 16  ;;  %v1526_v17 = vshll.u32 %v1458_v58, 16  ;;  %v1492_v10 = vrot.slane %v1490_v7, 5 }
  0xc5   :  { %v1460_v33 = vld [vmem:[#allocation2 + $0x78] sm:$0xf]  ;;  %v7418_v35 = vrot.slane %v1504_v56, 5  ;;  %v1532_v21 = vshll.u32 %v1459_v62, 16  ;;  %v1462_v22 = vld [vmem:[#allocation2 + $0x80] sm:$0xf] }
  0xc6   :  { %v1502_v36 = vrot.slane %v1501_v1, 4  ;;  %v1515_v34 = vor.u32 %v1514_v27, %v1511_v24  ;;  %v1525_v14 = vrot.slane %v1523_v28, 4  ;;  %v1528_v42 = vrot.slane %v1526_v17, 5  ;;  %v1461_v37 = vld [vmem:[#allocation2 + $0x7c] sm:$0x1]  ;;  %1710 = vrot.lane.b32.xlu0 %v1692_v25, %s6842_s25  ;;  %v6688_v63 = vld [vmem:[%s9368_s1 + $0x80] sm:$0xff]  }
  0xc7   :  { %v1694_v2 = vld [vmem:[#allocation2 + $0x78] sm:$0xf]  ;;  %v1493_v45 = vsel %vm7142_vm4, %v1488_v0, %v1492_v10  ;;  %v7424_v13 = vrot.slane %v1518_v39, 5  ;;  %v1537_v46 = vshrl.u32 %v1460_v33, 16  ;;  %v1540_v26 = vshll.u32 %v1460_v33, 16  ;;  %v6689_v1 = vld [vmem:[%s9368_s1 + $0xc8] sm:$0xff]   ;;  %6395 = vmatpush3.bf16.msra.mxu1 %v6688_v63 }
  0xc8   :  { %1712 = vrot.lane.b32.xlu1 %v1693_v31, %s6842_s25  ;;  %v1081_v47 = vld [vmem:[#allocation2 + $0x10] sm:$0xe]  ;;  %v1082_v48 = vld [vmem:[#allocation2 + $0x14] sm:$0x1]  ;;  %v1529_v29 = vor.u32 %v1528_v42, %v1525_v14  ;;  %v6024_v12 = vrot.slane %v7412_v40, 9  ;;  %v1113_v50 = vrot.slane %v7414_v59, 5  ;;  %v1507_v16 = vsel %vm7142_vm4, %v1502_v36, %v7418_v35  ;;  %6396 = vmatprep.subr.bf16.mxu1 %v6689_v1 }
  0xc9   :  { %v1463_v7 = vld [vmem:[#allocation2 + $0x84] sm:$0x1]  ;;  %v1551_v8 = vshrl.u32 %v1462_v22, 16  ;;  %v1539_v53 = vrot.slane %v1537_v46, 4  ;;  %v1542_v19 = vrot.slane %v1540_v26, 5  ;;  %v1546_v20 = vshll.u32 %v1461_v37, 16 }
  0xca   :  { %v1554_v55 = vshll.u32 %v1462_v22, 16  ;;  %v1192_v15 = vld [vmem:[#allocation2 + $0x10] sm:$0xf]  ;;  %v7434_v23 = vrot.slane %v1515_v34, 4  ;;  %v7436_v56 = vrot.slane %v1532_v21, 5  ;;  %1714 = vrot.lane.b32.xlu0 %v1694_v2, %s6842_s25  ;;  %v7449_v5 = vrot.slane %v1529_v29, 4 }
  0xcb   :  { %v1553_v58 = vrot.slane %v1551_v8, 4  ;;  %v1193_v51 = vld [vmem:[#allocation2 + $0x14] sm:$0x1]  ;;  %v1543_v60 = vor.u32 %v1542_v19, %v1539_v53  ;;  %v1560_v62 = vshll.u32 %v1463_v7, 16  ;;  %v1464_v0 = vld [vmem:[#allocation2 + $0x88] sm:$0xf]  ;;  %v7456_v27 = vsel %vm7440_vm13, %v6024_v12, %v1113_v50 }
  0xcc   :  { %1580 = vrot.lane.b32.xlu1 %v1493_v45, %s6842_s25  ;;  %v1556_v61 = vrot.slane %v1554_v55, 5  ;;  %v6025_v24 = vrot.slane %v1081_v47, 9  ;;  %v1117_v39 = vrot.slane %v1082_v48, 5  ;;  %v1209_v40 = vshrl.u32 %v1192_v15, 16  ;;  %v1194_v25 = vld [vmem:[#allocation2 + $0x18] sm:$0xf] }
  0xcd   :  { %v1212_v59 = vshll.u32 %v1192_v15, 16  ;;  %v1695_v31 = vld [vmem:[#allocation2 + $0x80] sm:$0xf]  ;;  %v7458_v28 = vrot.slane %v1543_v60, 4  ;;  %v7460_v17 = vrot.slane %v1546_v20, 5  ;;  %v1218_v34 = vshll.u32 %v1193_v51, 16 }
  0xce   :  { %v1557_v33 = vor.u32 %v1556_v61, %v1553_v58  ;;  %v1465_v10 = vld [vmem:[#allocation2 + $0x8c] sm:$0x1]  ;;  %v1083_v35 = vld [vmem:[#allocation2 + $0x18] sm:$0xe]  ;;  %v1084_v21 = vld [vmem:[#allocation2 + $0x1c] sm:$0x1]  ;;  %1582 = vrot.lane.b32.xlu0 %v1507_v16, %s6842_s25  ;;  %v1521_v37 = vsel %vm7142_vm4, %v7434_v23, %v7424_v13  ;;  %v1535_v29 = vsel %vm7142_vm4, %v7449_v5, %v7436_v56  ;;  %v7484_v13 = vsel %vm7440_vm13, %v6025_v24, %v1117_v39 }
  0xcf   :  { %v1211_v22 = vrot.slane %v1209_v40, 4  ;;  %v1214_v36 = vrot.slane %v1212_v59, 5  ;;  %v1565_v14 = vshrl.u32 %v1464_v0, 16  ;;  %v6690_v42 = vld [vmem:[%s9368_s1 + $0x88] sm:$0xff]   ;;  %v7473_v45 = vrot.slane %v1560_v62, 5  ;;  %v6691_v48 = vld [vmem:[%s9368_s1 + $0xd0] sm:$0xff]  }
  0xd0   :  { %1716 = vrot.lane.b32.xlu1 %v1695_v31, %s6842_s25  ;;  %v7471_v2 = vrot.slane %v1557_v33, 4  ;;  %v1568_v46 = vshll.u32 %v1464_v0, 16  ;;  %v1195_v26 = vld [vmem:[#allocation2 + $0x1c] sm:$0x1]  ;;  %v1196_v47 = vld [vmem:[#allocation2 + $0x20] sm:$0xf]  ;;  %6397 = vmatpush3.bf16.msra.mxu1 %v6690_v42  ;;  %v1549_v8 = vsel %vm7142_vm4, %v7458_v28, %v7460_v17 }
  0xd1   :  { %v1696_v49 = vld [vmem:[#allocation2 + $0x88] sm:$0xf]  ;;  %v1215_v12 = vor.u32 %v1214_v36, %v1211_v22  ;;  %v1567_v50 = vrot.slane %v1565_v14, 4  ;;  %v1197_v7 = vld [vmem:[#allocation2 + $0x24] sm:$0x1]  ;;  %v1574_v19 = vshll.u32 %v1465_v10, 16  ;;  %6398 = vmatprep.subr.bf16.mxu1 %v6691_v48 }
  0xd2   :  { %v1570_v53 = vrot.slane %v1568_v46, 5  ;;  %v1223_v20 = vshrl.u32 %v1194_v25, 16  ;;  %v7490_v55 = vld [vmem:[#allocation2 + $0x20] sm:$0xe]  ;;  %v7492_v15 = vrot.slane %v1218_v34, 5  ;;  %v6026_v16 = vrot.slane %v1083_v35, 9  ;;  %1718 = vrot.lane.b32.xlu0 %v1696_v49, %s6842_s25 }
  0xd3   :  { %v1121_v23 = vrot.slane %v1084_v21, 5  ;;  %v1226_v56 = vshll.u32 %v1194_v25, 16  ;;  %v1086_v58 = vld [vmem:[#allocation2 + $0x24] sm:$0x1]  ;;  %v1087_v51 = vld [vmem:[#allocation2 + $0x28] sm:$0xe]  ;;  %v1563_v63 = vsel %vm7142_vm4, %v7471_v2, %v7473_v45 }
  0xd4   :  { %1584 = vrot.lane.b32.xlu1 %v1521_v37, %s6842_s25  ;;  %v1571_v5 = vor.u32 %v1570_v53, %v1567_v50  ;;  %v1225_v60 = vrot.slane %v1223_v20, 4  ;;  %v1237_v61 = vshrl.u32 %v1196_v47, 16  ;;  %v1088_v62 = vld [vmem:[#allocation2 + $0x2c] sm:$0x1]  ;;  %v1198_v0 = vld [vmem:[#allocation2 + $0x28] sm:$0xf] }
  0xd5   :  { %v7500_v1 = vrot.slane %v1215_v12, 4  ;;  %v1228_v24 = vrot.slane %v1226_v56, 5  ;;  %v1232_v39 = vshll.u32 %v1195_v26, 16  ;;  %v1240_v40 = vshll.u32 %v1196_v47, 16  ;;  %v6692_v59 = vld [vmem:[%s9368_s1 + $0x90] sm:$0xff]   ;;  %v6695_v37 = vld [vmem:[%s9368_s1 + $0xd8] sm:$0xff]  }
  0xd6   :  { %v7505_v25 = vrot.slane %v1571_v5, 4  ;;  %v7507_v31 = vrot.slane %v1574_v19, 5  ;;  %v1239_v33 = vrot.slane %v1237_v61, 4  ;;  %v1246_v10 = vshll.u32 %v1197_v7, 16  ;;  %v1199_v35 = vld [vmem:[#allocation2 + $0x2c] sm:$0x1]  ;;  %6399 = vmatpush3.bf16.msra.mxu1 %v6692_v59  ;;  %1586 = vrot.lane.b32.xlu0 %v1535_v29, %s6842_s25 }
  0xd7   :  { %v1200_v21 = vld [vmem:[#allocation2 + $0x30] sm:$0xf]  ;;  %v7511_v36 = vsel %vm7440_vm13, %v6026_v16, %v1121_v23  ;;  %v1229_v34 = vor.u32 %v1228_v24, %v1225_v60  ;;  %v1242_v14 = vrot.slane %v1240_v40, 5  ;;  %v6027_v42 = vrot.slane %v7490_v55, 9  ;;  %v1201_v49 = vld [vmem:[#allocation2 + $0x34] sm:$0x1]  ;;  %6400 = vmatprep.subr.bf16.mxu1 %v6695_v37 }
  0xd8   :  { %v1697_v22 = vld [vmem:[#allocation2 + $0x90] sm:$0xf]  ;;  %v1125_v46 = vrot.slane %v1086_v58, 5  ;;  %v6028_v26 = vrot.slane %v1087_v51, 9  ;;  %v1129_v47 = vrot.slane %v1088_v62, 5  ;;  %v1251_v48 = vshrl.u32 %v1198_v0, 16 }
  0xd9   :  { %1720 = vrot.lane.b32.xlu1 %v1697_v22, %s6842_s25  ;;  %v7519_v12 = vld [vmem:[#allocation2 + $0x30] sm:$0xe]  ;;  %v1221_v50 = vsel %vm7142_vm4, %v7500_v1, %v7492_v15  ;;  %v7525_v7 = vrot.slane %v1232_v39, 5  ;;  %v1243_v53 = vor.u32 %v1242_v14, %v1239_v33  ;;  %v1254_v19 = vshll.u32 %v1198_v0, 16  ;;  %v1090_v20 = vld [vmem:[#allocation2 + $0x34] sm:$0x1] }
  0xda   :  { %v1091_v29 = vld [vmem:[#allocation2 + $0x38] sm:$0xe]  ;;  %v1092_v55 = vld [vmem:[#allocation2 + $0x3c] sm:$0x1]  ;;  %v1577_v16 = vsel %vm7142_vm4, %v7505_v25, %v7507_v31  ;;  %v7531_v23 = vrot.slane %v1246_v10, 5  ;;  %v1253_v56 = vrot.slane %v1251_v48, 4  ;;  %1143 = vrot.lane.b32.xlu0 %v7456_v27, %s6842_s25  ;;  %v7553_v40 = vsel %vm7440_vm13, %v6027_v42, %v1125_v46 }
  0xdb   :  { %v1265_v58 = vshrl.u32 %v1200_v21, 16  ;;  %v1202_v51 = vld [vmem:[#allocation2 + $0x38] sm:$0xf]  ;;  %v7536_v60 = vrot.slane %v1229_v34, 4  ;;  %v1256_v61 = vrot.slane %v1254_v19, 5  ;;  %v1260_v62 = vshll.u32 %v1199_v35, 16 }
  0xdc   :  { %v6697_v5 = vld [vmem:[%s9368_s1 + $0x98] sm:$0xff]   ;;  %v1268_v0 = vshll.u32 %v1200_v21, 16  ;;  %v6698_v24 = vld [vmem:[%s9368_s1 + $0xe0] sm:$0xff]   ;;  %v7549_v39 = vrot.slane %v1243_v53, 4  ;;  %v7557_v59 = vsel %vm7440_vm13, %v6028_v26, %v1129_v47  ;;  %v1274_v22 = vshll.u32 %v1201_v49, 16 }
  0xdd   :  { %1588 = vrot.lane.b32.xlu1 %v1549_v8, %s6842_s25  ;;  %v1267_v33 = vrot.slane %v1265_v58, 4  ;;  %v1203_v10 = vld [vmem:[#allocation2 + $0x3c] sm:$0x1]  ;;  %v1204_v27 = vld [vmem:[#allocation2 + $0x40] sm:$0xf]  ;;  %v1257_v35 = vor.u32 %v1256_v61, %v1253_v56  ;;  %v6029_v34 = vrot.slane %v7519_v12, 9  ;;  %6401 = vmatpush3.bf16.msra.mxu1 %v6697_v5  ;;  %v1235_v46 = vsel %vm7142_vm4, %v7536_v60, %v7525_v7 }
  0xde   :  { %v1270_v21 = vrot.slane %v1268_v0, 5  ;;  %v625_v28 = vld [vmem:[#allocation2 + $0x8] sm:$0xf]  ;;  %v1133_v17 = vrot.slane %v1090_v20, 5  ;;  %v6030_v8 = vrot.slane %v1091_v29, 9  ;;  %v1137_v14 = vrot.slane %v1092_v55, 5  ;;  %6402 = vmatprep.subr.bf16.mxu1 %v6698_v24  ;;  %1590 = vrot.lane.b32.xlu0 %v1563_v63, %s6842_s25 }
  0xdf   :  { %v1279_v37 = vshrl.u32 %v1202_v51, 16  ;;  %v1205_v42 = vld [vmem:[#allocation2 + $0x44] sm:$0x1]  ;;  %633 = vst.msk [vmem:[#allocation3 + $0x14] sm:$0xf] %vm26_vm0, %v625_v28  ;;  %v7565_v26 = vrot.slane %v1260_v62, 5  ;;  %v1249_v53 = vsel %vm7142_vm4, %v7549_v39, %v7531_v23 }
  0xe0   :  { %v1271_v47 = vor.u32 %v1270_v21, %v1267_v33  ;;  %v1282_v48 = vshll.u32 %v1202_v51, 16  ;;  %v7567_v49 = vld [vmem:[#allocation2 + $0x40] sm:$0xe]  ;;  %v7569_v12 = vld [vmem:[#allocation2 + $0x44] sm:$0x1]  ;;  %v1288_v20 = vshll.u32 %v1203_v10, 16  ;;  %v7599_v62 = vsel %vm7440_vm13, %v6029_v34, %v1133_v17 }
  0xe1   :  { %1145 = vrot.lane.b32.xlu1 %v7484_v13, %s6842_s25  ;;  %v1281_v19 = vrot.slane %v1279_v37, 4  ;;  %v1293_v29 = vshrl.u32 %v1204_v27, 16  ;;  %v7583_v55 = vld [vmem:[#allocation2 + $0x58] sm:$0xe]  ;;  %v7585_v56 = vld [vmem:[#allocation2 + $0x5c] sm:$0x1]  ;;  %v7603_v0 = vsel %vm7440_vm13, %v6030_v8, %v1137_v14 }
  0xe2   :  { %v1995_v58 = vld [vmem:[#allocation2 + $0x60] sm:$0xf]  ;;  %v7590_v45 = vrot.slane %v1257_v35, 4  ;;  %v7592_v13 = vrot.slane %v1274_v22, 5  ;;  %v1284_v63 = vrot.slane %v1282_v48, 5  ;;  %v1296_v51 = vshll.u32 %v1204_v27, 16  ;;  %1320 = vrot.lane.b32.xlu0 %v1221_v50, %s6842_s25 }
  0xe3   :  { %v6699_v2 = vld [vmem:[%s9368_s1 + $0xa0] sm:$0xff]   ;;  %v6702_v61 = vld [vmem:[%s9368_s1 + $0xe8] sm:$0xff]   ;;  %v1295_v24 = vrot.slane %v1293_v29, 4  ;;  %v1302_v33 = vshll.u32 %v1205_v42, 16  ;;  %v626_v27 = vld [vmem:[#allocation2 + $0x10] sm:$0xf] }
  0xe4   :  { %v1996_v5 = vld [vmem:[#allocation2 + $0x64] sm:$0x1]  ;;  %v7605_v10 = vld [vmem:[#allocation2 + $0x60] sm:$0xe]  ;;  %6403 = vmatpush3.bf16.msra.mxu1 %v6699_v2  ;;  %v7609_v21 = vrot.slane %v1271_v47, 4  ;;  %v1285_v22 = vor.u32 %v1284_v63, %v1281_v19  ;;  %v7611_v28 = vrot.slane %v1288_v20, 5  ;;  %v1263_v25 = vsel %vm7142_vm4, %v7590_v45, %v7565_v26 }
  0xe5   :  { %v7607_v35 = vld [vmem:[#allocation2 + $0x64] sm:$0x1]  ;;  %v1298_v37 = vrot.slane %v1296_v51, 5  ;;  %v7613_v34 = vld [vmem:[#allocation2 + $0x68] sm:$0xe]  ;;  %6404 = vmatprep.subr.bf16.mxu1 %v6702_v61  ;;  %1592 = vrot.lane.b32.xlu1 %v1577_v16, %s6842_s25  ;;  %v7630_v14 = vrot.slane %v1302_v33, 5 }
  0xe6   :  { %v7615_v17 = vld [vmem:[#allocation2 + $0x6c] sm:$0x1]  ;;  %v1997_v8 = vld [vmem:[#allocation2 + $0x68] sm:$0xf]  ;;  %634 = vst.msk [vmem:[#allocation3 + $0x28] sm:$0xf] %vm26_vm0, %v626_v27  ;;  %1147 = vrot.lane.b32.xlu0 %v7511_v36, %s6842_s25  ;;  %v1277_v36 = vsel %vm7142_vm4, %v7609_v21, %v7592_v13 }
  0xe7   :  { %v6031_v42 = vrot.slane %v7567_v49, 9  ;;  %v1141_v47 = vrot.slane %v7569_v12, 5  ;;  %v2012_v48 = vshrl.u32 %v1995_v58, 16  ;;  %v627_v19 = vld [vmem:[#allocation2 + $0x18] sm:$0xf]  ;;  %v1299_v20 = vor.u32 %v1298_v37, %v1295_v24 }
  0xe8   :  { %v6048_v29 = vrot.slane %v7583_v55, 9  ;;  %v1916_v15 = vrot.slane %v7585_v56, 5  ;;  %v2015_v1 = vshll.u32 %v1995_v58, 16  ;;  %v7636_v50 = vld [vmem:[#allocation2 + $0x6c] sm:$0x1]  ;;  %v7643_v31 = vrot.slane %v1285_v22, 4 }
  0xe9   :  { %v1999_v2 = vld [vmem:[#allocation2 + $0x70] sm:$0xf]  ;;  %635 = vst.msk [vmem:[#allocation3 + $0x3c] sm:$0xf] %vm26_vm0, %v627_v19  ;;  %v2014_v16 = vrot.slane %v2012_v48, 4  ;;  %v2021_v49 = vshll.u32 %v1996_v5, 16  ;;  %1322 = vrot.lane.b32.xlu1 %v1235_v46, %s6842_s25  ;;  %v7680_v7 = vsel %vm7440_vm13, %v6031_v42, %v1141_v47 }
  0xea   :  { %v628_v12 = vld [vmem:[#allocation2 + $0x20] sm:$0xf]  ;;  %v6703_v55 = vld [vmem:[%s9368_s1 + $0xa8] sm:$0xff]   ;;  %v7648_v56 = vrot.slane %v1299_v20, 4  ;;  %v2017_v58 = vrot.slane %v2015_v1, 5  ;;  %v6049_v63 = vrot.slane %v7605_v10, 9  ;;  %v7687_v19 = vsel %vm7440_vm13, %v6048_v29, %v1916_v15  ;;  %1324 = vrot.lane.b32.xlu0 %v1249_v53, %s6842_s25 }
  0xeb   :  { %v1920_v51 = vrot.slane %v7607_v35, 5  ;;  %v7652_v61 = vld [vmem:[#allocation2 + $0x74] sm:$0x1]  ;;  %636 = vst.msk [vmem:[#allocation3 + $0x50] sm:$0xf] %vm26_vm0, %v628_v12  ;;  %v7666_v24 = vrot.slane %v2021_v49, 5  ;;  %6405 = vmatpush3.bf16.msra.mxu1 %v6703_v55  ;;  %v1291_v15 = vsel %vm7142_vm4, %v7643_v31, %v7611_v28 }
  0xec   :  { %v6704_v5 = vld [vmem:[%s9368_s1 + $0xf0] sm:$0xff]   ;;  %v6050_v33 = vrot.slane %v7613_v34, 9  ;;  %v1924_v10 = vrot.slane %v7615_v17, 5  ;;  %v2026_v35 = vshrl.u32 %v1997_v8, 16  ;;  %v2018_v60 = vor.u32 %v2017_v58, %v2014_v16  ;;  %v807_v37 = vld [vmem:[#allocation2 + $0xc] sm:$0x1] }
  0xed   :  { %v7670_v27 = vld [vmem:[#allocation2 + $0x70] sm:$0xe]  ;;  %v7672_v22 = vld [vmem:[#allocation2 + $0x74] sm:$0x1]  ;;  %v2029_v46 = vshll.u32 %v1997_v8, 16  ;;  %v2035_v1 = vshll.u32 %v7636_v50, 16  ;;  %6406 = vmatprep.subr.bf16.mxu1 %v6704_v5  ;;  %1149 = vrot.lane.b32.xlu1 %v7553_v40, %s6842_s25  ;;  %v1305_v5 = vsel %vm7142_vm4, %v7648_v56, %v7630_v14 }
  0xee   :  { %v1433_v34 = vld [vmem:[#allocation2 + $0x50] sm:$0xf]  ;;  %v629_v48 = vld [vmem:[#allocation2 + $0x28] sm:$0xf]  ;;  %v2028_v20 = vrot.slane %v2026_v35, 4  ;;  %v2040_v49 = vshrl.u32 %v1999_v2, 16  ;;  %1151 = vrot.lane.b32.xlu0 %v7557_v59, %s6842_s25 }
  0xef   :  { %v6705_v17 = vld [vmem:[%s9368_s1 + $0xb0] sm:$0xff]   ;;  %v7690_v42 = vld [vmem:[#allocation2 + $0x78] sm:$0xe]  ;;  %v7692_v47 = vld [vmem:[#allocation2 + $0x7c] sm:$0x1]  ;;  %v7703_v50 = vrot.slane %v2018_v60, 4 }
  0xf0   :  { %v806_v8 = vld [vmem:[#allocation2 + $0x8] sm:$0xe]  ;;  %1442 = vst.msk [vmem:[#allocation3 + $0xa0] sm:$0xf] %vm26_vm0, %v1433_v34  ;;  %637 = vst.msk [vmem:[#allocation3 + $0x64] sm:$0xf] %vm26_vm0, %v629_v48  ;;  %6407 = vmatpush3.bf16.msra.mxu1 %v6705_v17 }
  0xf1   :  { %v630_v16 = vld [vmem:[#allocation2 + $0x30] sm:$0xf]  ;;  %v6708_v29 = vld [vmem:[%s9368_s1 + $0xf8] sm:$0xff]   ;;  %v2031_v12 = vrot.slane %v2029_v46, 5  ;;  %v2043_v55 = vshll.u32 %v1999_v2, 16  ;;  %v7720_v2 = vsel %vm7440_vm13, %v6049_v63, %v1920_v51  ;;  %v2042_v35 = vrot.slane %v2040_v49, 4  ;;  %1326 = vrot.lane.b32.xlu1 %v1263_v25, %s6842_s25 }
  0xf2   :  { %v804_v58 = vld [vmem:[#allocation2] sm:$0xe]  ;;  %638 = vst.msk [vmem:[#allocation3 + $0x78] sm:$0xf] %vm26_vm0, %v630_v16  ;;  %v2049_v60 = vshll.u32 %v7652_v61, 16  ;;  %v6051_v53 = vrot.slane %v7670_v27, 9  ;;  %v2024_v63 = vsel %vm7142_vm4, %v7703_v50, %v7666_v24  ;;  %v7733_v51 = vsel %vm7440_vm13, %v6050_v33, %v1924_v10  ;;  %6408 = vmatprep.subr.bf16.mxu1 %v6708_v29  ;;  %1328 = vrot.lane.b32.xlu0 %v1277_v36, %s6842_s25 }
  0xf3   :  { %v805_v46 = vld [vmem:[#allocation2 + $0x4] sm:$0x1]  ;;  %v7723_v34 = vld [vmem:[#allocation2] sm:$0xe]  ;;  %v2032_v23 = vor.u32 %v2031_v12, %v2028_v20  ;;  %v2045_v39 = vrot.slane %v2043_v55, 5  ;;  %v1928_v40 = vrot.slane %v7672_v22, 5 }
  0xf4   :  { %v3639_v48 = vld [vmem:[#allocation2 + $0x4] sm:$0x1]  ;;  %v2001_v16 = vld [vmem:[#allocation2 + $0x78] sm:$0xf]  ;;  %v7735_v61 = vrot.slane %v2035_v1, 5  ;;  %v845_v20 = vrot.slane %v807_v37, 5 }
  0xf5   :  { %v2002_v49 = vld [vmem:[#allocation2 + $0x7c] sm:$0x1]  ;;  %v2003_v12 = vld [vmem:[#allocation2 + $0x80] sm:$0xf]  ;;  %v6052_v27 = vrot.slane %v7690_v42, 9  ;;  %v1932_v22 = vrot.slane %v7692_v47, 5  ;;  %v2046_v10 = vor.u32 %v2045_v39, %v2042_v35  ;;  %1153 = vrot.lane.b32.xlu1 %v7599_v62, %s6842_s25 }
  0xf6   :  { %v6017_v17 = vrot.slane %v806_v8, 9  ;;  %v6016_v55 = vrot.slane %v804_v58, 9  ;;  %v808_v30 = vld [vmem:[#allocation2 + $0x10] sm:$0xe]  ;;  %v6710_v18 = vld [vmem:[%s9368_s1 + $0xb8] sm:$0xff]   ;;  %v7750_v33 = vrot.slane %v2032_v23, 4  ;;  %v7756_v8 = vsel %vm7440_vm13, %v6051_v53, %v1928_v40  ;;  %1155 = vrot.lane.b32.xlu0 %v7603_v0, %s6842_s25 }
  0xf7   :  { %v7752_v37 = vrot.slane %v2049_v60, 5  ;;  %v841_v1 = vrot.slane %v805_v46, 5  ;;  %v2004_v42 = vld [vmem:[#allocation2 + $0x84] sm:$0x1]  ;;  %v631_v47 = vld [vmem:[#allocation2 + $0x38] sm:$0xf]  ;;  %6409 = vmatpush3.bf16.msra.mxu1 %v6710_v18 }
  0xf8   :  { %v846_v59 = vsel %vm7440_vm13, %v6017_v17, %v845_v20  ;;  %v6165_v29 = vrot.slane %v7723_v34, 9  ;;  %v2054_v58 = vshrl.u32 %v2001_v16, 16  ;;  %v809_v26 = vld [vmem:[#allocation2 + $0x14] sm:$0x1]  ;;  %v7761_v45 = vld [vmem:[#allocation2 + $0x80] sm:$0xe]  ;;  %v7769_v34 = vsel %vm7440_vm13, %v6052_v27, %v1932_v22 }
  0xf9   :  { %639 = vst.msk [vmem:[#allocation3 + $0x8c] sm:$0xf] %vm26_vm0, %v631_v47  ;;  %880 = vst.msk [vmem:[#allocation3 + $0x18] sm:$0xf] %vm26_vm0, %v846_v59  ;;  %v842_v25 = vsel %vm7440_vm13, %v6016_v55, %v841_v1  ;;  %v3672_v35 = vrot.slane %v3639_v48, 5  ;;  %v2057_v60 = vshll.u32 %v2001_v16, 16  ;;  %v2038_v48 = vsel %vm7142_vm4, %v7750_v33, %v7735_v61  ;;  %1330 = vrot.lane.b32.xlu1 %v1291_v15, %s6842_s25 }
  0xfa   :  { %v2063_v46 = vshll.u32 %v2002_v49, 16  ;;  %v1893_v23 = vld [vmem:[#allocation2 + $0x84] sm:$0x1]  ;;  %v810_v39 = vld [vmem:[#allocation2 + $0x18] sm:$0xe]  ;;  %v2056_v53 = vrot.slane %v2054_v58, 4  ;;  %1332 = vrot.lane.b32.xlu0 %v1305_v5, %s6842_s25 }
  0xfb   :  { %879 = vst.msk [vmem:[#allocation3 + $0x4] sm:$0xf] %vm26_vm0, %v842_v25  ;;  %v2068_v40 = vshrl.u32 %v2003_v12, 16  ;;  %v2071_v20 = vshll.u32 %v2003_v12, 16  ;;  %v7772_v18 = vld [vmem:[#allocation2 + $0x88] sm:$0xe]  ;;  %v7792_v13 = vsel %vm7440_vm13, %v6165_v29, %v3672_v35 }
  0xfc   :  { %v7774_v17 = vld [vmem:[#allocation2 + $0x8c] sm:$0x1]  ;;  %v811_v47 = vld [vmem:[#allocation2 + $0x1c] sm:$0x1]  ;;  %v7788_v16 = vrot.slane %v2046_v10, 4  ;;  %v2059_v49 = vrot.slane %v2057_v60, 5 }
  0xfd   :  { %v6018_v12 = vrot.slane %v808_v30, 9  ;;  %v2005_v27 = vld [vmem:[#allocation2 + $0x88] sm:$0xf]  ;;  %v2070_v22 = vrot.slane %v2068_v40, 4  ;;  %v2073_v55 = vrot.slane %v2071_v20, 5  ;;  %v2077_v1 = vshll.u32 %v2004_v42, 16  ;;  %1157 = vrot.lane.b32.xlu1 %v7680_v7, %s6842_s25 }
  0xfe   :  { %v849_v59 = vrot.slane %v809_v26, 5  ;;  %v1434_v58 = vld [vmem:[#allocation2 + $0x58] sm:$0xf]  ;;  %v2060_v62 = vor.u32 %v2059_v49, %v2056_v53  ;;  %v7794_v21 = vrot.slane %v2063_v46, 5  ;;  %v6053_v36 = vrot.slane %v7761_v45, 9  ;;  %1946 = vrot.lane.b32.xlu0 %v7687_v19, %s6842_s25 }
  0xff   :  { %v2006_v25 = vld [vmem:[#allocation2 + $0x8c] sm:$0x1]  ;;  %1443 = vst.msk [vmem:[#allocation3 + $0xb4] sm:$0xf] %vm26_vm0, %v1434_v58  ;;  %v1435_v10 = vld [vmem:[#allocation2 + $0x60] sm:$0xf]  ;;  %v2074_v30 = vor.u32 %v2073_v55, %v2070_v22  ;;  %v2052_v31 = vsel %vm7142_vm4, %v7788_v16, %v7752_v37 }
 0x100   :  { %v850_v60 = vsel %vm7440_vm13, %v6018_v12, %v849_v59  ;;  %v1936_v42 = vrot.slane %v1893_v23, 5  ;;  %v6019_v26 = vrot.slane %v810_v39, 9  ;;  %v2007_v40 = vld [vmem:[#allocation2 + $0x90] sm:$0xf]  ;;  %v812_v20 = vld [vmem:[#allocation2 + $0x20] sm:$0xe] }
 0x101   :  { %1444 = vst.msk [vmem:[#allocation3 + $0xc8] sm:$0xf] %vm26_vm0, %v1435_v10  ;;  %881 = vst.msk [vmem:[#allocation3 + $0x2c] sm:$0xf] %vm26_vm0, %v850_v60  ;;  %v6054_v29 = vrot.slane %v7772_v18, 9  ;;  %v1940_v45 = vrot.slane %v7774_v17, 5  ;;  %1334 = vrot.lane.b32.xlu1 %v1319_v54, %s6842_s25 }
 0x102   :  { %v853_v35 = vrot.slane %v811_v47, 5  ;;  %v2082_v46 = vshrl.u32 %v2005_v27, 16  ;;  %v7812_v23 = vld [vmem:[#allocation2 + $0x94] sm:$0x1]  ;;  %v813_v39 = vld [vmem:[#allocation2 + $0x24] sm:$0x1]  ;;  %2123 = vrot.lane.b32.xlu0 %v2024_v63, %s6842_s25 }
 0x103   :  { %v7814_v53 = vrot.slane %v2060_v62, 4  ;;  %v7816_v0 = vrot.slane %v2077_v1, 5  ;;  %v2085_v49 = vshll.u32 %v2005_v27, 16  ;;  %v2091_v12 = vshll.u32 %v2006_v25, 16  ;;  %v814_v22 = vld [vmem:[#allocation2 + $0x28] sm:$0xe] }
 0x104   :  { %v815_v28 = vld [vmem:[#allocation2 + $0x2c] sm:$0x1]  ;;  %v854_v15 = vsel %vm7440_vm13, %v6019_v26, %v853_v35  ;;  %v2084_v18 = vrot.slane %v2082_v46, 4  ;;  %v2096_v17 = vshrl.u32 %v2007_v40, 16  ;;  %v7824_v47 = vld [vmem:[#allocation2 + $0x90] sm:$0xe]  ;;  %v7830_v27 = vsel %vm7440_vm13, %v6053_v36, %v1936_v42 }
 0x105   :  { %v2009_v55 = vld [vmem:[#allocation2 + $0x98] sm:$0xf]  ;;  %v1436_v59 = vld [vmem:[#allocation2 + $0x68] sm:$0xf]  ;;  %v1437_v1 = vld [vmem:[#allocation2 + $0x70] sm:$0xf]  ;;  %v7849_v36 = vsel %vm7440_vm13, %v6054_v29, %v1940_v45  ;;  %v2066_v35 = vsel %vm7142_vm4, %v7814_v53, %v7794_v21  ;;  %1948 = vrot.lane.b32.xlu1 %v7720_v2, %s6842_s25 }
 0x106   :  { %v7826_v58 = vrot.slane %v2074_v30, 4  ;;  %882 = vst.msk [vmem:[#allocation3 + $0x40] sm:$0xf] %vm26_vm0, %v854_v15  ;;  %v2087_v62 = vrot.slane %v2085_v49, 5  ;;  %v2099_v25 = vshll.u32 %v2007_v40, 16  ;;  %v2098_v30 = vrot.slane %v2096_v17, 4  ;;  %1950 = vrot.lane.b32.xlu0 %v7733_v51, %s6842_s25 }
 0x107   :  { %v7833_v10 = vld [vmem:[#allocation2 + $0x94] sm:$0x1]  ;;  %v7835_v60 = vld [vmem:[#allocation2 + $0x30] sm:$0xe]  ;;  %1445 = vst.msk [vmem:[#allocation3 + $0xdc] sm:$0xf] %vm26_vm0, %v1436_v59 }
 0x108   :  { %1446 = vst.msk [vmem:[#allocation3 + $0xf0] sm:$0xf] %vm26_vm0, %v1437_v1  ;;  %v6020_v42 = vrot.slane %v812_v20, 9  ;;  %v857_v26 = vrot.slane %v813_v39, 5  ;;  %v817_v40 = vld [vmem:[#allocation2 + $0x34] sm:$0x1]  ;;  %v2088_v46 = vor.u32 %v2087_v62, %v2084_v18  ;;  %v2080_v18 = vsel %vm7142_vm4, %v7826_v58, %v7816_v0 }
 0x109   :  { %v2101_v49 = vrot.slane %v2099_v25, 5  ;;  %v2105_v14 = vshll.u32 %v7812_v23, 16  ;;  %v7856_v56 = vld [vmem:[#allocation2 + $0x9c] sm:$0x1]  ;;  %v818_v7 = vld [vmem:[#allocation2 + $0x38] sm:$0xe]  ;;  %2125 = vrot.lane.b32.xlu1 %v2038_v48, %s6842_s25 }
 0x10a   :  { %v819_v5 = vld [vmem:[#allocation2 + $0x3c] sm:$0x1]  ;;  %v7858_v15 = vrot.slane %v2091_v12, 5  ;;  %v858_v20 = vsel %vm7440_vm13, %v6020_v42, %v857_v26  ;;  %v6021_v29 = vrot.slane %v814_v22, 9  ;;  %v861_v45 = vrot.slane %v815_v28, 5  ;;  %2127 = vrot.lane.b32.xlu0 %v2052_v31, %s6842_s25 }
 0x10b   :  { %v7862_v39 = vld [vmem:[#allocation2 + $0x58] sm:$0xe]  ;;  %v1613_v17 = vld [vmem:[#allocation2 + $0x5c] sm:$0x1]  ;;  %v2102_v23 = vor.u32 %v2101_v49, %v2098_v30  ;;  %883 = vst.msk [vmem:[#allocation3 + $0x54] sm:$0xf] %vm26_vm0, %v858_v20 }
 0x10c   :  { %v6055_v59 = vrot.slane %v7824_v47, 9  ;;  %v2110_v12 = vshrl.u32 %v2009_v55, 16  ;;  %v7870_v1 = vld [vmem:[#allocation2 + $0x50] sm:$0xe]  ;;  %v7872_v62 = vld [vmem:[#allocation2 + $0x54] sm:$0x1]  ;;  %v862_v47 = vsel %vm7440_vm13, %v6021_v29, %v861_v45 }
 0x10d   :  { %v1438_v22 = vld [vmem:[#allocation2 + $0x78] sm:$0xf]  ;;  %v1439_v28 = vld [vmem:[#allocation2 + $0x80] sm:$0xf]  ;;  %v1944_v25 = vrot.slane %v7833_v10, 5  ;;  %v2113_v30 = vshll.u32 %v2009_v55, 16  ;;  %v906_v10 = vpop.permute.xlu1 %905  ;;  %1952 = vrot.lane.b32.xlu1 %v7756_v8, %s6842_s25 }
 0x10e   :  { %v6022_v42 = vrot.slane %v7835_v60, 9  ;;  %v7886_v26 = vld [vmem:[#allocation2 + $0x60] sm:$0xe]  ;;  %1447 = vst.msk [vmem:[#allocation3 + $0x104] sm:$0xf] %vm26_vm0, %v1438_v22  ;;  %v7890_v19 = vrot.slane %v2088_v46, 4  ;;  %v904_v60 = vpop.permute.xlu0 %903  ;;  %1954 = vrot.lane.b32.xlu0 %v7769_v34, %s6842_s25 }
 0x10f   :  { %1448 = vst.msk [vmem:[#allocation3 + $0x118] sm:$0xf] %vm26_vm0, %v1439_v28  ;;  %v7892_v49 = vrot.slane %v2105_v14, 5  ;;  %884 = vst.msk [vmem:[#allocation3 + $0x68] sm:$0xf] %vm26_vm0, %v862_v47  ;;  %v7895_v9 = vrot.slane %v2110_v12, 4  ;;  %v7931_v2 = vsel %vm7440_vm13, %v6055_v59, %v1944_v25 }
 0x110   :  { %v865_v6 = vrot.slane %v817_v40, 5  ;;  %v7897_v54 = vld [vmem:[#allocation2 + $0x64] sm:$0x1]  ;;  %v7899_v55 = vld [vmem:[#allocation2 + $0x68] sm:$0xe]  ;;  %v2115_v20 = vrot.slane %v2113_v30, 5  ;;  %v2094_v50 = vsel %vm7142_vm4, %v7890_v19, %v7858_v15 }
 0x111   :  { %v2119_v29 = vshll.u32 %v7856_v56, 16  ;;  %v6023_v45 = vrot.slane %v818_v7, 9  ;;  %v869_v22 = vrot.slane %v819_v5, 5  ;;  %v1617_v46 = vld [vmem:[#allocation2 + $0x6c] sm:$0x1]  ;;  %v7904_v40 = vrot.slane %v2102_v23, 4  ;;  %2129 = vrot.lane.b32.xlu1 %v2066_v35, %s6842_s25 }
 0x112   :  { %v1618_v28 = vld [vmem:[#allocation2 + $0x70] sm:$0xe]  ;;  %v1619_v14 = vld [vmem:[#allocation2 + $0x74] sm:$0x1]  ;;  %928 = vst.msk [vmem:[#allocation3 + $0x18] sm:$0xf] %vm795_vm10, %v906_v10  ;;  %v866_v12 = vsel %vm7440_vm13, %v6022_v42, %v865_v6  ;;  %v2116_v5 = vor.u32 %v2115_v20, %v7895_v9  ;;  %2131 = vrot.lane.b32.xlu0 %v2080_v18, %s6842_s25 }
 0x113   :  { %v1176_v43 = vld [vmem:[#allocation2 + $0x10] sm:$0xf]  ;;  %927 = vst.msk [vmem:[#allocation3 + $0x4] sm:$0xf] %vm795_vm10, %v904_v60  ;;  %v6041_v47 = vrot.slane %v7862_v39, 9  ;;  %v1648_v30 = vrot.slane %v1613_v17, 5  ;;  %v870_v39 = vsel %vm7440_vm13, %v6023_v45, %v869_v22 }
 0x114   :  { %v1620_v44 = vld [vmem:[#allocation2 + $0x78] sm:$0xe]  ;;  %v1621_v56 = vld [vmem:[#allocation2 + $0x7c] sm:$0x1]  ;;  %1184 = vst.msk [vmem:[#allocation3 + $0xc] sm:$0xf] %vm26_vm0, %v1176_v43 }
 0x115   :  { %v1440_v7 = vld [vmem:[#allocation2 + $0x88] sm:$0xf]  ;;  %885 = vst.msk [vmem:[#allocation3 + $0x7c] sm:$0xf] %vm26_vm0, %v866_v12  ;;  %v6040_v43 = vrot.slane %v7870_v1, 9  ;;  %v1644_v17 = vrot.slane %v7872_v62, 5  ;;  %v1649_v63 = vsel %vm7440_vm13, %v6041_v47, %v1648_v30  ;;  %1956 = vrot.lane.b32.xlu1 %v7830_v27, %s6842_s25 }
 0x116   :  { %v1622_v23 = vld [vmem:[#allocation2 + $0x80] sm:$0xe]  ;;  %v1623_v42 = vld [vmem:[#allocation2 + $0x84] sm:$0x1]  ;;  %1449 = vst.msk [vmem:[#allocation3 + $0x12c] sm:$0xf] %vm26_vm0, %v1440_v7  ;;  %1958 = vrot.lane.b32.xlu0 %v7849_v36, %s6842_s25 }
 0x117   :  { %v1177_v24 = vld [vmem:[#allocation2 + $0x18] sm:$0xf]  ;;  %886 = vst.msk [vmem:[#allocation3 + $0x90] sm:$0xf] %vm26_vm0, %v870_v39  ;;  %v6042_v1 = vrot.slane %v7886_v26, 9  ;;  %v7938_v60 = vrot.slane %v2119_v29, 5  ;;  %v1645_v59 = vsel %vm7440_vm13, %v6040_v43, %v1644_v17  ;;  %v908_v26 = vpop.permute.xlu0 %907  ;;  %v2108_v29 = vsel %vm7142_vm4, %v7904_v40, %v7892_v49 }
 0x118   :  { %v1624_v62 = vld [vmem:[#allocation2 + $0x88] sm:$0xe]  ;;  %v1625_v9 = vld [vmem:[#allocation2 + $0x8c] sm:$0x1]  ;;  %1185 = vst.msk [vmem:[#allocation3 + $0x20] sm:$0xf] %vm26_vm0, %v1177_v24 }
 0x119   :  { %v935_v6 = vld [vmem:[#allocation2 + $0x8] sm:$0xf]  ;;  %v1178_v10 = vld [vmem:[#allocation2 + $0x20] sm:$0xf]  ;;  %1683 = vst.msk [vmem:[#allocation3 + $0xb8] sm:$0xf] %vm26_vm0, %v1649_v63  ;;  %2133 = vrot.lane.b32.xlu1 %v2094_v50, %s6842_s25 }
 0x11a   :  { %v1652_v25 = vrot.slane %v7897_v54, 5  ;;  %v6043_v20 = vrot.slane %v7899_v55, 9  ;;  %v936_v45 = vld [vmem:[#allocation2 + $0xc] sm:$0x1]  ;;  %v937_v22 = vld [vmem:[#allocation2 + $0x10] sm:$0xf]  ;;  %2135 = vrot.lane.b32.xlu0 %v2108_v29, %s6842_s25 }
 0x11b   :  { %1186 = vst.msk [vmem:[#allocation3 + $0x34] sm:$0xf] %vm26_vm0, %v1178_v10  ;;  %1682 = vst.msk [vmem:[#allocation3 + $0xa4] sm:$0xf] %vm26_vm0, %v1645_v59  ;;  %v1656_v12 = vrot.slane %v1617_v46, 5  ;;  %v6044_v47 = vrot.slane %v1618_v28, 9 }
 0x11c   :  { %v1660_v30 = vrot.slane %v1619_v14, 5  ;;  %v938_v7 = vld [vmem:[#allocation2 + $0x14] sm:$0x1]  ;;  %929 = vst.msk [vmem:[#allocation3 + $0x2c] sm:$0xf] %vm795_vm10, %v908_v26  ;;  %v7960_v54 = vrot.slane %v2116_v5, 4  ;;  %v1653_v55 = vsel %vm7440_vm13, %v6042_v1, %v1652_v25 }
 0x11d   :  { %v6045_v46 = vrot.slane %v1620_v44, 9  ;;  %v1664_v28 = vrot.slane %v1621_v56, 5  ;;  %v939_v14 = vld [vmem:[#allocation2 + $0x18] sm:$0xf]  ;;  %1684 = vst.msk [vmem:[#allocation3 + $0xcc] sm:$0xf] %vm26_vm0, %v1653_v55  ;;  %v1657_v51 = vsel %vm7440_vm13, %v6043_v20, %v1656_v12  ;;  %1960 = vrot.lane.b32.xlu1 %v7931_v2, %s6842_s25 }
 0x11e   :  { %v1661_v39 = vsel %vm7440_vm13, %v6044_v47, %v1660_v30  ;;  %v6046_v61 = vrot.slane %v1622_v23, 9  ;;  %v1668_v33 = vrot.slane %v1623_v42, 5  ;;  %v1179_v48 = vld [vmem:[#allocation2 + $0x28] sm:$0xf]  ;;  %v1180_v43 = vld [vmem:[#allocation2 + $0x30] sm:$0xf]  ;;  %v2122_v36 = vsel %vm7142_vm4, %v7960_v54, %v7938_v60 }
 0x11f   :  { %v7969_v5 = vld [vmem:[#allocation3] sm:$0xff]  ;;  %1685 = vst.msk [vmem:[#allocation3 + $0xe0] sm:$0xf] %vm26_vm0, %v1657_v51  ;;  %1686 = vst.msk [vmem:[#allocation3 + $0xf4] sm:$0xf] %vm26_vm0, %v1661_v39  ;;  %v1665_v44 = vsel %vm7440_vm13, %v6045_v46, %v1664_v28  ;;  %v6047_v56 = vrot.slane %v1624_v62, 9 }
 0x120   :  { %v1672_v17 = vrot.slane %v1625_v9, 5  ;;  %v952_v24 = vshrl.u32 %v935_v6, 16  ;;  %v940_v63 = vld [vmem:[#allocation2 + $0x1c] sm:$0x1]  ;;  %1187 = vst.msk [vmem:[#allocation3 + $0x48] sm:$0xf] %vm26_vm0, %v1179_v48  ;;  %v1669_v23 = vsel %vm7440_vm13, %v6046_v61, %v1668_v33 }
 0x121   :  { %1188 = vst.msk [vmem:[#allocation3 + $0x5c] sm:$0xf] %vm26_vm0, %v1180_v43  ;;  %3710 = vst.msk [vmem:[#allocation3 + $0x4] sm:$0xf] %vm26_vm0, %v7792_v13  ;;  %v955_v42 = vshll.u32 %v935_v6, 16  ;;  %v961_v1 = vshll.u32 %v936_v45, 16  ;;  %v910_v13 = vpop.permute.xlu1 %909  ;;  %2137 = vrot.lane.b32.xlu1 %v2122_v36, %s6842_s25 }
 0x122   :  { %1687 = vst.msk [vmem:[#allocation3 + $0x108] sm:$0xf] %vm26_vm0, %v1665_v44  ;;  %v966_v10 = vshrl.u32 %v937_v22, 16  ;;  %v941_v59 = vld [vmem:[#allocation2 + $0x20] sm:$0xf]  ;;  %v1673_v62 = vsel %vm7440_vm13, %v6047_v56, %v1672_v17  ;;  %v954_v9 = vrot.slane %v952_v24, 4  ;;  %v912_v56 = vpop.permute.xlu0 %911 }
 0x123   :  { %1688 = vst.msk [vmem:[#allocation3 + $0x11c] sm:$0xf] %vm26_vm0, %v1669_v23  ;;  %v969_v6 = vshll.u32 %v937_v22, 16  ;;  %v975_v25 = vshll.u32 %v938_v7, 16  ;;  %v942_v20 = vld [vmem:[#allocation2 + $0x24] sm:$0x1] }
 0x124   :  { %930 = vst.msk [vmem:[#allocation3 + $0x40] sm:$0xf] %vm795_vm10, %v910_v13  ;;  %v957_v45 = vrot.slane %v955_v42, 5  ;;  %v963_v37 = vrot.slane %v961_v1, 5  ;;  %v968_v16 = vrot.slane %v966_v10, 4  ;;  %v980_v31 = vshrl.u32 %v939_v14, 16 }
 0x125   :  { %1689 = vst.msk [vmem:[#allocation3 + $0x130] sm:$0xf] %vm26_vm0, %v1673_v62  ;;  %v943_v26 = vld [vmem:[#allocation2 + $0x28] sm:$0xf]  ;;  %v971_v8 = vrot.slane %v969_v6, 5  ;;  %v977_v12 = vrot.slane %v975_v25, 5  ;;  %v774_v39 = vpop.permute.xlu1 %773 }
 0x126   :  { %v983_v47 = vshll.u32 %v939_v14, 16  ;;  %v989_v30 = vshll.u32 %v940_v63, 16  ;;  %v944_v55 = vld [vmem:[#allocation2 + $0x2c] sm:$0x1]  ;;  %v958_v46 = vor.u32 %v957_v45, %v954_v9  ;;  %v982_v28 = vrot.slane %v980_v31, 4  ;;  %v6696_v49 = vld [vmem:[%s9368_s1 + $0x110] sm:$0xff]  }
 0x127   :  { %v994_v51 = vshrl.u32 %v941_v59, 16  ;;  %v997_v22 = vshll.u32 %v941_v59, 16  ;;  %v1352_v7 = vld [vmem:[#allocation2 + $0x10] sm:$0xe]  ;;  %v972_v61 = vor.u32 %v971_v8, %v968_v16  ;;  %v1003_v48 = vshll.u32 %v942_v20, 16  ;;  %v6686_v60 = vld [vmem:[%s9368_s1 + $0x108] sm:$0xff]  }
 0x128   :  { %v985_v14 = vrot.slane %v983_v47, 5  ;;  %v991_v33 = vrot.slane %v989_v30, 5  ;;  %v1353_v43 = vld [vmem:[#allocation2 + $0x14] sm:$0x1]  ;;  %v1354_v44 = vld [vmem:[#allocation2 + $0x18] sm:$0xe] }
 0x129   :  { %797 = vst.msk [vmem:[#allocation3 + $0x14] sm:$0xf] %vm795_vm10, %v774_v39  ;;  %v959_v17 = vrot.slane %v958_v46, 4  ;;  %v996_v24 = vrot.slane %v994_v51, 4  ;;  %v999_v34 = vrot.slane %v997_v22, 5  ;;  %v1008_v63 = vshrl.u32 %v943_v26, 16  ;;  %v914_v25 = vpop.permute.xlu1 %913 }
 0x12a   :  { %v1355_v23 = vld [vmem:[#allocation2 + $0x1c] sm:$0x1]  ;;  %931 = vst.msk [vmem:[#allocation3 + $0x54] sm:$0xf] %vm795_vm10, %v912_v56  ;;  %v973_v42 = vrot.slane %v972_v61, 4  ;;  %v986_v21 = vor.u32 %v985_v14, %v982_v28  ;;  %v1005_v53 = vrot.slane %v1003_v48, 5 }
 0x12b   :  { %v1011_v35 = vshll.u32 %v943_v26, 16  ;;  %v1181_v1 = vld [vmem:[#allocation2 + $0x38] sm:$0xf]  ;;  %v964_v10 = vsel %vm7142_vm4, %v959_v17, %v963_v37  ;;  %v1000_v59 = vor.u32 %v999_v34, %v996_v24  ;;  %v1010_v13 = vrot.slane %v1008_v63, 4  ;;  %v945_v9 = vld [vmem:[#allocation2 + $0x30] sm:$0xf] }
 0x12c   :  { %v1017_v62 = vshll.u32 %v944_v55, 16  ;;  %1189 = vst.msk [vmem:[#allocation3 + $0x70] sm:$0xf] %vm26_vm0, %v1181_v1  ;;  %v1182_v6 = vld [vmem:[#allocation2 + $0x40] sm:$0xf]  ;;  %v978_v20 = vsel %vm7142_vm4, %v973_v42, %v977_v12  ;;  %v987_v45 = vrot.slane %v986_v21, 4 }
 0x12d   :  { %1071 = vst.msk [vmem:[#allocation3 + $0x8] sm:$0xf] %vm26_vm0, %v964_v10  ;;  %v1013_v37 = vrot.slane %v1011_v35, 5  ;;  %v6032_v16 = vrot.slane %v1352_v7, 9  ;;  %v946_v31 = vld [vmem:[#allocation2 + $0x34] sm:$0x1] }
 0x12e   :  { %1190 = vst.msk [vmem:[#allocation3 + $0x84] sm:$0xf] %vm26_vm0, %v1182_v6  ;;  %1072 = vst.msk [vmem:[#allocation3 + $0x1c] sm:$0xf] %vm26_vm0, %v978_v20  ;;  %v1001_v0 = vrot.slane %v1000_v59, 4  ;;  %v1019_v58 = vrot.slane %v1017_v62, 5  ;;  %v992_v8 = vsel %vm7142_vm4, %v987_v45, %v991_v33 }
 0x12f   :  { %932 = vst.msk [vmem:[#allocation3 + $0x68] sm:$0xf] %vm795_vm10, %v914_v25  ;;  %v1386_v18 = vrot.slane %v1353_v43, 5  ;;  %v6033_v27 = vrot.slane %v1354_v44, 9  ;;  %v947_v26 = vld [vmem:[#allocation2 + $0x38] sm:$0xf]  ;;  %v1014_v47 = vor.u32 %v1013_v37, %v1010_v13 }
 0x130   :  { %v1390_v12 = vrot.slane %v1355_v23, 5  ;;  %v1022_v30 = vshrl.u32 %v945_v9, 16  ;;  %v8024_v55 = vld [vmem:[#allocation2 + $0x30] sm:$0xe]  ;;  %1073 = vst.msk [vmem:[#allocation3 + $0x30] sm:$0xf] %vm26_vm0, %v992_v8  ;;  %v1006_v46 = vsel %vm7142_vm4, %v1001_v0, %v1005_v53  ;;  %v776_v53 = vpop.permute.xlu0 %775 }
 0x131   :  { %v1387_v28 = vsel %vm7440_vm13, %v6032_v16, %v1386_v18  ;;  %v1025_v51 = vshll.u32 %v945_v9, 16  ;;  %v1031_v22 = vshll.u32 %v946_v31, 16  ;;  %v8031_v7 = vld [vmem:[#allocation2 + $0x3c] sm:$0x1]  ;;  %v1361_v39 = vld [vmem:[#allocation2 + $0x34] sm:$0x1] }
 0x132   :  { %v8033_v61 = vld [vmem:[#allocation2 + $0x38] sm:$0xe]  ;;  %1074 = vst.msk [vmem:[#allocation3 + $0x44] sm:$0xf] %vm26_vm0, %v1006_v46  ;;  %v1015_v33 = vrot.slane %v1014_v47, 4  ;;  %v1391_v48 = vsel %vm7440_vm13, %v6033_v27, %v1390_v12  ;;  %v1024_v43 = vrot.slane %v1022_v30, 4  ;;  %v778_v46 = vpop.permute.xlu1 %777 }
 0x133   :  { %v2238_v14 = vld [vmem:[#allocation3 + $0x14] sm:$0xff]  ;;  %1424 = vst.msk [vmem:[#allocation3 + $0x10] sm:$0xf] %vm26_vm0, %v1387_v28  ;;  %v1036_v44 = vshrl.u32 %v947_v26, 16  ;;  %v1363_v56 = vld [vmem:[#allocation2 + $0x3c] sm:$0x1] }
 0x134   :  { %v6066_v15 = vcombine.high %v7969_v5, %v2238_v14  ;;  %v6065_v19 = vcombine.low %v7969_v5, %v2238_v14  ;;  %1425 = vst.msk [vmem:[#allocation3 + $0x24] sm:$0xf] %vm26_vm0, %v1391_v48  ;;  %v1027_v50 = vrot.slane %v1025_v51, 5  ;;  %v949_v17 = vld [vmem:[#allocation2 + $0x40] sm:$0xf]  ;;  %v1020_v34 = vsel %vm7142_vm4, %v1015_v33, %v1019_v58  ;;  %v6709_v48 = vld [vmem:[%s9368_s1 + $0x118] sm:$0xff]  }
 0x135   :  { %v1183_v24 = vld [vmem:[#allocation2 + $0x48] sm:$0xf]  ;;  %v1033_v63 = vrot.slane %v1031_v22, 5  ;;  %v1038_v23 = vrot.slane %v1036_v44, 4  ;;  %v1039_v42 = vshll.u32 %v947_v26, 16  ;;  %v9382_v5 = vrot.slane %v7384_v4, 5  ;;  %v916_v26 = vpop.permute.xlu0 %915 }
 0x136   :  { %1191 = vst.msk [vmem:[#allocation3 + $0x98] sm:$0xf] %vm26_vm0, %v1183_v24  ;;  %v1979_v21 = vld [vmem:[#allocation2 + $0x60] sm:$0xf]  ;;  %2834 = vmatprep.mubr.bf16.mxu0 %v6066_v15  ;;  %1075 = vst.msk [vmem:[#allocation3 + $0x58] sm:$0xf] %vm26_vm0, %v1020_v34  ;;  %v1028_v54 = vor.u32 %v1027_v50, %v1024_v43  ;;  %v918_v24 = vpop.permute.xlu1 %917 }
 0x137   :  { %v9383_v35 = vrot.slane %v7382_v3, 9  ;;  %v9384_v10 = vrot.slane %v7402_v52, 5  ;;  %v9385_v59 = vrot.slane %v7398_v11, 9  ;;  %v6036_v62 = vrot.slane %v8024_v55, 9  ;;  %v950_v9 = vld [vmem:[#allocation2 + $0x44] sm:$0x1]  ;;  %2835 = vmatmul.mubr.bf16.vlgmr.msra.gmra.mrb[0].mxu0 %v6065_v19 }
 0x138   :  { %v1738_v6 = vld [vmem:[#allocation2 + $0x58] sm:$0xf]  ;;  %1987 = vst.msk [vmem:[#allocation3 + $0xac] sm:$0xf] %vm26_vm0, %v1979_v21  ;;  %v1041_v3 = vrot.slane %v1039_v42, 5  ;;  %v1045_v4 = vshll.u32 %v8031_v7, 16 }
 0x139   :  { %v1395_v1 = vsel %vm7440_vm13, %v9383_v35, %v9382_v5  ;;  %v1399_v13 = vsel %vm7440_vm13, %v9385_v59, %v9384_v10  ;;  %798 = vst.msk [vmem:[#allocation3 + $0x28] sm:$0xf] %vm795_vm10, %v776_v53  ;;  %v1402_v11 = vrot.slane %v1361_v39, 5  ;;  %v6037_v52 = vrot.slane %v8033_v61, 9  ;;  %v1739_v25 = vld [vmem:[#allocation2 + $0x5c] sm:$0x1] }
 0x13a   :  { %1426 = vst.msk [vmem:[#allocation3 + $0x38] sm:$0xf] %vm26_vm0, %v1395_v1  ;;  %1427 = vst.msk [vmem:[#allocation3 + $0x4c] sm:$0xf] %vm26_vm0, %v1399_v13  ;;  %v1029_v40 = vrot.slane %v1028_v54, 4  ;;  %v1406_v2 = vrot.slane %v1363_v56, 5  ;;  %v1042_v16 = vor.u32 %v1041_v3, %v1038_v23 }
 0x13b   :  { %v1050_v29 = vshrl.u32 %v949_v17, 16  ;;  %v1053_v20 = vshll.u32 %v949_v17, 16  ;;  %v1364_v45 = vld [vmem:[#allocation2 + $0x40] sm:$0xe]  ;;  %v1403_v31 = vsel %vm7440_vm13, %v6036_v62, %v1402_v11  ;;  %v1059_v0 = vshll.u32 %v950_v9, 16  ;;  %v780_v17 = vpop.permute.xlu0 %779 }
 0x13c   :  { %v6816_v37 = vld [vmem:[%s9368_s1 + $0x100] sm:$0xff]   ;;  %v1755_v58 = vshrl.u32 %v1738_v6, 16  ;;  %v1366_v27 = vld [vmem:[#allocation2 + $0x48] sm:$0xe]  ;;  %v1034_v8 = vsel %vm7142_vm4, %v1029_v40, %v1033_v63  ;;  %v1407_v47 = vsel %vm7440_vm13, %v6037_v52, %v1406_v2  ;;  %1428 = vst.msk [vmem:[#allocation3 + $0x60] sm:$0xf] %vm26_vm0, %v1403_v31 }
 0x13d   :  { %6611 = vmatpush3.bf16.msra.mxu0 %v6816_v37  ;;  %v1365_v18 = vld [vmem:[#allocation2 + $0x44] sm:$0x1]  ;;  %v1052_v12 = vrot.slane %v1050_v29, 4  ;;  %v1055_v30 = vrot.slane %v1053_v20, 5  ;;  %v1367_v55 = vld [vmem:[#allocation2 + $0x4c] sm:$0x1] }
 0x13e   :  { %6612 = vmatprep.subr.bf16.mxu0 %v6686_v60  ;;  %933 = vst.msk [vmem:[#allocation3 + $0x7c] sm:$0xf] %vm795_vm10, %v916_v26  ;;  %v1043_v28 = vrot.slane %v1042_v16, 4  ;;  %v1047_v51 = vrot.slane %v1045_v4, 5  ;;  %v2155_v22 = vld [vmem:[#allocation2 + $0x60] sm:$0xe] }
 0x13f   :  { %1076 = vst.msk [vmem:[#allocation3 + $0x6c] sm:$0xf] %vm26_vm0, %v1034_v8  ;;  %1429 = vst.msk [vmem:[#allocation3 + $0x74] sm:$0xf] %vm26_vm0, %v1407_v47  ;;  %v1056_v7 = vor.u32 %v1055_v30, %v1052_v12  ;;  %v1757_v39 = vrot.slane %v1755_v58, 4  ;;  %v1758_v61 = vshll.u32 %v1738_v6, 16  ;;  %v1579_v11 = vpop.permute.xlu0 %1578 }
 0x140   :  { %799 = vst.msk [vmem:[#allocation3 + $0x3c] sm:$0xf] %vm795_vm10, %v778_v46  ;;  %v1764_v14 = vshll.u32 %v1739_v25, 16  ;;  %v2156_v33 = vld [vmem:[#allocation2 + $0x64] sm:$0x1]  ;;  %v1048_v43 = vsel %vm7142_vm4, %v1043_v28, %v1047_v51  ;;  %v6038_v44 = vrot.slane %v1364_v45, 9 }
 0x141   :  { %6613 = vmatpush3.bf16.msra.mxu0 %v6686_v60  ;;  %v1410_v56 = vrot.slane %v1365_v18, 5  ;;  %v6039_v36 = vrot.slane %v1366_v27, 9  ;;  %v2157_v15 = vld [vmem:[#allocation2 + $0x68] sm:$0xe]  ;;  %1077 = vst.msk [vmem:[#allocation3 + $0x80] sm:$0xf] %vm26_vm0, %v1048_v43 }
 0x142   :  { %6614 = vmatprep.subr.bf16.mxu0 %v6696_v49  ;;  %v1057_v19 = vrot.slane %v1056_v7, 4  ;;  %v1061_v50 = vrot.slane %v1059_v0, 5  ;;  %v1760_v34 = vrot.slane %v1758_v61, 5  ;;  %v1414_v23 = vrot.slane %v1367_v55, 5  ;;  %v4196_v42 = vld [vmem:[#allocation2 + $0x48] sm:$0xe]  ;;  %v782_v55 = vpop.permute.xlu1 %781 }
 0x143   :  { %v1411_v63 = vsel %vm7440_vm13, %v6038_v44, %v1410_v56  ;;  %v4197_v21 = vld [vmem:[#allocation2 + $0x4c] sm:$0x1]  ;;  %800 = vst.msk [vmem:[#allocation3 + $0x50] sm:$0xf] %vm795_vm10, %v780_v17  ;;  %934 = vst.msk [vmem:[#allocation3 + $0x90] sm:$0xf] %vm795_vm10, %v918_v24 }
 0x144   :  { %v1062_v53 = vsel %vm7142_vm4, %v1057_v19, %v1061_v50  ;;  %v1766_v60 = vrot.slane %v1764_v14, 5  ;;  %1430 = vst.msk [vmem:[#allocation3 + $0x88] sm:$0xf] %vm26_vm0, %v1411_v63  ;;  %v2158_v54 = vld [vmem:[#allocation2 + $0x6c] sm:$0x1]  ;;  %v6056_v5 = vrot.slane %v2155_v22, 9  ;;  %v1761_v1 = vor.u32 %v1760_v34, %v1757_v39 }
 0x145   :  { %v2241_v35 = vld [vmem:[#allocation3 + $0x28] sm:$0xff]  ;;  %6615 = vmatpush3.bf16.msra.mxu0 %v6696_v49  ;;  %1078 = vst.msk [vmem:[#allocation3 + $0x94] sm:$0xf] %vm26_vm0, %v1062_v53  ;;  %v1415_v10 = vsel %vm7440_vm13, %v6039_v36, %v1414_v23  ;;  %v2189_v59 = vrot.slane %v2156_v33, 5  ;;  %v6057_v13 = vrot.slane %v2157_v15, 9  ;;  %v6188_v9 = vrot.slane %v4196_v42, 9 }
 0x146   :  { %v1740_v62 = vld [vmem:[#allocation2 + $0x60] sm:$0xf]  ;;  %6616 = vmatprep.subr.bf16.mxu0 %v6709_v48  ;;  %1431 = vst.msk [vmem:[#allocation3 + $0x9c] sm:$0xf] %vm26_vm0, %v1415_v10  ;;  %v4244_v6 = vrot.slane %v4197_v21, 5  ;;  %v2193_v3 = vrot.slane %v2158_v54, 5  ;;  %v1709_v24 = vpop.permute.xlu1 %1708 }
 0x147   :  { %v1769_v4 = vshrl.u32 %v1740_v62, 16  ;;  %v2244_v52 = vld [vmem:[#allocation3 + $0x3c] sm:$0xff]  ;;  %v1762_v49 = vrot.slane %v1761_v1, 4  ;;  %v2190_v40 = vsel %vm7440_vm13, %v6056_v5, %v2189_v59  ;;  %v1741_v2 = vld [vmem:[#allocation2 + $0x64] sm:$0x1]  ;;  %v1772_v37 = vshll.u32 %v1740_v62, 16 }
 0x148   :  { %v6679_v25 = vld [vmem:[#allocation3 + $0x2c] ss:$20 sps:$4 sm:$0xff]   ;;  %1602 = vst.msk [vmem:[#allocation3 + $0xa0] sm:$0xf] %vm795_vm10, %v1579_v11  ;;  %v6070_v29 = vcombine.low %v2241_v35, %v2244_v52  ;;  %v2194_v20 = vsel %vm7440_vm13, %v6057_v13, %v2193_v3  ;;  %v1742_v16 = vld [vmem:[#allocation2 + $0x68] sm:$0xf]  ;;  %v4245_v28 = vsel %vm7440_vm13, %v6188_v9, %v4244_v6  ;;  %v784_v35 = vpop.permute.xlu0 %783 }
 0x149   :  { %2227 = vst.msk [vmem:[#allocation3 + $0xb0] sm:$0xf] %vm26_vm0, %v2190_v40  ;;  %v1771_v45 = vrot.slane %v1769_v4, 4  ;;  %v1743_v31 = vld [vmem:[#allocation2 + $0x6c] sm:$0x1]  ;;  %2842 = vmatprep.mubr.bf16.mxu0 %v6679_v25  ;;  %6617 = vmatpush3.bf16.msra.mxu0 %v6709_v48  ;;  %v1767_v0 = vsel %vm7142_vm4, %v1762_v49, %v1766_v60  ;;  %v1778_v58 = vshll.u32 %v1741_v2, 16 }
 0x14a   :  { %2228 = vst.msk [vmem:[#allocation3 + $0xc4] sm:$0xf] %vm26_vm0, %v2194_v20  ;;  %v1783_v18 = vshrl.u32 %v1742_v16, 16  ;;  %v1786_v27 = vshll.u32 %v1742_v16, 16  ;;  %v1980_v26 = vld [vmem:[#allocation2 + $0x68] sm:$0xf]  ;;  %2843 = vmatmul.mubr.bf16.gmra.mrb[4].mxu0 %v6070_v29 }
 0x14b   :  { %1874 = vst.msk [vmem:[#allocation3 + $0xa8] sm:$0xf] %vm26_vm0, %v1767_v0  ;;  %v1774_v8 = vrot.slane %v1772_v37, 5  ;;  %v1792_v47 = vshll.u32 %v1743_v31, 16  ;;  %1988 = vst.msk [vmem:[#allocation3 + $0xc0] sm:$0xf] %vm26_vm0, %v1980_v26 }
 0x14c   :  { %v1981_v12 = vld [vmem:[#allocation2 + $0x70] sm:$0xf]  ;;  %v1780_v51 = vrot.slane %v1778_v58, 5  ;;  %v1785_v22 = vrot.slane %v1783_v18, 4  ;;  %v1788_v7 = vrot.slane %v1786_v27, 5  ;;  %v1707_v58 = vpop.permute.xlu0 %1706  ;;  %v786_v18 = vpop.permute.xlu1 %785 }
 0x14d   :  { %v2159_v30 = vld [vmem:[#allocation2 + $0x70] sm:$0xe]  ;;  %1989 = vst.msk [vmem:[#allocation3 + $0xd4] sm:$0xf] %vm26_vm0, %v1981_v12  ;;  %v1775_v39 = vor.u32 %v1774_v8, %v1771_v45  ;;  %v1794_v61 = vrot.slane %v1792_v47, 5 }
 0x14e   :  { %v8134_v46 = vld [vmem:[#allocation2 + $0x50] sm:$0xe]  ;;  %801 = vst.msk [vmem:[#allocation3 + $0x64] sm:$0xf] %vm795_vm10, %v782_v55  ;;  %v2160_v14 = vld [vmem:[#allocation2 + $0x74] sm:$0x1]  ;;  %v1789_v44 = vor.u32 %v1788_v7, %v1785_v22 }
 0x14f   :  { %v2161_v33 = vld [vmem:[#allocation2 + $0x78] sm:$0xe]  ;;  %v6058_v48 = vrot.slane %v2159_v30, 9  ;;  %v8140_v43 = vld [vmem:[#allocation3 + $0x88] ss:$20 sps:$4 sm:$0xff]   ;;  %v1776_v36 = vrot.slane %v1775_v39, 4 }
 0x150   :  { %v2162_v56 = vld [vmem:[#allocation2 + $0x7c] sm:$0x1]  ;;  %4261 = vst.msk [vmem:[#allocation3 + $0x9c] sm:$0xf] %vm26_vm0, %v4245_v28  ;;  %v2197_v15 = vrot.slane %v2160_v14, 5  ;;  %v6059_v19 = vrot.slane %v2161_v33, 9  ;;  %v1711_v33 = vpop.permute.xlu0 %1710 }
 0x151   :  { %v2201_v50 = vrot.slane %v2162_v56, 5  ;;  %v2163_v17 = vld [vmem:[#allocation2 + $0x80] sm:$0xe]  ;;  %v1790_v34 = vrot.slane %v1789_v44, 4  ;;  %v2164_v63 = vld [vmem:[#allocation2 + $0x84] sm:$0x1]  ;;  %v1781_v53 = vsel %vm7142_vm4, %v1776_v36, %v1780_v51 }
 0x152   :  { %v6060_v23 = vrot.slane %v2163_v17, 9  ;;  %1731 = vst.msk [vmem:[#allocation3 + $0xb8] sm:$0xf] %vm795_vm10, %v1709_v24  ;;  %v8144_v42 = vld [vmem:[#allocation2 + $0x54] sm:$0x1]  ;;  %v6189_v21 = vrot.slane %v8134_v46, 9  ;;  %v2198_v60 = vsel %vm7440_vm13, %v6058_v48, %v2197_v15  ;;  %v1713_v48 = vpop.permute.xlu1 %1712 }
 0x153   :  { %v2202_v54 = vsel %vm7440_vm13, %v6059_v19, %v2201_v50  ;;  %v2165_v5 = vld [vmem:[#allocation2 + $0x88] sm:$0xe]  ;;  %1875 = vst.msk [vmem:[#allocation3 + $0xbc] sm:$0xf] %vm26_vm0, %v1781_v53  ;;  %v1795_v1 = vsel %vm7142_vm4, %v1790_v34, %v1794_v61  ;;  %2229 = vst.msk [vmem:[#allocation3 + $0xd8] sm:$0xf] %vm26_vm0, %v2198_v60 }
 0x154   :  { %2230 = vst.msk [vmem:[#allocation3 + $0xec] sm:$0xf] %vm26_vm0, %v2202_v54  ;;  %v2166_v10 = vld [vmem:[#allocation2 + $0x8c] sm:$0x1]  ;;  %v2205_v59 = vrot.slane %v2164_v63, 5  ;;  %v6061_v13 = vrot.slane %v2165_v5, 9 }
 0x155   :  { %v1744_v62 = vld [vmem:[#allocation2 + $0x70] sm:$0xf]  ;;  %802 = vst.msk [vmem:[#allocation3 + $0x78] sm:$0xf] %vm795_vm10, %v784_v35  ;;  %v2209_v6 = vrot.slane %v2166_v10, 5  ;;  %v2250_v52 = vld [vmem:[#allocation3 + $0x64] sm:$0xff] }
 0x156   :  { %v2247_v9 = vld [vmem:[#allocation3 + $0x50] sm:$0xff]  ;;  %1876 = vst.msk [vmem:[#allocation3 + $0xd0] sm:$0xf] %vm26_vm0, %v1795_v1  ;;  %v1797_v4 = vshrl.u32 %v1744_v62, 16  ;;  %v1800_v11 = vshll.u32 %v1744_v62, 16  ;;  %v2206_v49 = vsel %vm7440_vm13, %v6060_v23, %v2205_v59  ;;  %v4472_v0 = vrot.slane %v8144_v42, 5  ;;  %v1715_v1 = vpop.permute.xlu0 %1714  ;;  %v1581_v10 = vpop.permute.xlu1 %1580 }
 0x157   :  { %v1745_v3 = vld [vmem:[#allocation2 + $0x74] sm:$0x1]  ;;  %v1746_v2 = vld [vmem:[#allocation2 + $0x78] sm:$0xf]  ;;  %v6075_v29 = vcombine.low %v2247_v9, %v2250_v52  ;;  %v2210_v20 = vsel %vm7440_vm13, %v6061_v13, %v2209_v6  ;;  %2231 = vst.msk [vmem:[#allocation3 + $0x100] sm:$0xf] %vm26_vm0, %v2206_v49 }
 0x158   :  { %v6682_v25 = vld [vmem:[#allocation3 + $0x54] ss:$20 sps:$4 sm:$0xff]   ;;  %v1806_v40 = vshll.u32 %v1745_v3, 16  ;;  %v1799_v45 = vrot.slane %v1797_v4, 4  ;;  %v1802_v37 = vrot.slane %v1800_v11, 5  ;;  %v1811_v27 = vshrl.u32 %v1746_v2, 16 }
 0x159   :  { %v1747_v16 = vld [vmem:[#allocation2 + $0x7c] sm:$0x1]  ;;  %v1982_v31 = vld [vmem:[#allocation2 + $0x78] sm:$0xf]  ;;  %2850 = vmatprep.mubr.bf16.mxu0 %v6682_v25  ;;  %2232 = vst.msk [vmem:[#allocation3 + $0x114] sm:$0xf] %vm26_vm0, %v2210_v20  ;;  %v4473_v34 = vsel %vm7440_vm13, %v6189_v21, %v4472_v0 }
 0x15a   :  { %v1814_v26 = vshll.u32 %v1746_v2, 16  ;;  %v1820_v8 = vshll.u32 %v1747_v16, 16  ;;  %1990 = vst.msk [vmem:[#allocation3 + $0xe8] sm:$0xf] %vm26_vm0, %v1982_v31  ;;  %v1983_v47 = vld [vmem:[#allocation2 + $0x80] sm:$0xf]  ;;  %2851 = vmatmul.mubr.bf16.gmra.mrb[8].mxu0 %v6075_v29  ;;  %v1803_v12 = vor.u32 %v1802_v37, %v1799_v45  ;;  %v1583_v0 = vpop.permute.xlu0 %1582 }
 0x15b   :  { %1730 = vst.msk [vmem:[#allocation3 + $0xa4] sm:$0xf] %vm795_vm10, %v1707_v58  ;;  %803 = vst.msk [vmem:[#allocation3 + $0x8c] sm:$0xf] %vm795_vm10, %v786_v18  ;;  %v2167_v30 = vld [vmem:[#allocation2 + $0x90] sm:$0xe]  ;;  %v1717_v58 = vpop.permute.xlu1 %1716 }
 0x15c   :  { %1991 = vst.msk [vmem:[#allocation3 + $0xfc] sm:$0xf] %vm26_vm0, %v1983_v47  ;;  %v2168_v55 = vld [vmem:[#allocation2 + $0x94] sm:$0x1]  ;;  %v2169_v28 = vld [vmem:[#allocation2 + $0x98] sm:$0xe] }
 0x15d   :  { %v1808_v51 = vrot.slane %v1806_v40, 5  ;;  %v1813_v22 = vrot.slane %v1811_v27, 4  ;;  %v1816_v7 = vrot.slane %v1814_v26, 5  ;;  %v2170_v39 = vld [vmem:[#allocation2 + $0x9c] sm:$0x1]  ;;  %v6062_v61 = vrot.slane %v2167_v30, 9 }
 0x15e   :  { %v1822_v14 = vrot.slane %v1820_v8, 5  ;;  %v1804_v44 = vrot.slane %v1803_v12, 4  ;;  %v2213_v36 = vrot.slane %v2168_v55, 5  ;;  %v6063_v15 = vrot.slane %v2169_v28, 9  ;;  %v4996_v19 = vld [vmem:[#allocation2 + $0x98] sm:$0xe] }
 0x15f   :  { %v1817_v56 = vor.u32 %v1816_v7, %v1813_v22  ;;  %1732 = vst.msk [vmem:[#allocation3 + $0xcc] sm:$0xf] %vm795_vm10, %v1711_v33  ;;  %1733 = vst.msk [vmem:[#allocation3 + $0xe0] sm:$0xf] %vm795_vm10, %v1713_v48  ;;  %v2217_v50 = vrot.slane %v2170_v39, 5  ;;  %v2253_v60 = vld [vmem:[#allocation3 + $0x78] sm:$0xff]  ;;  %v1585_v33 = vpop.permute.xlu1 %1584 }
 0x160   :  { %v4997_v17 = vld [vmem:[#allocation2 + $0x9c] sm:$0x1]  ;;  %v1748_v24 = vld [vmem:[#allocation2 + $0x80] sm:$0xf]  ;;  %v1809_v63 = vsel %vm7142_vm4, %v1804_v44, %v1808_v51  ;;  %v2214_v42 = vsel %vm7440_vm13, %v6062_v61, %v2213_v36  ;;  %v1749_v53 = vld [vmem:[#allocation2 + $0x84] sm:$0x1] }
 0x161   :  { %v1818_v23 = vrot.slane %v1817_v56, 4  ;;  %1877 = vst.msk [vmem:[#allocation3 + $0xe4] sm:$0xf] %vm26_vm0, %v1809_v63  ;;  %v2218_v54 = vsel %vm7440_vm13, %v6063_v15, %v2217_v50  ;;  %2233 = vst.msk [vmem:[#allocation3 + $0x128] sm:$0xf] %vm26_vm0, %v2214_v42  ;;  %v6212_v46 = vrot.slane %v4996_v19, 9 }
 0x162   :  { %v1825_v5 = vshrl.u32 %v1748_v24, 16  ;;  %v1828_v35 = vshll.u32 %v1748_v24, 16  ;;  %v8185_v21 = vld [vmem:[#allocation3 + $0xa0] sm:$0xff]  ;;  %v2256_v59 = vld [vmem:[#allocation3 + $0x8c] sm:$0xff]  ;;  %2234 = vst.msk [vmem:[#allocation3 + $0x13c] sm:$0xf] %vm26_vm0, %v2218_v54 }
 0x163   :  { %v6684_v13 = vld [vmem:[#allocation3 + $0x7c] ss:$20 sps:$4 sm:$0xff]   ;;  %v1823_v62 = vsel %vm7142_vm4, %v1818_v23, %v1822_v14  ;;  %v5044_v9 = vrot.slane %v4997_v17, 5  ;;  %v1834_v6 = vshll.u32 %v1749_v53, 16  ;;  %4510 = vst.msk [vmem:[#allocation3 + $0xa4] sm:$0xf] %vm26_vm0, %v4473_v34  ;;  %v6080_v3 = vcombine.low %v2253_v60, %v2256_v59  ;;  %v1719_v14 = vpop.permute.xlu0 %1718  ;;  %v1721_v34 = vpop.permute.xlu1 %1720 }
 0x164   :  { %1734 = vst.msk [vmem:[#allocation3 + $0xf4] sm:$0xf] %vm795_vm10, %v1715_v1  ;;  %1603 = vst.msk [vmem:[#allocation3 + $0xb4] sm:$0xf] %vm795_vm10, %v1581_v10  ;;  %v1827_v4 = vrot.slane %v1825_v5, 4  ;;  %v1830_v11 = vrot.slane %v1828_v35, 5  ;;  %2858 = vmatprep.mubr.bf16.mxu0 %v6684_v13 }
 0x165   :  { %1878 = vst.msk [vmem:[#allocation3 + $0xf8] sm:$0xf] %vm26_vm0, %v1823_v62  ;;  %v1750_v52 = vld [vmem:[#allocation2 + $0x88] sm:$0xf]  ;;  %v1751_v25 = vld [vmem:[#allocation2 + $0x8c] sm:$0x1]  ;;  %2859 = vmatmul.mubr.bf16.gmra.mrb[12].mxu0 %v6080_v3  ;;  %v5045_v47 = vsel %vm7440_vm13, %v6212_v46, %v5044_v9 }
 0x166   :  { %v1836_v49 = vrot.slane %v1834_v6, 5  ;;  %v1839_v40 = vshrl.u32 %v1750_v52, 16  ;;  %v1842_v2 = vshll.u32 %v1750_v52, 16  ;;  %v1848_v29 = vshll.u32 %v1751_v25, 16  ;;  %v1984_v20 = vld [vmem:[#allocation2 + $0x88] sm:$0xf] }
 0x167   :  { %v1831_v45 = vor.u32 %v1830_v11, %v1827_v4  ;;  %1992 = vst.msk [vmem:[#allocation3 + $0x110] sm:$0xf] %vm26_vm0, %v1984_v20  ;;  %v1985_v37 = vld [vmem:[#allocation2 + $0x90] sm:$0xf]  ;;  %v1753_v31 = vld [vmem:[#allocation2 + $0x94] sm:$0x1]  ;;  %v1587_v24 = vpop.permute.xlu0 %1586  ;;  %v1589_v42 = vpop.permute.xlu1 %1588 }
 0x168   :  { %v1752_v16 = vld [vmem:[#allocation2 + $0x90] sm:$0xf]  ;;  %v1841_v18 = vrot.slane %v1839_v40, 4  ;;  %v1844_v27 = vrot.slane %v1842_v2, 5  ;;  %1993 = vst.msk [vmem:[#allocation3 + $0x124] sm:$0xf] %vm26_vm0, %v1985_v37 }
 0x169   :  { %v1853_v26 = vshrl.u32 %v1752_v16, 16  ;;  %v1986_v8 = vld [vmem:[#allocation2 + $0x98] sm:$0xf]  ;;  %1604 = vst.msk [vmem:[#allocation3 + $0xc8] sm:$0xf] %vm795_vm10, %v1583_v0  ;;  %v1832_v12 = vrot.slane %v1831_v45, 4 }
 0x16a   :  { %1735 = vst.msk [vmem:[#allocation3 + $0x108] sm:$0xf] %vm795_vm10, %v1717_v58  ;;  %v1856_v30 = vshll.u32 %v1752_v16, 16  ;;  %v1862_v55 = vshll.u32 %v1753_v31, 16  ;;  %v1845_v28 = vor.u32 %v1844_v27, %v1841_v18  ;;  %v1850_v51 = vrot.slane %v1848_v29, 5 }
 0x16b   :  { %1994 = vst.msk [vmem:[#allocation3 + $0x138] sm:$0xf] %vm26_vm0, %v1986_v8  ;;  %v1855_v22 = vrot.slane %v1853_v26, 4  ;;  %v8201_v7 = vld [vmem:[#allocation3 + $0x128] ss:$20 sps:$4 sm:$0xff]   ;;  %v1837_v39 = vsel %vm7142_vm4, %v1832_v12, %v1836_v49  ;;  %v2262_v48 = vld [vmem:[#allocation3 + $0xb4] sm:$0xff]  ;;  %v1144_v23 = vpop.permute.xlu0 %1143  ;;  %v1146_v35 = vpop.permute.xlu1 %1145 }
 0x16c   :  { %v1858_v61 = vrot.slane %v1856_v30, 5  ;;  %5061 = vst.msk [vmem:[#allocation3 + $0x13c] sm:$0xf] %vm26_vm0, %v5045_v47  ;;  %1879 = vst.msk [vmem:[#allocation3 + $0x10c] sm:$0xf] %vm26_vm0, %v1837_v39  ;;  %v1846_v44 = vrot.slane %v1845_v28, 4  ;;  %v6086_v56 = vcombine.high %v8185_v21, %v2262_v48  ;;  %v6085_v36 = vcombine.low %v8185_v21, %v2262_v48 }
 0x16d   :  { %1736 = vst.msk [vmem:[#allocation3 + $0x11c] sm:$0xf] %vm795_vm10, %v1719_v14  ;;  %1605 = vst.msk [vmem:[#allocation3 + $0xdc] sm:$0xf] %vm795_vm10, %v1585_v33  ;;  %v1864_v19 = vrot.slane %v1862_v55, 5 }
 0x16e   :  { %v1859_v15 = vor.u32 %v1858_v61, %v1855_v22  ;;  %v1851_v50 = vsel %vm7142_vm4, %v1846_v44, %v1850_v51  ;;  %2866 = vmatprep.mubr.bf16.mxu0 %v6086_v56  ;;  %1606 = vst.msk [vmem:[#allocation3 + $0xf0] sm:$0xf] %vm795_vm10, %v1587_v24  ;;  %1737 = vst.msk [vmem:[#allocation3 + $0x130] sm:$0xf] %vm795_vm10, %v1721_v34  ;;  %v6693_v54 = vld [vmem:[#allocation3 + $0xcc] ss:$20 sps:$4 sm:$0xff]  }
 0x16f   :  { %1880 = vst.msk [vmem:[#allocation3 + $0x120] sm:$0xf] %vm26_vm0, %v1851_v50  ;;  %2867 = vmatmul.mubr.bf16.gmra.mrb[16].mxu0 %v6085_v36  ;;  %v1591_v5 = vpop.permute.xlu0 %1590  ;;  %v1593_v1 = vpop.permute.xlu1 %1592  ;;  %v6711_v40 = vld [vmem:[#allocation3 + $0x10] ss:$20 sps:$4 sm:$0xff]   ;;  %v6714_v58 = vld [vmem:[#allocation3 + $0x38] ss:$20 sps:$4 sm:$0xff]  }
 0x170   :  { %v1860_v17 = vrot.slane %v1859_v15, 4  ;;  %v2265_v53 = vld [vmem:[#allocation3 + $0xc8] sm:$0xff]  ;;  %1167 = vst.msk [vmem:[#allocation3 + $0x8] sm:$0xf] %vm795_vm10, %v1144_v23  ;;  %1607 = vst.msk [vmem:[#allocation3 + $0x104] sm:$0xf] %vm795_vm10, %v1589_v42  ;;  %2874 = vmatprep.mubr.bf16.mxu0 %v6693_v54 }
 0x171   :  { %1608 = vst.msk [vmem:[#allocation3 + $0x118] sm:$0xf] %vm795_vm10, %v1591_v5  ;;  %1168 = vst.msk [vmem:[#allocation3 + $0x1c] sm:$0xf] %vm795_vm10, %v1146_v35  ;;  %v6700_v13 = vld [vmem:[#allocation3 + $0xf4] ss:$20 sps:$4 sm:$0xff]  }
 0x172   :  { %v1865_v63 = vsel %vm7142_vm4, %v1860_v17, %v1864_v19  ;;  %1609 = vst.msk [vmem:[#allocation3 + $0x12c] sm:$0xf] %vm795_vm10, %v1593_v1  ;;  %v6715_v18 = vld [vmem:[#allocation3 + $0x60] ss:$20 sps:$4 sm:$0xff]   ;;  %v6719_v51 = vld [vmem:[#allocation3 + $0xb0] ss:$20 sps:$4 sm:$0xff]  }
 0x173   :  { %1881 = vst.msk [vmem:[#allocation3 + $0x134] sm:$0xf] %vm26_vm0, %v1865_v63  ;;  %v1321_v21 = vpop.permute.xlu0 %1320  ;;  %v1323_v6 = vpop.permute.xlu1 %1322  ;;  %v4013_v36 = vld [vmem:[#allocation2 + $0x48] sm:$0xf]  ;;  %v6723_v15 = vld [vmem:[#allocation3 + $0x100] ss:$20 sps:$4 sm:$0xff]  }
 0x174   :  { %v2268_v60 = vld [vmem:[#allocation3 + $0xdc] sm:$0xff]  ;;  %1344 = vst.msk [vmem:[#allocation3 + $0xc] sm:$0xf] %vm795_vm10, %v1321_v21  ;;  %1345 = vst.msk [vmem:[#allocation3 + $0x20] sm:$0xf] %vm795_vm10, %v1323_v6 }
 0x175   :  { %v6090_v46 = vcombine.low %v2265_v53, %v2268_v60  ;;  %v2271_v10 = vld [vmem:[#allocation3 + $0xf0] sm:$0xff] }
 0x176   :  { %v6706_v25 = vld [vmem:[#allocation3 + $0x11c] ss:$20 sps:$4 sm:$0xff]  }
 0x177   :  { %2875 = vmatmul.mubr.bf16.gmra.mrb[20].mxu0 %v6090_v46  ;;  %v2274_v59 = vld [vmem:[#allocation3 + $0x104] sm:$0xff]  ;;  %v1148_v9 = vpop.permute.xlu0 %1147  ;;  %v1150_v4 = vpop.permute.xlu1 %1149 }
 0x178   :  { %v6095_v62 = vcombine.low %v2271_v10, %v2274_v59  ;;  %2882 = vmatprep.mubr.bf16.mxu0 %v6700_v13  ;;  %1169 = vst.msk [vmem:[#allocation3 + $0x30] sm:$0xf] %vm795_vm10, %v1148_v9  ;;  %v2277_v11 = vld [vmem:[#allocation3 + $0x118] sm:$0xff]  ;;  %1170 = vst.msk [vmem:[#allocation3 + $0x44] sm:$0xf] %vm795_vm10, %v1150_v4 }
 0x179   :  { %v2280_v52 = vld [vmem:[#allocation3 + $0x12c] sm:$0xff] }
 0x17a   :  { %v6100_v49 = vcombine.low %v2277_v11, %v2280_v52 }
 0x17b   :  { %v1325_v3 = vpop.permute.xlu0 %1324  ;;  %v1327_v29 = vpop.permute.xlu1 %1326  ;;  %v2236_v20 = vld [vmem:[#allocation3 + $0x8] sm:$0xff]  ;;  %v2239_v45 = vld [vmem:[#allocation3 + $0x1c] sm:$0xff] }
 0x17c   :  { %1346 = vst.msk [vmem:[#allocation3 + $0x34] sm:$0xf] %vm795_vm10, %v1325_v3  ;;  %v6712_v37 = vld [vmem:[#allocation3 + $0xc] ss:$20 sps:$4 sm:$0xff]   ;;  %1347 = vst.msk [vmem:[#allocation3 + $0x48] sm:$0xf] %vm795_vm10, %v1327_v29  ;;  %v6067_v16 = vcombine.low %v2236_v20, %v2239_v45 }
 0x17d   :  { %2931 = vmatprep.mubr.bf16.mxu1 %v6712_v37  ;;  %v3478_v20 = vld [vmem:[#allocation2] sm:$0xf]  ;;  %v3479_v45 = vld [vmem:[#allocation2 + $0x4] sm:$0x1]  ;;  %v4278_v37 = vld [vmem:[#allocation2 + $0x50] sm:$0xf] }
 0x17e   :  { %2932 = vmatmul.mubr.bf16.vlgmr.msra.gmra.mrb[0].mxu1 %v6067_v16  ;;  %v3495_v16 = vshrl.u32 %v3478_v20, 16 }
 0x17f   :  { %2883 = vmatmul.mubr.bf16.gmra.mrb[24].mxu0 %v6095_v62  ;;  %v1152_v2 = vpop.permute.xlu0 %1151  ;;  %v1154_v0 = vpop.permute.xlu1 %1153 }
 0x180   :  { %2890 = vmatprep.mubr.bf16.mxu0 %v6706_v25  ;;  %1171 = vst.msk [vmem:[#allocation3 + $0x58] sm:$0xf] %vm795_vm10, %v1152_v2  ;;  %1172 = vst.msk [vmem:[#allocation3 + $0x6c] sm:$0xf] %vm795_vm10, %v1154_v0  ;;  %v4813_v25 = vld [vmem:[#allocation2 + $0x98] sm:$0xf] }
 0x181   :  { %v3504_v0 = vshll.u32 %v3479_v45, 16 }
 0x183   :  { %v1329_v31 = vpop.permute.xlu0 %1328  ;;  %v1331_v26 = vpop.permute.xlu1 %1330  ;;  %v2242_v8 = vld [vmem:[#allocation3 + $0x30] sm:$0xff]  ;;  %v2245_v47 = vld [vmem:[#allocation3 + $0x44] sm:$0xff] }
 0x184   :  { %1348 = vst.msk [vmem:[#allocation3 + $0x5c] sm:$0xf] %vm795_vm10, %v1329_v31  ;;  %v6716_v12 = vld [vmem:[#allocation3 + $0x34] ss:$20 sps:$4 sm:$0xff]   ;;  %1349 = vst.msk [vmem:[#allocation3 + $0x70] sm:$0xf] %vm795_vm10, %v1331_v26  ;;  %v6072_v30 = vcombine.low %v2242_v8, %v2245_v47 }
 0x185   :  { %2939 = vmatprep.mubr.bf16.mxu1 %v6716_v12  ;;  %v3498_v31 = vshll.u32 %v3478_v20, 16  ;;  %v3497_v26 = vrot.slane %v3495_v16, 4 }
 0x186   :  { %2940 = vmatmul.mubr.bf16.gmra.mrb[4].mxu1 %v6072_v30 }
 0x187   :  { %2891 = vmatmul.mubr.bf16.gmra.mrb[28].mxu0 %v6100_v49  ;;  %v1156_v27 = vpop.permute.xlu0 %1155  ;;  %v1158_v28 = vpop.permute.xlu1 %1157  ;;  %v3500_v8 = vrot.slane %v3498_v31, 5 }
 0x188   :  { %6618 = vmatprep.mubr.msk.bf16.mxu0 %vm172_vm5, %v6711_v40  ;;  %1173 = vst.msk [vmem:[#allocation3 + $0x80] sm:$0xf] %vm795_vm10, %v1156_v27  ;;  %1174 = vst.msk [vmem:[#allocation3 + $0x94] sm:$0xf] %vm795_vm10, %v1158_v28  ;;  %v4298_v27 = vshll.u32 %v4278_v37, 16  ;;  %v3506_v28 = vrot.slane %v3504_v0, 5 }
 0x18a   :  { %v4300_v30 = vrot.slane %v4298_v27, 5 }
 0x18b   :  { %v1333_v55 = vpop.permute.xlu0 %1332  ;;  %v1335_v39 = vpop.permute.xlu1 %1334  ;;  %v2248_v61 = vld [vmem:[#allocation3 + $0x58] sm:$0xff]  ;;  %v2251_v14 = vld [vmem:[#allocation3 + $0x6c] sm:$0xff] }
 0x18c   :  { %1350 = vst.msk [vmem:[#allocation3 + $0x84] sm:$0xf] %vm795_vm10, %v1333_v55  ;;  %v6720_v33 = vld [vmem:[#allocation3 + $0x5c] ss:$20 sps:$4 sm:$0xff]   ;;  %1351 = vst.msk [vmem:[#allocation3 + $0x98] sm:$0xf] %vm795_vm10, %v1335_v39  ;;  %v6077_v48 = vcombine.low %v2248_v61, %v2251_v14  ;;  %v3501_v55 = vor.u32 %v3500_v8, %v3497_v26 }
 0x18d   :  { %2947 = vmatprep.mubr.bf16.mxu1 %v6720_v33 }
 0x18e   :  { %2948 = vmatmul.mubr.bf16.gmra.mrb[8].mxu1 %v6077_v48 }
 0x18f   :  { %6619 = vmatmul.mubr.msk.bf16.vlgmr.msra.gmra.mrb[32].mxu0 %vm172_vm5, %v6714_v58  ;;  %v1947_v22 = vpop.permute.xlu0 %1946  ;;  %v1949_v56 = vpop.permute.xlu1 %1948  ;;  %v4279_v58 = vld [vmem:[#allocation2 + $0x54] sm:$0x1] }
 0x190   :  { %6622 = vmatprep.mubr.msk.bf16.mxu0 %vm172_vm5, %v6715_v18  ;;  %1970 = vst.msk [vmem:[#allocation3 + $0xa8] sm:$0xf] %vm795_vm10, %v1947_v22  ;;  %1971 = vst.msk [vmem:[#allocation3 + $0xbc] sm:$0xf] %vm795_vm10, %v1949_v56  ;;  %v4295_v18 = vshrl.u32 %v4278_v37, 16  ;;  %v4304_v12 = vshll.u32 %v4279_v58, 16 }
 0x191   :  { %v3502_v22 = vrot.slane %v3501_v55, 4  ;;  %v8283_v58 = vld [vmem:[%s9369_s2] ss:$0 sm:$0xff] }
 0x192   :  { %v4297_v47 = vrot.slane %v4295_v18, 4  ;;  %v4306_v39 = vrot.slane %v4304_v12, 5 }
 0x193   :  { %v2124_v44 = vpop.permute.xlu0 %2123  ;;  %v2257_v19 = vld [vmem:[#allocation3 + $0x94] sm:$0xff]  ;;  %v2126_v17 = vpop.permute.xlu1 %2125  ;;  %v2254_v24 = vld [vmem:[#allocation3 + $0x80] sm:$0xff]  ;;  %v3507_v48 = vsel %vm7142_vm4, %v3502_v22, %v3506_v28 }
 0x194   :  { %2147 = vst.msk [vmem:[#allocation3 + $0xac] sm:$0xf] %vm795_vm10, %v2124_v44  ;;  %2148 = vst.msk [vmem:[#allocation3 + $0xc0] sm:$0xf] %vm795_vm10, %v2126_v17  ;;  %v6083_v34 = vcombine.high %v2254_v24, %v2257_v19  ;;  %v6082_v63 = vcombine.low %v2254_v24, %v2257_v19  ;;  %3606 = vrot.lane.b32.xlu0 %v3507_v48, %s6842_s25  ;;  %v8294_v48 = vstv %s9372_s5 }
 0x195   :  { %4021 = vst.msk [vmem:[#allocation3 + $0x98] sm:$0xf] %vm26_vm0, %v4013_v36 }
 0x196   :  { %2955 = vmatprep.mubr.bf16.mxu1 %v6083_v34 }
 0x197   :  { %6623 = vmatmul.mubr.msk.bf16.gmra.mrb[36].mxu0 %vm172_vm5, %v8140_v43  ;;  %v6722_v43 = vld [vmem:[#allocation3 + $0xd8] ss:$20 sps:$4 sm:$0xff]   ;;  %v1951_v50 = vpop.permute.xlu0 %1950  ;;  %v1953_v42 = vpop.permute.xlu1 %1952  ;;  %2956 = vmatmul.mubr.bf16.gmra.mrb[12].mxu1 %v6082_v63 }
 0x198   :  { %6626 = vmatprep.mubr.msk.bf16.mxu0 %vm172_vm5, %v6719_v51  ;;  %1972 = vst.msk [vmem:[#allocation3 + $0xd0] sm:$0xf] %vm795_vm10, %v1951_v50  ;;  %1973 = vst.msk [vmem:[#allocation3 + $0xe4] sm:$0xf] %vm795_vm10, %v1953_v42  ;;  %v4301_v51 = vor.u32 %v4300_v30, %v4297_v47 }
 0x19a   :  { %v4302_v14 = vrot.slane %v4301_v51, 4 }
 0x19b   :  { %v2128_v23 = vpop.permute.xlu0 %2127  ;;  %v2130_v60 = vpop.permute.xlu1 %2129  ;;  %v2260_v54 = vld [vmem:[#allocation3 + $0xa8] sm:$0xff]  ;;  %v2263_v46 = vld [vmem:[#allocation3 + $0xbc] sm:$0xff] }
 0x19c   :  { %2149 = vst.msk [vmem:[#allocation3 + $0xd4] sm:$0xf] %vm795_vm10, %v2128_v23  ;;  %v6725_v5 = vld [vmem:[#allocation3 + $0xac] ss:$20 sps:$4 sm:$0xff]   ;;  %2150 = vst.msk [vmem:[#allocation3 + $0xe8] sm:$0xf] %vm795_vm10, %v2130_v60  ;;  %v6087_v35 = vcombine.low %v2260_v54, %v2263_v46 }
 0x19d   :  { %2963 = vmatprep.mubr.bf16.mxu1 %v6725_v5 }
 0x19f   :  { %6627 = vmatmul.mubr.msk.bf16.gmra.mrb[40].mxu0 %vm172_vm5, %v6722_v43  ;;  %v1955_v53 = vpop.permute.xlu0 %1954  ;;  %v1957_v1 = vpop.permute.xlu1 %1956  ;;  %2964 = vmatmul.mubr.bf16.gmra.mrb[16].mxu1 %v6087_v35  ;;  %v4307_v43 = vsel %vm7142_vm4, %v4302_v14, %v4306_v39 }
 0x1a0   :  { %6630 = vmatprep.mubr.msk.bf16.mxu0 %vm172_vm5, %v6723_v15  ;;  %1974 = vst.msk [vmem:[#allocation3 + $0xf8] sm:$0xf] %vm795_vm10, %v1955_v53  ;;  %1975 = vst.msk [vmem:[#allocation3 + $0x10c] sm:$0xf] %vm795_vm10, %v1957_v1  ;;  %4406 = vrot.lane.b32.xlu0 %v4307_v43, %s6842_s25 }
 0x1a3   :  { %v2132_v21 = vpop.permute.xlu0 %2131  ;;  %v2134_v59 = vpop.permute.xlu1 %2133  ;;  %v2266_v13 = vld [vmem:[#allocation3 + $0xd0] sm:$0xff] }
 0x1a4   :  { %2151 = vst.msk [vmem:[#allocation3 + $0xfc] sm:$0xf] %vm795_vm10, %v2132_v21  ;;  %v6727_v62 = vld [vmem:[#allocation3 + $0xd4] ss:$20 sps:$4 sm:$0xff]   ;;  %2152 = vst.msk [vmem:[#allocation3 + $0x110] sm:$0xf] %vm795_vm10, %v2134_v59 }
 0x1a5   :  { %2971 = vmatprep.mubr.bf16.mxu1 %v6727_v62 }
 0x1a7   :  { %6631 = vmatmul.mubr.msk.bf16.gmra.mrb[44].mxu0 %vm172_vm5, %v8201_v7  ;;  %v1959_v10 = vpop.permute.xlu0 %1958  ;;  %v2269_v7 = vld [vmem:[#allocation3 + $0xe4] sm:$0xff]  ;;  %v1961_v3 = vpop.permute.xlu1 %1960  ;;  %v6731_v52 = vld [vmem:[#allocation3 + $0xf8] ss:$20 sps:$4 sm:$0xff]  }
 0x1a8   :  { %1976 = vst.msk [vmem:[#allocation3 + $0x120] sm:$0xf] %vm795_vm10, %v1959_v10  ;;  %v6092_v9 = vcombine.low %v2266_v13, %v2269_v7  ;;  %1977 = vst.msk [vmem:[#allocation3 + $0x134] sm:$0xf] %vm795_vm10, %v1961_v3 }
 0x1aa   :  { %2972 = vmatmul.mubr.bf16.gmra.mrb[20].mxu1 %v6092_v9 }
 0x1ab   :  { %v2136_v6 = vpop.permute.xlu0 %2135  ;;  %v2138_v4 = vpop.permute.xlu1 %2137  ;;  %v6729_v11 = vld [vmem:[#allocation3 + $0xfc] ss:$20 sps:$4 sm:$0xff]  }
 0x1ac   :  { %2153 = vst.msk [vmem:[#allocation3 + $0x124] sm:$0xf] %vm795_vm10, %v2136_v6  ;;  %2154 = vst.msk [vmem:[#allocation3 + $0x138] sm:$0xf] %vm795_vm10, %v2138_v4  ;;  %2979 = vmatprep.mubr.bf16.mxu1 %v6729_v11 }
 0x1b2   :  { %2980 = vmatmul.mubr.bf16.gmra.mrb[24].mxu1 %v6731_v52 }
 0x1b3   :  { %v2281_v49 = vld [vmem:[#allocation3 + $0x134] sm:$0xff]  ;;  %v2278_v40 = vld [vmem:[#allocation3 + $0x120] sm:$0xff] }
 0x1b4   :  { %4821 = vst.msk [vmem:[#allocation3 + $0x138] sm:$0xf] %vm26_vm0, %v4813_v25  ;;  %v6103_v2 = vcombine.high %v2278_v40, %v2281_v49  ;;  %v6102_v29 = vcombine.low %v2278_v40, %v2281_v49 }
 0x1b6   :  { %2987 = vmatprep.mubr.bf16.mxu1 %v6103_v2 }
 0x1ba   :  { %2988 = vmatmul.mubr.bf16.gmra.mrb[28].mxu1 %v6102_v29 }
 0x20a   :  { %v6346_v61 = vpop.f32.mrb[0].mxu0 }
 0x20b   :  { %v6347_v33 = vpop.f32.mrb[1].mxu0 }
 0x20c   :  { %v6348_v44 = vadd.f32 %v6347_v33, %v6346_v61  ;;  %v6349_v56 = vpop.f32.mrb[2].mxu0 }
 0x20d   :  { %v6350_v36 = vpop.f32.mrb[3].mxu0 }
 0x20e   :  { %v6351_v15 = vadd.f32 %v6350_v36, %v6349_v56  ;;  %v2837_v30 = vadd.f32 %v6348_v44, %v8283_v58 }
 0x210   :  { %v2840_v22 = vadd.f32 %v6351_v15, %v8283_v58 }
 0x21d   :  { %v6352_v19 = vpop.f32.mrb[4].mxu0 }
 0x21e   :  { %v6353_v50 = vpop.f32.mrb[5].mxu0 }
 0x21f   :  { %v6354_v17 = vadd.f32 %v6353_v50, %v6352_v19  ;;  %v6355_v24 = vpop.f32.mrb[6].mxu0 }
 0x220   :  { %v6356_v34 = vpop.f32.mrb[7].mxu0 }
 0x221   :  { %v6357_v63 = vadd.f32 %v6356_v34, %v6355_v24  ;;  %v2845_v19 = vadd.f32 %v6354_v17, %v8283_v58 }
 0x223   :  { %v2848_v44 = vadd.f32 %v6357_v63, %v8283_v58 }
 0x22d   :  { %v6358_v23 = vpop.f32.mrb[8].mxu0 }
 0x22e   :  { %v6359_v42 = vpop.f32.mrb[9].mxu0 }
 0x22f   :  { %v6360_v53 = vadd.f32 %v6359_v42, %v6358_v23  ;;  %v6361_v60 = vpop.f32.mrb[10].mxu0 }
 0x230   :  { %v6362_v54 = vpop.f32.mrb[11].mxu0 }
 0x231   :  { %v6363_v46 = vadd.f32 %v6362_v54, %v6361_v60  ;;  %v8299_v15 = vadd.f32 %v6360_v53, %v8283_v58 }
 0x233   :  { %v8303_v60 = vadd.f32 %v6363_v46, %v8283_v58  ;;  %v4037_v46 = vld [vmem:[#allocation2 + $0x4c] sm:$0x1] }
 0x238   :  { %v6364_v5 = vpop.f32.mrb[12].mxu0 }
 0x239   :  { %v6365_v35 = vpop.f32.mrb[13].mxu0 }
 0x23a   :  { %v6366_v21 = vadd.f32 %v6365_v35, %v6364_v5  ;;  %v6367_v1 = vpop.f32.mrb[14].mxu0  ;;  %v4036_v35 = vld [vmem:[#allocation2 + $0x48] sm:$0xf] }
 0x23b   :  { %v6368_v10 = vpop.f32.mrb[15].mxu0 }
 0x23c   :  { %v6369_v59 = vadd.f32 %v6368_v10, %v6367_v1  ;;  %v8306_v54 = vadd.f32 %v6366_v21, %v8283_v58 }
 0x23e   :  { %v8309_v17 = vadd.f32 %v6369_v59, %v8283_v58 }
 0x242   :  { %v6370_v13 = vpop.f32.mrb[16].mxu0 }
 0x243   :  { %v6371_v7 = vpop.f32.mrb[17].mxu0 }
 0x244   :  { %v8272_v62 = vadd.f32 %v6371_v7, %v6370_v13  ;;  %v6373_v9 = vpop.f32.mrb[18].mxu0  ;;  %v4137_v13 = vshrl.u32 %v4036_v35, 16 }
 0x245   :  { %v6374_v6 = vpop.f32.mrb[19].mxu0 }
 0x246   :  { %v6375_v3 = vadd.f32 %v6374_v6, %v6373_v9  ;;  %v8314_v21 = vadd.f32 %v8272_v62, %v8283_v58 }
 0x248   :  { %v8317_v59 = vadd.f32 %v6375_v3, %v8283_v58 }
 0x24a   :  { %v6376_v4 = vpop.f32.mrb[20].mxu0 }
 0x24b   :  { %v6377_v11 = vpop.f32.mrb[21].mxu0 }
 0x24c   :  { %v6378_v52 = vadd.f32 %v6377_v11, %v6376_v4  ;;  %v6379_v25 = vpop.f32.mrb[22].mxu0  ;;  %v4140_v4 = vshll.u32 %v4036_v35, 16  ;;  %v3372_v35 = vld [vmem:[#allocation2 + $0x10] sm:$0xf] }
 0x24d   :  { %v6380_v49 = vpop.f32.mrb[23].mxu0 }
 0x24e   :  { %v8274_v40 = vadd.f32 %v6380_v49, %v6379_v25  ;;  %v4139_v49 = vrot.slane %v4137_v13, 4  ;;  %v4142_v3 = vrot.slane %v4140_v4, 5 }
 0x251   :  { %v6410_v8 = vpop.f32.mrb[0].mxu1 }
 0x252   :  { %v6382_v2 = vpop.f32.mrb[24].mxu0  ;;  %v6411_v12 = vpop.f32.mrb[1].mxu1 }
 0x253   :  { %v6383_v29 = vpop.f32.mrb[25].mxu0  ;;  %v6412_v55 = vadd.f32 %v6411_v12, %v6410_v8  ;;  %v6413_v28 = vpop.f32.mrb[2].mxu1 }
 0x254   :  { %v8276_v20 = vadd.f32 %v6383_v29, %v6382_v2  ;;  %v6385_v45 = vpop.f32.mrb[26].mxu0  ;;  %v6414_v51 = vpop.f32.mrb[3].mxu1  ;;  %v8322_v2 = vadd.f32 %v6378_v52, %v8283_v58 }
 0x255   :  { %v6386_v37 = vpop.f32.mrb[27].mxu0  ;;  %v6415_v39 = vadd.f32 %v6414_v51, %v6413_v28  ;;  %v2934_v61 = vadd.f32 %v6412_v55, %v2837_v30 }
 0x256   :  { %v8278_v16 = vadd.f32 %v6386_v37, %v6385_v45 }
 0x257   :  { %v2937_v56 = vadd.f32 %v6415_v39, %v2840_v22 }
 0x259   :  { %v6416_v24 = vpop.f32.mrb[4].mxu1 }
 0x25a   :  { %v6388_v31 = vpop.f32.mrb[28].mxu0  ;;  %v6417_v42 = vpop.f32.mrb[5].mxu1 }
 0x25b   :  { %v6389_v0 = vpop.f32.mrb[29].mxu0  ;;  %v6418_v63 = vadd.f32 %v6417_v42, %v6416_v24  ;;  %v6419_v5 = vpop.f32.mrb[6].mxu1 }
 0x25c   :  { %v8285_v18 = vadd.f32 %v6389_v0, %v6388_v31  ;;  %v6391_v27 = vpop.f32.mrb[30].mxu0  ;;  %v6420_v10 = vpop.f32.mrb[7].mxu1  ;;  %v8326_v0 = vadd.f32 %v8274_v40, %v8283_v58 }
 0x25d   :  { %v6392_v26 = vpop.f32.mrb[31].mxu0  ;;  %v2942_v9 = vadd.f32 %v6418_v63, %v2845_v19  ;;  %v6421_v6 = vadd.f32 %v6420_v10, %v6419_v5 }
 0x25e   :  { %v8287_v47 = vadd.f32 %v6392_v26, %v6391_v27  ;;  %v4146_v26 = vshll.u32 %v4037_v46, 16 }
 0x25f   :  { %v2945_v62 = vadd.f32 %v6421_v6, %v2848_v44  ;;  %v3369_v44 = vld [vmem:[#allocation2 + $0xc] sm:$0x1] }
 0x261   :  { %v6422_v52 = vpop.f32.mrb[8].mxu1 }
 0x262   :  { %v6620_v14 = vpop.f32.mrb[32].mxu0  ;;  %v6423_v39 = vpop.f32.mrb[9].mxu1 }
 0x263   :  { %v3030_v33 = vpop.f32.mrb[33].mxu0  ;;  %v3039_v37 = vadd.f32 %v6620_v14, %v2942_v9  ;;  %v6425_v19 = vpop.f32.mrb[10].mxu1 }
 0x264   :  { %v3031_v36 = vadd.f32 %v3030_v33, %v2934_v61  ;;  %v6621_v43 = vpop.f32.mrb[34].mxu0  ;;  %v4143_v61 = vor.u32 %v4142_v3, %v4139_v49  ;;  %v3366_v33 = vld [vmem:[#allocation2 + $0x8] sm:$0xf]  ;;  %v8358_v3 = vadd.f32 %v8278_v16, %v8283_v58  ;;  %v3378_v16 = vld [vmem:[#allocation2 + $0x18] sm:$0xf] }
 0x265   :  { %v3033_v50 = vpop.f32.mrb[35].mxu0  ;;  %vm3095_vm1 = vcmp.gt.f32.partialorder %v3039_v37, 0.0  ;;  %v3112_v51 = vmul.f32 %v8294_v48, %v3039_v37  ;;  %v3042_v22 = vadd.f32 %v6621_v43, %v2945_v62 }
 0x266   :  { %vm3093_vm14 = vcmp.gt.f32.partialorder %v3031_v36, 0.0  ;;  %v3110_v34 = vmul.f32 %v8294_v48, %v3031_v36  ;;  %v3034_v23 = vadd.f32 %v3033_v50, %v2937_v56  ;;  %v8347_v49 = vrot.slane %v4143_v61, 4 }
 0x267   :  { %v3128_v50 = vsel %vm3095_vm1, %v3039_v37, %v3112_v51  ;;  %vm3096_vm2 = vcmp.gt.f32.partialorder %v3042_v22, 0.0  ;;  %v3113_v24 = vmul.f32 %v8294_v48, %v3042_v22 }
 0x268   :  { %v3126_v1 = vsel %vm3093_vm14, %v3031_v36, %v3110_v34  ;;  %vm3094_vm15 = vcmp.gt.f32.partialorder %v3034_v23, 0.0  ;;  %v3111_v53 = vmul.f32 %v8294_v48, %v3034_v23  ;;  %v6424_v36 = vadd.f32 %v6423_v39, %v6422_v52  ;;  %v6426_v34 = vpop.f32.mrb[11].mxu1 }
 0x269   :  { %v6314_v7 = vpack.c.bf16 %v3126_v1, %v3126_v1  ;;  %v3375_v1 = vld [vmem:[#allocation2 + $0x14] sm:$0x1]  ;;  %v3129_v10 = vsel %vm3096_vm2, %v3042_v22, %v3113_v24 }
 0x26a   :  { %v3127_v11 = vsel %vm3094_vm15, %v3034_v23, %v3111_v53  ;;  %v8319_v25 = vpop.f32.mrb[36].mxu0  ;;  %v8332_v23 = vrot.slane %v4146_v26, 5  ;;  %v6316_v53 = vpack.c.bf16 %v3128_v50, %v3128_v50  ;;  %v2950_v13 = vadd.f32 %v6424_v36, %v8299_v15 }
 0x26b   :  { %v3207_v29 = vshrl.u32 %v6314_v7, 16  ;;  %v6315_v45 = vpack.c.bf16 %v3127_v11, %v3127_v11  ;;  %v3046_v31 = vpop.f32.mrb[37].mxu0  ;;  %v3210_v12 = vshll.u32 %v6314_v7, 16  ;;  %v6427_v7 = vadd.f32 %v6426_v34, %v6425_v19  ;;  %v3384_v19 = vld [vmem:[#allocation2 + $0x20] sm:$0xf] }
 0x26c   :  { %v8328_v27 = vpop.f32.mrb[38].mxu0  ;;  %v6317_v4 = vpack.c.bf16 %v3129_v10, %v3129_v10  ;;  %v3223_v15 = vshrl.u32 %v6316_v53, 16  ;;  %v8362_v26 = vadd.f32 %v8285_v18, %v8283_v58  ;;  %v4149_v18 = vsel %vm7142_vm4, %v8347_v49, %v8332_v23 }
 0x26d   :  { %v3209_v8 = vrot.slane %v3207_v29, 7  ;;  %v3215_v30 = vshrl.u32 %v6315_v45, 16  ;;  %v3049_v55 = vpop.f32.mrb[39].mxu0  ;;  %v3218_v28 = vshll.u32 %v6315_v45, 16  ;;  %v8351_v29 = vadd.f32 %v8276_v20, %v8283_v58 }
 0x26e   :  { %v3047_v45 = vadd.f32 %v3046_v31, %v2950_v13  ;;  %v2953_v37 = vadd.f32 %v6427_v7, %v8303_v60  ;;  %v6428_v60 = vpop.f32.mrb[12].mxu1  ;;  %v3234_v22 = vshll.u32 %v6317_v4, 16 }
 0x26f   :  { %v3212_v14 = vor.u32 %v3210_v12, %v3209_v8  ;;  %v3213_v40 = vrot.slane %v3209_v8, 4  ;;  %v3217_v56 = vrot.slane %v3215_v30, 7  ;;  %v3226_v8 = vshll.u32 %v6316_v53, 16  ;;  %v6429_v39 = vpop.f32.mrb[13].mxu1 }
 0x270   :  { %v3231_v12 = vshrl.u32 %v6317_v4, 16  ;;  %v3225_v30 = vrot.slane %v3223_v15, 7  ;;  %vm3097_vm3 = vcmp.gt.f32.partialorder %v3047_v45, 0.0  ;;  %v3114_v31 = vmul.f32 %v8294_v48, %v3047_v45 }
 0x271   :  { %v3367_v42 = vsel %vm7162_vm8, %v3212_v14, %v3366_v33  ;;  %v3370_v43 = vsel %vm7170_vm9, %v3213_v40, %v3369_v44  ;;  %v3220_v63 = vor.u32 %v3218_v28, %v3217_v56  ;;  %v3221_v5 = vrot.slane %v3217_v56, 4  ;;  %v3381_v40 = vld [vmem:[#allocation2 + $0x1c] sm:$0x1] }
 0x272   :  { %3371 = vst [vmem:[#allocation2 + $0xc] sm:$0x1] %v3370_v43  ;;  %3368 = vst [vmem:[#allocation2 + $0x8] sm:$0xf] %v3367_v42  ;;  %v8339_v9 = vpop.f32.mrb[40].mxu0  ;;  %v3050_v52 = vadd.f32 %v3049_v55, %v2953_v37  ;;  %v8369_v28 = vadd.f32 %v8287_v47, %v8283_v58  ;;  %v3233_v51 = vrot.slane %v3231_v12, 7  ;;  %v3228_v61 = vor.u32 %v3226_v8, %v3225_v30 }
 0x273   :  { %v3373_v6 = vsel %vm7162_vm8, %v3220_v63, %v3372_v35  ;;  %v3376_v46 = vsel %vm7170_vm9, %v3221_v5, %v3375_v1  ;;  %v8345_v11 = vpop.f32.mrb[41].mxu0  ;;  %v3229_v14 = vrot.slane %v3225_v30, 4  ;;  %v3130_v33 = vsel %vm3097_vm3, %v3047_v45, %v3114_v31  ;;  %v6431_v55 = vpop.f32.mrb[14].mxu1  ;;  %v3387_v42 = vld [vmem:[#allocation2 + $0x24] sm:$0x1] }
 0x274   :  { %3377 = vst [vmem:[#allocation2 + $0x14] sm:$0x1] %v3376_v46  ;;  %3374 = vst [vmem:[#allocation2 + $0x10] sm:$0xf] %v3373_v6  ;;  %v8354_v62 = vpop.f32.mrb[42].mxu0  ;;  %vm3098_vm6 = vcmp.gt.f32.partialorder %v3050_v52, 0.0  ;;  %v3236_v56 = vor.u32 %v3234_v22, %v3233_v51  ;;  %v6318_v58 = vpack.c.bf16 %v3130_v33, %v3130_v33  ;;  %v3115_v47 = vmul.f32 %v8294_v48, %v3050_v52 }
 0x275   :  { %v8364_v20 = vpop.f32.mrb[43].mxu0  ;;  %v3237_v36 = vrot.slane %v3233_v51, 4  ;;  %v6432_v44 = vpop.f32.mrb[15].mxu1  ;;  %v3379_v24 = vsel %vm7162_vm8, %v3228_v61, %v3378_v16  ;;  %v3382_v34 = vsel %vm7170_vm9, %v3229_v14, %v3381_v40  ;;  %v6430_v43 = vadd.f32 %v6429_v39, %v6428_v60  ;;  %v6732_v61 = vld [vmem:[%s9370_s3 + $0x40] sm:$0xff]   ;;  %v3390_v33 = vld [vmem:[#allocation2 + $0x28] sm:$0xf] }
 0x276   :  { %v6433_v63 = vadd.f32 %v6432_v44, %v6431_v55  ;;  %3380 = vst [vmem:[#allocation2 + $0x18] sm:$0xf] %v3379_v24  ;;  %3383 = vst [vmem:[#allocation2 + $0x1c] sm:$0x1] %v3382_v34  ;;  %v3385_v1 = vsel %vm7162_vm8, %v3236_v56, %v3384_v19  ;;  %v3239_v10 = vshrl.u32 %v6318_v58, 16  ;;  %v3242_v13 = vshll.u32 %v6318_v58, 16  ;;  %6470 = vmatprep.subr.bf16.mxu1 %v6732_v61 }
 0x277   :  { %v3388_v53 = vsel %vm7170_vm9, %v3237_v36, %v3387_v42  ;;  %3386 = vst [vmem:[#allocation2 + $0x20] sm:$0xf] %v3385_v1  ;;  %v3131_v46 = vsel %vm3098_vm6, %v3050_v52, %v3115_v47  ;;  %v2958_v4 = vadd.f32 %v6430_v43, %v8306_v54  ;;  %v3393_v19 = vld [vmem:[#allocation2 + $0x2c] sm:$0x1]  ;;  %v6733_v47 = vld [vmem:[%s9370_s3] sm:$0xff]  }
 0x278   :  { %3389 = vst [vmem:[#allocation2 + $0x24] sm:$0x1] %v3388_v53  ;;  %v2961_v15 = vadd.f32 %v6433_v63, %v8309_v17  ;;  %v3241_v30 = vrot.slane %v3239_v10, 7  ;;  %v6319_v31 = vpack.c.bf16 %v3131_v46, %v3131_v46  ;;  %v6434_v17 = vpop.f32.mrb[16].mxu1  ;;  %v3462_v43 = vld [vmem:[#allocation2] sm:$0xf]  ;;  %6471 = vmatpush3.bf16.msra.mxu1 %v6733_v47 }
 0x279   :  { %v8376_v50 = vld [vmem:[#allocation2 + $0x8] sm:$0xe]  ;;  %v3911_v35 = vld [vmem:[#allocation2 + $0xc] sm:$0x1]  ;;  %v3055_v52 = vadd.f32 %v8319_v25, %v2958_v4  ;;  %v6435_v36 = vpop.f32.mrb[17].mxu1 }
 0x27a   :  { %v8382_v5 = vpop.f32.mrb[44].mxu0  ;;  %v8390_v6 = vld [vmem:[#allocation2 + $0x8] sm:$0xf]  ;;  %v6173_v37 = vrot.slane %v8376_v50, 9  ;;  %v3944_v16 = vrot.slane %v3911_v35, 5  ;;  %v3058_v54 = vadd.f32 %v8328_v27, %v2961_v15  ;;  %v3244_v14 = vor.u32 %v3242_v13, %v3241_v30  ;;  %v6437_v58 = vpop.f32.mrb[18].mxu1 }
 0x27b   :  { %v8388_v7 = vpop.f32.mrb[45].mxu0  ;;  %v8398_v8 = vld [vmem:[#allocation2 + $0x10] sm:$0xe]  ;;  %v8400_v12 = vld [vmem:[#allocation2 + $0x14] sm:$0x1]  ;;  %v3509_v39 = vshrl.u32 %v8390_v6, 16  ;;  %v3116_v25 = vmul.f32 %v8294_v48, %v3055_v52  ;;  %v6436_v34 = vadd.f32 %v6435_v36, %v6434_v17 }
 0x27c   :  { %v8395_v45 = vpop.f32.mrb[46].mxu0  ;;  %v6174_v51 = vrot.slane %v8398_v8, 9  ;;  %v3948_v22 = vrot.slane %v8400_v12, 5  ;;  %v3245_v40 = vrot.slane %v3241_v30, 4  ;;  %v3247_v55 = vshrl.u32 %v6319_v31, 16  ;;  %v6438_v42 = vpop.f32.mrb[19].mxu1 }
 0x27d   :  { %v8402_v60 = vpop.f32.mrb[47].mxu0  ;;  %v3250_v56 = vshll.u32 %v6319_v31, 16  ;;  %vm3099_vm7 = vcmp.gt.f32.partialorder %v3055_v52, 0.0  ;;  %vm3100_vm11 = vcmp.gt.f32.partialorder %v3058_v54, 0.0  ;;  %v3117_v27 = vmul.f32 %v8294_v48, %v3058_v54  ;;  %v3396_v63 = vld [vmem:[#allocation2 + $0x30] sm:$0xf] }
 0x27e   :  { %v3391_v44 = vsel %vm7162_vm8, %v3244_v14, %v3390_v33  ;;  %v3394_v50 = vsel %vm7170_vm9, %v3245_v40, %v3393_v19  ;;  %v3249_v24 = vrot.slane %v3247_v55, 7  ;;  %v3132_v35 = vsel %vm3099_vm7, %v3055_v52, %v3116_v25  ;;  %v3720_v10 = vld [vmem:[#allocation2 + $0x18] sm:$0xf]  ;;  %v3915_v46 = vld [vmem:[#allocation2 + $0x1c] sm:$0x1] }
 0x27f   :  { %3392 = vst [vmem:[#allocation2 + $0x28] sm:$0xf] %v3391_v44  ;;  %3395 = vst [vmem:[#allocation2 + $0x2c] sm:$0x1] %v3394_v50  ;;  %v3133_v1 = vsel %vm3100_vm11, %v3058_v54, %v3117_v27  ;;  %v6439_v53 = vadd.f32 %v6438_v42, %v6437_v58  ;;  %v3914_v13 = vld [vmem:[#allocation2 + $0x18] sm:$0xe]  ;;  %v8424_v4 = vsel %vm7440_vm13, %v6173_v37, %v3944_v16  ;;  %3738 = vrot.lane.b32.xlu0 %v3720_v10, %s6842_s25 }
 0x280   :  { %3470 = vst.msk [vmem:[#allocation3] sm:$0xf] %vm26_vm0, %v3462_v43  ;;  %v3252_v15 = vor.u32 %v3250_v56, %v3249_v24  ;;  %v3253_v30 = vrot.slane %v3249_v24, 4  ;;  %v3399_v31 = vld [vmem:[#allocation2 + $0x34] sm:$0x1]  ;;  %v6320_v17 = vpack.c.bf16 %v3132_v35, %v3132_v35  ;;  %v6321_v61 = vpack.c.bf16 %v3133_v1, %v3133_v1  ;;  %v6440_v58 = vpop.f32.mrb[20].mxu1 }
 0x281   :  { %v3721_v52 = vld [vmem:[#allocation2 + $0x20] sm:$0xf]  ;;  %v2966_v54 = vadd.f32 %v6436_v34, %v8314_v21  ;;  %v2969_v14 = vadd.f32 %v6439_v53, %v8317_v59  ;;  %v6175_v40 = vrot.slane %v3914_v13, 9  ;;  %v3952_v37 = vrot.slane %v3915_v46, 5  ;;  %v8433_v33 = vld [vmem:[#allocation2 + $0x24] sm:$0x1] }
 0x282   :  { %3740 = vrot.lane.b32.xlu1 %v3721_v52, %s6842_s25  ;;  %v8431_v16 = vld [vmem:[#allocation2 + $0x20] sm:$0xe]  ;;  %v3397_v55 = vsel %vm7162_vm8, %v3252_v15, %v3396_v63  ;;  %v3400_v56 = vsel %vm7170_vm9, %v3253_v30, %v3399_v31  ;;  %v3255_v36 = vshrl.u32 %v6320_v17, 16  ;;  %v3258_v19 = vshll.u32 %v6320_v17, 16  ;;  %v3718_v47 = vld [vmem:[#allocation2 + $0x8] sm:$0xf]  ;;  %v3607_v15 = vpop.permute.xlu0 %3606 }
 0x283   :  { %3398 = vst [vmem:[#allocation2 + $0x30] sm:$0xf] %v3397_v55  ;;  %3401 = vst [vmem:[#allocation2 + $0x34] sm:$0x1] %v3400_v56  ;;  %v3263_v21 = vshrl.u32 %v6321_v61, 16  ;;  %v3266_v59 = vshll.u32 %v6321_v61, 16  ;;  %v3063_v25 = vadd.f32 %v8345_v11, %v2966_v54  ;;  %v3066_v27 = vadd.f32 %v8364_v20, %v2969_v14  ;;  %3734 = vrot.lane.b32.xlu0 %v3718_v47, %s6842_s25 }
 0x284   :  { %v6734_v44 = vld [vmem:[%s9370_s3 + $0x48] sm:$0xff]   ;;  %v3257_v50 = vrot.slane %v3255_v36, 7  ;;  %v6441_v24 = vpop.f32.mrb[21].mxu1  ;;  %v3719_v34 = vld [vmem:[#allocation2 + $0x10] sm:$0xf]  ;;  %v3953_v42 = vsel %vm7440_vm13, %v6175_v40, %v3952_v37  ;;  %v6176_v43 = vrot.slane %v8431_v16, 9 }
 0x285   :  { %v3956_v11 = vrot.slane %v8433_v33, 5  ;;  %v3265_v63 = vrot.slane %v3263_v21, 7  ;;  %vm3101_vm12 = vcmp.gt.f32.partialorder %v3063_v25, 0.0  ;;  %v3118_v20 = vmul.f32 %v8294_v48, %v3063_v25  ;;  %v6443_v35 = vpop.f32.mrb[22].mxu1  ;;  %6472 = vmatprep.subr.bf16.mxu1 %v6734_v44  ;;  %v3402_v30 = vld [vmem:[#allocation2 + $0x38] sm:$0xf] }
 0x286   :  { %vm3102_vm14 = vcmp.gt.f32.partialorder %v3066_v27, 0.0  ;;  %3736 = vrot.lane.b32.xlu1 %v3719_v34, %s6842_s25  ;;  %v3260_v1 = vor.u32 %v3258_v19, %v3257_v50  ;;  %v3261_v53 = vrot.slane %v3257_v50, 4  ;;  %v3119_v10 = vmul.f32 %v8294_v48, %v3066_v27  ;;  %v6444_v46 = vpop.f32.mrb[23].mxu1  ;;  %v3405_v31 = vld [vmem:[#allocation2 + $0x3c] sm:$0x1]  ;;  %v6735_v14 = vld [vmem:[%s9370_s3 + $0x8] sm:$0xff]  }
 0x287   :  { %v6442_v13 = vadd.f32 %v6441_v24, %v6440_v58  ;;  %v3268_v17 = vor.u32 %v3266_v59, %v3265_v63  ;;  %v3269_v61 = vrot.slane %v3265_v63, 4  ;;  %v3134_v52 = vsel %vm3101_vm12, %v3063_v25, %v3118_v20  ;;  %3630 = vst.msk [vmem:[#allocation3] sm:$0xf] %vm795_vm10, %v3607_v15  ;;  %v3408_v16 = vld [vmem:[#allocation2 + $0x40] sm:$0xf]  ;;  %3978 = vrot.lane.b32.xlu0 %v3953_v42, %s6842_s25  ;;  %v4407_v24 = vpop.permute.xlu0 %4406  ;;  %v6446_v63 = vpop.f32.mrb[24].mxu1 }
 0x288   :  { %v6445_v54 = vadd.f32 %v6444_v46, %v6443_v35  ;;  %v3403_v40 = vsel %vm7162_vm8, %v3260_v1, %v3402_v30  ;;  %v3406_v37 = vsel %vm7170_vm9, %v3261_v53, %v3405_v31  ;;  %v3411_v33 = vld [vmem:[#allocation2 + $0x44] sm:$0x1]  ;;  %v6322_v55 = vpack.c.bf16 %v3134_v52, %v3134_v52  ;;  %v8468_v25 = vld [vmem:[#allocation2 + $0x18] sm:$0xf]  ;;  %v4262_v58 = vld [vmem:[#allocation2 + $0x50] sm:$0xf]  ;;  %6473 = vmatpush3.bf16.msra.mxu1 %v6735_v14 }
 0x289   :  { %v3135_v56 = vsel %vm3102_vm14, %v3066_v27, %v3119_v10  ;;  %3404 = vst [vmem:[#allocation2 + $0x38] sm:$0xf] %v3403_v40  ;;  %3407 = vst [vmem:[#allocation2 + $0x3c] sm:$0x1] %v3406_v37  ;;  %v3409_v36 = vsel %vm7162_vm8, %v3268_v17, %v3408_v16  ;;  %v3412_v19 = vsel %vm7170_vm9, %v3269_v61, %v3411_v33  ;;  %v3537_v12 = vshrl.u32 %v8468_v25, 16  ;;  %v6737_v53 = vld [vmem:[%s9370_s3 + $0x10] sm:$0xff]  }
 0x28a   :  { %v6323_v21 = vpack.c.bf16 %v3135_v56, %v3135_v56  ;;  %v2974_v59 = vadd.f32 %v6442_v13, %v8322_v2  ;;  %3413 = vst [vmem:[#allocation2 + $0x44] sm:$0x1] %v3412_v19  ;;  %3410 = vst [vmem:[#allocation2 + $0x40] sm:$0xf] %v3409_v36  ;;  %v3271_v27 = vshrl.u32 %v6322_v55, 16  ;;  %v3274_v47 = vshll.u32 %v6322_v55, 16 }
 0x28b   :  { %v2977_v44 = vadd.f32 %v6445_v54, %v8326_v0  ;;  %v3957_v50 = vsel %vm7440_vm13, %v6176_v43, %v3956_v11  ;;  %4270 = vst.msk [vmem:[#allocation3 + $0xa0] sm:$0xf] %vm26_vm0, %v4262_v58  ;;  %v3949_v0 = vsel %vm7440_vm13, %v6174_v51, %v3948_v22  ;;  %v6736_v43 = vld [vmem:[%s9370_s3 + $0x50] sm:$0xff]   ;;  %3974 = vrot.lane.b32.xlu0 %v8424_v4, %s6842_s25  ;;  %v3540_v8 = vshll.u32 %v8468_v25, 16  ;;  %v3414_v46 = vld [vmem:[#allocation2 + $0x58] sm:$0xf] }
 0x28c   :  { %v3279_v34 = vshrl.u32 %v6323_v21, 16  ;;  %v3282_v42 = vshll.u32 %v6323_v21, 16  ;;  %v3071_v2 = vadd.f32 %v8339_v9, %v2974_v59  ;;  %3980 = vrot.lane.b32.xlu1 %v3957_v50, %s6842_s25  ;;  %4430 = vst.msk [vmem:[#allocation3 + $0xa0] sm:$0xf] %vm795_vm10, %v4407_v24  ;;  %v3273_v11 = vrot.slane %v3271_v27, 7  ;;  %v6447_v9 = vpop.f32.mrb[25].mxu1  ;;  %6474 = vmatprep.subr.bf16.mxu1 %v6736_v43 }
 0x28d   :  { %v3074_v20 = vadd.f32 %v8354_v62, %v2977_v44  ;;  %v6448_v22 = vadd.f32 %v6447_v9, %v6446_v63  ;;  %v6449_v1 = vpop.f32.mrb[26].mxu1  ;;  %v3417_v15 = vld [vmem:[#allocation2 + $0x5c] sm:$0x1]  ;;  %6475 = vmatpush3.bf16.msra.mxu1 %v6737_v53  ;;  %v3420_v14 = vld [vmem:[#allocation2 + $0x60] sm:$0xf]  ;;  %v3539_v58 = vrot.slane %v3537_v12, 4 }
 0x28e   :  { %v3281_v35 = vrot.slane %v3279_v34, 7  ;;  %vm3103_vm15 = vcmp.gt.f32.partialorder %v3071_v2, 0.0  ;;  %v3120_v51 = vmul.f32 %v8294_v48, %v3071_v2  ;;  %v3276_v62 = vor.u32 %v3274_v47, %v3273_v11  ;;  %v6450_v13 = vpop.f32.mrb[27].mxu1  ;;  %v3423_v40 = vld [vmem:[#allocation2 + $0x64] sm:$0x1]  ;;  %v6738_v47 = vld [vmem:[%s9370_s3 + $0x58] sm:$0xff]  }
 0x28f   :  { %v3277_v10 = vrot.slane %v3273_v11, 4  ;;  %vm3104_vm1 = vcmp.gt.f32.partialorder %v3074_v20, 0.0  ;;  %v3121_v4 = vmul.f32 %v8294_v48, %v3074_v20  ;;  %v2982_v61 = vadd.f32 %v6448_v22, %v8351_v29  ;;  %v3485_v19 = vld [vmem:[#allocation2 + $0x1c] sm:$0x1]  ;;  %v8509_v27 = vld [vmem:[#allocation2 + $0x18] sm:$0xf]  ;;  %6476 = vmatprep.subr.bf16.mxu1 %v6738_v47 }
 0x290   :  { %v3284_v30 = vor.u32 %v3282_v42, %v3281_v35  ;;  %v3285_v31 = vrot.slane %v3281_v35, 4  ;;  %v3136_v17 = vsel %vm3103_vm15, %v3071_v2, %v3120_v51  ;;  %3976 = vrot.lane.b32.xlu1 %v3949_v0, %s6842_s25  ;;  %v3415_v52 = vsel %vm7162_vm8, %v3276_v62, %v3414_v46  ;;  %v3724_v33 = vld [vmem:[#allocation2 + $0x38] sm:$0xf]  ;;  %v6452_v24 = vpop.f32.mrb[28].mxu1  ;;  %v3722_v0 = vld [vmem:[#allocation2 + $0x28] sm:$0xf] }
 0x291   :  { %v3418_v54 = vsel %vm7170_vm9, %v3277_v10, %v3417_v15  ;;  %v6324_v37 = vpack.c.bf16 %v3136_v17, %v3136_v17  ;;  %v3137_v16 = vsel %vm3104_vm1, %v3074_v20, %v3121_v4  ;;  %3416 = vst [vmem:[#allocation2 + $0x58] sm:$0xf] %v3415_v52  ;;  %v3079_v36 = vadd.f32 %v8388_v7, %v2982_v61  ;;  %v6453_v43 = vpop.f32.mrb[29].mxu1  ;;  %v6739_v51 = vld [vmem:[%s9370_s3 + $0x18] sm:$0xff]   ;;  %v3429_v10 = vld [vmem:[#allocation2 + $0x6c] sm:$0x1] }
 0x292   :  { %3419 = vst [vmem:[#allocation2 + $0x5c] sm:$0x1] %v3418_v54  ;;  %v3421_v29 = vsel %vm7162_vm8, %v3284_v30, %v3420_v14  ;;  %v3424_v55 = vsel %vm7170_vm9, %v3285_v31, %v3423_v40  ;;  %v6325_v56 = vpack.c.bf16 %v3137_v16, %v3137_v16  ;;  %3746 = vrot.lane.b32.xlu0 %v3724_v33, %s6842_s25  ;;  %v3542_v2 = vrot.slane %v3540_v8, 5  ;;  %v6455_v12 = vpop.f32.mrb[30].mxu1  ;;  %v3432_v46 = vld [vmem:[#allocation2 + $0x70] sm:$0xf] }
 0x293   :  { %3422 = vst [vmem:[#allocation2 + $0x60] sm:$0xf] %v3421_v29  ;;  %3425 = vst [vmem:[#allocation2 + $0x64] sm:$0x1] %v3424_v55  ;;  %v3287_v21 = vshrl.u32 %v6324_v37, 16  ;;  %v3290_v59 = vshll.u32 %v6324_v37, 16  ;;  %v6451_v25 = vadd.f32 %v6450_v13, %v6449_v1  ;;  %v3122_v7 = vmul.f32 %v8294_v48, %v3079_v36  ;;  %6477 = vmatpush3.bf16.msra.mxu1 %v6739_v51 }
 0x294   :  { %v3295_v44 = vshrl.u32 %v6325_v56, 16  ;;  %v3298_v50 = vshll.u32 %v6325_v56, 16  ;;  %vm3105_vm2 = vcmp.gt.f32.partialorder %v3079_v36, 0.0  ;;  %v3546_v63 = vshll.u32 %v3485_v19, 16  ;;  %v6456_v62 = vpop.f32.mrb[31].mxu1  ;;  %v6740_v16 = vld [vmem:[%s9370_s3 + $0xc0] sm:$0xff]  }
 0x295   :  { %v3289_v34 = vrot.slane %v3287_v21, 7  ;;  %v2985_v42 = vadd.f32 %v6451_v25, %v8358_v3  ;;  %v3138_v20 = vsel %vm3105_vm2, %v3079_v36, %v3122_v7  ;;  %v6454_v9 = vadd.f32 %v6453_v43, %v6452_v24  ;;  %v3426_v3 = vld [vmem:[#allocation2 + $0x68] sm:$0xf]  ;;  %v3435_v61 = vld [vmem:[#allocation2 + $0x74] sm:$0x1]  ;;  %v6741_v36 = vld [vmem:[%s9370_s3 + $0x60] sm:$0xff]   ;;  %6534 = vmatprep.subr.bf16.mxu0 %v6740_v16 }
 0x296   :  { %v3297_v11 = vrot.slane %v3295_v44, 7  ;;  %3742 = vrot.lane.b32.xlu0 %v3722_v0, %s6842_s25  ;;  %v4053_v35 = vshrl.u32 %v8509_v27, 16  ;;  %v6326_v8 = vpack.c.bf16 %v3138_v20, %v3138_v20  ;;  %v3543_v15 = vor.u32 %v3542_v2, %v3539_v58  ;;  %v4025_v14 = vld [vmem:[#allocation2 + $0x1c] sm:$0x1]  ;;  %v3438_v44 = vld [vmem:[#allocation2 + $0x78] sm:$0xf]  ;;  %6478 = vmatprep.subr.bf16.mxu1 %v6741_v36 }
 0x297   :  { %v3292_v22 = vor.u32 %v3290_v59, %v3289_v34  ;;  %v3293_v1 = vrot.slane %v3289_v34, 4  ;;  %v3082_v53 = vadd.f32 %v8402_v60, %v2985_v42  ;;  %v3548_v30 = vrot.slane %v3546_v63, 5  ;;  %v3486_v63 = vld [vmem:[#allocation2 + $0x20] sm:$0xf]  ;;  %v3487_v0 = vld [vmem:[#allocation2 + $0x24] sm:$0x1] }
 0x298   :  { %v3300_v4 = vor.u32 %v3298_v50, %v3297_v11  ;;  %v3301_v13 = vrot.slane %v3297_v11, 4  ;;  %v3303_v52 = vshrl.u32 %v6326_v8, 16  ;;  %v3306_v54 = vshll.u32 %v6326_v8, 16  ;;  %v3441_v50 = vld [vmem:[#allocation2 + $0x7c] sm:$0x1] }
 0x299   :  { %v3427_v31 = vsel %vm7162_vm8, %v3292_v22, %v3426_v3  ;;  %v3430_v17 = vsel %vm7170_vm9, %v3293_v1, %v3429_v10  ;;  %vm3106_vm3 = vcmp.gt.f32.partialorder %v3082_v53, 0.0  ;;  %v3123_v37 = vmul.f32 %v8294_v48, %v3082_v53  ;;  %v4027_v36 = vld [vmem:[#allocation2 + $0x24] sm:$0x1] }
 0x29a   :  { %3428 = vst [vmem:[#allocation2 + $0x68] sm:$0xf] %v3427_v31  ;;  %3431 = vst [vmem:[#allocation2 + $0x6c] sm:$0x1] %v3430_v17  ;;  %v3433_v60 = vsel %vm7162_vm8, %v3300_v4, %v3432_v46  ;;  %v3436_v40 = vsel %vm7170_vm9, %v3301_v13, %v3435_v61  ;;  %v3305_v33 = vrot.slane %v3303_v52, 7  ;;  %v3544_v29 = vrot.slane %v3543_v15, 4 }
 0x29b   :  { %3434 = vst [vmem:[#allocation2 + $0x70] sm:$0xf] %v3433_v60  ;;  %3437 = vst [vmem:[#allocation2 + $0x74] sm:$0x1] %v3436_v40  ;;  %v2990_v55 = vadd.f32 %v6454_v9, %v8362_v26  ;;  %v4055_v56 = vrot.slane %v4053_v35, 4  ;;  %v3139_v19 = vsel %vm3106_vm3, %v3082_v53, %v3123_v37  ;;  %v4056_v21 = vshll.u32 %v8509_v27, 16 }
 0x29c   :  { %v4062_v59 = vshll.u32 %v4025_v14, 16  ;;  %v6457_v25 = vadd.f32 %v6456_v62, %v6455_v12  ;;  %v3308_v58 = vor.u32 %v3306_v54, %v3305_v33  ;;  %v3309_v47 = vrot.slane %v3305_v33, 4  ;;  %v6742_v26 = vld [vmem:[%s9370_s3 + $0x80] sm:$0xff]   ;;  %v3481_v52 = vld [vmem:[#allocation2 + $0xc] sm:$0x1] }
 0x29d   :  { %v6327_v7 = vpack.c.bf16 %v3139_v19, %v3139_v19  ;;  %v3549_v24 = vsel %vm7142_vm4, %v3544_v29, %v3548_v30  ;;  %v3087_v27 = vadd.f32 %v8382_v5, %v2990_v55  ;;  %v4058_v34 = vrot.slane %v4056_v21, 5  ;;  %6535 = vmatpush3.bf16.msra.mxu0 %v6742_v26  ;;  %v3444_v13 = vld [vmem:[#allocation2 + $0x80] sm:$0xf]  ;;  %v3447_v46 = vld [vmem:[#allocation2 + $0x84] sm:$0x1] }
 0x29e   :  { %3612 = vrot.lane.b32.xlu1 %v3549_v24, %s6842_s25  ;;  %v4064_v42 = vrot.slane %v4062_v59, 5  ;;  %v2993_v2 = vadd.f32 %v6457_v25, %v8369_v28  ;;  %v3439_v43 = vsel %vm7162_vm8, %v3308_v58, %v3438_v44  ;;  %v3442_v11 = vsel %vm7170_vm9, %v3309_v47, %v3441_v50  ;;  %v6743_v28 = vld [vmem:[%s9370_s3 + $0x20] sm:$0xff]   ;;  %v3450_v59 = vld [vmem:[#allocation2 + $0x88] sm:$0xf]  ;;  %v3922_v50 = vld [vmem:[#allocation2 + $0x38] sm:$0xe] }
 0x29f   :  { %v3311_v20 = vshrl.u32 %v6327_v7, 16  ;;  %v3314_v9 = vshll.u32 %v6327_v7, 16  ;;  %3440 = vst [vmem:[#allocation2 + $0x78] sm:$0xf] %v3439_v43  ;;  %3443 = vst [vmem:[#allocation2 + $0x7c] sm:$0x1] %v3442_v11  ;;  %v3124_v5 = vmul.f32 %v8294_v48, %v3087_v27  ;;  %v4059_v12 = vor.u32 %v4058_v34, %v4055_v56  ;;  %6479 = vmatpush3.bf16.msra.mxu1 %v6743_v28 }
 0x2a0   :  { %vm3107_vm6 = vcmp.gt.f32.partialorder %v3087_v27, 0.0  ;;  %v3090_v35 = vadd.f32 %v8395_v45, %v2993_v2  ;;  %v3551_v22 = vshrl.u32 %v3486_v63, 16  ;;  %v3554_v1 = vshll.u32 %v3486_v63, 16  ;;  %v4026_v54 = vld [vmem:[#allocation2 + $0x20] sm:$0xf] }
 0x2a1   :  { %v3313_v51 = vrot.slane %v3311_v20, 7  ;;  %v3560_v3 = vshll.u32 %v3487_v0, 16  ;;  %v3140_v8 = vsel %vm3107_vm6, %v3087_v27, %v3124_v5  ;;  %v4060_v53 = vrot.slane %v4059_v12, 4  ;;  %v3453_v26 = vld [vmem:[#allocation2 + $0x8c] sm:$0x1] }
 0x2a2   :  { %vm3108_vm7 = vcmp.gt.f32.partialorder %v3090_v35, 0.0  ;;  %v3125_v62 = vmul.f32 %v8294_v48, %v3090_v35  ;;  %v6328_v15 = vpack.c.bf16 %v3140_v8, %v3140_v8  ;;  %v3553_v45 = vrot.slane %v3551_v22, 4  ;;  %v3923_v0 = vld [vmem:[#allocation2 + $0x3c] sm:$0x1]  ;;  %v3482_v43 = vld [vmem:[#allocation2 + $0x10] sm:$0xf] }
 0x2a3   :  { %v3316_v10 = vor.u32 %v3314_v9, %v3313_v51  ;;  %v3317_v4 = vrot.slane %v3313_v51, 4  ;;  %v4065_v30 = vsel %vm7142_vm4, %v4060_v53, %v4064_v42  ;;  %v3556_v17 = vrot.slane %v3554_v1, 5  ;;  %v3456_v9 = vld [vmem:[#allocation2 + $0x90] sm:$0xf]  ;;  %v3459_v5 = vld [vmem:[#allocation2 + $0x94] sm:$0x1] }
 0x2a4   :  { %v3141_v31 = vsel %vm3108_vm7, %v3090_v35, %v3125_v62  ;;  %v3562_v61 = vrot.slane %v3560_v3, 5  ;;  %v3319_v60 = vshrl.u32 %v6328_v15, 16  ;;  %v3322_v40 = vshll.u32 %v6328_v15, 16  ;;  %4152 = vrot.lane.b32.xlu1 %v4065_v30, %s6842_s25  ;;  %v3483_v28 = vld [vmem:[#allocation2 + $0x14] sm:$0x1] }
 0x2a5   :  { %v3445_v14 = vsel %vm7162_vm8, %v3316_v10, %v3444_v13  ;;  %v3448_v48 = vsel %vm7170_vm9, %v3317_v4, %v3447_v46  ;;  %v6329_v37 = vpack.c.bf16 %v3141_v31, %v3141_v31  ;;  %v3557_v16 = vor.u32 %v3556_v17, %v3553_v45  ;;  %v4022_v51 = vld [vmem:[#allocation2 + $0x10] sm:$0xf]  ;;  %v3924_v53 = vld [vmem:[#allocation2 + $0x40] sm:$0xe]  ;;  %v4023_v62 = vld [vmem:[#allocation2 + $0x14] sm:$0x1] }
 0x2a6   :  { %3446 = vst [vmem:[#allocation2 + $0x80] sm:$0xf] %v3445_v14  ;;  %3449 = vst [vmem:[#allocation2 + $0x84] sm:$0x1] %v3448_v48  ;;  %v3511_v33 = vrot.slane %v3509_v39, 4  ;;  %v3512_v29 = vshll.u32 %v8390_v6, 16 }
 0x2a7   :  { %v3321_v55 = vrot.slane %v3319_v60, 7  ;;  %v3518_v56 = vshll.u32 %v3481_v52, 16  ;;  %v4067_v19 = vshrl.u32 %v4026_v54, 16  ;;  %v4070_v21 = vshll.u32 %v4026_v54, 16  ;;  %v6744_v6 = vld [vmem:[%s9370_s3 + $0xc8] sm:$0xff]  }
 0x2a8   :  { %v3327_v25 = vshrl.u32 %v6329_v37, 16  ;;  %v3330_v58 = vshll.u32 %v6329_v37, 16  ;;  %v3558_v47 = vrot.slane %v3557_v16, 4  ;;  %v3514_v44 = vrot.slane %v3512_v29, 5  ;;  %6536 = vmatprep.subr.bf16.mxu0 %v6744_v6  ;;  %v3925_v15 = vld [vmem:[#allocation2 + $0x44] sm:$0x1] }
 0x2a9   :  { %v3324_v7 = vor.u32 %v3322_v40, %v3321_v55  ;;  %v3325_v24 = vrot.slane %v3321_v55, 4  ;;  %v3520_v27 = vrot.slane %v3518_v56, 5  ;;  %v4069_v34 = vrot.slane %v4067_v19, 4  ;;  %v3918_v52 = vld [vmem:[#allocation2 + $0x28] sm:$0xe] }
 0x2aa   :  { %v3329_v39 = vrot.slane %v3327_v25, 7  ;;  %v3563_v42 = vsel %vm7142_vm4, %v3558_v47, %v3562_v61  ;;  %v3515_v2 = vor.u32 %v3514_v44, %v3511_v33  ;;  %v4072_v63 = vrot.slane %v4070_v21, 5  ;;  %v3920_v61 = vld [vmem:[#allocation2 + $0x30] sm:$0xe]  ;;  %v6745_v54 = vld [vmem:[%s9370_s3 + $0x88] sm:$0xff]  }
 0x2ab   :  { %v3451_v11 = vsel %vm7162_vm8, %v3324_v7, %v3450_v59  ;;  %v3454_v20 = vsel %vm7170_vm9, %v3325_v24, %v3453_v26  ;;  %3614 = vrot.lane.b32.xlu0 %v3563_v42, %s6842_s25  ;;  %v4076_v12 = vshll.u32 %v4027_v36, 16  ;;  %v6179_v35 = vrot.slane %v3922_v50, 9  ;;  %v3921_v60 = vld [vmem:[#allocation2 + $0x34] sm:$0x1]  ;;  %v3919_v40 = vld [vmem:[#allocation2 + $0x2c] sm:$0x1]  ;;  %6537 = vmatpush3.bf16.msra.mxu0 %v6745_v54 }
 0x2ac   :  { %3452 = vst [vmem:[#allocation2 + $0x88] sm:$0xf] %v3451_v11  ;;  %3455 = vst [vmem:[#allocation2 + $0x8c] sm:$0x1] %v3454_v20  ;;  %v3332_v22 = vor.u32 %v3330_v58, %v3329_v39  ;;  %v3333_v1 = vrot.slane %v3329_v39, 4  ;;  %v3516_v3 = vrot.slane %v3515_v2, 4  ;;  %v4073_v8 = vor.u32 %v4072_v63, %v4069_v34 }
 0x2ad   :  { %v4078_v10 = vrot.slane %v4076_v12, 5  ;;  %v3968_v4 = vrot.slane %v3923_v0, 5  ;;  %v3523_v13 = vshrl.u32 %v3482_v43, 16  ;;  %v3526_v46 = vshll.u32 %v3482_v43, 16  ;;  %v6746_v37 = vld [vmem:[%s9370_s3 + $0x68] sm:$0xff]   ;;  %v6748_v44 = vld [vmem:[%s9370_s3 + $0xd0] sm:$0xff]  }
 0x2ae   :  { %v3457_v45 = vsel %vm7162_vm8, %v3332_v22, %v3456_v9  ;;  %v3460_v30 = vsel %vm7170_vm9, %v3333_v1, %v3459_v5  ;;  %v3521_v31 = vsel %vm7142_vm4, %v3516_v3, %v3520_v27  ;;  %v4074_v17 = vrot.slane %v4073_v8, 4  ;;  %v3725_v33 = vld [vmem:[#allocation2 + $0x40] sm:$0xf]  ;;  %v3492_v36 = vld [vmem:[#allocation2 + $0x38] sm:$0xf]  ;;  %v6747_v19 = vld [vmem:[%s9370_s3 + $0x28] sm:$0xff]   ;;  %6480 = vmatprep.subr.bf16.mxu1 %v6746_v37  ;;  %6538 = vmatprep.subr.bf16.mxu0 %v6748_v44 }
 0x2af   :  { %3461 = vst [vmem:[#allocation2 + $0x94] sm:$0x1] %v3460_v30  ;;  %3458 = vst [vmem:[#allocation2 + $0x90] sm:$0xf] %v3457_v45  ;;  %3608 = vrot.lane.b32.xlu1 %v3521_v31, %s6842_s25  ;;  %v3969_v32 = vsel %vm7440_vm13, %v6179_v35, %v3968_v4  ;;  %v3525_v14 = vrot.slane %v3523_v13, 4  ;;  %v3528_v38 = vrot.slane %v3526_v46, 5  ;;  %6481 = vmatpush3.bf16.msra.mxu1 %v6747_v19 }
 0x2b0   :  { %v3532_v48 = vshll.u32 %v3483_v28, 16  ;;  %v4079_v16 = vsel %vm7142_vm4, %v4074_v17, %v4078_v10  ;;  %v6180_v29 = vrot.slane %v3924_v53, 9  ;;  %v3972_v55 = vrot.slane %v3925_v15, 5  ;;  %v3493_v47 = vld [vmem:[#allocation2 + $0x3c] sm:$0x1]  ;;  %v6749_v34 = vld [vmem:[%s9370_s3 + $0x90] sm:$0xff]  }
 0x2b1   :  { %v4039_v56 = vshrl.u32 %v4022_v51, 16  ;;  %4154 = vrot.lane.b32.xlu0 %v4079_v16, %s6842_s25  ;;  %v3529_v21 = vor.u32 %v3528_v38, %v3525_v14  ;;  %v4042_v25 = vshll.u32 %v4022_v51, 16  ;;  %v4048_v58 = vshll.u32 %v4023_v62, 16  ;;  %v4032_v27 = vld [vmem:[#allocation2 + $0x38] sm:$0xf]  ;;  %6539 = vmatpush3.bf16.msra.mxu0 %v6749_v34  ;;  %v6750_v5 = vld [vmem:[%s9370_s3 + $0x70] sm:$0xff]  }
 0x2b2   :  { %v3534_v59 = vrot.slane %v3532_v48, 5  ;;  %v3973_v50 = vsel %vm7440_vm13, %v6180_v29, %v3972_v55  ;;  %v6178_v24 = vrot.slane %v3920_v61, 9  ;;  %v3964_v26 = vrot.slane %v3921_v60, 5  ;;  %v3488_v63 = vld [vmem:[#allocation2 + $0x28] sm:$0xf]  ;;  %6482 = vmatprep.subr.bf16.mxu1 %v6750_v5  ;;  %v6751_v4 = vld [vmem:[%s9370_s3 + $0x30] sm:$0xff]  }
 0x2b3   :  { %v4041_v7 = vrot.slane %v4039_v56, 4  ;;  %3748 = vrot.lane.b32.xlu1 %v3725_v33, %s6842_s25  ;;  %v3530_v6 = vrot.slane %v3529_v21, 4  ;;  %v4044_v39 = vrot.slane %v4042_v25, 5  ;;  %v8607_v42 = vrot.slane %v4048_v58, 5  ;;  %v4033_v9 = vld [vmem:[#allocation2 + $0x3c] sm:$0x1]  ;;  %6483 = vmatpush3.bf16.msra.mxu1 %v6751_v4 }
 0x2b4   :  { %v6177_v2 = vrot.slane %v3918_v52, 9  ;;  %v8611_v0 = vsel %vm7440_vm13, %v6178_v24, %v3964_v26  ;;  %v3960_v43 = vrot.slane %v3919_v40, 5  ;;  %v3593_v11 = vshrl.u32 %v3492_v36, 16  ;;  %v3723_v12 = vld [vmem:[#allocation2 + $0x30] sm:$0xf]  ;;  %v6752_v54 = vld [vmem:[%s9370_s3 + $0xd8] sm:$0xff]  }
 0x2b5   :  { %v3596_v20 = vshll.u32 %v3492_v36, 16  ;;  %3986 = vrot.lane.b32.xlu0 %v3969_v32, %s6842_s25  ;;  %v3535_v35 = vsel %vm7142_vm4, %v3530_v6, %v3534_v59  ;;  %v4045_v28 = vor.u32 %v4044_v39, %v4041_v7  ;;  %v3602_v51 = vshll.u32 %v3493_v47, 16  ;;  %v3489_v1 = vld [vmem:[#allocation2 + $0x2c] sm:$0x1]  ;;  %v3490_v10 = vld [vmem:[#allocation2 + $0x30] sm:$0xf]  ;;  %6540 = vmatprep.subr.bf16.mxu0 %v6752_v54 }
 0x2b6   :  { %v4109_v22 = vshrl.u32 %v4032_v27, 16  ;;  %v8621_v3 = vsel %vm7440_vm13, %v6177_v2, %v3960_v43  ;;  %v3595_v8 = vrot.slane %v3593_v11, 4  ;;  %v4112_v62 = vshll.u32 %v4032_v27, 16  ;;  %v3491_v52 = vld [vmem:[#allocation2 + $0x34] sm:$0x1]  ;;  %v6753_v40 = vld [vmem:[%s9370_s3 + $0x98] sm:$0xff]  }
 0x2b7   :  { %v3598_v53 = vrot.slane %v3596_v20, 5  ;;  %3744 = vrot.lane.b32.xlu1 %v3723_v12, %s6842_s25  ;;  %v4046_v13 = vrot.slane %v4045_v28, 4  ;;  %v8627_v46 = vrot.slane %v3602_v51, 5  ;;  %v4118_v45 = vshll.u32 %v4033_v9, 16  ;;  %v4028_v60 = vld [vmem:[#allocation2 + $0x28] sm:$0xf]  ;;  %6541 = vmatpush3.bf16.msra.mxu0 %v6753_v40 }
 0x2b8   :  { %v4111_v15 = vrot.slane %v4109_v22, 4  ;;  %v4114_v31 = vrot.slane %v4112_v62, 5  ;;  %v3565_v17 = vshrl.u32 %v3488_v63, 16  ;;  %v3568_v61 = vshll.u32 %v3488_v63, 16  ;;  %v4029_v55 = vld [vmem:[#allocation2 + $0x2c] sm:$0x1] }
 0x2b9   :  { %v3599_v30 = vor.u32 %v3598_v53, %v3595_v8  ;;  %3610 = vrot.lane.b32.xlu0 %v3535_v35, %s6842_s25  ;;  %v4051_v32 = vsel %vm7142_vm4, %v4046_v13, %v8607_v42  ;;  %v8636_v14 = vrot.slane %v4118_v45, 5  ;;  %v3574_v38 = vshll.u32 %v3489_v1, 16  ;;  %v6754_v56 = vld [vmem:[%s9370_s3 + $0x78] sm:$0xff]   ;;  %v4030_v25 = vld [vmem:[#allocation2 + $0x30] sm:$0xf]  ;;  %v6756_v28 = vld [vmem:[%s9370_s3 + $0xe0] sm:$0xff]  }
 0x2ba   :  { %v3579_v48 = vshrl.u32 %v3490_v10, 16  ;;  %v4115_v16 = vor.u32 %v4114_v31, %v4111_v15  ;;  %v3567_v33 = vrot.slane %v3565_v17, 4  ;;  %v3570_v29 = vrot.slane %v3568_v61, 5  ;;  %v4031_v24 = vld [vmem:[#allocation2 + $0x34] sm:$0x1]  ;;  %6484 = vmatprep.subr.bf16.mxu1 %v6754_v56  ;;  %v6755_v11 = vld [vmem:[%s9370_s3 + $0x38] sm:$0xff]   ;;  %6542 = vmatprep.subr.bf16.mxu0 %v6756_v28 }
 0x2bb   :  { %v3600_v37 = vrot.slane %v3599_v30, 4  ;;  %3988 = vrot.lane.b32.xlu1 %v3973_v50, %s6842_s25  ;;  %v8645_v36 = vrot.slane %v3574_v38, 5  ;;  %v3582_v21 = vshll.u32 %v3490_v10, 16  ;;  %v3588_v59 = vshll.u32 %v3491_v52, 16  ;;  %v4286_v6 = vld [vmem:[#allocation2 + $0x70] sm:$0xf]  ;;  %6485 = vmatpush3.bf16.msra.mxu1 %v6755_v11 }
 0x2bc   :  { %v3581_v19 = vrot.slane %v3579_v48, 4  ;;  %v8650_v47 = vrot.slane %v4115_v16, 4  ;;  %v3571_v44 = vor.u32 %v3570_v29, %v3567_v33  ;;  %v4081_v7 = vshrl.u32 %v4028_v60, 16  ;;  %v4287_v43 = vld [vmem:[#allocation2 + $0x74] sm:$0x1] }
 0x2bd   :  { %v3605_v58 = vsel %vm7142_vm4, %v3600_v37, %v8627_v46  ;;  %4150 = vrot.lane.b32.xlu0 %v4051_v32, %s6842_s25  ;;  %v3584_v50 = vrot.slane %v3582_v21, 5  ;;  %v8653_v26 = vrot.slane %v3588_v59, 5  ;;  %v4084_v27 = vshll.u32 %v4028_v60, 16  ;;  %v4284_v35 = vld [vmem:[#allocation2 + $0x68] sm:$0xf] }
 0x2be   :  { %v4090_v34 = vshll.u32 %v4029_v55, 16  ;;  %v4121_v39 = vsel %vm7142_vm4, %v8650_v47, %v8636_v14  ;;  %v8659_v42 = vrot.slane %v3571_v44, 4  ;;  %v4083_v2 = vrot.slane %v4081_v7, 4  ;;  %v4285_v13 = vld [vmem:[#allocation2 + $0x6c] sm:$0x1] }
 0x2bf   :  { %v4095_v63 = vshrl.u32 %v4030_v25, 16  ;;  %3984 = vrot.lane.b32.xlu1 %v8611_v0, %s6842_s25  ;;  %v3585_v20 = vor.u32 %v3584_v50, %v3581_v19  ;;  %v4086_v9 = vrot.slane %v4084_v27, 5  ;;  %v4098_v12 = vshll.u32 %v4030_v25, 16  ;;  %v6760_v0 = vld [vmem:[%s9370_s3 + $0xa0] sm:$0xff]   ;;  %v6761_v46 = vld [vmem:[%s9370_s3 + $0xe8] sm:$0xff]  }
 0x2c0   :  { %v8666_v5 = vrot.slane %v4090_v34, 5  ;;  %v3577_v51 = vsel %vm7142_vm4, %v8659_v42, %v8645_v36  ;;  %v4104_v1 = vshll.u32 %v4031_v24, 16  ;;  %v4351_v8 = vshrl.u32 %v4286_v6, 16  ;;  %v4282_v17 = vld [vmem:[#allocation2 + $0x60] sm:$0xf]  ;;  %6543 = vmatpush3.bf16.msra.mxu0 %v6760_v0 }
 0x2c1   :  { %v4097_v22 = vrot.slane %v4095_v63, 4  ;;  %3982 = vrot.lane.b32.xlu0 %v8621_v3, %s6842_s25  ;;  %v8680_v53 = vrot.slane %v3585_v20, 4  ;;  %v4087_v62 = vor.u32 %v4086_v9, %v4083_v2  ;;  %v4100_v10 = vrot.slane %v4098_v12, 5  ;;  %v4283_v32 = vld [vmem:[#allocation2 + $0x64] sm:$0x1]  ;;  %6544 = vmatprep.subr.bf16.mxu0 %v6761_v46  ;;  %v6763_v9 = vld [vmem:[%s9370_s3 + $0xf0] sm:$0xff]  }
 0x2c2   :  { %v4354_v4 = vshll.u32 %v4286_v6, 16  ;;  %v8685_v15 = vrot.slane %v4104_v1, 5  ;;  %v4353_v45 = vrot.slane %v4351_v8, 4  ;;  %v4360_v30 = vshll.u32 %v4287_v43, 16  ;;  %v4280_v14 = vld [vmem:[#allocation2 + $0x58] sm:$0xf] }
 0x2c3   :  { %v4337_v31 = vshrl.u32 %v4284_v35, 16  ;;  %3620 = vrot.lane.b32.xlu1 %v3605_v58, %s6842_s25  ;;  %v3591_v3 = vsel %vm7142_vm4, %v8680_v53, %v8653_v26  ;;  %v8692_v61 = vrot.slane %v4087_v62, 4  ;;  %v4101_v52 = vor.u32 %v4100_v10, %v4097_v22  ;;  %v4520_v38 = vld [vmem:[#allocation2 + $0x68] sm:$0xf]  ;;  %v4034_v56 = vld [vmem:[#allocation2 + $0x40] sm:$0xf] }
 0x2c4   :  { %v4356_v54 = vrot.slane %v4354_v4, 5  ;;  %v8694_v48 = vrot.slane %v4360_v30, 5  ;;  %v4340_v40 = vshll.u32 %v4284_v35, 16  ;;  %v4346_v37 = vshll.u32 %v4285_v13, 16  ;;  %v4518_v19 = vld [vmem:[#allocation2 + $0x58] sm:$0xf] }
 0x2c5   :  { %v4339_v60 = vrot.slane %v4337_v31, 4  ;;  %4538 = vrot.lane.b32.xlu0 %v4520_v38, %s6842_s25  ;;  %v4093_v16 = vsel %vm7142_vm4, %v8692_v61, %v8666_v5  ;;  %v8701_v33 = vrot.slane %v4101_v52, 4  ;;  %v4323_v55 = vshrl.u32 %v4282_v17, 16  ;;  %v4281_v47 = vld [vmem:[#allocation2 + $0x5c] sm:$0x1]  ;;  %v6762_v6 = vld [vmem:[%s9370_s3 + $0xa8] sm:$0xff]  }
 0x2c6   :  { %v4357_v29 = vor.u32 %v4356_v54, %v4353_v45  ;;  %v4342_v21 = vrot.slane %v4340_v40, 5  ;;  %v8703_v59 = vrot.slane %v4346_v37, 5  ;;  %v4326_v25 = vshll.u32 %v4282_v17, 16  ;;  %v4035_v44 = vld [vmem:[#allocation2 + $0x44] sm:$0x1]  ;;  %6545 = vmatpush3.bf16.msra.mxu0 %v6762_v6  ;;  %v6764_v8 = vld [vmem:[%s9370_s3 + $0xb0] sm:$0xff]  }
 0x2c7   :  { %v4332_v58 = vshll.u32 %v4283_v32, 16  ;;  %4160 = vrot.lane.b32.xlu1 %v4121_v39, %s6842_s25  ;;  %v4107_v7 = vsel %vm7142_vm4, %v8701_v33, %v8685_v15  ;;  %v4325_v50 = vrot.slane %v4323_v55, 4  ;;  %v4309_v27 = vshrl.u32 %v4280_v14, 16  ;;  %v4710_v34 = vld [vmem:[#allocation2 + $0x58] sm:$0xe]  ;;  %6546 = vmatprep.subr.bf16.mxu0 %v6763_v9 }
 0x2c8   :  { %v8710_v24 = vrot.slane %v4357_v29, 4  ;;  %v4343_v2 = vor.u32 %v4342_v21, %v4339_v60  ;;  %v4328_v63 = vrot.slane %v4326_v25, 5  ;;  %v4312_v11 = vshll.u32 %v4280_v14, 16  ;;  %v4711_v39 = vld [vmem:[#allocation2 + $0x5c] sm:$0x1] }
 0x2c9   :  { %v8715_v43 = vrot.slane %v4332_v58, 5  ;;  %v3465_v20 = vld [vmem:[#allocation2 + $0x18] sm:$0xf]  ;;  %4534 = vrot.lane.b32.xlu0 %v4518_v19, %s6842_s25  ;;  %v4311_v35 = vrot.slane %v4309_v27, 4  ;;  %v4318_v28 = vshll.u32 %v4281_v47, 16  ;;  %v4123_v22 = vshrl.u32 %v4034_v56, 16 }
 0x2ca   :  { %v4363_v12 = vsel %vm7142_vm4, %v8710_v24, %v8694_v48  ;;  %v4292_v1 = vld [vmem:[#allocation2 + $0x88] sm:$0xf]  ;;  %3473 = vst.msk [vmem:[#allocation3 + $0x3c] sm:$0xf] %vm26_vm0, %v3465_v20  ;;  %v8729_v0 = vrot.slane %v4343_v2, 4  ;;  %v4329_v62 = vor.u32 %v4328_v63, %v4325_v50  ;;  %v4314_v10 = vrot.slane %v4312_v11, 5  ;;  %6547 = vmatpush3.bf16.msra.mxu0 %v6764_v8 }
 0x2cb   :  { %v4126_v4 = vshll.u32 %v4034_v56, 16  ;;  %v4293_v13 = vld [vmem:[#allocation2 + $0x8c] sm:$0x1]  ;;  %v4290_v46 = vld [vmem:[#allocation2 + $0x80] sm:$0xf]  ;;  %v6767_v45 = vld [vmem:[%s9370_s3 + $0xf8] sm:$0xff]   ;;  %3616 = vrot.lane.b32.xlu1 %v3577_v51, %s6842_s25 }
 0x2cc   :  { %v8740_v30 = vrot.slane %v4318_v28, 5  ;;  %v4125_v31 = vrot.slane %v4123_v22, 4  ;;  %v4132_v17 = vshll.u32 %v4035_v44, 16  ;;  %v6197_v52 = vrot.slane %v4710_v34, 9  ;;  %v4007_v54 = vld [vmem:[#allocation2 + $0x18] sm:$0xf]  ;;  %6548 = vmatprep.subr.bf16.mxu0 %v6767_v45 }
 0x2cd   :  { %v4349_v32 = vsel %vm7142_vm4, %v8729_v0, %v8703_v59  ;;  %v8746_v14 = vrot.slane %v4329_v62, 4  ;;  %v4315_v38 = vor.u32 %v4314_v10, %v4311_v35  ;;  %v4128_v60 = vrot.slane %v4126_v4, 5  ;;  %4015 = vst.msk [vmem:[#allocation3 + $0x20] sm:$0xf] %vm26_vm0, %v4007_v54  ;;  %v3466_v40 = vld [vmem:[#allocation2 + $0x20] sm:$0xf]  ;;  %3618 = vrot.lane.b32.xlu0 %v3591_v3, %s6842_s25 }
 0x2ce   :  { %v3463_v36 = vld [vmem:[#allocation2 + $0x8] sm:$0xf]  ;;  %v8755_v42 = vrot.slane %v4132_v17, 5  ;;  %v4744_v51 = vrot.slane %v4711_v39, 5  ;;  %v4393_v37 = vshrl.u32 %v4292_v1, 16  ;;  %v4396_v29 = vshll.u32 %v4292_v1, 16 }
 0x2cf   :  { %3474 = vst.msk [vmem:[#allocation3 + $0x50] sm:$0xf] %vm26_vm0, %v3466_v40  ;;  %3471 = vst.msk [vmem:[#allocation3 + $0x14] sm:$0xf] %vm26_vm0, %v3463_v36  ;;  %v4008_v55 = vld [vmem:[#allocation2 + $0x20] sm:$0xf]  ;;  %v4335_v56 = vsel %vm7142_vm4, %v8746_v14, %v8715_v43  ;;  %v4129_v26 = vor.u32 %v4128_v60, %v4125_v31  ;;  %4156 = vrot.lane.b32.xlu1 %v4093_v16, %s6842_s25 }
 0x2d0   :  { %v8763_v19 = vrot.slane %v4315_v38, 4  ;;  %v4402_v53 = vshll.u32 %v4293_v13, 16  ;;  %v4291_v3 = vld [vmem:[#allocation2 + $0x84] sm:$0x1]  ;;  %v4288_v21 = vld [vmem:[#allocation2 + $0x78] sm:$0xf]  ;;  %v8774_v58 = vsel %vm7440_vm13, %v6197_v52, %v4744_v51 }
 0x2d1   :  { %v4822_v25 = vld [vmem:[#allocation2 + $0x60] sm:$0xf]  ;;  %4016 = vst.msk [vmem:[#allocation3 + $0x34] sm:$0xf] %vm26_vm0, %v4008_v55  ;;  %v4395_v47 = vrot.slane %v4393_v37, 4  ;;  %v4398_v44 = vrot.slane %v4396_v29, 5  ;;  %4158 = vrot.lane.b32.xlu0 %v4107_v7, %s6842_s25 }
 0x2d2   :  { %v4379_v50 = vshrl.u32 %v4290_v46, 16  ;;  %v4289_v27 = vld [vmem:[#allocation2 + $0x7c] sm:$0x1]  ;;  %v4521_v6 = vld [vmem:[#allocation2 + $0x70] sm:$0xf]  ;;  %v4321_v2 = vsel %vm7142_vm4, %v8763_v19, %v8740_v30  ;;  %v8783_v5 = vrot.slane %v4129_v26, 4 }
 0x2d3   :  { %v6768_v34 = vld [vmem:[%s9370_s3 + $0xb8] sm:$0xff]   ;;  %v8785_v61 = vrot.slane %v4402_v53, 5  ;;  %v4382_v16 = vshll.u32 %v4290_v46, 16  ;;  %v4823_v63 = vld [vmem:[#allocation2 + $0x64] sm:$0x1]  ;;  %v4399_v20 = vor.u32 %v4398_v44, %v4395_v47  ;;  %v4388_v35 = vshll.u32 %v4291_v3, 16  ;;  %4540 = vrot.lane.b32.xlu1 %v4521_v6, %s6842_s25 }
 0x2d4   :  { %v4714_v11 = vld [vmem:[#allocation2 + $0x68] sm:$0xe]  ;;  %v6772_v39 = vld [vmem:[%s9370_s3 + $0x100] sm:$0xff]   ;;  %v4381_v9 = vrot.slane %v4379_v50, 4  ;;  %v4365_v28 = vshrl.u32 %v4288_v21, 16  ;;  %6549 = vmatpush3.bf16.msra.mxu0 %v6768_v34  ;;  %v4135_v1 = vsel %vm7142_vm4, %v8783_v5, %v8755_v42  ;;  %v4368_v62 = vshll.u32 %v4288_v21, 16 }
 0x2d5   :  { %v4715_v22 = vld [vmem:[#allocation2 + $0x6c] sm:$0x1]  ;;  %v4384_v8 = vrot.slane %v4382_v16, 5  ;;  %v4374_v10 = vshll.u32 %v4289_v27, 16  ;;  %v4712_v4 = vld [vmem:[#allocation2 + $0x60] sm:$0xe]  ;;  %6634 = vmatprep.subr.bf16.mxu1 %v6772_v39 }
 0x2d6   :  { %v4713_v13 = vld [vmem:[#allocation2 + $0x64] sm:$0x1]  ;;  %v4826_v46 = vld [vmem:[#allocation2 + $0x70] sm:$0xf]  ;;  %v8801_v15 = vrot.slane %v4399_v20, 4  ;;  %v8803_v33 = vrot.slane %v4388_v35, 5 }
 0x2d7   :  { %v4367_v7 = vrot.slane %v4365_v28, 4  ;;  %v4839_v45 = vshrl.u32 %v4822_v25, 16  ;;  %v3464_v31 = vld [vmem:[#allocation2 + $0x10] sm:$0xf]  ;;  %v4522_v17 = vld [vmem:[#allocation2 + $0x78] sm:$0xf]  ;;  %v4385_v54 = vor.u32 %v4384_v8, %v4381_v9 }
 0x2d8   :  { %v4519_v52 = vld [vmem:[#allocation2 + $0x60] sm:$0xf]  ;;  %v4370_v38 = vrot.slane %v4368_v62, 5  ;;  %v8805_v60 = vrot.slane %v4374_v10, 5  ;;  %v4842_v40 = vshll.u32 %v4822_v25, 16  ;;  %4542 = vrot.lane.b32.xlu0 %v4522_v17, %s6842_s25  ;;  %v4405_v51 = vsel %vm7142_vm4, %v8801_v15, %v8785_v61 }
 0x2d9   :  { %v4827_v36 = vld [vmem:[#allocation2 + $0x74] sm:$0x1]  ;;  %3472 = vst.msk [vmem:[#allocation3 + $0x28] sm:$0xf] %vm26_vm0, %v3464_v31  ;;  %v4841_v37 = vrot.slane %v4839_v45, 4  ;;  %v4848_v29 = vshll.u32 %v4823_v63, 16  ;;  %4536 = vrot.lane.b32.xlu1 %v4519_v52, %s6842_s25 }
 0x2da   :  { %v6199_v55 = vrot.slane %v4714_v11, 9  ;;  %v4824_v26 = vld [vmem:[#allocation2 + $0x68] sm:$0xf]  ;;  %v8813_v53 = vrot.slane %v4385_v54, 4  ;;  %v4371_v3 = vor.u32 %v4370_v38, %v4367_v7  ;;  %v4844_v21 = vrot.slane %v4842_v40, 5 }
 0x2db   :  { %v4752_v47 = vrot.slane %v4715_v22, 5  ;;  %v4825_v25 = vld [vmem:[#allocation2 + $0x6c] sm:$0x1]  ;;  %v4718_v44 = vld [vmem:[#allocation2 + $0x78] sm:$0xe]  ;;  %v8816_v27 = vrot.slane %v4848_v29, 5 }
 0x2dc   :  { %v4006_v50 = vld [vmem:[#allocation2 + $0x10] sm:$0xf]  ;;  %v6198_v34 = vrot.slane %v4712_v4, 9  ;;  %v4748_v6 = vrot.slane %v4713_v13, 5  ;;  %v4867_v16 = vshrl.u32 %v4826_v46, 16  ;;  %v4391_v63 = vsel %vm7142_vm4, %v8813_v53, %v8803_v33  ;;  %4414 = vrot.lane.b32.xlu0 %v4363_v12, %s6842_s25 }
 0x2dd   :  { %v4719_v39 = vld [vmem:[#allocation2 + $0x7c] sm:$0x1]  ;;  %4014 = vst.msk [vmem:[#allocation3 + $0xc] sm:$0xf] %vm26_vm0, %v4006_v50  ;;  %v8823_v11 = vrot.slane %v4371_v3, 4  ;;  %v4845_v20 = vor.u32 %v4844_v21, %v4841_v37  ;;  %v8827_v9 = vsel %vm7440_vm13, %v6199_v55, %v4752_v47  ;;  %v4870_v62 = vshll.u32 %v4826_v46, 16  ;;  %4412 = vrot.lane.b32.xlu1 %v4349_v32, %s6842_s25 }
 0x2de   :  { %v4716_v35 = vld [vmem:[#allocation2 + $0x70] sm:$0xe]  ;;  %v4717_v28 = vld [vmem:[#allocation2 + $0x74] sm:$0x1]  ;;  %v8837_v22 = vsel %vm7440_vm13, %v6198_v34, %v4748_v6  ;;  %v4869_v8 = vrot.slane %v4867_v16, 4  ;;  %v4876_v10 = vshll.u32 %v4827_v36, 16 }
 0x2df   :  { %v4830_v4 = vld [vmem:[#allocation2 + $0x80] sm:$0xf]  ;;  %v4377_v13 = vsel %vm7142_vm4, %v8823_v11, %v8805_v60  ;;  %v8843_v7 = vrot.slane %v4845_v20, 4  ;;  %v4853_v45 = vshrl.u32 %v4824_v26, 16  ;;  %v4856_v31 = vshll.u32 %v4824_v26, 16 }
 0x2e0   :  { %v4828_v17 = vld [vmem:[#allocation2 + $0x78] sm:$0xf]  ;;  %v4872_v24 = vrot.slane %v4870_v62, 5  ;;  %v8851_v12 = vrot.slane %v4876_v10, 5  ;;  %v4862_v46 = vshll.u32 %v4825_v25, 16  ;;  %v6201_v52 = vrot.slane %v4718_v44, 9  ;;  %4410 = vrot.lane.b32.xlu0 %v4335_v56, %s6842_s25 }
 0x2e1   :  { %v3469_v48 = vld [vmem:[#allocation2 + $0x38] sm:$0xf]  ;;  %v4831_v54 = vld [vmem:[#allocation2 + $0x84] sm:$0x1]  ;;  %v4851_v38 = vsel %vm7142_vm4, %v8843_v7, %v8816_v27  ;;  %v4855_v40 = vrot.slane %v4853_v45, 4  ;;  %v4858_v36 = vrot.slane %v4856_v31, 5  ;;  %4408 = vrot.lane.b32.xlu1 %v4321_v2, %s6842_s25 }
 0x2e2   :  { %3477 = vst.msk [vmem:[#allocation3 + $0x8c] sm:$0xf] %vm26_vm0, %v3469_v48  ;;  %v4760_v37 = vrot.slane %v4719_v39, 5  ;;  %v4829_v29 = vld [vmem:[#allocation2 + $0x7c] sm:$0x1]  ;;  %v4873_v59 = vor.u32 %v4872_v24, %v4869_v8  ;;  %v8864_v0 = vrot.slane %v4862_v46, 5 }
 0x2e3   :  { %v6200_v32 = vrot.slane %v4716_v35, 9  ;;  %v4756_v55 = vrot.slane %v4717_v28, 5  ;;  %v4722_v26 = vld [vmem:[#allocation2 + $0x88] sm:$0xe]  ;;  %v4011_v3 = vld [vmem:[#allocation2 + $0x38] sm:$0xf]  ;;  %v4859_v21 = vor.u32 %v4858_v36, %v4855_v40 }
 0x2e4   :  { %v8868_v47 = vsel %vm7440_vm13, %v6201_v52, %v4760_v37  ;;  %v4895_v25 = vshrl.u32 %v4830_v4, 16  ;;  %v4898_v44 = vshll.u32 %v4830_v4, 16  ;;  %v4723_v50 = vld [vmem:[#allocation2 + $0x8c] sm:$0x1]  ;;  %v3642_v34 = vld [vmem:[#allocation2 + $0x10] sm:$0xe]  ;;  %4162 = vrot.lane.b32.xlu0 %v4135_v1, %s6842_s25 }
 0x2e5   :  { %v3643_v6 = vld [vmem:[#allocation2 + $0x14] sm:$0x1]  ;;  %4019 = vst.msk [vmem:[#allocation3 + $0x70] sm:$0xf] %vm26_vm0, %v4011_v3  ;;  %v3467_v43 = vld [vmem:[#allocation2 + $0x28] sm:$0xf]  ;;  %v8881_v16 = vsel %vm7440_vm13, %v6200_v32, %v4756_v55 }
 0x2e6   :  { %v3468_v14 = vld [vmem:[#allocation2 + $0x30] sm:$0xf]  ;;  %v8877_v56 = vrot.slane %v4873_v59, 4  ;;  %v4904_v39 = vshll.u32 %v4831_v54, 16  ;;  %v4881_v20 = vshrl.u32 %v4828_v17, 16  ;;  %v8885_v62 = vrot.slane %v4859_v21, 4 }
 0x2e7   :  { %v4720_v35 = vld [vmem:[#allocation2 + $0x80] sm:$0xe]  ;;  %3475 = vst.msk [vmem:[#allocation3 + $0x64] sm:$0xf] %vm26_vm0, %v3467_v43  ;;  %3476 = vst.msk [vmem:[#allocation3 + $0x78] sm:$0xf] %vm26_vm0, %v3468_v14 }
 0x2e8   :  { %v4009_v28 = vld [vmem:[#allocation2 + $0x28] sm:$0xf]  ;;  %v4523_v8 = vld [vmem:[#allocation2 + $0x80] sm:$0xf]  ;;  %v4897_v10 = vrot.slane %v4895_v25, 4  ;;  %v4900_v30 = vrot.slane %v4898_v44, 5  ;;  %v4879_v31 = vsel %vm7142_vm4, %v8877_v56, %v8851_v12  ;;  %v4865_v54 = vsel %vm7142_vm4, %v8885_v62, %v8864_v0 }
 0x2e9   :  { %v4884_v19 = vshll.u32 %v4828_v17, 16  ;;  %v3644_v2 = vld [vmem:[#allocation2 + $0x18] sm:$0xe]  ;;  %v3645_v4 = vld [vmem:[#allocation2 + $0x1c] sm:$0x1]  ;;  %v8898_v48 = vrot.slane %v4904_v39, 5  ;;  %4544 = vrot.lane.b32.xlu1 %v4523_v8, %s6842_s25 }
 0x2ea   :  { %4017 = vst.msk [vmem:[#allocation3 + $0x48] sm:$0xf] %vm26_vm0, %v4009_v28  ;;  %v4010_v45 = vld [vmem:[#allocation2 + $0x30] sm:$0xf]  ;;  %v4883_v17 = vrot.slane %v4881_v20, 4  ;;  %v4890_v24 = vshll.u32 %v4829_v29, 16  ;;  %v4901_v42 = vor.u32 %v4900_v30, %v4897_v10 }
 0x2eb   :  { %v4721_v46 = vld [vmem:[#allocation2 + $0x84] sm:$0x1]  ;;  %4018 = vst.msk [vmem:[#allocation3 + $0x5c] sm:$0xf] %vm26_vm0, %v4010_v45  ;;  %v4524_v52 = vld [vmem:[#allocation2 + $0x88] sm:$0xf] }
 0x2ec   :  { %v4886_v5 = vrot.slane %v4884_v19, 5  ;;  %v6203_v1 = vrot.slane %v4722_v26, 9  ;;  %v4834_v40 = vld [vmem:[#allocation2 + $0x90] sm:$0xf]  ;;  %v4835_v36 = vld [vmem:[#allocation2 + $0x94] sm:$0x1]  ;;  %4546 = vrot.lane.b32.xlu0 %v4524_v52, %s6842_s25 }
 0x2ed   :  { %v8906_v37 = vrot.slane %v4890_v24, 5  ;;  %v4768_v59 = vrot.slane %v4723_v50, 5  ;;  %v6167_v29 = vrot.slane %v3642_v34, 9  ;;  %v3680_v32 = vrot.slane %v3643_v6, 5  ;;  %v4832_v55 = vld [vmem:[#allocation2 + $0x88] sm:$0xf]  ;;  %4164 = vrot.lane.b32.xlu1 %v4149_v18, %s6842_s25 }
 0x2ee   :  { %v8908_v3 = vrot.slane %v4901_v42, 4  ;;  %v4887_v21 = vor.u32 %v4886_v5, %v4883_v17  ;;  %v6202_v25 = vrot.slane %v4720_v35, 9  ;;  %v4764_v44 = vrot.slane %v4721_v46, 5  ;;  %v4833_v43 = vld [vmem:[#allocation2 + $0x8c] sm:$0x1] }
 0x2ef   :  { %v3640_v14 = vld [vmem:[#allocation2 + $0x8] sm:$0xe]  ;;  %v8913_v26 = vsel %vm7440_vm13, %v6203_v1, %v4768_v59  ;;  %v3681_v39 = vsel %vm7440_vm13, %v6167_v29, %v3680_v32  ;;  %v6168_v50 = vrot.slane %v3644_v2, 9  ;;  %v3684_v34 = vrot.slane %v3645_v4, 5  ;;  %v3641_v6 = vld [vmem:[#allocation2 + $0xc] sm:$0x1] }
 0x2f0   :  { %v3770_v20 = vld [vmem:[#allocation2 + $0x18] sm:$0xf]  ;;  %v4266_v28 = vld [vmem:[#allocation2 + $0x70] sm:$0xf]  ;;  %v4907_v35 = vsel %vm7142_vm4, %v8908_v3, %v8898_v48  ;;  %v8921_v8 = vrot.slane %v4887_v21, 4  ;;  %v8926_v10 = vsel %vm7440_vm13, %v6202_v25, %v4764_v44  ;;  %v4923_v30 = vshrl.u32 %v4834_v40, 16  ;;  %4774 = vrot.lane.b32.xlu0 %v8774_v58, %s6842_s25 }
 0x2f1   :  { %3712 = vst.msk [vmem:[#allocation3 + $0x2c] sm:$0xf] %vm26_vm0, %v3681_v39  ;;  %v3771_v19 = vld [vmem:[#allocation2 + $0x1c] sm:$0x1]  ;;  %v4724_v2 = vld [vmem:[#allocation2 + $0x90] sm:$0xe]  ;;  %v3685_v17 = vsel %vm7440_vm13, %v6168_v50, %v3684_v34  ;;  %4420 = vrot.lane.b32.xlu1 %v4405_v51, %s6842_s25 }
 0x2f2   :  { %4274 = vst.msk [vmem:[#allocation3 + $0xf0] sm:$0xf] %vm26_vm0, %v4266_v28  ;;  %v4265_v4 = vld [vmem:[#allocation2 + $0x68] sm:$0xf]  ;;  %v4264_v45 = vld [vmem:[#allocation2 + $0x60] sm:$0xf]  ;;  %v4893_v1 = vsel %vm7142_vm4, %v8921_v8, %v8906_v37 }
 0x2f3   :  { %v4926_v24 = vshll.u32 %v4834_v40, 16  ;;  %v4932_v46 = vshll.u32 %v4835_v36, 16  ;;  %v4909_v52 = vshrl.u32 %v4832_v55, 16  ;;  %v4725_v42 = vld [vmem:[#allocation2 + $0x94] sm:$0x1]  ;;  %v4925_v23 = vrot.slane %v4923_v30, 4 }
 0x2f4   :  { %4273 = vst.msk [vmem:[#allocation3 + $0xdc] sm:$0xf] %vm26_vm0, %v4265_v4  ;;  %4272 = vst.msk [vmem:[#allocation3 + $0xc8] sm:$0xf] %vm26_vm0, %v4264_v45  ;;  %v4263_v5 = vld [vmem:[#allocation2 + $0x58] sm:$0xf]  ;;  %4418 = vrot.lane.b32.xlu0 %v4391_v63, %s6842_s25 }
 0x2f5   :  { %3713 = vst.msk [vmem:[#allocation3 + $0x40] sm:$0xf] %vm26_vm0, %v3685_v17  ;;  %v4912_v49 = vshll.u32 %v4832_v55, 16  ;;  %v4918_v18 = vshll.u32 %v4833_v43, 16  ;;  %4271 = vst.msk [vmem:[#allocation3 + $0xb4] sm:$0xf] %vm26_vm0, %v4263_v5  ;;  %4416 = vrot.lane.b32.xlu1 %v4377_v13, %s6842_s25 }
 0x2f6   :  { %v4012_v40 = vld [vmem:[#allocation2 + $0x40] sm:$0xf]  ;;  %v4928_v36 = vrot.slane %v4926_v24, 5  ;;  %v8947_v59 = vrot.slane %v4932_v46, 5  ;;  %v4911_v29 = vrot.slane %v4909_v52, 4  ;;  %v6166_v32 = vrot.slane %v3640_v14, 9 }
 0x2f7   :  { %v3772_v21 = vld [vmem:[#allocation2 + $0x20] sm:$0xf]  ;;  %4020 = vst.msk [vmem:[#allocation3 + $0x84] sm:$0xf] %vm26_vm0, %v4012_v40  ;;  %v4914_v25 = vrot.slane %v4912_v49, 5  ;;  %v8950_v44 = vrot.slane %v4918_v18, 5 }
 0x2f8   :  { %v3676_v39 = vrot.slane %v3641_v6, 5  ;;  %v3811_v55 = vshrl.u32 %v3770_v20, 16  ;;  %v3773_v43 = vld [vmem:[#allocation2 + $0x24] sm:$0x1]  ;;  %v4929_v58 = vor.u32 %v4928_v36, %v4925_v23  ;;  %v3814_v50 = vshll.u32 %v3770_v20, 16  ;;  %4950 = vrot.lane.b32.xlu0 %v4851_v38, %s6842_s25 }
 0x2f9   :  { %v3820_v34 = vshll.u32 %v3771_v19, 16  ;;  %v6204_v14 = vrot.slane %v4724_v2, 9  ;;  %v3766_v28 = vld [vmem:[#allocation2 + $0x8] sm:$0xf]  ;;  %v4915_v30 = vor.u32 %v4914_v25, %v4911_v29  ;;  %v4772_v6 = vrot.slane %v4725_v42, 5 }
 0x2fa   :  { %v3677_v4 = vsel %vm7440_vm13, %v6166_v32, %v3676_v39  ;;  %v3813_v45 = vrot.slane %v3811_v55, 4  ;;  %v3767_v17 = vld [vmem:[#allocation2 + $0xc] sm:$0x1]  ;;  %v4836_v24 = vld [vmem:[#allocation2 + $0x98] sm:$0xf]  ;;  %v8966_v61 = vrot.slane %v4929_v58, 4 }
 0x2fb   :  { %3711 = vst.msk [vmem:[#allocation3 + $0x18] sm:$0xf] %vm26_vm0, %v3677_v4  ;;  %v3816_v15 = vrot.slane %v3814_v50, 5  ;;  %v3822_v51 = vrot.slane %v3820_v34, 5  ;;  %v3825_v20 = vshrl.u32 %v3772_v21, 16  ;;  %v8969_v2 = vrot.slane %v4915_v30, 4 }
 0x2fc   :  { %v4837_v19 = vld [vmem:[#allocation2 + $0x9c] sm:$0x1]  ;;  %v8973_v46 = vsel %vm7440_vm13, %v6204_v14, %v4772_v6  ;;  %v3828_v52 = vshll.u32 %v3772_v21, 16  ;;  %v3834_v42 = vshll.u32 %v3773_v43, 16  ;;  %v8975_v5 = vld [vmem:[#allocation2 + $0x10] sm:$0xf]  ;;  %v4935_v53 = vsel %vm7142_vm4, %v8966_v61, %v8947_v59  ;;  %v3739_v6 = vpop.permute.xlu0 %3738  ;;  %4778 = vrot.lane.b32.xlu0 %v8827_v9, %s6842_s25 }
 0x2fd   :  { %v4269_v33 = vld [vmem:[#allocation2 + $0x88] sm:$0xf]  ;;  %v3817_v63 = vor.u32 %v3816_v15, %v3813_v45  ;;  %v3827_v23 = vrot.slane %v3825_v20, 4  ;;  %v3783_v49 = vshrl.u32 %v3766_v28, 16  ;;  %v4268_v18 = vld [vmem:[#allocation2 + $0x80] sm:$0xf]  ;;  %v4921_v29 = vsel %vm7142_vm4, %v8969_v2, %v8950_v44  ;;  %v3741_v20 = vpop.permute.xlu1 %3740 }
 0x2fe   :  { %4277 = vst.msk [vmem:[#allocation3 + $0x12c] sm:$0xf] %vm26_vm0, %v4269_v33  ;;  %v4267_v40 = vld [vmem:[#allocation2 + $0x78] sm:$0xf]  ;;  %v4525_v36 = vld [vmem:[#allocation2 + $0x90] sm:$0xf] }
 0x2ff   :  { %v3830_v60 = vrot.slane %v3828_v52, 5  ;;  %v3836_v11 = vrot.slane %v3834_v42, 5  ;;  %v3786_v13 = vshll.u32 %v3766_v28, 16  ;;  %v3769_v32 = vld [vmem:[#allocation2 + $0x14] sm:$0x1]  ;;  %v3818_v39 = vrot.slane %v3817_v63, 4  ;;  %4548 = vrot.lane.b32.xlu1 %v4525_v36, %s6842_s25 }
 0x300   :  { %v3650_v21 = vld [vmem:[#allocation2 + $0x30] sm:$0xe]  ;;  %4276 = vst.msk [vmem:[#allocation3 + $0x118] sm:$0xf] %vm26_vm0, %v4268_v18  ;;  %4275 = vst.msk [vmem:[#allocation3 + $0x104] sm:$0xf] %vm26_vm0, %v4267_v40  ;;  %v3735_v9 = vpop.permute.xlu0 %3734  ;;  %4954 = vrot.lane.b32.xlu0 %v4879_v31, %s6842_s25 }
 0x301   :  { %v4806_v25 = vld [vmem:[#allocation2 + $0x60] sm:$0xf]  ;;  %v3785_v55 = vrot.slane %v3783_v49, 4  ;;  %v3792_v43 = vshll.u32 %v3767_v17, 16  ;;  %v4937_v58 = vshrl.u32 %v4836_v24, 16  ;;  %v3831_v34 = vor.u32 %v3830_v60, %v3827_v23 }
 0x302   :  { %v3651_v50 = vld [vmem:[#allocation2 + $0x34] sm:$0x1]  ;;  %4814 = vst.msk [vmem:[#allocation3 + $0xac] sm:$0xf] %vm26_vm0, %v4806_v25  ;;  %v3788_v14 = vrot.slane %v3786_v13, 5  ;;  %v4940_v28 = vshll.u32 %v4836_v24, 16  ;;  %v3823_v27 = vsel %vm7142_vm4, %v3818_v39, %v3822_v51 }
 0x303   :  { %v4946_v30 = vshll.u32 %v4837_v19, 16  ;;  %v3646_v4 = vld [vmem:[#allocation2 + $0x20] sm:$0xe]  ;;  %v3647_v45 = vld [vmem:[#allocation2 + $0x24] sm:$0x1]  ;;  %v3794_v7 = vrot.slane %v3792_v43, 5  ;;  %4776 = vrot.lane.b32.xlu1 %v8837_v22, %s6842_s25 }
 0x304   :  { %v4939_v38 = vrot.slane %v4937_v58, 4  ;;  %v3797_v17 = vshrl.u32 %v8975_v5, 16  ;;  %v9005_v15 = vld [vmem:[#allocation2 + $0x38] sm:$0xe]  ;;  %3760 = vst.msk [vmem:[#allocation3 + $0x2c] sm:$0xf] %vm795_vm10, %v3739_v6  ;;  %v3789_v19 = vor.u32 %v3788_v14, %v3785_v55  ;;  %4782 = vrot.lane.b32.xlu0 %v8868_v47, %s6842_s25 }
 0x305   :  { %3904 = vst.msk [vmem:[#allocation3 + $0x30] sm:$0xf] %vm26_vm0, %v3823_v27  ;;  %v3832_v24 = vrot.slane %v3831_v34, 4  ;;  %v4942_v52 = vrot.slane %v4940_v28, 5  ;;  %v9009_v42 = vrot.slane %v4946_v30, 5  ;;  %v3800_v23 = vshll.u32 %v8975_v5, 16 }
 0x306   :  { %v3653_v33 = vld [vmem:[#allocation2 + $0x3c] sm:$0x1]  ;;  %v3778_v63 = vld [vmem:[#allocation2 + $0x38] sm:$0xf]  ;;  %3761 = vst.msk [vmem:[#allocation3 + $0x40] sm:$0xf] %vm795_vm10, %v3741_v20 }
 0x307   :  { %v3799_v51 = vrot.slane %v3797_v17, 4  ;;  %v3806_v49 = vshll.u32 %v3769_v32, 16  ;;  %v6171_v18 = vrot.slane %v3650_v21, 9  ;;  %v3779_v40 = vld [vmem:[#allocation2 + $0x3c] sm:$0x1]  ;;  %v3837_v36 = vsel %vm7142_vm4, %v3832_v24, %v3836_v11  ;;  %v3737_v11 = vpop.permute.xlu1 %3736  ;;  %4952 = vrot.lane.b32.xlu1 %v4865_v54, %s6842_s25  ;;  %v3979_v24 = vpop.permute.xlu0 %3978 }
 0x308   :  { %v3790_v60 = vrot.slane %v3789_v19, 4  ;;  %v4943_v13 = vor.u32 %v4942_v52, %v4939_v38  ;;  %v3696_v25 = vrot.slane %v3651_v50, 5  ;;  %v3648_v39 = vld [vmem:[#allocation2 + $0x28] sm:$0xe]  ;;  %v4808_v55 = vld [vmem:[#allocation2 + $0x70] sm:$0xf]  ;;  %4958 = vrot.lane.b32.xlu0 %v4907_v35, %s6842_s25 }
 0x309   :  { %3905 = vst.msk [vmem:[#allocation3 + $0x44] sm:$0xf] %vm26_vm0, %v3837_v36  ;;  %v3802_v43 = vrot.slane %v3800_v23, 5  ;;  %v3808_v58 = vrot.slane %v3806_v49, 5  ;;  %v6169_v5 = vrot.slane %v3646_v4, 9  ;;  %v3688_v32 = vrot.slane %v3647_v45, 5 }
 0x30a   :  { %4816 = vst.msk [vmem:[#allocation3 + $0xd4] sm:$0xf] %vm26_vm0, %v4808_v55  ;;  %v4807_v21 = vld [vmem:[#allocation2 + $0x68] sm:$0xf]  ;;  %v3795_v50 = vsel %vm7142_vm4, %v3790_v60, %v3794_v7  ;;  %v9024_v34 = vrot.slane %v4943_v13, 4  ;;  %v3697_v22 = vsel %vm7440_vm13, %v6171_v18, %v3696_v25  ;;  %v6172_v14 = vrot.slane %v9005_v15, 9 }
 0x30b   :  { %3758 = vst.msk [vmem:[#allocation3 + $0x4] sm:$0xf] %vm795_vm10, %v3735_v9  ;;  %v3649_v28 = vld [vmem:[#allocation2 + $0x2c] sm:$0x1]  ;;  %v3780_v30 = vld [vmem:[#allocation2 + $0x40] sm:$0xf]  ;;  %v3803_v4 = vor.u32 %v3802_v43, %v3799_v51  ;;  %v3689_v45 = vsel %vm7440_vm13, %v6169_v5, %v3688_v32  ;;  %4780 = vrot.lane.b32.xlu1 %v8881_v16, %s6842_s25 }
 0x30c   :  { %4815 = vst.msk [vmem:[#allocation3 + $0xc0] sm:$0xf] %vm26_vm0, %v4807_v21  ;;  %3902 = vst.msk [vmem:[#allocation3 + $0x8] sm:$0xf] %vm26_vm0, %v3795_v50  ;;  %v3700_v6 = vrot.slane %v3653_v33, 5  ;;  %v3867_v27 = vshrl.u32 %v3778_v63, 16  ;;  %v4949_v12 = vsel %vm7142_vm4, %v9024_v34, %v9009_v42  ;;  %4786 = vrot.lane.b32.xlu0 %v8913_v26, %s6842_s25 }
 0x30d   :  { %3759 = vst.msk [vmem:[#allocation3 + $0x18] sm:$0xf] %vm795_vm10, %v3737_v11  ;;  %v3781_v7 = vld [vmem:[#allocation2 + $0x44] sm:$0x1]  ;;  %v3776_v38 = vld [vmem:[#allocation2 + $0x30] sm:$0xf] }
 0x30e   :  { %3716 = vst.msk [vmem:[#allocation3 + $0x7c] sm:$0xf] %vm26_vm0, %v3697_v22  ;;  %3714 = vst.msk [vmem:[#allocation3 + $0x54] sm:$0xf] %vm26_vm0, %v3689_v45  ;;  %v3870_v56 = vshll.u32 %v3778_v63, 16  ;;  %v3876_v31 = vshll.u32 %v3779_v40, 16  ;;  %v3701_v52 = vsel %vm7440_vm13, %v6172_v14, %v3700_v6 }
 0x30f   :  { %v6170_v17 = vrot.slane %v3648_v39, 9  ;;  %v3777_v15 = vld [vmem:[#allocation2 + $0x34] sm:$0x1]  ;;  %v4810_v20 = vld [vmem:[#allocation2 + $0x80] sm:$0xf]  ;;  %v3804_v19 = vrot.slane %v3803_v4, 4  ;;  %v3981_v39 = vpop.permute.xlu1 %3980  ;;  %4956 = vrot.lane.b32.xlu1 %v4893_v1, %s6842_s25 }
 0x310   :  { %v3869_v33 = vrot.slane %v3867_v27, 4  ;;  %v3692_v51 = vrot.slane %v3649_v28, 5  ;;  %4818 = vst.msk [vmem:[#allocation3 + $0xfc] sm:$0xf] %vm26_vm0, %v4810_v20  ;;  %v4809_v63 = vld [vmem:[#allocation2 + $0x78] sm:$0xf]  ;;  %4962 = vrot.lane.b32.xlu0 %v4935_v53, %s6842_s25 }
 0x311   :  { %4000 = vst.msk [vmem:[#allocation3 + $0x30] sm:$0xf] %vm795_vm10, %v3979_v24  ;;  %v3872_v23 = vrot.slane %v3870_v56, 5  ;;  %v3878_v49 = vrot.slane %v3876_v31, 5  ;;  %v3881_v18 = vshrl.u32 %v3780_v30, 16  ;;  %v3884_v40 = vshll.u32 %v3780_v30, 16 }
 0x312   :  { %3717 = vst.msk [vmem:[#allocation3 + $0x90] sm:$0xf] %vm26_vm0, %v3701_v52  ;;  %v3774_v0 = vld [vmem:[#allocation2 + $0x28] sm:$0xf]  ;;  %4817 = vst.msk [vmem:[#allocation3 + $0xe8] sm:$0xf] %vm26_vm0, %v4809_v63  ;;  %v3809_v62 = vsel %vm7142_vm4, %v3804_v19, %v3808_v58  ;;  %v3693_v54 = vsel %vm7440_vm13, %v6170_v17, %v3692_v51  ;;  %v3975_v58 = vpop.permute.xlu0 %3974 }
 0x313   :  { %v3890_v36 = vshll.u32 %v3781_v7, 16  ;;  %v3853_v60 = vshrl.u32 %v3776_v38, 16  ;;  %v3775_v13 = vld [vmem:[#allocation2 + $0x2c] sm:$0x1]  ;;  %v4442_v25 = vld [vmem:[#allocation2 + $0x60] sm:$0xe]  ;;  %v3873_v55 = vor.u32 %v3872_v23, %v3869_v33  ;;  %v3977_v20 = vpop.permute.xlu1 %3976  ;;  %4784 = vrot.lane.b32.xlu1 %v8926_v10, %s6842_s25 }
 0x314   :  { %3903 = vst.msk [vmem:[#allocation3 + $0x1c] sm:$0xf] %vm26_vm0, %v3809_v62  ;;  %3715 = vst.msk [vmem:[#allocation3 + $0x68] sm:$0xf] %vm26_vm0, %v3693_v54  ;;  %v3883_v9 = vrot.slane %v3881_v18, 4  ;;  %v3886_v43 = vrot.slane %v3884_v40, 5 }
 0x315   :  { %v3856_v5 = vshll.u32 %v3776_v38, 16  ;;  %v4443_v47 = vld [vmem:[#allocation2 + $0x64] sm:$0x1]  ;;  %v4444_v32 = vld [vmem:[#allocation2 + $0x68] sm:$0xe]  ;;  %v3892_v11 = vrot.slane %v3890_v36, 5 }
 0x316   :  { %v4445_v21 = vld [vmem:[#allocation2 + $0x6c] sm:$0x1]  ;;  %4001 = vst.msk [vmem:[#allocation3 + $0x44] sm:$0xf] %vm795_vm10, %v3981_v39  ;;  %v3855_v50 = vrot.slane %v3853_v60, 4  ;;  %v3862_v22 = vshll.u32 %v3777_v15, 16  ;;  %v3887_v4 = vor.u32 %v3886_v43, %v3883_v9  ;;  %v3747_v40 = vpop.permute.xlu0 %3746 }
 0x317   :  { %v3839_v14 = vshrl.u32 %v3774_v0, 16  ;;  %v4446_v28 = vld [vmem:[#allocation2 + $0x70] sm:$0xe]  ;;  %3998 = vst.msk [vmem:[#allocation3 + $0x8] sm:$0xf] %vm795_vm10, %v3975_v58  ;;  %v3874_v30 = vrot.slane %v3873_v55, 4  ;;  %4960 = vrot.lane.b32.xlu1 %v4921_v29, %s6842_s25 }
 0x318   :  { %v3858_v45 = vrot.slane %v3856_v5, 5  ;;  %v3842_v6 = vshll.u32 %v3774_v0, 16  ;;  %v4447_v27 = vld [vmem:[#allocation2 + $0x74] sm:$0x1]  ;;  %v4440_v7 = vld [vmem:[#allocation2 + $0x58] sm:$0xe] }
 0x319   :  { %v3864_v16 = vrot.slane %v3862_v22, 5  ;;  %v3841_v38 = vrot.slane %v3839_v14, 4  ;;  %v3848_v56 = vshll.u32 %v3775_v13, 16  ;;  %v6191_v31 = vrot.slane %v4442_v25, 9  ;;  %v4441_v17 = vld [vmem:[#allocation2 + $0x5c] sm:$0x1] }
 0x31a   :  { %v9076_v15 = vld [vmem:[#allocation2 + $0x78] sm:$0xe]  ;;  %v3879_v24 = vsel %vm7142_vm4, %v3874_v30, %v3878_v49  ;;  %v3888_v19 = vrot.slane %v3887_v4, 4  ;;  %v3859_v52 = vor.u32 %v3858_v45, %v3855_v50  ;;  %v3844_v33 = vrot.slane %v3842_v6, 5  ;;  %v4449_v51 = vld [vmem:[#allocation2 + $0x7c] sm:$0x1]  ;;  %v3743_v22 = vpop.permute.xlu0 %3742 }
 0x31b   :  { %v4450_v63 = vld [vmem:[#allocation2 + $0x80] sm:$0xe]  ;;  %v4451_v23 = vld [vmem:[#allocation2 + $0x84] sm:$0x1]  ;;  %3999 = vst.msk [vmem:[#allocation3 + $0x1c] sm:$0xf] %vm795_vm10, %v3977_v20  ;;  %4788 = vrot.lane.b32.xlu1 %v8973_v46, %s6842_s25 }
 0x31c   :  { %3908 = vst.msk [vmem:[#allocation3 + $0x80] sm:$0xf] %vm26_vm0, %v3879_v24  ;;  %v3850_v48 = vrot.slane %v3848_v56, 5  ;;  %v4480_v3 = vrot.slane %v4443_v47, 5  ;;  %v6192_v35 = vrot.slane %v4444_v32, 9  ;;  %v4484_v49 = vrot.slane %v4445_v21, 5 }
 0x31d   :  { %v4812_v18 = vld [vmem:[#allocation2 + $0x90] sm:$0xf]  ;;  %v3893_v0 = vsel %vm7142_vm4, %v3888_v19, %v3892_v11  ;;  %v3860_v62 = vrot.slane %v3859_v52, 4  ;;  %v3845_v54 = vor.u32 %v3844_v33, %v3841_v38  ;;  %v6193_v36 = vrot.slane %v4446_v28, 9  ;;  %v4566_v60 = vld [vmem:[#allocation2 + $0x58] sm:$0xf] }
 0x31e   :  { %4820 = vst.msk [vmem:[#allocation3 + $0x124] sm:$0xf] %vm26_vm0, %v4812_v18  ;;  %v4811_v37 = vld [vmem:[#allocation2 + $0x88] sm:$0xf]  ;;  %3909 = vst.msk [vmem:[#allocation3 + $0x94] sm:$0xf] %vm26_vm0, %v3893_v0  ;;  %v4481_v8 = vsel %vm7440_vm13, %v6191_v31, %v4480_v3  ;;  %v4485_v1 = vsel %vm7440_vm13, %v6192_v35, %v4484_v49 }
 0x31f   :  { %3764 = vst.msk [vmem:[#allocation3 + $0x7c] sm:$0xf] %vm795_vm10, %v3747_v40  ;;  %v4488_v13 = vrot.slane %v4447_v27, 5  ;;  %v6190_v25 = vrot.slane %v4440_v7, 9  ;;  %v4567_v39 = vld [vmem:[#allocation2 + $0x5c] sm:$0x1]  ;;  %v3865_v9 = vsel %vm7142_vm4, %v3860_v62, %v3864_v16  ;;  %4964 = vrot.lane.b32.xlu1 %v4949_v12, %s6842_s25 }
 0x320   :  { %v4452_v55 = vld [vmem:[#allocation2 + $0x88] sm:$0xe]  ;;  %4819 = vst.msk [vmem:[#allocation3 + $0x110] sm:$0xf] %vm26_vm0, %v4811_v37  ;;  %v3846_v26 = vrot.slane %v3845_v54, 4  ;;  %v4476_v43 = vrot.slane %v4441_v17, 5 }
 0x321   :  { %4512 = vst.msk [vmem:[#allocation3 + $0xcc] sm:$0xf] %vm26_vm0, %v4481_v8  ;;  %4513 = vst.msk [vmem:[#allocation3 + $0xe0] sm:$0xf] %vm26_vm0, %v4485_v1  ;;  %v6194_v5 = vrot.slane %v9076_v15, 9  ;;  %v4489_v32 = vsel %vm7440_vm13, %v6193_v36, %v4488_v13  ;;  %v4492_v21 = vrot.slane %v4449_v51, 5  ;;  %v3613_v1 = vpop.permute.xlu1 %3612 }
 0x322   :  { %v4453_v47 = vld [vmem:[#allocation2 + $0x8c] sm:$0x1]  ;;  %3907 = vst.msk [vmem:[#allocation3 + $0x6c] sm:$0xf] %vm26_vm0, %v3865_v9  ;;  %v6195_v58 = vrot.slane %v4450_v63, 9  ;;  %v4496_v11 = vrot.slane %v4451_v23, 5  ;;  %v3851_v14 = vsel %vm7142_vm4, %v3846_v26, %v3850_v48  ;;  %v4477_v28 = vsel %vm7440_vm13, %v6190_v25, %v4476_v43 }
 0x323   :  { %v4570_v50 = vld [vmem:[#allocation2 + $0x68] sm:$0xf]  ;;  %4514 = vst.msk [vmem:[#allocation3 + $0xf4] sm:$0xf] %vm26_vm0, %v4489_v32  ;;  %v4583_v30 = vshrl.u32 %v4566_v60, 16  ;;  %v4586_v10 = vshll.u32 %v4566_v60, 16  ;;  %v4493_v6 = vsel %vm7440_vm13, %v6194_v5, %v4492_v21 }
 0x324   :  { %v4571_v4 = vld [vmem:[#allocation2 + $0x6c] sm:$0x1]  ;;  %v4568_v45 = vld [vmem:[#allocation2 + $0x60] sm:$0xf]  ;;  %3762 = vst.msk [vmem:[#allocation3 + $0x54] sm:$0xf] %vm795_vm10, %v3743_v22  ;;  %v4497_v27 = vsel %vm7440_vm13, %v6195_v58, %v4496_v11 }
 0x325   :  { %3906 = vst.msk [vmem:[#allocation3 + $0x58] sm:$0xf] %vm26_vm0, %v3851_v14  ;;  %4511 = vst.msk [vmem:[#allocation3 + $0xb8] sm:$0xf] %vm26_vm0, %v4477_v28  ;;  %v4592_v7 = vshll.u32 %v4567_v39, 16  ;;  %v6196_v16 = vrot.slane %v4452_v55, 9 }
 0x326   :  { %4515 = vst.msk [vmem:[#allocation3 + $0x108] sm:$0xf] %vm26_vm0, %v4493_v6  ;;  %4516 = vst.msk [vmem:[#allocation3 + $0x11c] sm:$0xf] %vm26_vm0, %v4497_v27  ;;  %v4585_v59 = vrot.slane %v4583_v30, 4  ;;  %v4588_v61 = vrot.slane %v4586_v10, 5 }
 0x327   :  { %v4500_v53 = vrot.slane %v4453_v47, 5  ;;  %v4611_v38 = vshrl.u32 %v4570_v50, 16  ;;  %v4569_v56 = vld [vmem:[#allocation2 + $0x64] sm:$0x1]  ;;  %v4594_v31 = vrot.slane %v4592_v7, 5  ;;  %v4614_v17 = vshll.u32 %v4570_v50, 16 }
 0x328   :  { %v4620_v15 = vshll.u32 %v4571_v4, 16  ;;  %v4597_v20 = vshrl.u32 %v4568_v45, 16  ;;  %v4574_v24 = vld [vmem:[#allocation2 + $0x78] sm:$0xf]  ;;  %v4589_v19 = vor.u32 %v4588_v61, %v4585_v59  ;;  %v4600_v51 = vshll.u32 %v4568_v45, 16 }
 0x329   :  { %v4501_v52 = vsel %vm7440_vm13, %v6196_v16, %v4500_v53  ;;  %v4613_v33 = vrot.slane %v4611_v38, 4  ;;  %v4575_v63 = vld [vmem:[#allocation2 + $0x7c] sm:$0x1]  ;;  %v4572_v23 = vld [vmem:[#allocation2 + $0x70] sm:$0xf]  ;;  %v4616_v48 = vrot.slane %v4614_v17, 5 }
 0x32a   :  { %4517 = vst.msk [vmem:[#allocation3 + $0x130] sm:$0xf] %vm26_vm0, %v4501_v52  ;;  %v4622_v3 = vrot.slane %v4620_v15, 5  ;;  %v4599_v35 = vrot.slane %v4597_v20, 4  ;;  %v4606_v44 = vshll.u32 %v4569_v56, 16  ;;  %v4590_v49 = vrot.slane %v4589_v19, 4  ;;  %v4153_v19 = vpop.permute.xlu1 %4152 }
 0x32b   :  { %v4573_v2 = vld [vmem:[#allocation2 + $0x74] sm:$0x1]  ;;  %v4182_v29 = vld [vmem:[#allocation2 + $0x10] sm:$0xe]  ;;  %v4602_v18 = vrot.slane %v4600_v51, 5  ;;  %v4639_v40 = vshrl.u32 %v4574_v24, 16  ;;  %v4617_v54 = vor.u32 %v4616_v48, %v4613_v33 }
 0x32c   :  { %v4642_v0 = vshll.u32 %v4574_v24, 16  ;;  %v4183_v62 = vld [vmem:[#allocation2 + $0x14] sm:$0x1]  ;;  %v4608_v36 = vrot.slane %v4606_v44, 5  ;;  %v4648_v60 = vshll.u32 %v4575_v63, 16  ;;  %v4625_v37 = vshrl.u32 %v4572_v23, 16 }
 0x32d   :  { %v4184_v8 = vld [vmem:[#allocation2 + $0x18] sm:$0xe]  ;;  %v4595_v13 = vsel %vm7142_vm4, %v4590_v49, %v4594_v31  ;;  %v4603_v25 = vor.u32 %v4602_v18, %v4599_v35  ;;  %v4641_v39 = vrot.slane %v4639_v40, 4  ;;  %v4185_v9 = vld [vmem:[#allocation2 + $0x1c] sm:$0x1]  ;;  %v4618_v43 = vrot.slane %v4617_v54, 4 }
 0x32e   :  { %v4644_v55 = vrot.slane %v4642_v0, 5  ;;  %v4578_v26 = vld [vmem:[#allocation2 + $0x88] sm:$0xf]  ;;  %3633 = vst.msk [vmem:[#allocation3 + $0x3c] sm:$0xf] %vm795_vm10, %v3613_v1  ;;  %v4650_v46 = vrot.slane %v4648_v60, 5 }
 0x32f   :  { %4702 = vst.msk [vmem:[#allocation3 + $0xa8] sm:$0xf] %vm26_vm0, %v4595_v13  ;;  %v4627_v5 = vrot.slane %v4625_v37, 4  ;;  %v4628_v47 = vshll.u32 %v4572_v23, 16  ;;  %v4579_v32 = vld [vmem:[#allocation2 + $0x8c] sm:$0x1]  ;;  %v4623_v14 = vsel %vm7142_vm4, %v4618_v43, %v4622_v3 }
 0x330   :  { %v4604_v21 = vrot.slane %v4603_v25, 4  ;;  %v4645_v58 = vor.u32 %v4644_v55, %v4641_v39  ;;  %v4634_v11 = vshll.u32 %v4573_v2, 16  ;;  %v6181_v50 = vrot.slane %v4182_v29, 9  ;;  %v4576_v22 = vld [vmem:[#allocation2 + $0x80] sm:$0xf] }
 0x331   :  { %v4630_v28 = vrot.slane %v4628_v47, 5  ;;  %v4216_v30 = vrot.slane %v4183_v62, 5  ;;  %v6182_v10 = vrot.slane %v4184_v8, 9  ;;  %v4577_v4 = vld [vmem:[#allocation2 + $0x84] sm:$0x1]  ;;  %v4220_v16 = vrot.slane %v4185_v9, 5 }
 0x332   :  { %v4186_v45 = vld [vmem:[#allocation2 + $0x20] sm:$0xe]  ;;  %4704 = vst.msk [vmem:[#allocation3 + $0xd0] sm:$0xf] %vm26_vm0, %v4623_v14  ;;  %v4609_v6 = vsel %vm7142_vm4, %v4604_v21, %v4608_v36  ;;  %v4646_v27 = vrot.slane %v4645_v58, 4  ;;  %v4636_v7 = vrot.slane %v4634_v11, 5  ;;  %v3615_v11 = vpop.permute.xlu0 %3614 }
 0x333   :  { %v4187_v59 = vld [vmem:[#allocation2 + $0x24] sm:$0x1]  ;;  %4703 = vst.msk [vmem:[#allocation3 + $0xbc] sm:$0xf] %vm26_vm0, %v4609_v6  ;;  %v4631_v42 = vor.u32 %v4630_v28, %v4627_v5  ;;  %v4217_v34 = vsel %vm7440_vm13, %v6181_v50, %v4216_v30  ;;  %v4667_v12 = vshrl.u32 %v4578_v26, 16  ;;  %v4670_v61 = vshll.u32 %v4578_v26, 16 }
 0x334   :  { %v4188_v53 = vld [vmem:[#allocation2 + $0x28] sm:$0xe]  ;;  %v4189_v38 = vld [vmem:[#allocation2 + $0x2c] sm:$0x1]  ;;  %v4651_v56 = vsel %vm7142_vm4, %v4646_v27, %v4650_v46  ;;  %v4221_v31 = vsel %vm7440_vm13, %v6182_v10, %v4220_v16  ;;  %4254 = vst.msk [vmem:[#allocation3 + $0x10] sm:$0xf] %vm26_vm0, %v4217_v34 }
 0x335   :  { %v4676_v17 = vshll.u32 %v4579_v32, 16  ;;  %v4653_v15 = vshrl.u32 %v4576_v22, 16  ;;  %v4190_v20 = vld [vmem:[#allocation2 + $0x30] sm:$0xe]  ;;  %v4191_v24 = vld [vmem:[#allocation2 + $0x34] sm:$0x1] }
 0x336   :  { %4706 = vst.msk [vmem:[#allocation3 + $0xf8] sm:$0xf] %vm26_vm0, %v4651_v56  ;;  %v4632_v52 = vrot.slane %v4631_v42, 4  ;;  %4255 = vst.msk [vmem:[#allocation3 + $0x24] sm:$0xf] %vm26_vm0, %v4221_v31  ;;  %v4669_v33 = vrot.slane %v4667_v12, 4 }
 0x337   :  { %v4672_v51 = vrot.slane %v4670_v61, 5  ;;  %v4656_v63 = vshll.u32 %v4576_v22, 16  ;;  %v4192_v23 = vld [vmem:[#allocation2 + $0x38] sm:$0xe]  ;;  %4175 = vst.msk [vmem:[#allocation3 + $0x20] sm:$0xf] %vm795_vm10, %v4153_v19 }
 0x338   :  { %v4678_v48 = vrot.slane %v4676_v17, 5  ;;  %v4655_v3 = vrot.slane %v4653_v15, 4  ;;  %v4662_v35 = vshll.u32 %v4577_v4, 16  ;;  %v6183_v44 = vrot.slane %v4186_v45, 9  ;;  %v4193_v2 = vld [vmem:[#allocation2 + $0x3c] sm:$0x1]  ;;  %v3609_v17 = vpop.permute.xlu1 %3608 }
 0x339   :  { %v4637_v29 = vsel %vm7142_vm4, %v4632_v52, %v4636_v7  ;;  %v4673_v49 = vor.u32 %v4672_v51, %v4669_v33  ;;  %v4658_v18 = vrot.slane %v4656_v63, 5  ;;  %v4224_v40 = vrot.slane %v4187_v59, 5  ;;  %v4580_v0 = vld [vmem:[#allocation2 + $0x90] sm:$0xf]  ;;  %v4581_v62 = vld [vmem:[#allocation2 + $0x94] sm:$0x1] }
 0x33a   :  { %4705 = vst.msk [vmem:[#allocation3 + $0xe4] sm:$0xf] %vm26_vm0, %v4637_v29  ;;  %v4664_v54 = vrot.slane %v4662_v35, 5  ;;  %v6184_v36 = vrot.slane %v4188_v53, 9  ;;  %v4228_v60 = vrot.slane %v4189_v38, 5  ;;  %v6185_v37 = vrot.slane %v4190_v20, 9  ;;  %v4155_v35 = vpop.permute.xlu0 %4154 }
 0x33b   :  { %v4194_v8 = vld [vmem:[#allocation2 + $0x40] sm:$0xe]  ;;  %v4195_v1 = vld [vmem:[#allocation2 + $0x44] sm:$0x1]  ;;  %v4674_v13 = vrot.slane %v4673_v49, 4  ;;  %v4659_v25 = vor.u32 %v4658_v18, %v4655_v3  ;;  %v4225_v39 = vsel %vm7440_vm13, %v6183_v44, %v4224_v40  ;;  %v4232_v55 = vrot.slane %v4191_v24, 5 }
 0x33c   :  { %v4982_v9 = vld [vmem:[#allocation2 + $0x60] sm:$0xe]  ;;  %v4983_v26 = vld [vmem:[#allocation2 + $0x64] sm:$0x1]  ;;  %v4984_v43 = vld [vmem:[#allocation2 + $0x68] sm:$0xe]  ;;  %v4229_v46 = vsel %vm7440_vm13, %v6184_v36, %v4228_v60 }
 0x33d   :  { %4256 = vst.msk [vmem:[#allocation3 + $0x38] sm:$0xf] %vm26_vm0, %v4225_v39  ;;  %v6186_v5 = vrot.slane %v4192_v23, 9  ;;  %v4236_v47 = vrot.slane %v4193_v2, 5  ;;  %v4681_v32 = vshrl.u32 %v4580_v0, 16  ;;  %v4679_v50 = vsel %vm7142_vm4, %v4674_v13, %v4678_v48 }
 0x33e   :  { %v4985_v21 = vld [vmem:[#allocation2 + $0x6c] sm:$0x1]  ;;  %v4986_v58 = vld [vmem:[#allocation2 + $0x70] sm:$0xe]  ;;  %v4660_v22 = vrot.slane %v4659_v25, 4  ;;  %v4233_v14 = vsel %vm7440_vm13, %v6185_v37, %v4232_v55  ;;  %v4684_v28 = vshll.u32 %v4580_v0, 16  ;;  %v3987_v41 = vpop.permute.xlu0 %3986 }
 0x33f   :  { %4257 = vst.msk [vmem:[#allocation3 + $0x4c] sm:$0xf] %vm26_vm0, %v4229_v46  ;;  %v4987_v30 = vld [vmem:[#allocation2 + $0x74] sm:$0x1]  ;;  %v4988_v10 = vld [vmem:[#allocation2 + $0x78] sm:$0xe]  ;;  %v4237_v45 = vsel %vm7440_vm13, %v6186_v5, %v4236_v47 }
 0x340   :  { %v4989_v4 = vld [vmem:[#allocation2 + $0x7c] sm:$0x1]  ;;  %3634 = vst.msk [vmem:[#allocation3 + $0x50] sm:$0xf] %vm795_vm10, %v3615_v11  ;;  %v4683_v6 = vrot.slane %v4681_v32, 4  ;;  %v4690_v27 = vshll.u32 %v4581_v62, 16  ;;  %v4665_v16 = vsel %vm7142_vm4, %v4660_v22, %v4664_v54  ;;  %v3749_v54 = vpop.permute.xlu1 %3748 }
 0x341   :  { %4708 = vst.msk [vmem:[#allocation3 + $0x120] sm:$0xf] %vm26_vm0, %v4679_v50  ;;  %4258 = vst.msk [vmem:[#allocation3 + $0x60] sm:$0xf] %vm26_vm0, %v4233_v14  ;;  %v4990_v7 = vld [vmem:[#allocation2 + $0x80] sm:$0xe] }
 0x342   :  { %4259 = vst.msk [vmem:[#allocation3 + $0x74] sm:$0xf] %vm26_vm0, %v4237_v45  ;;  %v4686_v59 = vrot.slane %v4684_v28, 5  ;;  %v6187_v42 = vrot.slane %v4194_v8, 9  ;;  %v4240_v34 = vrot.slane %v4195_v1, 5  ;;  %v4692_v61 = vrot.slane %v4690_v27, 5 }
 0x343   :  { %v4991_v12 = vld [vmem:[#allocation2 + $0x84] sm:$0x1]  ;;  %4707 = vst.msk [vmem:[#allocation3 + $0x10c] sm:$0xf] %vm26_vm0, %v4665_v16  ;;  %v6205_v53 = vrot.slane %v4982_v9, 9  ;;  %v5016_v38 = vrot.slane %v4983_v26, 5  ;;  %v3611_v26 = vpop.permute.xlu0 %3610 }
 0x344   :  { %v6206_v56 = vrot.slane %v4984_v43, 9  ;;  %v4992_v31 = vld [vmem:[#allocation2 + $0x88] sm:$0xe]  ;;  %v4687_v15 = vor.u32 %v4686_v59, %v4683_v6  ;;  %v4241_v20 = vsel %vm7440_vm13, %v6187_v42, %v4240_v34  ;;  %v5020_v24 = vrot.slane %v4985_v21, 5  ;;  %v4993_v52 = vld [vmem:[#allocation2 + $0x8c] sm:$0x1]  ;;  %v3745_v25 = vpop.permute.xlu1 %3744 }
 0x345   :  { %v6207_v19 = vrot.slane %v4986_v58, 9  ;;  %v4994_v33 = vld [vmem:[#allocation2 + $0x90] sm:$0xe]  ;;  %3631 = vst.msk [vmem:[#allocation3 + $0x14] sm:$0xf] %vm795_vm10, %v3609_v17  ;;  %v5017_v51 = vsel %vm7440_vm13, %v6205_v53, %v5016_v38  ;;  %v5024_v63 = vrot.slane %v4987_v30, 5 }
 0x346   :  { %4260 = vst.msk [vmem:[#allocation3 + $0x88] sm:$0xf] %vm26_vm0, %v4241_v20  ;;  %v6208_v23 = vrot.slane %v4988_v10, 9  ;;  %v5028_v48 = vrot.slane %v4989_v4, 5  ;;  %v4995_v3 = vld [vmem:[#allocation2 + $0x94] sm:$0x1]  ;;  %v5021_v2 = vsel %vm7440_vm13, %v6206_v56, %v5020_v24 }
 0x347   :  { %v4688_v44 = vrot.slane %v4687_v15, 4  ;;  %5054 = vst.msk [vmem:[#allocation3 + $0xb0] sm:$0xf] %vm26_vm0, %v5017_v51  ;;  %v6209_v29 = vrot.slane %v4990_v7, 9  ;;  %v5032_v49 = vrot.slane %v4991_v12, 5  ;;  %v5025_v18 = vsel %vm7440_vm13, %v6207_v19, %v5024_v63  ;;  %v6779_v9 = vld [vmem:[%s9370_s3 + $0x108] sm:$0xff]   ;;  %v4151_v5 = vpop.permute.xlu0 %4150 }
 0x348   :  { %4176 = vst.msk [vmem:[#allocation3 + $0x34] sm:$0xf] %vm795_vm10, %v4155_v35  ;;  %v5029_v40 = vsel %vm7440_vm13, %v6208_v23, %v5028_v48  ;;  %v6210_v0 = vrot.slane %v4992_v31, 9  ;;  %v5036_v62 = vrot.slane %v4993_v52, 5  ;;  %v6211_v37 = vrot.slane %v4994_v33, 9  ;;  %v3989_v57 = vpop.permute.xlu1 %3988  ;;  %v6817_v43 = vld [vmem:[%s9370_s3 + $0x100] sm:$0xff]  }
 0x349   :  { %5055 = vst.msk [vmem:[#allocation3 + $0xc4] sm:$0xf] %vm26_vm0, %v5021_v2  ;;  %v4693_v36 = vsel %vm7142_vm4, %v4688_v44, %v4692_v61  ;;  %5056 = vst.msk [vmem:[#allocation3 + $0xd8] sm:$0xf] %vm26_vm0, %v5025_v18  ;;  %v5033_v60 = vsel %vm7440_vm13, %v6209_v29, %v5032_v49  ;;  %v5040_v8 = vrot.slane %v4995_v3, 5  ;;  %v6785_v46 = vld [vmem:[%s9370_s3 + $0x110] sm:$0xff]  }
 0x34a   :  { %5057 = vst.msk [vmem:[#allocation3 + $0xec] sm:$0xf] %vm26_vm0, %v5029_v40  ;;  %4709 = vst.msk [vmem:[#allocation3 + $0x134] sm:$0xf] %vm26_vm0, %v4693_v36  ;;  %v5037_v1 = vsel %vm7440_vm13, %v6210_v0, %v5036_v62  ;;  %v6759_v55 = vld [vmem:[#allocation3 + $0x4] ss:$20 sps:$4 sm:$0xff]  }
 0x34b   :  { %3765 = vst.msk [vmem:[#allocation3 + $0x90] sm:$0xf] %vm795_vm10, %v3749_v54  ;;  %v5041_v13 = vsel %vm7440_vm13, %v6211_v37, %v5040_v8  ;;  %4004 = vst.msk [vmem:[#allocation3 + $0x80] sm:$0xf] %vm795_vm10, %v3987_v41  ;;  %5661 = vmatprep.mubr.bf16.mxu1 %v6759_v55  ;;  %v6793_v32 = vld [vmem:[%s9370_s3 + $0x118] sm:$0xff]   ;;  %v3983_v21 = vpop.permute.xlu0 %3982  ;;  %v5074_v42 = vld [vmem:[#allocation3 + $0x50] sm:$0xff] }
 0x34c   :  { %5058 = vst.msk [vmem:[#allocation3 + $0x100] sm:$0xf] %vm26_vm0, %v5033_v60  ;;  %5059 = vst.msk [vmem:[#allocation3 + $0x114] sm:$0xf] %vm26_vm0, %v5037_v1  ;;  %v6757_v39 = vld [vmem:[#allocation3] ss:$20 sps:$4 sm:$0xff]   ;;  %v3985_v47 = vpop.permute.xlu1 %3984 }
 0x34d   :  { %5060 = vst.msk [vmem:[#allocation3 + $0x128] sm:$0xf] %vm26_vm0, %v5041_v13  ;;  %5662 = vmatmul.mubr.bf16.vlgmr.msra.gmra.mrb[32].mxu1 %v6757_v39  ;;  %v5071_v11 = vld [vmem:[#allocation3 + $0x3c] sm:$0xff]  ;;  %v6780_v17 = vld [vmem:[#allocation3 + $0x30] ss:$20 sps:$4 sm:$0xff]  }
 0x34e   :  { %3763 = vst.msk [vmem:[#allocation3 + $0x68] sm:$0xf] %vm795_vm10, %v3745_v25  ;;  %3632 = vst.msk [vmem:[#allocation3 + $0x28] sm:$0xf] %vm795_vm10, %v3611_v26  ;;  %6635 = vmatpush3.bf16.msra.mxu1 %v6817_v43  ;;  %v6765_v50 = vld [vmem:[#allocation3 + $0x2c] ss:$20 sps:$4 sm:$0xff]  }
 0x34f   :  { %4005 = vst.msk [vmem:[#allocation3 + $0x94] sm:$0xf] %vm795_vm10, %v3989_v57  ;;  %6636 = vmatprep.subr.bf16.mxu1 %v6779_v9  ;;  %4174 = vst.msk [vmem:[#allocation3 + $0xc] sm:$0xf] %vm795_vm10, %v4151_v5  ;;  %5669 = vmatprep.mubr.bf16.mxu1 %v6765_v50  ;;  %v4539_v28 = vpop.permute.xlu0 %4538  ;;  %v6769_v30 = vld [vmem:[#allocation3 + $0x8] ss:$20 sps:$4 sm:$0xff]  }
 0x350   :  { %4003 = vst.msk [vmem:[#allocation3 + $0x6c] sm:$0xf] %vm795_vm10, %v3985_v47  ;;  %4002 = vst.msk [vmem:[#allocation3 + $0x58] sm:$0xf] %vm795_vm10, %v3983_v21  ;;  %v3621_v14 = vpop.permute.xlu1 %3620 }
 0x351   :  { %3637 = vst.msk [vmem:[#allocation3 + $0x8c] sm:$0xf] %vm795_vm10, %v3621_v14  ;;  %4560 = vst.msk [vmem:[#allocation3 + $0xcc] sm:$0xf] %vm795_vm10, %v4539_v28 }
 0x352   :  { %6637 = vmatpush3.bf16.msra.mxu1 %v6779_v9  ;;  %v6775_v38 = vld [vmem:[#allocation3 + $0x7c] ss:$20 sps:$4 sm:$0xff]  }
 0x353   :  { %6638 = vmatprep.subr.bf16.mxu1 %v6785_v46  ;;  %v4535_v45 = vpop.permute.xlu0 %4534 }
 0x354   :  { %v4161_v4 = vpop.permute.xlu1 %4160  ;;  %4558 = vst.msk [vmem:[#allocation3 + $0xa4] sm:$0xf] %vm795_vm10, %v4535_v45 }
 0x355   :  { %v5068_v58 = vld [vmem:[#allocation3 + $0x28] sm:$0xff]  ;;  %4179 = vst.msk [vmem:[#allocation3 + $0x70] sm:$0xf] %vm795_vm10, %v4161_v4 }
 0x356   :  { %v6219_v22 = vcombine.low %v5068_v58, %v5071_v11  ;;  %6639 = vmatpush3.bf16.msra.mxu1 %v6785_v46  ;;  %v6771_v10 = vld [vmem:[#allocation3 + $0xc] ss:$20 sps:$4 sm:$0xff]   ;;  %v6773_v12 = vld [vmem:[#allocation3 + $0x54] ss:$20 sps:$4 sm:$0xff]  }
 0x357   :  { %6640 = vmatprep.subr.bf16.mxu1 %v6793_v32  ;;  %5758 = vmatprep.mubr.bf16.mxu0 %v6771_v10  ;;  %v3619_v27 = vpop.permute.xlu0 %3618  ;;  %v6790_v13 = vld [vmem:[#allocation3 + $0x80] ss:$20 sps:$4 sm:$0xff]  }
 0x358   :  { %5670 = vmatmul.mubr.bf16.gmra.mrb[36].mxu1 %v6219_v22  ;;  %5759 = vmatmul.mubr.bf16.vlgmr.msra.gmra.mrb[48].mxu0 %v6769_v30  ;;  %v3617_v6 = vpop.permute.xlu1 %3616  ;;  %3636 = vst.msk [vmem:[#allocation3 + $0x78] sm:$0xf] %vm795_vm10, %v3619_v27  ;;  %v5083_v19 = vld [vmem:[#allocation3 + $0x8c] sm:$0xff] }
 0x359   :  { %3635 = vst.msk [vmem:[#allocation3 + $0x64] sm:$0xf] %vm795_vm10, %v3617_v6  ;;  %5677 = vmatprep.mubr.bf16.mxu1 %v6773_v12  ;;  %v6796_v30 = vld [vmem:[#allocation3 + $0x10] ss:$20 sps:$4 sm:$0xff]  }
 0x35a   :  { %6641 = vmatpush3.bf16.msra.mxu1 %v6793_v32 }
 0x35b   :  { %v4159_v16 = vpop.permute.xlu0 %4158  ;;  %v5086_v49 = vld [vmem:[#allocation3 + $0xa0] sm:$0xff] }
 0x35c   :  { %v4157_v7 = vpop.permute.xlu1 %4156  ;;  %4178 = vst.msk [vmem:[#allocation3 + $0x5c] sm:$0xf] %vm795_vm10, %v4159_v16  ;;  %v5078_v23 = vld [vmem:[#allocation3 + $0x6c] sm:$0xff] }
 0x35d   :  { %4177 = vst.msk [vmem:[#allocation3 + $0x48] sm:$0xf] %vm795_vm10, %v4157_v7  ;;  %v6800_v7 = vld [vmem:[#allocation3 + $0x38] ss:$20 sps:$4 sm:$0xff]  }
 0x35f   :  { %v4543_v53 = vpop.permute.xlu0 %4542  ;;  %v5080_v15 = vld [vmem:[#allocation3 + $0x78] sm:$0xff] }
 0x360   :  { %v4541_v59 = vpop.permute.xlu1 %4540  ;;  %v5077_v34 = vld [vmem:[#allocation3 + $0x64] sm:$0xff]  ;;  %4562 = vst.msk [vmem:[#allocation3 + $0xf4] sm:$0xf] %vm795_vm10, %v4543_v53  ;;  %v6229_v33 = vcombine.low %v5080_v15, %v5083_v19  ;;  %v6810_v15 = vld [vmem:[#allocation3 + $0xd8] ss:$20 sps:$4 sm:$0xff]  }
 0x361   :  { %4561 = vst.msk [vmem:[#allocation3 + $0xe0] sm:$0xf] %vm795_vm10, %v4541_v59  ;;  %v6224_v61 = vcombine.low %v5074_v42, %v5077_v34  ;;  %v6801_v59 = vld [vmem:[#allocation3 + $0x60] ss:$20 sps:$4 sm:$0xff]   ;;  %v6805_v53 = vld [vmem:[#allocation3 + $0x88] ss:$20 sps:$4 sm:$0xff]  }
 0x363   :  { %5678 = vmatmul.mubr.bf16.gmra.mrb[40].mxu1 %v6224_v61  ;;  %v4415_v20 = vpop.permute.xlu0 %4414  ;;  %v6781_v24 = vld [vmem:[#allocation3 + $0x5c] ss:$20 sps:$4 sm:$0xff]  }
 0x364   :  { %v4537_v56 = vpop.permute.xlu1 %4536  ;;  %5685 = vmatprep.mubr.bf16.mxu1 %v6775_v38  ;;  %v6777_v31 = vld [vmem:[#allocation3 + $0x34] ss:$20 sps:$4 sm:$0xff]   ;;  %4434 = vst.msk [vmem:[#allocation3 + $0xf0] sm:$0xf] %vm795_vm10, %v4415_v20  ;;  %v5075_v51 = vld [vmem:[#allocation3 + $0x58] sm:$0xff] }
 0x365   :  { %4559 = vst.msk [vmem:[#allocation3 + $0xb8] sm:$0xf] %vm795_vm10, %v4537_v56  ;;  %5766 = vmatprep.mubr.bf16.mxu0 %v6777_v31  ;;  %v6226_v3 = vcombine.low %v5075_v51, %v5078_v23  ;;  %v6806_v38 = vld [vmem:[#allocation3 + $0xb0] ss:$20 sps:$4 sm:$0xff]   ;;  %v6811_v20 = vld [vmem:[#allocation3 + $0x100] ss:$20 sps:$4 sm:$0xff]  }
 0x366   :  { %5767 = vmatmul.mubr.bf16.gmra.mrb[52].mxu0 %v6780_v17 }
 0x367   :  { %5774 = vmatprep.mubr.bf16.mxu0 %v6781_v24  ;;  %v4411_v63 = vpop.permute.xlu0 %4410 }
 0x368   :  { %v4413_v52 = vpop.permute.xlu1 %4412  ;;  %4432 = vst.msk [vmem:[#allocation3 + $0xc8] sm:$0xf] %vm795_vm10, %v4411_v63  ;;  %v6786_v54 = vld [vmem:[#allocation3 + $0xcc] ss:$20 sps:$4 sm:$0xff]  }
 0x369   :  { %4433 = vst.msk [vmem:[#allocation3 + $0xdc] sm:$0xf] %vm795_vm10, %v4413_v52  ;;  %v6815_v52 = vld [vmem:[#allocation3 + $0x128] ss:$20 sps:$4 sm:$0xff]  }
 0x36b   :  { %5686 = vmatmul.mubr.bf16.gmra.mrb[44].mxu1 %v6229_v33  ;;  %v4163_v35 = vpop.permute.xlu0 %4162  ;;  %v5098_v57 = vld [vmem:[#allocation3 + $0xf0] sm:$0xff] }
 0x36c   :  { %v4409_v48 = vpop.permute.xlu1 %4408  ;;  %4180 = vst.msk [vmem:[#allocation3 + $0x84] sm:$0xf] %vm795_vm10, %v4163_v35  ;;  %v6783_v40 = vld [vmem:[#allocation3 + $0xa4] ss:$20 sps:$4 sm:$0xff]  }
 0x36d   :  { %4431 = vst.msk [vmem:[#allocation3 + $0xb4] sm:$0xf] %vm795_vm10, %v4409_v48  ;;  %5693 = vmatprep.mubr.bf16.mxu1 %v6783_v40 }
 0x36e   :  { %5775 = vmatmul.mubr.bf16.gmra.mrb[56].mxu0 %v6226_v3 }
 0x36f   :  { %v4547_v2 = vpop.permute.xlu0 %4546  ;;  %v5092_v60 = vld [vmem:[#allocation3 + $0xc8] sm:$0xff] }
 0x370   :  { %v4545_v44 = vpop.permute.xlu1 %4544  ;;  %4564 = vst.msk [vmem:[#allocation3 + $0x11c] sm:$0xf] %vm795_vm10, %v4547_v2  ;;  %v5095_v8 = vld [vmem:[#allocation3 + $0xdc] sm:$0xff] }
 0x371   :  { %4563 = vst.msk [vmem:[#allocation3 + $0x108] sm:$0xf] %vm795_vm10, %v4545_v44  ;;  %v6239_v25 = vcombine.low %v5092_v60, %v5095_v8 }
 0x373   :  { %v4775_v62 = vpop.permute.xlu0 %4774 }
 0x374   :  { %v4165_v29 = vpop.permute.xlu1 %4164  ;;  %v5089_v18 = vld [vmem:[#allocation3 + $0xb4] sm:$0xff]  ;;  %4798 = vst.msk [vmem:[#allocation3 + $0xa8] sm:$0xf] %vm795_vm10, %v4775_v62 }
 0x375   :  { %4181 = vst.msk [vmem:[#allocation3 + $0x98] sm:$0xf] %vm795_vm10, %v4165_v29  ;;  %v6234_v0 = vcombine.low %v5086_v49, %v5089_v18  ;;  %v9288_v49 = vld [vmem:[%s9371_s4] ss:$0 sm:$0xff]  ;;  %s6844_s4 = smov [#allocation6]  }
 0x376   :  { %s5973_s15 = sshll.u32 %s6844_s4, 4  ;;  %s5974_s15 = int_to_ptr.vmem [resolvable:$true] %s5973_s15 }
 0x377   :  { %5694 = vmatmul.mubr.bf16.gmra.mrb[48].mxu1 %v6234_v0  ;;  %v4419_v37 = vpop.permute.xlu0 %4418  ;;  %s6818_s0 = scalar_lea.vmem %s5974_s15, 2048  ;;  %p6823_p1 = scmp.lt.s32.totalorder %s5974_s15, %s5974_s15 }
 0x378   :  { %v4421_v36 = vpop.permute.xlu1 %4420  ;;  %5701 = vmatprep.mubr.bf16.mxu1 %v6786_v54  ;;  %4436 = vst.msk [vmem:[#allocation3 + $0x118] sm:$0xf] %vm795_vm10, %v4419_v37  ;;  %v6791_v46 = vld [vmem:[#allocation3 + $0xf4] ss:$20 sps:$4 sm:$0xff]   ;;  %p6819_p0 = scmp.ne.s32.totalorder %s5974_s15, %s6818_s0  ;;  %p6824_p2 = scmp.lt.s32.totalorder %s6818_s0, %s6818_s0 }
 0x379   :  { %4437 = vst.msk [vmem:[#allocation3 + $0x12c] sm:$0xf] %vm795_vm10, %v4421_v36 }
 0x37a   :  { %p6825_p3 = por %p6824_p2, %p6823_p1 }
 0x37b   :  { %v4951_v39 = vpop.permute.xlu0 %4950 }
 0x37c   :  { %v4417_v1 = vpop.permute.xlu1 %4416  ;;  %v6788_v41 = vld [vmem:[#allocation3 + $0x84] ss:$20 sps:$4 sm:$0xff]   ;;  %4974 = vst.msk [vmem:[#allocation3 + $0xac] sm:$0xf] %vm795_vm10, %v4951_v39  ;;  %p6826_p4 = pnand %p6825_p3, %p6819_p0 }
 0x37d   :  { %4435 = vst.msk [vmem:[#allocation3 + $0x104] sm:$0xf] %vm795_vm10, %v4417_v1  ;;  %5782 = vmatprep.mubr.bf16.mxu0 %v6788_v41 }
 0x37e   :  { %5783 = vmatmul.mubr.bf16.gmra.mrb[60].mxu0 %v6790_v13 }
 0x37f   :  { %5702 = vmatmul.mubr.bf16.gmra.mrb[52].mxu1 %v6239_v25  ;;  %v4779_v9 = vpop.permute.xlu0 %4778  ;;  %v5104_v50 = vld [vmem:[#allocation3 + $0x118] sm:$0xff] }
 0x380   :  { %v4549_v55 = vpop.permute.xlu1 %4548  ;;  %4800 = vst.msk [vmem:[#allocation3 + $0xd0] sm:$0xf] %vm795_vm10, %v4779_v9  ;;  %5709 = vmatprep.mubr.bf16.mxu1 %v6791_v46 }
 0x381   :  { %4565 = vst.msk [vmem:[#allocation3 + $0x130] sm:$0xf] %vm795_vm10, %v4549_v55 }
 0x383   :  { %v4955_v47 = vpop.permute.xlu0 %4954 }
 0x384   :  { %v4777_v26 = vpop.permute.xlu1 %4776  ;;  %v5101_v43 = vld [vmem:[#allocation3 + $0x104] sm:$0xff]  ;;  %4976 = vst.msk [vmem:[#allocation3 + $0xd4] sm:$0xf] %vm795_vm10, %v4955_v47 }
 0x385   :  { %4799 = vst.msk [vmem:[#allocation3 + $0xbc] sm:$0xf] %vm795_vm10, %v4777_v26  ;;  %v6244_v5 = vcombine.low %v5098_v57, %v5101_v43 }
 0x387   :  { %5710 = vmatmul.mubr.bf16.gmra.mrb[56].mxu1 %v6244_v5  ;;  %v4783_v58 = vpop.permute.xlu0 %4782 }
 0x388   :  { %v4953_v32 = vpop.permute.xlu1 %4952  ;;  %v6794_v21 = vld [vmem:[#allocation3 + $0x11c] ss:$20 sps:$4 sm:$0xff]   ;;  %4802 = vst.msk [vmem:[#allocation3 + $0xf8] sm:$0xf] %vm795_vm10, %v4783_v58 }
 0x389   :  { %4975 = vst.msk [vmem:[#allocation3 + $0xc0] sm:$0xf] %vm795_vm10, %v4953_v32  ;;  %v5107_v11 = vld [vmem:[#allocation3 + $0x12c] sm:$0xff]  ;;  %5717 = vmatprep.mubr.bf16.mxu1 %v6794_v21 }
 0x38a   :  { %v6249_v14 = vcombine.low %v5104_v50, %v5107_v11 }
 0x38b   :  { %v4959_v28 = vpop.permute.xlu0 %4958 }
 0x38c   :  { %v4781_v22 = vpop.permute.xlu1 %4780  ;;  %4978 = vst.msk [vmem:[#allocation3 + $0xfc] sm:$0xf] %vm795_vm10, %v4959_v28  ;;  %v6799_v45 = vld [vmem:[#allocation3 + $0xa8] ss:$20 sps:$4 sm:$0xff]  }
 0x38d   :  { %4801 = vst.msk [vmem:[#allocation3 + $0xe4] sm:$0xf] %vm795_vm10, %v4781_v22 }
 0x38f   :  { %5718 = vmatmul.mubr.bf16.gmra.mrb[60].mxu1 %v6249_v14  ;;  %v4787_v6 = vpop.permute.xlu0 %4786 }
 0x390   :  { %v4957_v10 = vpop.permute.xlu1 %4956  ;;  %6642 = vmatprep.mubr.msk.bf16.mxu1 %vm172_vm5, %v6796_v30  ;;  %v6797_v4 = vld [vmem:[#allocation3 + $0xac] ss:$20 sps:$4 sm:$0xff]   ;;  %4804 = vst.msk [vmem:[#allocation3 + $0x120] sm:$0xf] %vm795_vm10, %v4787_v6 }
 0x391   :  { %4977 = vst.msk [vmem:[#allocation3 + $0xe8] sm:$0xf] %vm795_vm10, %v4957_v10  ;;  %5790 = vmatprep.mubr.bf16.mxu0 %v6797_v4 }
 0x392   :  { %5791 = vmatmul.mubr.bf16.gmra.mrb[64].mxu0 %v6799_v45 }
 0x393   :  { %v4963_v16 = vpop.permute.xlu0 %4962 }
 0x394   :  { %v4785_v27 = vpop.permute.xlu1 %4784  ;;  %4980 = vst.msk [vmem:[#allocation3 + $0x124] sm:$0xf] %vm795_vm10, %v4963_v16  ;;  %v6804_v12 = vld [vmem:[#allocation3 + $0xd0] ss:$20 sps:$4 sm:$0xff]  }
 0x395   :  { %4803 = vst.msk [vmem:[#allocation3 + $0x10c] sm:$0xf] %vm795_vm10, %v4785_v27 }
 0x397   :  { %6643 = vmatmul.mubr.msk.bf16.vlgmr.msra.gmra.mrb[64].mxu1 %vm172_vm5, %v6800_v7 }
 0x398   :  { %v4961_v42 = vpop.permute.xlu1 %4960  ;;  %6646 = vmatprep.mubr.msk.bf16.mxu1 %vm172_vm5, %v6801_v59  ;;  %v6802_v34 = vld [vmem:[#allocation3 + $0xd4] ss:$20 sps:$4 sm:$0xff]  }
 0x399   :  { %4979 = vst.msk [vmem:[#allocation3 + $0x110] sm:$0xf] %vm795_vm10, %v4961_v42  ;;  %5798 = vmatprep.mubr.bf16.mxu0 %v6802_v34 }
 0x39a   :  { %5799 = vmatmul.mubr.bf16.gmra.mrb[68].mxu0 %v6804_v12 }
 0x39c   :  { %v4789_v61 = vpop.permute.xlu1 %4788  ;;  %v6809_v17 = vld [vmem:[#allocation3 + $0xf8] ss:$20 sps:$4 sm:$0xff]  }
 0x39d   :  { %4805 = vst.msk [vmem:[#allocation3 + $0x134] sm:$0xf] %vm795_vm10, %v4789_v61 }
 0x39f   :  { %6647 = vmatmul.mubr.msk.bf16.gmra.mrb[68].mxu1 %vm172_vm5, %v6805_v53 }
 0x3a0   :  { %v4965_v56 = vpop.permute.xlu1 %4964  ;;  %6650 = vmatprep.mubr.msk.bf16.mxu1 %vm172_vm5, %v6806_v38  ;;  %v6807_v31 = vld [vmem:[#allocation3 + $0xfc] ss:$20 sps:$4 sm:$0xff]  }
 0x3a1   :  { %4981 = vst.msk [vmem:[#allocation3 + $0x138] sm:$0xf] %vm795_vm10, %v4965_v56  ;;  %5806 = vmatprep.mubr.bf16.mxu0 %v6807_v31 }
 0x3a2   :  { %5807 = vmatmul.mubr.bf16.gmra.mrb[72].mxu0 %v6809_v17 }
 0x3a4   :  { %v6814_v19 = vld [vmem:[#allocation3 + $0x120] ss:$20 sps:$4 sm:$0xff]  }
 0x3a7   :  { %6651 = vmatmul.mubr.msk.bf16.gmra.mrb[72].mxu1 %vm172_vm5, %v6810_v15 }
 0x3a8   :  { %6654 = vmatprep.mubr.msk.bf16.mxu1 %vm172_vm5, %v6811_v20  ;;  %v6812_v24 = vld [vmem:[#allocation3 + $0x124] ss:$20 sps:$4 sm:$0xff]  }
 0x3a9   :  { %5814 = vmatprep.mubr.bf16.mxu0 %v6812_v24 }
 0x3aa   :  { %5815 = vmatmul.mubr.bf16.gmra.mrb[76].mxu0 %v6814_v19 }
 0x3af   :  { %6655 = vmatmul.mubr.msk.bf16.gmra.mrb[76].mxu1 %vm172_vm5, %v6815_v52 }
 0x420   :  { %v6486_v33 = vpop.f32.mrb[32].mxu1 }
 0x421   :  { %v6487_v51 = vpop.f32.mrb[33].mxu1 }
 0x422   :  { %v6488_v63 = vadd.f32 %v6487_v51, %v6486_v33  ;;  %v6489_v23 = vpop.f32.mrb[34].mxu1 }
 0x423   :  { %v6490_v48 = vpop.f32.mrb[35].mxu1 }
 0x424   :  { %v6491_v3 = vadd.f32 %v6490_v48, %v6489_v23  ;;  %v5664_v54 = vadd.f32 %v6488_v63, %v9288_v49 }
 0x426   :  { %v5667_v8 = vadd.f32 %v6491_v3, %v9288_v49 }
 0x42b   :  { %v6492_v35 = vpop.f32.mrb[36].mxu1  ;;  %v6550_v0 = vpop.f32.mrb[48].mxu0 }
 0x42c   :  { %v6493_v44 = vpop.f32.mrb[37].mxu1  ;;  %v6551_v62 = vpop.f32.mrb[49].mxu0 }
 0x42d   :  { %v6494_v2 = vadd.f32 %v6493_v44, %v6492_v35  ;;  %v6495_v29 = vpop.f32.mrb[38].mxu1  ;;  %v6552_v36 = vadd.f32 %v6551_v62, %v6550_v0  ;;  %v6553_v60 = vpop.f32.mrb[50].mxu0 }
 0x42e   :  { %v6496_v18 = vpop.f32.mrb[39].mxu1  ;;  %v6554_v37 = vpop.f32.mrb[51].mxu0 }
 0x42f   :  { %v6497_v40 = vadd.f32 %v6496_v18, %v6495_v29  ;;  %v6555_v1 = vadd.f32 %v6554_v37, %v6553_v60  ;;  %v9292_v41 = vadd.f32 %v6552_v36, %v5664_v54  ;;  %v5672_v5 = vadd.f32 %v6494_v2, %v9288_v49 }
 0x431   :  { %v9294_v13 = vadd.f32 %v6555_v1, %v5667_v8  ;;  %v5675_v58 = vadd.f32 %v6497_v40, %v9288_v49 }
 0x436   :  { %v6498_v25 = vpop.f32.mrb[40].mxu1 }
 0x437   :  { %v6499_v39 = vpop.f32.mrb[41].mxu1 }
 0x438   :  { %v6500_v55 = vadd.f32 %v6499_v39, %v6498_v25  ;;  %v6501_v9 = vpop.f32.mrb[42].mxu1 }
 0x439   :  { %v6502_v26 = vpop.f32.mrb[43].mxu1  ;;  %v6556_v43 = vpop.f32.mrb[52].mxu0 }
 0x43a   :  { %v6503_v57 = vadd.f32 %v6502_v26, %v6501_v9  ;;  %v6557_v46 = vpop.f32.mrb[53].mxu0  ;;  %v5680_v7 = vadd.f32 %v6500_v55, %v9288_v49 }
 0x43b   :  { %v6558_v47 = vadd.f32 %v6557_v46, %v6556_v43  ;;  %v6559_v32 = vpop.f32.mrb[54].mxu0 }
 0x43c   :  { %v6560_v21 = vpop.f32.mrb[55].mxu0  ;;  %v5683_v34 = vadd.f32 %v6503_v57, %v9288_v49 }
 0x43d   :  { %v6561_v11 = vadd.f32 %v6560_v21, %v6559_v32  ;;  %v5769_v22 = vadd.f32 %v6558_v47, %v5672_v5 }
 0x43e   :  { %v6504_v50 = vpop.f32.mrb[44].mxu1 }
 0x43f   :  { %v6505_v14 = vpop.f32.mrb[45].mxu1  ;;  %v9298_v10 = vadd.f32 %v6561_v11, %v5675_v58 }
 0x440   :  { %v6506_v28 = vadd.f32 %v6505_v14, %v6504_v50  ;;  %v6507_v30 = vpop.f32.mrb[46].mxu1 }
 0x441   :  { %v6508_v4 = vpop.f32.mrb[47].mxu1  ;;  %v6562_v6 = vpop.f32.mrb[56].mxu0 }
 0x442   :  { %v6509_v45 = vadd.f32 %v6508_v4, %v6507_v30  ;;  %v6563_v27 = vpop.f32.mrb[57].mxu0  ;;  %v5688_v51 = vadd.f32 %v6506_v28, %v9288_v49  ;;  %v5922_v30 = vld [vmem:[#allocation4 + $0x10] sm:$0xff] }
 0x443   :  { %v6564_v16 = vadd.f32 %v6563_v27, %v6562_v6  ;;  %v6565_v59 = vpop.f32.mrb[58].mxu0 }
 0x444   :  { %v6566_v42 = vpop.f32.mrb[59].mxu0  ;;  %v5691_v2 = vadd.f32 %v6509_v45, %v9288_v49 }
 0x445   :  { %v6567_v12 = vadd.f32 %v6566_v42, %v6565_v59  ;;  %v9302_v61 = vadd.f32 %v6564_v16, %v5680_v7  ;;  %v5920_v7 = vld [vmem:[#allocation4] sm:$0xff] }
 0x447   :  { %v9304_v53 = vadd.f32 %v6567_v12, %v5683_v34  ;;  %v5923_v34 = vld [vmem:[#allocation4 + $0x18] sm:$0xff] }
 0x44a   :  { %v6510_v38 = vpop.f32.mrb[48].mxu1 }
 0x44b   :  { %v6511_v56 = vpop.f32.mrb[49].mxu1 }
 0x44c   :  { %v6512_v31 = vadd.f32 %v6511_v56, %v6510_v38  ;;  %v6513_v17 = vpop.f32.mrb[50].mxu1  ;;  %v5921_v56 = vld [vmem:[#allocation4 + $0x8] sm:$0xff] }
 0x44d   :  { %v6514_v15 = vpop.f32.mrb[51].mxu1 }
 0x44e   :  { %v6515_v20 = vadd.f32 %v6514_v15, %v6513_v17  ;;  %v5696_v46 = vadd.f32 %v6512_v31, %v9288_v49 }
 0x450   :  { %v5699_v21 = vadd.f32 %v6515_v20, %v9288_v49 }
 0x451   :  { %v6568_v19 = vpop.f32.mrb[60].mxu0 }
 0x452   :  { %v6516_v24 = vpop.f32.mrb[52].mxu1  ;;  %v6569_v33 = vpop.f32.mrb[61].mxu0 }
 0x453   :  { %v6517_v52 = vpop.f32.mrb[53].mxu1  ;;  %v6570_v23 = vadd.f32 %v6569_v33, %v6568_v19  ;;  %v6571_v3 = vpop.f32.mrb[62].mxu0 }
 0x454   :  { %v6518_v63 = vadd.f32 %v6517_v52, %v6516_v24  ;;  %v6519_v48 = vpop.f32.mrb[54].mxu1  ;;  %v6572_v44 = vpop.f32.mrb[63].mxu0 }
 0x455   :  { %v6520_v35 = vpop.f32.mrb[55].mxu1  ;;  %v6573_v18 = vadd.f32 %v6572_v44, %v6571_v3  ;;  %v5785_v40 = vadd.f32 %v6570_v23, %v5688_v51  ;;  %v5926_v23 = vld [vmem:[#allocation4 + $0x30] sm:$0xff]  ;;  %v5924_v44 = vld [vmem:[#allocation4 + $0x20] sm:$0xff] }
 0x456   :  { %v6521_v29 = vadd.f32 %v6520_v35, %v6519_v48 }
 0x457   :  { %v5788_v0 = vadd.f32 %v6573_v18, %v5691_v2 }
 0x458   :  { %v5707_v24 = vadd.f32 %v6521_v29, %v9288_v49 }
 0x45a   :  { %v6522_v62 = vpop.f32.mrb[56].mxu1 }
 0x45b   :  { %v6523_v54 = vpop.f32.mrb[57].mxu1 }
 0x45c   :  { %v9308_v36 = vadd.f32 %v6523_v54, %v6522_v62  ;;  %v6525_v60 = vpop.f32.mrb[58].mxu1  ;;  %v5927_v54 = vld [vmem:[#allocation4 + $0x38] sm:$0xff] }
 0x45d   :  { %v6526_v37 = vpop.f32.mrb[59].mxu1 }
 0x45e   :  { %v9310_v8 = vadd.f32 %v6526_v37, %v6525_v60 }
 0x462   :  { %v6528_v1 = vpop.f32.mrb[60].mxu1 }
 0x463   :  { %v6529_v25 = vpop.f32.mrb[61].mxu1 }
 0x464   :  { %v9312_v39 = vadd.f32 %v6529_v25, %v6528_v1  ;;  %v6531_v55 = vpop.f32.mrb[62].mxu1  ;;  %v5925_v1 = vld [vmem:[#allocation4 + $0x28] sm:$0xff]  ;;  %v5712_v25 = vadd.f32 %v9308_v36, %v9288_v49 }
 0x465   :  { %v6532_v9 = vpop.f32.mrb[63].mxu1  ;;  %v6574_v57 = vpop.f32.mrb[64].mxu0 }
 0x466   :  { %v9314_v26 = vadd.f32 %v6532_v9, %v6531_v55  ;;  %v6575_v43 = vpop.f32.mrb[65].mxu0 }
 0x467   :  { %v6576_v5 = vadd.f32 %v6575_v43, %v6574_v57  ;;  %v6577_v47 = vpop.f32.mrb[66].mxu0 }
 0x468   :  { %v6578_v32 = vpop.f32.mrb[67].mxu0 }
 0x469   :  { %v6579_v58 = vadd.f32 %v6578_v32, %v6577_v47  ;;  %v9318_v50 = vadd.f32 %v6576_v5, %v5696_v46  ;;  %v5930_v32 = vld [vmem:[#allocation4 + $0x50] sm:$0xff] }
 0x46a   :  { %v6644_v11 = vpop.f32.mrb[64].mxu1 }
 0x46b   :  { %v5866_v14 = vadd.f32 %v6644_v11, %v5769_v22  ;;  %v5857_v28 = vpop.f32.mrb[65].mxu1  ;;  %v9321_v6 = vadd.f32 %v6579_v58, %v5699_v21 }
 0x46c   :  { %v5858_v4 = vadd.f32 %v5857_v28, %v9292_v41  ;;  %v6645_v45 = vpop.f32.mrb[66].mxu1  ;;  %v5704_v41 = vadd.f32 %v6518_v63, %v9288_v49 }
 0x46d   :  { %v5938_v27 = vadd.f32 %v5922_v30, %v5866_v14  ;;  %v5869_v16 = vadd.f32 %v6645_v45, %v9298_v10  ;;  %v5860_v59 = vpop.f32.mrb[67].mxu1  ;;  %v6580_v38 = vpop.f32.mrb[68].mxu0  ;;  %v5928_v14 = vld [vmem:[#allocation4 + $0x40] sm:$0xff]  ;;  %v5931_v45 = vld [vmem:[#allocation4 + $0x58] sm:$0xff] }
 0x46e   :  { %v5936_v42 = vadd.f32 %v5920_v7, %v5858_v4  ;;  %v5861_v12 = vadd.f32 %v5860_v59, %v9294_v13  ;;  %v6581_v31 = vpop.f32.mrb[69].mxu0 }
 0x46f   :  { %5954 = vst.msk [vmem:[#allocation6 + $0x10] sm:$0xff] %vm172_vm5, %v5938_v27  ;;  %v5939_v22 = vadd.f32 %v5923_v34, %v5869_v16  ;;  %v6582_v15 = vadd.f32 %v6581_v31, %v6580_v38  ;;  %v6583_v20 = vpop.f32.mrb[70].mxu0  ;;  %v5929_v16 = vld [vmem:[#allocation4 + $0x48] sm:$0xff] }
 0x470   :  { %5952 = vst.msk [vmem:[#allocation6] sm:$0xff] %vm172_vm5, %v5936_v42  ;;  %v5937_v17 = vadd.f32 %v5921_v56, %v5861_v12  ;;  %v6584_v10 = vpop.f32.mrb[71].mxu0  ;;  %v5720_v42 = vadd.f32 %v9312_v39, %v9288_v49 }
 0x471   :  { %5955 = vst.msk [vmem:[#allocation6 + $0x18] sm:$0xff] %vm172_vm5, %v5939_v22  ;;  %v6585_v13 = vadd.f32 %v6584_v10, %v6583_v20  ;;  %v5801_v52 = vadd.f32 %v6582_v15, %v5704_v41  ;;  %v5934_v10 = vld [vmem:[#allocation4 + $0x70] sm:$0xff] }
 0x472   :  { %5953 = vst.msk [vmem:[#allocation6 + $0x8] sm:$0xff] %vm172_vm5, %v5937_v17  ;;  %v6648_v19 = vpop.f32.mrb[68].mxu1 }
 0x473   :  { %v5882_v33 = vadd.f32 %v6648_v19, %v5785_v40  ;;  %v5873_v51 = vpop.f32.mrb[69].mxu1  ;;  %v5804_v3 = vadd.f32 %v6585_v13, %v5707_v24  ;;  %v5932_v24 = vld [vmem:[#allocation4 + $0x60] sm:$0xff] }
 0x474   :  { %v5874_v63 = vadd.f32 %v5873_v51, %v9302_v61  ;;  %v6649_v48 = vpop.f32.mrb[70].mxu1 }
 0x475   :  { %v5942_v35 = vadd.f32 %v5926_v23, %v5882_v33  ;;  %v5885_v2 = vadd.f32 %v6649_v48, %v5788_v0  ;;  %v5876_v18 = vpop.f32.mrb[71].mxu1  ;;  %v6586_v60 = vpop.f32.mrb[72].mxu0 }
 0x476   :  { %v5940_v62 = vadd.f32 %v5924_v44, %v5874_v63  ;;  %v5877_v29 = vadd.f32 %v5876_v18, %v9304_v53  ;;  %v6587_v40 = vpop.f32.mrb[73].mxu0  ;;  %v5715_v53 = vadd.f32 %v9310_v8, %v9288_v49 }
 0x477   :  { %5958 = vst.msk [vmem:[#allocation6 + $0x30] sm:$0xff] %vm172_vm5, %v5942_v35  ;;  %v5943_v37 = vadd.f32 %v5927_v54, %v5885_v2  ;;  %v6588_v55 = vadd.f32 %v6587_v40, %v6586_v60  ;;  %v6589_v9 = vpop.f32.mrb[74].mxu0 }
 0x478   :  { %5956 = vst.msk [vmem:[#allocation6 + $0x20] sm:$0xff] %vm172_vm5, %v5940_v62  ;;  %v5941_v61 = vadd.f32 %v5925_v1, %v5877_v29  ;;  %v6590_v0 = vpop.f32.mrb[75].mxu0 }
 0x479   :  { %5959 = vst.msk [vmem:[#allocation6 + $0x38] sm:$0xff] %vm172_vm5, %v5943_v37  ;;  %v6591_v57 = vadd.f32 %v6590_v0, %v6589_v9  ;;  %v5809_v46 = vadd.f32 %v6588_v55, %v5712_v25 }
 0x47a   :  { %5957 = vst.msk [vmem:[#allocation6 + $0x28] sm:$0xff] %vm172_vm5, %v5941_v61  ;;  %v6652_v43 = vpop.f32.mrb[72].mxu1 }
 0x47b   :  { %v5898_v5 = vadd.f32 %v6652_v43, %v5801_v52  ;;  %v5889_v47 = vpop.f32.mrb[73].mxu1  ;;  %v5812_v58 = vadd.f32 %v6591_v57, %v5715_v53 }
 0x47c   :  { %v5890_v36 = vadd.f32 %v5889_v47, %v9318_v50  ;;  %v6653_v21 = vpop.f32.mrb[74].mxu1 }
 0x47d   :  { %v5946_v11 = vadd.f32 %v5930_v32, %v5898_v5  ;;  %v5901_v28 = vadd.f32 %v6653_v21, %v5804_v3  ;;  %v5892_v30 = vpop.f32.mrb[75].mxu1  ;;  %v6592_v27 = vpop.f32.mrb[76].mxu0 }
 0x47e   :  { %v5944_v4 = vadd.f32 %v5928_v14, %v5890_v36  ;;  %v5893_v8 = vadd.f32 %v5892_v30, %v9321_v6  ;;  %v6593_v59 = vpop.f32.mrb[77].mxu0  ;;  %v5723_v6 = vadd.f32 %v9314_v26, %v9288_v49  ;;  %v5935_v49 = vld [vmem:[#allocation4 + $0x78] sm:$0xff]  ;;  %v5933_v26 = vld [vmem:[#allocation4 + $0x68] sm:$0xff] }
 0x47f   :  { %5962 = vst.msk [vmem:[#allocation6 + $0x50] sm:$0xff] %vm172_vm5, %v5946_v11  ;;  %v5947_v7 = vadd.f32 %v5931_v45, %v5901_v28  ;;  %v6594_v34 = vadd.f32 %v6593_v59, %v6592_v27  ;;  %v6595_v12 = vpop.f32.mrb[78].mxu0 }
 0x480   :  { %5960 = vst.msk [vmem:[#allocation6 + $0x40] sm:$0xff] %vm172_vm5, %v5944_v4  ;;  %v5945_v50 = vadd.f32 %v5929_v16, %v5893_v8  ;;  %v6596_v38 = vpop.f32.mrb[79].mxu0 }
 0x481   :  { %5963 = vst.msk [vmem:[#allocation6 + $0x58] sm:$0xff] %vm172_vm5, %v5947_v7  ;;  %v6597_v22 = vadd.f32 %v6596_v38, %v6595_v12  ;;  %v5817_v56 = vadd.f32 %v6594_v34, %v5720_v42 }
 0x482   :  { %5961 = vst.msk [vmem:[#allocation6 + $0x48] sm:$0xff] %vm172_vm5, %v5945_v50  ;;  %v6656_v31 = vpop.f32.mrb[76].mxu1 }
 0x483   :  { %v5905_v41 = vpop.f32.mrb[77].mxu1  ;;  %v5914_v17 = vadd.f32 %v6656_v31, %v5817_v56  ;;  %v5820_v39 = vadd.f32 %v6597_v22, %v5723_v6 }
 0x484   :  { %v5906_v15 = vadd.f32 %v5905_v41, %v5809_v46  ;;  %v6657_v20 = vpop.f32.mrb[78].mxu1 }
 0x485   :  { %v5908_v13 = vpop.f32.mrb[79].mxu1  ;;  %v5950_v19 = vadd.f32 %v5934_v10, %v5914_v17  ;;  %v5917_v33 = vadd.f32 %v6657_v20, %v5820_v39 }
 0x486   :  { %v5948_v52 = vadd.f32 %v5932_v24, %v5906_v15  ;;  %v5909_v51 = vadd.f32 %v5908_v13, %v5812_v58 }
 0x487   :  { %5966 = vst.msk [vmem:[#allocation6 + $0x70] sm:$0xff] %vm172_vm5, %v5950_v19  ;;  %v5951_v23 = vadd.f32 %v5935_v49, %v5917_v33 }
 0x488   :  { %5964 = vst.msk [vmem:[#allocation6 + $0x60] sm:$0xff] %vm172_vm5, %v5948_v52  ;;  %v5949_v63 = vadd.f32 %v5933_v26, %v5909_v51 }
 0x489   :  { %5967 = vst.msk [vmem:[#allocation6 + $0x78] sm:$0xff] %vm172_vm5, %v5951_v23 }
 0x48a   :  { %5965 = vst.msk [vmem:[#allocation6 + $0x68] sm:$0xff] %vm172_vm5, %v5949_v63 }
 0x48b   :  { %6829 = shalt.err (!%p6826_p4)
}
 0x48c   :  { %s6830_s17 = scalar_lea.hbm %s9373_s6, 2048 }
 0x48d   :  { %p6831_p5 = scmp.ne.s32.totalorder %s9373_s6, %s6830_s17  ;;  %p6834_p6 = scmp.lt.u32.totalorder %s6830_s17, %s9373_s6 }
 0x48f   :  { %p6836_p7 = pnand %p6834_p6, %p6831_p5 }
 0x491   :  { %6839 = shalt.err (!%p6836_p7)
}
 0x492   :  { %s6845_s20 = smov 128   ;;  %s6846_s21 = smov 8  }
 0x493   :  { %5979 = dma.vmem_to_hbm [thread:$0]  %s5974_s15, 2048, %s9373_s6, [#allocation7], %s6845_s20, %s6845_s20, %s6846_s21  }
 0x494   :  { %6840 = dma.done.wait [#allocation7], 2048  }
 0x495   :  { %6841 = vsyncadd [#allocation7], 4294965248 }
 0x496   :  { %5983 = vsyncpa [#allocation7], 1 }

</bundles_post_ra>
